<compile_context>
chip_gen: v6e
topology: v6e:2x2x1
jax: 0.10.0
libtpu: 0.0.40
codegen_flags: <defaults>
</compile_context>

<pallas_src>
import numpy as np
import jax
import jax.numpy as jnp
from jax.experimental import pallas as pl
from jax.experimental.pallas import tpu as pltpu


# ----------------------------- parameter setup (plain JAX / numpy glue) -----------------

def _linear_init(key, fan_in, fan_out):
    """PyTorch nn.Linear default init: U(-1/sqrt(fan_in), 1/sqrt(fan_in)) for W and b."""
    kw, kb = jax.random.split(key)
    bound = 1.0 / np.sqrt(fan_in)
    w = jax.random.uniform(kw, (fan_in, fan_out), jnp.float32, -bound, bound)
    b = jax.random.uniform(kb, (1, fan_out), jnp.float32, -bound, bound)
    return w, b


def compute_energy_np(lgtSGs):
    lgtLambda = np.abs(lgtSGs[:, 3:4])
    lgtMu = np.abs(lgtSGs[:, 4:])
    return lgtMu * 2.0 * np.pi / lgtLambda * (1.0 - np.exp(-2.0 * lgtLambda))


def fibonacci_sphere(samples=1):
    points = []
    phi = np.pi * (3.0 - np.sqrt(5.0))
    for i in range(samples):
        y = 1 - i / float(samples - 1) * 2
        radius = np.sqrt(1 - y * y)
        theta = phi * i
        x = np.cos(theta) * radius
        z = np.sin(theta) * radius
        points.append([x, y, z])
    return np.array(points)


def init_params(seed=0, num_lgt_sgs=32, specular_albedo=0.02, latent_dim=32,
                brdf_encoder_dims=(512, 512, 512, 512), brdf_decoder_dims=(128, 128)):
    key = jax.random.PRNGKey(seed)
    keys = jax.random.split(key, 16)

    # encoder: 3 -> 512 -> 512 -> 512 -> 512 -> 32
    enc = []
    dim = 3
    ki = 0
    for d in brdf_encoder_dims:
        enc.append(_linear_init(keys[ki], dim, d)); ki += 1
        dim = d
    enc.append(_linear_init(keys[ki], dim, latent_dim)); ki += 1

    # decoder: 32 -> 128 -> 128 -> 4
    dec = []
    dim = latent_dim
    for d in brdf_decoder_dims:
        dec.append(_linear_init(keys[ki], dim, d)); ki += 1
        dim = d
    dec.append(_linear_init(keys[ki], dim, 4)); ki += 1

    # Pre-cast weights to bf16 ONCE (stored in params) -> no per-forward astype traffic.
    # Layer-0 encoder weight stays f32: it feeds the VPU broadcast-FMA path, not the MXU.
    enc_bf16 = [(w if li == 0 else w.astype(jnp.bfloat16), b) for li, (w, b) in enumerate(enc)]
    dec_bf16 = [(w.astype(jnp.bfloat16), b) for (w, b) in dec]

    # lgtSGs (32, 7), deterministic replication of the torch init recipe
    rng = np.random.RandomState(seed)
    lgt = rng.randn(num_lgt_sgs, 7).astype(np.float64)
    lgt[:, -2:] = np.repeat(lgt[:, -3:-2], 2, axis=1)
    lgt[:, 3:4] = 10.0 + np.abs(lgt[:, 3:4] * 20.0)
    energy = compute_energy_np(lgt)
    lgt[:, 4:] = np.abs(lgt[:, 4:]) / np.sum(energy, axis=0, keepdims=True) * 2.0 * np.pi * 0.8
    # (the torch code assigns half-sphere lobes then immediately overwrites with full sphere)
    lgt[:, :3] = fibonacci_sphere(num_lgt_sgs).astype(np.float32)
    lgtSGs = jnp.asarray(lgt, dtype=jnp.float32)

    specular_reflectance = jnp.full((1, 1), specular_albedo, dtype=jnp.float32)
    return dict(enc=enc, dec=dec, enc_bf16=enc_bf16, dec_bf16=dec_bf16,
                lgtSGs=lgtSGs, specular_reflectance=specular_reflectance)


# ----------------------------- Pallas kernel ---------------------------------------------

def _brdf_kernel(pts_ref, noise_ref,
                 ew0, eb0,                                   # layer 0: f32 W (VPU FMA path)
                 ew1, eb1, ew2, eb2, ew3, eb3, ew4, eb4,     # encoder: W bf16, b f32
                 dw0, db0, dw1, db1, dw2, db2,               # decoder: W bf16, b f32
                 out_ref):
    bf16 = jnp.bfloat16

    def lrelu(x):
        return jnp.where(x > 0, x, 0.2 * x)

    def mm_act(x_bf16, w_ref, b_ref):
        # bf16 MXU matmul (f32 accumulation), f32 bias add, then pack to bf16 and run
        # the LReLU on packed bf16 (half the VALU vreg-ops / intermediate bytes).
        y = jnp.dot(x_bf16, w_ref[...], preferred_element_type=jnp.float32) + b_ref[...]
        return lrelu(y.astype(bf16))

    def mm_f32(x_bf16, w_ref, b_ref):
        # final layer of each chain keeps an f32 result (kl output / pre-sigmoid logits)
        return jnp.dot(x_bf16, w_ref[...], preferred_element_type=jnp.float32) + b_ref[...]

    w0 = ew0[...]                                             # (3, 512) f32
    b0 = eb0[...]                                             # (1, 512) f32

    def encode(x):
        # first layer as 3 broadcast-FMAs on the VPU (K=3 would waste ~97% of the MXU),
        # then cast once to bf16 and stay bf16 through the hidden layers.
        h = lrelu(x[:, 0:1] * w0[0:1, :]
                  + x[:, 1:2] * w0[1:2, :]
                  + x[:, 2:3] * w0[2:3, :]
                  + b0).astype(bf16)
        h = mm_act(h, ew1, eb1)
        h = mm_act(h, ew2, eb2)
        h = mm_act(h, ew3, eb3)
        return mm_f32(h, ew4, eb4)                            # kl (pre-sigmoid), f32

    def decode(z_bf16):
        d = mm_act(z_bf16, dw0, db0)
        d = mm_act(d, dw1, db1)
        return jax.nn.sigmoid(mm_f32(d, dw2, db2))            # (rows, 4) f32

    def process(lo, hi):
        x = pts_ref[lo:hi, :]                                 # (m, 3) f32
        nz = noise_ref[lo:hi, :]                              # (m, 32) f32
        kl = encode(x)                                        # (m, 32) f32
        lc = jax.nn.sigmoid(kl)                               # brdf_lc
        rand_lc = lc + nz * 0.06
        m = kl.shape[0]
        # fused decoder: decode lc and rand_lc in a single (2m, 32) pass
        z = jnp.concatenate([lc, rand_lc], axis=0).astype(bf16)
        d = decode(z)                                         # (2m, 4) f32
        # lane-dense assembly: one (m, 40) slab -> single full-width store, no masked
        # partial stores at lane offsets 32/36.
        return jnp.concatenate([kl, d[:m], d[m:]], axis=-1)

    tn = pts_ref.shape[0]
    half = tn // 2
    # Two independent half-tile chains in one basic block: the scheduler hides one half's
    # VPU/EUP (LReLU, cast, sigmoid) under the other half's MXU pushes.
    out_a = process(0, half)
    out_b = process(half, tn)
    out_ref[0:half, :] = out_a
    out_ref[half:tn, :] = out_b


def _choose_row_tile(N, tn_max=1024):
    """Row tile: multiple of 16 (two 8-row halves), >=2 grid steps when possible
    (keeps both v7x TensorCores busy), capped so VMEM stays comfortable."""
    half_n = -(-N // 2)                       # ceil(N/2)
    tn = max(16, -(-half_n // 16) * 16)       # round up to multiple of 16
    return min(tn_max, tn)


def envmap_material_forward(points, params, noise_key, tn=None):
    """points: (N, 3) float32. Returns the same dict as the PyTorch forward (unet=False)."""
    N = points.shape[0]
    latent_dim = params["enc_bf16"][-1][0].shape[1]
    out_cols = latent_dim + 8                                 # [kl | brdf | rand_brdf]

    if tn is None:
        tn = _choose_row_tile(N)
    assert tn % 16 == 0, "row tile must be a multiple of 16 (two 8-row halves)"

    # noise for rand_lc (replaces torch.randn(...).cuda(); std 0.06 is applied in-kernel)
    noise = jax.random.normal(noise_key, (N, latent_dim), dtype=jnp.float32)

    # pad rows to a multiple of tn (jnp.pad, no scatter round-trip)
    n_pad = int(np.ceil(N / tn) * tn)
    pad = n_pad - N
    pts_p = jnp.pad(points.astype(jnp.float32), ((0, pad), (0, 0)))
    noise_p = jnp.pad(noise, ((0, pad), (0, 0)))

    # weights are already pre-cast at init (layer-0 W f32, rest bf16, biases f32)
    weight_args = []
    for (w, b) in params["enc_bf16"]:
        weight_args += [w, b]
    for (w, b) in params["dec_bf16"]:
        weight_args += [w, b]

    def row_spec(cols):
        return pl.BlockSpec((tn, cols), lambda i: (i, 0))

    def full_spec(arr):
        return pl.BlockSpec(arr.shape, lambda i: (0, 0))

    in_specs = [row_spec(3), row_spec(latent_dim)] + [full_spec(a) for a in weight_args]
    out_specs = row_spec(out_cols)
    out_shape = jax.ShapeDtypeStruct((n_pad, out_cols), jnp.float32)

    out_p = pl.pallas_call(
        _brdf_kernel,
        out_shape=out_shape,
        grid_spec=pltpu.PrefetchScalarGridSpec(
            num_scalar_prefetch=0,
            grid=(n_pad // tn,),
            in_specs=in_specs,
            out_specs=out_specs,
        ),
        compiler_params=pltpu.CompilerParams(
            dimension_semantics=("parallel",),
            # footprint at tn=1024 with bf16 activations is ~10-12 MB; 32 MiB leaves
            # slack and fits v7x's 64 MiB per-TC VMEM.
            vmem_limit_bytes=32 * 1024 * 1024,
        ),
    )(pts_p, noise_p, *weight_args)

    kl_output = out_p[:N, 0:latent_dim]
    brdf = out_p[:N, latent_dim:latent_dim + 4]
    random_xi_brdf = out_p[:N, latent_dim + 4:latent_dim + 8]

    roughness = brdf[..., 3:] * 0.9 + 0.09
    diffuse_albedo = brdf[..., :3]
    random_xi_roughness = random_xi_brdf[..., 3:] * 0.9 + 0.09
    random_xi_diffuse = random_xi_brdf[..., :3]

    return dict(
        sg_lgtSGs=params["lgtSGs"],
        sg_specular_reflectance=params["specular_reflectance"],
        sg_roughness=roughness,
        sg_diffuse_albedo=diffuse_albedo,
        random_xi_roughness=random_xi_roughness,
        random_xi_diffuse_albedo=random_xi_diffuse,
        kl_output=kl_output,
    )


# ----------------------------- reference (pure JAX, matching precision) ------------------

def _reference_forward(points, params, noise_key):
    """Pure-JAX reference using the same precision scheme as the kernel
    (bf16 matmul inputs and bf16 hidden activations, f32 accumulation / bias / outputs)."""
    bf16 = jnp.bfloat16

    def lrelu(x):
        return jnp.where(x > 0, x, 0.2 * x)

    def mm_act(x, w, b):
        y = jnp.dot(x, w, preferred_element_type=jnp.float32) + b
        return lrelu(y.astype(bf16))

    def mm_f32(x, w, b):
        return jnp.dot(x, w, preferred_element_type=jnp.float32) + b

    enc = params["enc_bf16"]
    dec = params["dec_bf16"]
    latent_dim = enc[-1][0].shape[1]
    noise = jax.random.normal(noise_key, (points.shape[0], latent_dim), dtype=jnp.float32)

    x = points.astype(jnp.float32)
    w0, b0 = enc[0]                                           # f32 layer-0
    h = lrelu(x[:, 0:1] * w0[0:1, :] + x[:, 1:2] * w0[1:2, :]
              + x[:, 2:3] * w0[2:3, :] + b0).astype(bf16)
    for w, b in enc[1:-1]:
        h = mm_act(h, w, b)
    kl = mm_f32(h, *enc[-1])
    lc = jax.nn.sigmoid(kl)

    def decode(z):
        d = z.astype(bf16)
        for w, b in dec[:-1]:
            d = mm_act(d, w, b)
        return jax.nn.sigmoid(mm_f32(d, *dec[-1]))

    brdf = decode(lc)
    rand_brdf = decode(lc + noise * 0.06)
    return kl, brdf, rand_brdf


# ----------------------------- main -------------------------------------------------------

if __name__ == "__main__":
    params = init_params(seed=0)

    key = jax.random.PRNGKey(0)
    k_pts, k_noise = jax.random.split(key)
    N = 200  # small, non-multiple-of-tile to exercise padding + the >=2-grid-step path
    points = jax.random.normal(k_pts, (N, 3), dtype=jnp.float32)

    out = envmap_material_forward(points, params, k_noise)
    jax.block_until_ready(out)

    # sanity-check against pure-JAX reference (same bf16-activation precision scheme);
    # tolerance accounts for bf16 rounding-boundary differences between MXU and XLA dots.
    kl_ref, brdf_ref, rand_ref = _reference_forward(points, params, k_noise)
    np.testing.assert_allclose(np.asarray(out["kl_output"]), np.asarray(kl_ref),
                               rtol=5e-3, atol=5e-3)
    np.testing.assert_allclose(np.asarray(out["sg_diffuse_albedo"]),
                               np.asarray(brdf_ref[..., :3]), rtol=5e-3, atol=5e-3)
    np.testing.assert_allclose(np.asarray(out["sg_roughness"]),
                               np.asarray(brdf_ref[..., 3:] * 0.9 + 0.09),
                               rtol=5e-3, atol=5e-3)
    np.testing.assert_allclose(np.asarray(out["random_xi_diffuse_albedo"]),
                               np.asarray(rand_ref[..., :3]), rtol=5e-3, atol=5e-3)
    np.testing.assert_allclose(np.asarray(out["random_xi_roughness"]),
                               np.asarray(rand_ref[..., 3:] * 0.9 + 0.09),
                               rtol=5e-3, atol=5e-3)

    assert out["sg_lgtSGs"].shape == (32, 7)
    assert out["sg_specular_reflectance"].shape == (1, 1)
    assert out["sg_roughness"].shape == (N, 1)
    assert out["sg_diffuse_albedo"].shape == (N, 3)
    assert out["random_xi_roughness"].shape == (N, 1)
    assert out["random_xi_diffuse_albedo"].shape == (N, 3)
    assert out["kl_output"].shape == (N, 32)

    print("KERNEL_OK")
</pallas_src>

<mosaic_0001>
module attributes {stable_mosaic.version = 11 : i64} {
  func.func @_brdf_kernel(%arg0: i32, %arg1: memref<112x3xf32, #tpu.memory_space<vmem>>, %arg2: memref<112x32xf32, #tpu.memory_space<vmem>>, %arg3: memref<3x512xf32, #tpu.memory_space<vmem>>, %arg4: memref<1x512xf32, #tpu.memory_space<vmem>>, %arg5: memref<512x512xbf16, #tpu.memory_space<vmem>>, %arg6: memref<1x512xf32, #tpu.memory_space<vmem>>, %arg7: memref<512x512xbf16, #tpu.memory_space<vmem>>, %arg8: memref<1x512xf32, #tpu.memory_space<vmem>>, %arg9: memref<512x512xbf16, #tpu.memory_space<vmem>>, %arg10: memref<1x512xf32, #tpu.memory_space<vmem>>, %arg11: memref<512x32xbf16, #tpu.memory_space<vmem>>, %arg12: memref<1x32xf32, #tpu.memory_space<vmem>>, %arg13: memref<32x128xbf16, #tpu.memory_space<vmem>>, %arg14: memref<1x128xf32, #tpu.memory_space<vmem>>, %arg15: memref<128x128xbf16, #tpu.memory_space<vmem>>, %arg16: memref<1x128xf32, #tpu.memory_space<vmem>>, %arg17: memref<128x4xbf16, #tpu.memory_space<vmem>>, %arg18: memref<1x4xf32, #tpu.memory_space<vmem>>, %arg19: memref<112x40xf32, #tpu.memory_space<vmem>>) attributes {dimension_semantics = [#tpu.dimension_semantics<parallel>], iteration_bounds = array<i64: 2>, scalar_prefetch = 0 : i64, scratch_operands = 0 : i64, tpu.core_type = #tpu.core_type<tc>, window_params = [{transform_indices = @transform_0, window_bounds = array<i64: 112, 3>}, {transform_indices = @transform_1, window_bounds = array<i64: 112, 32>}, {pipeline_mode = #tpu.pipeline_mode<synchronous>, transform_indices = @transform_2, window_bounds = array<i64: 3, 512>}, {pipeline_mode = #tpu.pipeline_mode<synchronous>, transform_indices = @transform_3, window_bounds = array<i64: 1, 512>}, {pipeline_mode = #tpu.pipeline_mode<synchronous>, transform_indices = @transform_4, window_bounds = array<i64: 512, 512>}, {pipeline_mode = #tpu.pipeline_mode<synchronous>, transform_indices = @transform_5, window_bounds = array<i64: 1, 512>}, {pipeline_mode = #tpu.pipeline_mode<synchronous>, transform_indices = @transform_6, window_bounds = array<i64: 512, 512>}, {pipeline_mode = #tpu.pipeline_mode<synchronous>, transform_indices = @transform_7, window_bounds = array<i64: 1, 512>}, {pipeline_mode = #tpu.pipeline_mode<synchronous>, transform_indices = @transform_8, window_bounds = array<i64: 512, 512>}, {pipeline_mode = #tpu.pipeline_mode<synchronous>, transform_indices = @transform_9, window_bounds = array<i64: 1, 512>}, {pipeline_mode = #tpu.pipeline_mode<synchronous>, transform_indices = @transform_10, window_bounds = array<i64: 512, 32>}, {pipeline_mode = #tpu.pipeline_mode<synchronous>, transform_indices = @transform_11, window_bounds = array<i64: 1, 32>}, {pipeline_mode = #tpu.pipeline_mode<synchronous>, transform_indices = @transform_12, window_bounds = array<i64: 32, 128>}, {pipeline_mode = #tpu.pipeline_mode<synchronous>, transform_indices = @transform_13, window_bounds = array<i64: 1, 128>}, {pipeline_mode = #tpu.pipeline_mode<synchronous>, transform_indices = @transform_14, window_bounds = array<i64: 128, 128>}, {pipeline_mode = #tpu.pipeline_mode<synchronous>, transform_indices = @transform_15, window_bounds = array<i64: 1, 128>}, {pipeline_mode = #tpu.pipeline_mode<synchronous>, transform_indices = @transform_16, window_bounds = array<i64: 128, 4>}, {pipeline_mode = #tpu.pipeline_mode<synchronous>, transform_indices = @transform_17, window_bounds = array<i64: 1, 4>}, {transform_indices = @transform_18, window_bounds = array<i64: 112, 40>}]} {
    %c0 = arith.constant 0 : index
    %c0_0 = arith.constant 0 : index
    %0 = vector.load %arg3[%c0, %c0_0] : memref<3x512xf32, #tpu.memory_space<vmem>>, vector<3x512xf32>
    %c0_1 = arith.constant 0 : index
    %c0_2 = arith.constant 0 : index
    %1 = vector.load %arg4[%c0_1, %c0_2] : memref<1x512xf32, #tpu.memory_space<vmem>>, vector<1x512xf32>
    %c0_3 = arith.constant 0 : index
    %c0_4 = arith.constant 0 : index
    %2 = vector.load %arg1[%c0_3, %c0_4] : memref<112x3xf32, #tpu.memory_space<vmem>>, vector<56x3xf32>
    %c0_5 = arith.constant 0 : index
    %c0_6 = arith.constant 0 : index
    %3 = vector.load %arg2[%c0_5, %c0_6] : memref<112x32xf32, #tpu.memory_space<vmem>>, vector<56x32xf32>
    %4 = vector.extract_strided_slice %2 {offsets = [0, 0], sizes = [56, 1], strides = [1, 1]} : vector<56x3xf32> to vector<56x1xf32>
    %5 = vector.extract_strided_slice %0 {offsets = [0, 0], sizes = [1, 512], strides = [1, 1]} : vector<3x512xf32> to vector<1x512xf32>
    %6 = vector.broadcast %4 : vector<56x1xf32> to vector<56x512xf32>
    %7 = vector.broadcast %5 : vector<1x512xf32> to vector<56x512xf32>
    %8 = arith.mulf %6, %7 : vector<56x512xf32>
    %9 = vector.extract_strided_slice %2 {offsets = [0, 1], sizes = [56, 1], strides = [1, 1]} : vector<56x3xf32> to vector<56x1xf32>
    %10 = vector.extract_strided_slice %0 {offsets = [1, 0], sizes = [1, 512], strides = [1, 1]} : vector<3x512xf32> to vector<1x512xf32>
    %11 = vector.broadcast %9 : vector<56x1xf32> to vector<56x512xf32>
    %12 = vector.broadcast %10 : vector<1x512xf32> to vector<56x512xf32>
    %13 = arith.mulf %11, %12 : vector<56x512xf32>
    %14 = arith.addf %8, %13 : vector<56x512xf32>
    %15 = vector.extract_strided_slice %2 {offsets = [0, 2], sizes = [56, 1], strides = [1, 1]} : vector<56x3xf32> to vector<56x1xf32>
    %16 = vector.extract_strided_slice %0 {offsets = [2, 0], sizes = [1, 512], strides = [1, 1]} : vector<3x512xf32> to vector<1x512xf32>
    %17 = vector.broadcast %15 : vector<56x1xf32> to vector<56x512xf32>
    %18 = vector.broadcast %16 : vector<1x512xf32> to vector<56x512xf32>
    %19 = arith.mulf %17, %18 : vector<56x512xf32>
    %20 = arith.addf %14, %19 : vector<56x512xf32>
    %21 = vector.broadcast %1 : vector<1x512xf32> to vector<56x512xf32>
    %22 = arith.addf %20, %21 : vector<56x512xf32>
    %cst = arith.constant 0.000000e+00 : f32
    %23 = vector.broadcast %cst : f32 to vector<56x512xf32>
    %24 = arith.cmpf ogt, %22, %23 : vector<56x512xf32>
    %cst_7 = arith.constant 2.000000e-01 : f32
    %25 = vector.broadcast %cst_7 : f32 to vector<56x512xf32>
    %26 = arith.mulf %25, %22 : vector<56x512xf32>
    %27 = arith.select %24, %22, %26 : vector<56x512xi1>, vector<56x512xf32>
    %28 = arith.truncf %27 : vector<56x512xf32> to vector<56x512xbf16>
    %c0_8 = arith.constant 0 : index
    %c0_9 = arith.constant 0 : index
    %29 = vector.load %arg5[%c0_8, %c0_9] : memref<512x512xbf16, #tpu.memory_space<vmem>>, vector<512x512xbf16>
    %cst_10 = arith.constant dense<0.000000e+00> : vector<56x512xf32>
    %30 = tpu.matmul %28, %29, %cst_10 {dimension_numbers = #tpu.dot_dimension_numbers<[1], [0], [0], [1], [0, 0, 1, 1], [], []>} : vector<56x512xbf16>, vector<512x512xbf16>, vector<56x512xf32> -> vector<56x512xf32>
    %c0_11 = arith.constant 0 : index
    %c0_12 = arith.constant 0 : index
    %31 = vector.load %arg6[%c0_11, %c0_12] : memref<1x512xf32, #tpu.memory_space<vmem>>, vector<1x512xf32>
    %32 = vector.broadcast %31 : vector<1x512xf32> to vector<56x512xf32>
    %33 = arith.addf %30, %32 : vector<56x512xf32>
    %34 = arith.truncf %33 : vector<56x512xf32> to vector<56x512xbf16>
    %cst_13 = arith.constant 0.000000e+00 : bf16
    %35 = vector.broadcast %cst_13 : bf16 to vector<56x512xbf16>
    %36 = arith.cmpf ogt, %34, %35 : vector<56x512xbf16>
    %cst_14 = arith.constant 2.001950e-01 : bf16
    %37 = vector.broadcast %cst_14 : bf16 to vector<56x512xbf16>
    %38 = arith.mulf %37, %34 : vector<56x512xbf16>
    %39 = arith.select %36, %34, %38 : vector<56x512xi1>, vector<56x512xbf16>
    %c0_15 = arith.constant 0 : index
    %c0_16 = arith.constant 0 : index
    %40 = vector.load %arg7[%c0_15, %c0_16] : memref<512x512xbf16, #tpu.memory_space<vmem>>, vector<512x512xbf16>
    %cst_17 = arith.constant dense<0.000000e+00> : vector<56x512xf32>
    %41 = tpu.matmul %39, %40, %cst_17 {dimension_numbers = #tpu.dot_dimension_numbers<[1], [0], [0], [1], [0, 0, 1, 1], [], []>} : vector<56x512xbf16>, vector<512x512xbf16>, vector<56x512xf32> -> vector<56x512xf32>
    %c0_18 = arith.constant 0 : index
    %c0_19 = arith.constant 0 : index
    %42 = vector.load %arg8[%c0_18, %c0_19] : memref<1x512xf32, #tpu.memory_space<vmem>>, vector<1x512xf32>
    %43 = vector.broadcast %42 : vector<1x512xf32> to vector<56x512xf32>
    %44 = arith.addf %41, %43 : vector<56x512xf32>
    %45 = arith.truncf %44 : vector<56x512xf32> to vector<56x512xbf16>
    %cst_20 = arith.constant 0.000000e+00 : bf16
    %46 = vector.broadcast %cst_20 : bf16 to vector<56x512xbf16>
    %47 = arith.cmpf ogt, %45, %46 : vector<56x512xbf16>
    %cst_21 = arith.constant 2.001950e-01 : bf16
    %48 = vector.broadcast %cst_21 : bf16 to vector<56x512xbf16>
    %49 = arith.mulf %48, %45 : vector<56x512xbf16>
    %50 = arith.select %47, %45, %49 : vector<56x512xi1>, vector<56x512xbf16>
    %c0_22 = arith.constant 0 : index
    %c0_23 = arith.constant 0 : index
    %51 = vector.load %arg9[%c0_22, %c0_23] : memref<512x512xbf16, #tpu.memory_space<vmem>>, vector<512x512xbf16>
    %cst_24 = arith.constant dense<0.000000e+00> : vector<56x512xf32>
    %52 = tpu.matmul %50, %51, %cst_24 {dimension_numbers = #tpu.dot_dimension_numbers<[1], [0], [0], [1], [0, 0, 1, 1], [], []>} : vector<56x512xbf16>, vector<512x512xbf16>, vector<56x512xf32> -> vector<56x512xf32>
    %c0_25 = arith.constant 0 : index
    %c0_26 = arith.constant 0 : index
    %53 = vector.load %arg10[%c0_25, %c0_26] : memref<1x512xf32, #tpu.memory_space<vmem>>, vector<1x512xf32>
    %54 = vector.broadcast %53 : vector<1x512xf32> to vector<56x512xf32>
    %55 = arith.addf %52, %54 : vector<56x512xf32>
    %56 = arith.truncf %55 : vector<56x512xf32> to vector<56x512xbf16>
    %cst_27 = arith.constant 0.000000e+00 : bf16
    %57 = vector.broadcast %cst_27 : bf16 to vector<56x512xbf16>
    %58 = arith.cmpf ogt, %56, %57 : vector<56x512xbf16>
    %cst_28 = arith.constant 2.001950e-01 : bf16
    %59 = vector.broadcast %cst_28 : bf16 to vector<56x512xbf16>
    %60 = arith.mulf %59, %56 : vector<56x512xbf16>
    %61 = arith.select %58, %56, %60 : vector<56x512xi1>, vector<56x512xbf16>
    %c0_29 = arith.constant 0 : index
    %c0_30 = arith.constant 0 : index
    %62 = vector.load %arg11[%c0_29, %c0_30] : memref<512x32xbf16, #tpu.memory_space<vmem>>, vector<512x32xbf16>
    %cst_31 = arith.constant dense<0.000000e+00> : vector<56x32xf32>
    %63 = tpu.matmul %61, %62, %cst_31 {dimension_numbers = #tpu.dot_dimension_numbers<[1], [0], [0], [1], [0, 0, 1, 1], [], []>} : vector<56x512xbf16>, vector<512x32xbf16>, vector<56x32xf32> -> vector<56x32xf32>
    %c0_32 = arith.constant 0 : index
    %c0_33 = arith.constant 0 : index
    %64 = vector.load %arg12[%c0_32, %c0_33] : memref<1x32xf32, #tpu.memory_space<vmem>>, vector<1x32xf32>
    %65 = vector.broadcast %64 : vector<1x32xf32> to vector<56x32xf32>
    %66 = arith.addf %63, %65 : vector<56x32xf32>
    %67 = arith.negf %66 : vector<56x32xf32>
    %68 = math.exp %67 : vector<56x32xf32>
    %cst_34 = arith.constant 1.000000e+00 : f32
    %69 = vector.broadcast %cst_34 : f32 to vector<56x32xf32>
    %70 = arith.addf %69, %68 : vector<56x32xf32>
    %71 = arith.divf %69, %70 : vector<56x32xf32>
    %cst_35 = arith.constant 6.000000e-02 : f32
    %72 = vector.broadcast %cst_35 : f32 to vector<56x32xf32>
    %73 = arith.mulf %3, %72 : vector<56x32xf32>
    %74 = arith.addf %71, %73 : vector<56x32xf32>
    %75 = tpu.concatenate %71, %74 in 0 : vector<56x32xf32>, vector<56x32xf32> -> vector<112x32xf32>
    %76 = arith.truncf %75 : vector<112x32xf32> to vector<112x32xbf16>
    %c0_36 = arith.constant 0 : index
    %c0_37 = arith.constant 0 : index
    %77 = vector.load %arg13[%c0_36, %c0_37] : memref<32x128xbf16, #tpu.memory_space<vmem>>, vector<32x128xbf16>
    %cst_38 = arith.constant dense<0.000000e+00> : vector<112x128xf32>
    %78 = tpu.matmul %76, %77, %cst_38 {dimension_numbers = #tpu.dot_dimension_numbers<[1], [0], [0], [1], [0, 0, 1, 1], [], []>} : vector<112x32xbf16>, vector<32x128xbf16>, vector<112x128xf32> -> vector<112x128xf32>
    %c0_39 = arith.constant 0 : index
    %c0_40 = arith.constant 0 : index
    %79 = vector.load %arg14[%c0_39, %c0_40] : memref<1x128xf32, #tpu.memory_space<vmem>>, vector<1x128xf32>
    %80 = vector.broadcast %79 : vector<1x128xf32> to vector<112x128xf32>
    %81 = arith.addf %78, %80 : vector<112x128xf32>
    %82 = arith.truncf %81 : vector<112x128xf32> to vector<112x128xbf16>
    %cst_41 = arith.constant 0.000000e+00 : bf16
    %83 = vector.broadcast %cst_41 : bf16 to vector<112x128xbf16>
    %84 = arith.cmpf ogt, %82, %83 : vector<112x128xbf16>
    %cst_42 = arith.constant 2.001950e-01 : bf16
    %85 = vector.broadcast %cst_42 : bf16 to vector<112x128xbf16>
    %86 = arith.mulf %85, %82 : vector<112x128xbf16>
    %87 = arith.select %84, %82, %86 : vector<112x128xi1>, vector<112x128xbf16>
    %c0_43 = arith.constant 0 : index
    %c0_44 = arith.constant 0 : index
    %88 = vector.load %arg15[%c0_43, %c0_44] : memref<128x128xbf16, #tpu.memory_space<vmem>>, vector<128x128xbf16>
    %cst_45 = arith.constant dense<0.000000e+00> : vector<112x128xf32>
    %89 = tpu.matmul %87, %88, %cst_45 {dimension_numbers = #tpu.dot_dimension_numbers<[1], [0], [0], [1], [0, 0, 1, 1], [], []>} : vector<112x128xbf16>, vector<128x128xbf16>, vector<112x128xf32> -> vector<112x128xf32>
    %c0_46 = arith.constant 0 : index
    %c0_47 = arith.constant 0 : index
    %90 = vector.load %arg16[%c0_46, %c0_47] : memref<1x128xf32, #tpu.memory_space<vmem>>, vector<1x128xf32>
    %91 = vector.broadcast %90 : vector<1x128xf32> to vector<112x128xf32>
    %92 = arith.addf %89, %91 : vector<112x128xf32>
    %93 = arith.truncf %92 : vector<112x128xf32> to vector<112x128xbf16>
    %cst_48 = arith.constant 0.000000e+00 : bf16
    %94 = vector.broadcast %cst_48 : bf16 to vector<112x128xbf16>
    %95 = arith.cmpf ogt, %93, %94 : vector<112x128xbf16>
    %cst_49 = arith.constant 2.001950e-01 : bf16
    %96 = vector.broadcast %cst_49 : bf16 to vector<112x128xbf16>
    %97 = arith.mulf %96, %93 : vector<112x128xbf16>
    %98 = arith.select %95, %93, %97 : vector<112x128xi1>, vector<112x128xbf16>
    %c0_50 = arith.constant 0 : index
    %c0_51 = arith.constant 0 : index
    %99 = vector.load %arg17[%c0_50, %c0_51] : memref<128x4xbf16, #tpu.memory_space<vmem>>, vector<128x4xbf16>
    %cst_52 = arith.constant dense<0.000000e+00> : vector<112x4xf32>
    %100 = tpu.matmul %98, %99, %cst_52 {dimension_numbers = #tpu.dot_dimension_numbers<[1], [0], [0], [1], [0, 0, 1, 1], [], []>} : vector<112x128xbf16>, vector<128x4xbf16>, vector<112x4xf32> -> vector<112x4xf32>
    %c0_53 = arith.constant 0 : index
    %c0_54 = arith.constant 0 : index
    %101 = vector.load %arg18[%c0_53, %c0_54] : memref<1x4xf32, #tpu.memory_space<vmem>>, vector<1x4xf32>
    %102 = vector.broadcast %101 : vector<1x4xf32> to vector<112x4xf32>
    %103 = arith.addf %100, %102 : vector<112x4xf32>
    %104 = arith.negf %103 : vector<112x4xf32>
    %105 = math.exp %104 : vector<112x4xf32>
    %cst_55 = arith.constant 1.000000e+00 : f32
    %106 = vector.broadcast %cst_55 : f32 to vector<112x4xf32>
    %107 = arith.addf %106, %105 : vector<112x4xf32>
    %108 = arith.divf %106, %107 : vector<112x4xf32>
    %109 = vector.extract_strided_slice %108 {offsets = [0, 0], sizes = [56, 4], strides = [1, 1]} : vector<112x4xf32> to vector<56x4xf32>
    %110 = vector.extract_strided_slice %108 {offsets = [56, 0], sizes = [56, 4], strides = [1, 1]} : vector<112x4xf32> to vector<56x4xf32>
    %111 = tpu.concatenate %66, %109, %110 in 1 : vector<56x32xf32>, vector<56x4xf32>, vector<56x4xf32> -> vector<56x40xf32>
    %c56 = arith.constant 56 : index
    %c0_56 = arith.constant 0 : index
    %112 = vector.load %arg1[%c56, %c0_56] : memref<112x3xf32, #tpu.memory_space<vmem>>, vector<56x3xf32>
    %c56_57 = arith.constant 56 : index
    %c0_58 = arith.constant 0 : index
    %113 = vector.load %arg2[%c56_57, %c0_58] : memref<112x32xf32, #tpu.memory_space<vmem>>, vector<56x32xf32>
    %114 = vector.extract_strided_slice %112 {offsets = [0, 0], sizes = [56, 1], strides = [1, 1]} : vector<56x3xf32> to vector<56x1xf32>
    %115 = vector.extract_strided_slice %0 {offsets = [0, 0], sizes = [1, 512], strides = [1, 1]} : vector<3x512xf32> to vector<1x512xf32>
    %116 = vector.broadcast %114 : vector<56x1xf32> to vector<56x512xf32>
    %117 = vector.broadcast %115 : vector<1x512xf32> to vector<56x512xf32>
    %118 = arith.mulf %116, %117 : vector<56x512xf32>
    %119 = vector.extract_strided_slice %112 {offsets = [0, 1], sizes = [56, 1], strides = [1, 1]} : vector<56x3xf32> to vector<56x1xf32>
    %120 = vector.extract_strided_slice %0 {offsets = [1, 0], sizes = [1, 512], strides = [1, 1]} : vector<3x512xf32> to vector<1x512xf32>
    %121 = vector.broadcast %119 : vector<56x1xf32> to vector<56x512xf32>
    %122 = vector.broadcast %120 : vector<1x512xf32> to vector<56x512xf32>
    %123 = arith.mulf %121, %122 : vector<56x512xf32>
    %124 = arith.addf %118, %123 : vector<56x512xf32>
    %125 = vector.extract_strided_slice %112 {offsets = [0, 2], sizes = [56, 1], strides = [1, 1]} : vector<56x3xf32> to vector<56x1xf32>
    %126 = vector.extract_strided_slice %0 {offsets = [2, 0], sizes = [1, 512], strides = [1, 1]} : vector<3x512xf32> to vector<1x512xf32>
    %127 = vector.broadcast %125 : vector<56x1xf32> to vector<56x512xf32>
    %128 = vector.broadcast %126 : vector<1x512xf32> to vector<56x512xf32>
    %129 = arith.mulf %127, %128 : vector<56x512xf32>
    %130 = arith.addf %124, %129 : vector<56x512xf32>
    %131 = vector.broadcast %1 : vector<1x512xf32> to vector<56x512xf32>
    %132 = arith.addf %130, %131 : vector<56x512xf32>
    %cst_59 = arith.constant 0.000000e+00 : f32
    %133 = vector.broadcast %cst_59 : f32 to vector<56x512xf32>
    %134 = arith.cmpf ogt, %132, %133 : vector<56x512xf32>
    %cst_60 = arith.constant 2.000000e-01 : f32
    %135 = vector.broadcast %cst_60 : f32 to vector<56x512xf32>
    %136 = arith.mulf %135, %132 : vector<56x512xf32>
    %137 = arith.select %134, %132, %136 : vector<56x512xi1>, vector<56x512xf32>
    %138 = arith.truncf %137 : vector<56x512xf32> to vector<56x512xbf16>
    %c0_61 = arith.constant 0 : index
    %c0_62 = arith.constant 0 : index
    %139 = vector.load %arg5[%c0_61, %c0_62] : memref<512x512xbf16, #tpu.memory_space<vmem>>, vector<512x512xbf16>
    %cst_63 = arith.constant dense<0.000000e+00> : vector<56x512xf32>
    %140 = tpu.matmul %138, %139, %cst_63 {dimension_numbers = #tpu.dot_dimension_numbers<[1], [0], [0], [1], [0, 0, 1, 1], [], []>} : vector<56x512xbf16>, vector<512x512xbf16>, vector<56x512xf32> -> vector<56x512xf32>
    %c0_64 = arith.constant 0 : index
    %c0_65 = arith.constant 0 : index
    %141 = vector.load %arg6[%c0_64, %c0_65] : memref<1x512xf32, #tpu.memory_space<vmem>>, vector<1x512xf32>
    %142 = vector.broadcast %141 : vector<1x512xf32> to vector<56x512xf32>
    %143 = arith.addf %140, %142 : vector<56x512xf32>
    %144 = arith.truncf %143 : vector<56x512xf32> to vector<56x512xbf16>
    %cst_66 = arith.constant 0.000000e+00 : bf16
    %145 = vector.broadcast %cst_66 : bf16 to vector<56x512xbf16>
    %146 = arith.cmpf ogt, %144, %145 : vector<56x512xbf16>
    %cst_67 = arith.constant 2.001950e-01 : bf16
    %147 = vector.broadcast %cst_67 : bf16 to vector<56x512xbf16>
    %148 = arith.mulf %147, %144 : vector<56x512xbf16>
    %149 = arith.select %146, %144, %148 : vector<56x512xi1>, vector<56x512xbf16>
    %c0_68 = arith.constant 0 : index
    %c0_69 = arith.constant 0 : index
    %150 = vector.load %arg7[%c0_68, %c0_69] : memref<512x512xbf16, #tpu.memory_space<vmem>>, vector<512x512xbf16>
    %cst_70 = arith.constant dense<0.000000e+00> : vector<56x512xf32>
    %151 = tpu.matmul %149, %150, %cst_70 {dimension_numbers = #tpu.dot_dimension_numbers<[1], [0], [0], [1], [0, 0, 1, 1], [], []>} : vector<56x512xbf16>, vector<512x512xbf16>, vector<56x512xf32> -> vector<56x512xf32>
    %c0_71 = arith.constant 0 : index
    %c0_72 = arith.constant 0 : index
    %152 = vector.load %arg8[%c0_71, %c0_72] : memref<1x512xf32, #tpu.memory_space<vmem>>, vector<1x512xf32>
    %153 = vector.broadcast %152 : vector<1x512xf32> to vector<56x512xf32>
    %154 = arith.addf %151, %153 : vector<56x512xf32>
    %155 = arith.truncf %154 : vector<56x512xf32> to vector<56x512xbf16>
    %cst_73 = arith.constant 0.000000e+00 : bf16
    %156 = vector.broadcast %cst_73 : bf16 to vector<56x512xbf16>
    %157 = arith.cmpf ogt, %155, %156 : vector<56x512xbf16>
    %cst_74 = arith.constant 2.001950e-01 : bf16
    %158 = vector.broadcast %cst_74 : bf16 to vector<56x512xbf16>
    %159 = arith.mulf %158, %155 : vector<56x512xbf16>
    %160 = arith.select %157, %155, %159 : vector<56x512xi1>, vector<56x512xbf16>
    %c0_75 = arith.constant 0 : index
    %c0_76 = arith.constant 0 : index
    %161 = vector.load %arg9[%c0_75, %c0_76] : memref<512x512xbf16, #tpu.memory_space<vmem>>, vector<512x512xbf16>
    %cst_77 = arith.constant dense<0.000000e+00> : vector<56x512xf32>
    %162 = tpu.matmul %160, %161, %cst_77 {dimension_numbers = #tpu.dot_dimension_numbers<[1], [0], [0], [1], [0, 0, 1, 1], [], []>} : vector<56x512xbf16>, vector<512x512xbf16>, vector<56x512xf32> -> vector<56x512xf32>
    %c0_78 = arith.constant 0 : index
    %c0_79 = arith.constant 0 : index
    %163 = vector.load %arg10[%c0_78, %c0_79] : memref<1x512xf32, #tpu.memory_space<vmem>>, vector<1x512xf32>
    %164 = vector.broadcast %163 : vector<1x512xf32> to vector<56x512xf32>
    %165 = arith.addf %162, %164 : vector<56x512xf32>
    %166 = arith.truncf %165 : vector<56x512xf32> to vector<56x512xbf16>
    %cst_80 = arith.constant 0.000000e+00 : bf16
    %167 = vector.broadcast %cst_80 : bf16 to vector<56x512xbf16>
    %168 = arith.cmpf ogt, %166, %167 : vector<56x512xbf16>
    %cst_81 = arith.constant 2.001950e-01 : bf16
    %169 = vector.broadcast %cst_81 : bf16 to vector<56x512xbf16>
    %170 = arith.mulf %169, %166 : vector<56x512xbf16>
    %171 = arith.select %168, %166, %170 : vector<56x512xi1>, vector<56x512xbf16>
    %c0_82 = arith.constant 0 : index
    %c0_83 = arith.constant 0 : index
    %172 = vector.load %arg11[%c0_82, %c0_83] : memref<512x32xbf16, #tpu.memory_space<vmem>>, vector<512x32xbf16>
    %cst_84 = arith.constant dense<0.000000e+00> : vector<56x32xf32>
    %173 = tpu.matmul %171, %172, %cst_84 {dimension_numbers = #tpu.dot_dimension_numbers<[1], [0], [0], [1], [0, 0, 1, 1], [], []>} : vector<56x512xbf16>, vector<512x32xbf16>, vector<56x32xf32> -> vector<56x32xf32>
    %c0_85 = arith.constant 0 : index
    %c0_86 = arith.constant 0 : index
    %174 = vector.load %arg12[%c0_85, %c0_86] : memref<1x32xf32, #tpu.memory_space<vmem>>, vector<1x32xf32>
    %175 = vector.broadcast %174 : vector<1x32xf32> to vector<56x32xf32>
    %176 = arith.addf %173, %175 : vector<56x32xf32>
    %177 = arith.negf %176 : vector<56x32xf32>
    %178 = math.exp %177 : vector<56x32xf32>
    %cst_87 = arith.constant 1.000000e+00 : f32
    %179 = vector.broadcast %cst_87 : f32 to vector<56x32xf32>
    %180 = arith.addf %179, %178 : vector<56x32xf32>
    %181 = arith.divf %179, %180 : vector<56x32xf32>
    %cst_88 = arith.constant 6.000000e-02 : f32
    %182 = vector.broadcast %cst_88 : f32 to vector<56x32xf32>
    %183 = arith.mulf %113, %182 : vector<56x32xf32>
    %184 = arith.addf %181, %183 : vector<56x32xf32>
    %185 = tpu.concatenate %181, %184 in 0 : vector<56x32xf32>, vector<56x32xf32> -> vector<112x32xf32>
    %186 = arith.truncf %185 : vector<112x32xf32> to vector<112x32xbf16>
    %c0_89 = arith.constant 0 : index
    %c0_90 = arith.constant 0 : index
    %187 = vector.load %arg13[%c0_89, %c0_90] : memref<32x128xbf16, #tpu.memory_space<vmem>>, vector<32x128xbf16>
    %cst_91 = arith.constant dense<0.000000e+00> : vector<112x128xf32>
    %188 = tpu.matmul %186, %187, %cst_91 {dimension_numbers = #tpu.dot_dimension_numbers<[1], [0], [0], [1], [0, 0, 1, 1], [], []>} : vector<112x32xbf16>, vector<32x128xbf16>, vector<112x128xf32> -> vector<112x128xf32>
    %c0_92 = arith.constant 0 : index
    %c0_93 = arith.constant 0 : index
    %189 = vector.load %arg14[%c0_92, %c0_93] : memref<1x128xf32, #tpu.memory_space<vmem>>, vector<1x128xf32>
    %190 = vector.broadcast %189 : vector<1x128xf32> to vector<112x128xf32>
    %191 = arith.addf %188, %190 : vector<112x128xf32>
    %192 = arith.truncf %191 : vector<112x128xf32> to vector<112x128xbf16>
    %cst_94 = arith.constant 0.000000e+00 : bf16
    %193 = vector.broadcast %cst_94 : bf16 to vector<112x128xbf16>
    %194 = arith.cmpf ogt, %192, %193 : vector<112x128xbf16>
    %cst_95 = arith.constant 2.001950e-01 : bf16
    %195 = vector.broadcast %cst_95 : bf16 to vector<112x128xbf16>
    %196 = arith.mulf %195, %192 : vector<112x128xbf16>
    %197 = arith.select %194, %192, %196 : vector<112x128xi1>, vector<112x128xbf16>
    %c0_96 = arith.constant 0 : index
    %c0_97 = arith.constant 0 : index
    %198 = vector.load %arg15[%c0_96, %c0_97] : memref<128x128xbf16, #tpu.memory_space<vmem>>, vector<128x128xbf16>
    %cst_98 = arith.constant dense<0.000000e+00> : vector<112x128xf32>
    %199 = tpu.matmul %197, %198, %cst_98 {dimension_numbers = #tpu.dot_dimension_numbers<[1], [0], [0], [1], [0, 0, 1, 1], [], []>} : vector<112x128xbf16>, vector<128x128xbf16>, vector<112x128xf32> -> vector<112x128xf32>
    %c0_99 = arith.constant 0 : index
    %c0_100 = arith.constant 0 : index
    %200 = vector.load %arg16[%c0_99, %c0_100] : memref<1x128xf32, #tpu.memory_space<vmem>>, vector<1x128xf32>
    %201 = vector.broadcast %200 : vector<1x128xf32> to vector<112x128xf32>
    %202 = arith.addf %199, %201 : vector<112x128xf32>
    %203 = arith.truncf %202 : vector<112x128xf32> to vector<112x128xbf16>
    %cst_101 = arith.constant 0.000000e+00 : bf16
    %204 = vector.broadcast %cst_101 : bf16 to vector<112x128xbf16>
    %205 = arith.cmpf ogt, %203, %204 : vector<112x128xbf16>
    %cst_102 = arith.constant 2.001950e-01 : bf16
    %206 = vector.broadcast %cst_102 : bf16 to vector<112x128xbf16>
    %207 = arith.mulf %206, %203 : vector<112x128xbf16>
    %208 = arith.select %205, %203, %207 : vector<112x128xi1>, vector<112x128xbf16>
    %c0_103 = arith.constant 0 : index
    %c0_104 = arith.constant 0 : index
    %209 = vector.load %arg17[%c0_103, %c0_104] : memref<128x4xbf16, #tpu.memory_space<vmem>>, vector<128x4xbf16>
    %cst_105 = arith.constant dense<0.000000e+00> : vector<112x4xf32>
    %210 = tpu.matmul %208, %209, %cst_105 {dimension_numbers = #tpu.dot_dimension_numbers<[1], [0], [0], [1], [0, 0, 1, 1], [], []>} : vector<112x128xbf16>, vector<128x4xbf16>, vector<112x4xf32> -> vector<112x4xf32>
    %c0_106 = arith.constant 0 : index
    %c0_107 = arith.constant 0 : index
    %211 = vector.load %arg18[%c0_106, %c0_107] : memref<1x4xf32, #tpu.memory_space<vmem>>, vector<1x4xf32>
    %212 = vector.broadcast %211 : vector<1x4xf32> to vector<112x4xf32>
    %213 = arith.addf %210, %212 : vector<112x4xf32>
    %214 = arith.negf %213 : vector<112x4xf32>
    %215 = math.exp %214 : vector<112x4xf32>
    %cst_108 = arith.constant 1.000000e+00 : f32
    %216 = vector.broadcast %cst_108 : f32 to vector<112x4xf32>
    %217 = arith.addf %216, %215 : vector<112x4xf32>
    %218 = arith.divf %216, %217 : vector<112x4xf32>
    %219 = vector.extract_strided_slice %218 {offsets = [0, 0], sizes = [56, 4], strides = [1, 1]} : vector<112x4xf32> to vector<56x4xf32>
    %220 = vector.extract_strided_slice %218 {offsets = [56, 0], sizes = [56, 4], strides = [1, 1]} : vector<112x4xf32> to vector<56x4xf32>
    %221 = tpu.concatenate %176, %219, %220 in 1 : vector<56x32xf32>, vector<56x4xf32>, vector<56x4xf32> -> vector<56x40xf32>
    %c0_109 = arith.constant 0 : index
    %c0_110 = arith.constant 0 : index
    %222 = vector.load %arg19[%c0_109, %c0_110] : memref<112x40xf32, #tpu.memory_space<vmem>>, vector<56x40xf32>
    tpu.vector_store %arg19[%c0_109, %c0_110], %111 {strides = array<i32>} : memref<112x40xf32, #tpu.memory_space<vmem>>, vector<56x40xf32>,
    %c56_111 = arith.constant 56 : index
    %c0_112 = arith.constant 0 : index
    %223 = vector.load %arg19[%c56_111, %c0_112] : memref<112x40xf32, #tpu.memory_space<vmem>>, vector<56x40xf32>
    tpu.vector_store %arg19[%c56_111, %c0_112], %221 {strides = array<i32>} : memref<112x40xf32, #tpu.memory_space<vmem>>, vector<56x40xf32>,
    return
  }
  func.func @transform_0(%arg0: i32) -> (i32, i32) {
    %c0_i32 = arith.constant 0 : i32
    %c0_i32_0 = arith.constant 0 : i32
    return %arg0, %c0_i32 : i32, i32
  }
  func.func @transform_1(%arg0: i32) -> (i32, i32) {
    %c0_i32 = arith.constant 0 : i32
    %c0_i32_0 = arith.constant 0 : i32
    return %arg0, %c0_i32 : i32, i32
  }
  func.func @transform_2(%arg0: i32) -> (i32, i32) {
    %c0_i32 = arith.constant 0 : i32
    %c0_i32_0 = arith.constant 0 : i32
    %c0_i32_1 = arith.constant 0 : i32
    return %c0_i32, %c0_i32_0 : i32, i32
  }
  func.func @transform_3(%arg0: i32) -> (i32, i32) {
    %c0_i32 = arith.constant 0 : i32
    %c0_i32_0 = arith.constant 0 : i32
    %c0_i32_1 = arith.constant 0 : i32
    return %c0_i32, %c0_i32_0 : i32, i32
  }
  func.func @transform_4(%arg0: i32) -> (i32, i32) {
    %c0_i32 = arith.constant 0 : i32
    %c0_i32_0 = arith.constant 0 : i32
    %c0_i32_1 = arith.constant 0 : i32
    return %c0_i32, %c0_i32_0 : i32, i32
  }
  func.func @transform_5(%arg0: i32) -> (i32, i32) {
    %c0_i32 = arith.constant 0 : i32
    %c0_i32_0 = arith.constant 0 : i32
    %c0_i32_1 = arith.constant 0 : i32
    return %c0_i32, %c0_i32_0 : i32, i32
  }
  func.func @transform_6(%arg0: i32) -> (i32, i32) {
    %c0_i32 = arith.constant 0 : i32
    %c0_i32_0 = arith.constant 0 : i32
    %c0_i32_1 = arith.constant 0 : i32
    return %c0_i32, %c0_i32_0 : i32, i32
  }
  func.func @transform_7(%arg0: i32) -> (i32, i32) {
    %c0_i32 = arith.constant 0 : i32
    %c0_i32_0 = arith.constant 0 : i32
    %c0_i32_1 = arith.constant 0 : i32
    return %c0_i32, %c0_i32_0 : i32, i32
  }
  func.func @transform_8(%arg0: i32) -> (i32, i32) {
    %c0_i32 = arith.constant 0 : i32
    %c0_i32_0 = arith.constant 0 : i32
    %c0_i32_1 = arith.constant 0 : i32
    return %c0_i32, %c0_i32_0 : i32, i32
  }
  func.func @transform_9(%arg0: i32) -> (i32, i32) {
    %c0_i32 = arith.constant 0 : i32
    %c0_i32_0 = arith.constant 0 : i32
    %c0_i32_1 = arith.constant 0 : i32
    return %c0_i32, %c0_i32_0 : i32, i32
  }
  func.func @transform_10(%arg0: i32) -> (i32, i32) {
    %c0_i32 = arith.constant 0 : i32
    %c0_i32_0 = arith.constant 0 : i32
    %c0_i32_1 = arith.constant 0 : i32
    return %c0_i32, %c0_i32_0 : i32, i32
  }
  func.func @transform_11(%arg0: i32) -> (i32, i32) {
    %c0_i32 = arith.constant 0 : i32
    %c0_i32_0 = arith.constant 0 : i32
    %c0_i32_1 = arith.constant 0 : i32
    return %c0_i32, %c0_i32_0 : i32, i32
  }
  func.func @transform_12(%arg0: i32) -> (i32, i32) {
    %c0_i32 = arith.constant 0 : i32
    %c0_i32_0 = arith.constant 0 : i32
    %c0_i32_1 = arith.constant 0 : i32
    return %c0_i32, %c0_i32_0 : i32, i32
  }
  func.func @transform_13(%arg0: i32) -> (i32, i32) {
    %c0_i32 = arith.constant 0 : i32
    %c0_i32_0 = arith.constant 0 : i32
    %c0_i32_1 = arith.constant 0 : i32
    return %c0_i32, %c0_i32_0 : i32, i32
  }
  func.func @transform_14(%arg0: i32) -> (i32, i32) {
    %c0_i32 = arith.constant 0 : i32
    %c0_i32_0 = arith.constant 0 : i32
    %c0_i32_1 = arith.constant 0 : i32
    return %c0_i32, %c0_i32_0 : i32, i32
  }
  func.func @transform_15(%arg0: i32) -> (i32, i32) {
    %c0_i32 = arith.constant 0 : i32
    %c0_i32_0 = arith.constant 0 : i32
    %c0_i32_1 = arith.constant 0 : i32
    return %c0_i32, %c0_i32_0 : i32, i32
  }
  func.func @transform_16(%arg0: i32) -> (i32, i32) {
    %c0_i32 = arith.constant 0 : i32
    %c0_i32_0 = arith.constant 0 : i32
    %c0_i32_1 = arith.constant 0 : i32
    return %c0_i32, %c0_i32_0 : i32, i32
  }
  func.func @transform_17(%arg0: i32) -> (i32, i32) {
    %c0_i32 = arith.constant 0 : i32
    %c0_i32_0 = arith.constant 0 : i32
    %c0_i32_1 = arith.constant 0 : i32
    return %c0_i32, %c0_i32_0 : i32, i32
  }
  func.func @transform_18(%arg0: i32) -> (i32, i32) {
    %c0_i32 = arith.constant 0 : i32
    %c0_i32_0 = arith.constant 0 : i32
    return %arg0, %c0_i32 : i32, i32
  }
}

</mosaic_0001>

<bundles_post_ra>
// kernel: tpu_custom_call.1
= control target key start
LH: loop header
LB: loop body
LE: loop exit
PB: predicated region body
PF: predicated region fallthrough
CT: control target
= control target key end

     0   :  { %s12672_s0 = inlined_call_operand.vmem [shape: f32[224,3], index: 0, kind: input, shape index: {}]   ;;  %s12673_s1 = inlined_call_operand.vmem [shape: f32[224,32], index: 1, kind: input, shape index: {}]   ;;  %s12674_s2 = inlined_call_operand.vmem [shape: f32[3,512], index: 2, kind: input, shape index: {}]   ;;  %s12675_s3 = inlined_call_operand.vmem [shape: f32[1,512], index: 3, kind: input, shape index: {}]   ;;  %s12676_s4 = inlined_call_operand.hbm [shape: bf16[512,512], index: 4, kind: input, shape index: {}]   ;;  %s12677_s5 = inlined_call_operand.vmem [shape: f32[1,512], index: 5, kind: input, shape index: {}]   ;;  %s12678_s6 = inlined_call_operand.hbm [shape: bf16[512,512], index: 6, kind: input, shape index: {}]   ;;  %s12679_s7 = inlined_call_operand.vmem [shape: f32[1,512], index: 7, kind: input, shape index: {}]   ;;  %s12680_s8 = inlined_call_operand.hbm [shape: bf16[512,512], index: 8, kind: input, shape index: {}]   ;;  %s12681_s9 = inlined_call_operand.vmem [shape: f32[1,512], index: 9, kind: input, shape index: {}]   ;;  %s12682_s10 = inlined_call_operand.vmem [shape: bf16[512,32], index: 10, kind: input, shape index: {}]   ;;  %s12683_s11 = inlined_call_operand.vmem [shape: f32[1,32], index: 11, kind: input, shape index: {}]   ;;  %s12684_s12 = inlined_call_operand.vmem [shape: bf16[32,128], index: 12, kind: input, shape index: {}]   ;;  %s12685_s13 = inlined_call_operand.vmem [shape: f32[1,128], index: 13, kind: input, shape index: {}]   ;;  %s12686_s14 = inlined_call_operand.vmem [shape: bf16[128,128], index: 14, kind: input, shape index: {}]   ;;  %s12687_s15 = inlined_call_operand.vmem [shape: f32[1,128], index: 15, kind: input, shape index: {}]   ;;  %s12688_s16 = inlined_call_operand.vmem [shape: bf16[128,4], index: 16, kind: input, shape index: {}]   ;;  %s12689_s17 = inlined_call_operand.vmem [shape: f32[1,4], index: 17, kind: input, shape index: {}]   ;;  %s12690_s18 = inlined_call_operand.vmem [shape: f32[224,40], index: 18, kind: output, shape index: {}]  }
   0x1   :  { %12733 = sst [smem:[#allocation22_spill]] %s12672_s0 }
   0x2   :  { %12734 = sst [smem:[#allocation23_spill]] %s12673_s1 }
   0x3   :  { %12735 = sst [smem:[#allocation24_spill]] %s12674_s2 }
   0x4   :  { %23 = vsyncpa [#allocation3], 0 }
   0x5   :  { %24 = vsyncpa [#allocation5], 0  ;;  %s10424_s27 = smov 0  }
   0x6 LB: > { %s7907_s28 = sadd.s32 4294967295, %s10315_s27   ;;  %p7909_p0 = scmp.ge.s32.totalorder %s10315_s27, 1  ;;  %s10315_s27 = sphi %s10424_s27, %s30_s27  }
   0x7   : > { %p449_p1 = scmp.lt.s32.totalorder %s10315_s27, 3  ;;  %p10434_p2 = scmp.eq.s32.totalorder %s7907_s28, 0 }
   0x8   : > { %s10317_s0 = smov [#allocation4]   ;;  %s10318_s1 = smov [#allocation2]  }
   0x9   : > { %p10438_p3 = pnand %p7909_p0, %p449_p1  ;;  %s483_s19 = sshll.u32 %s10317_s0, 4  ;;  %s484_s19 = int_to_ptr.vmem [resolvable:$true] %s483_s19 }
   0xa   : > { %s467_s20 = sshll.u32 %s10318_s1, 4  ;;  %s10319_s22 = smov [#allocation6]   ;;  %s468_s20 = int_to_ptr.vmem [resolvable:$true] %s467_s20 }
   0xb   : > { %p8923_p4 = pneg %p10438_p3  ;;  %s499_s2 = sshll.u32 %s10319_s22, 4  ;;  %s10450_s2 = int_to_ptr.vmem [resolvable:$true] %s499_s2 }
   0xc   : > { %s10234_s23 = scalar_lea.vmem %s484_s19, 16384  ;;  %p10242_p10 = scmp.lt.s32.totalorder %s484_s19, %s484_s19 }
   0xd   : > { %p10446_p5 = pnand %p10434_p2, %p8923_p4  ;;  %p10235_p7 = scmp.ne.s32.totalorder %s484_s19, %s10234_s23 }
   0xe   : > { %p10243_p11 = scmp.lt.s32.totalorder %s10234_s23, %s10234_s23 }
   0xf   : > { %p10225_p6 = pneg %p10446_p5 }
  0x10   : > { %p10244_p12 = por %p10243_p11, %p10242_p10 }
  0x11   : > { %p10237_p8 = pnand %p10235_p7, %p10225_p6 }
  0x13   : > { %p10238_p9 = pneg %p10237_p8 }
  0x15   : > { %p10245_p13 = pnand %p10244_p12, %p10238_p9 }
  0x17   : > { %10248 = shalt.err (!%p10245_p13)
}
  0x18   : > { %s10320_s24 = smov 256   ;;  %s10321_s25 = smov 16  }
  0x19   : > { %8929 = dma.hbm_to_vmem [thread:$0]  (!%p10446_p5), %s12678_s6, 16384, %s484_s19, [#allocation5], %s10320_s24, %s10320_s24, %s10321_s25  }
  0x1a   : > { %s10260_s1 = scalar_lea.vmem %s468_s20, 16384  ;;  %p10268_p7 = scmp.lt.s32.totalorder %s468_s20, %s468_s20 }
  0x1b   : > { %p10261_p0 = scmp.ne.s32.totalorder %s468_s20, %s10260_s1  ;;  %p10269_p8 = scmp.lt.s32.totalorder %s10260_s1, %s10260_s1 }
  0x1d   : > { %p10263_p1 = pnand %p10261_p0, %p10225_p6  ;;  %p10270_p10 = por %p10269_p8, %p10268_p7 }
  0x1f   : > { %p10264_p4 = pneg %p10263_p1 }
  0x21   : > { %p10271_p9 = pnand %p10270_p10, %p10264_p4 }
  0x23   : > { %10274 = shalt.err (!%p10271_p9)
}
  0x24   : > { %8926 = dma.hbm_to_vmem [thread:$0]  (!%p10446_p5), %s12676_s4, 16384, %s468_s20, [#allocation3], %s10320_s24, %s10320_s24, %s10321_s25  }
  0x25   : > { %s10286_s19 = scalar_lea.vmem %s10450_s2, 16384  ;;  %p10294_p0 = scmp.lt.s32.totalorder %s10450_s2, %s10450_s2 }
  0x26   : > { %p10287_p11 = scmp.ne.s32.totalorder %s10450_s2, %s10286_s19  ;;  %p10295_p1 = scmp.lt.s32.totalorder %s10286_s19, %s10286_s19 }
  0x28   : > { %p10289_p12 = pnand %p10287_p11, %p10225_p6  ;;  %p10296_p4 = por %p10295_p1, %p10294_p0 }
  0x2a   : > { %p10290_p13 = pneg %p10289_p12 }
  0x2c   : > { %p10297_p7 = pnand %p10296_p4, %p10290_p13 }
  0x2e   : > { %10300 = shalt.err (!%p10297_p7)
}
  0x2f   : > { %8932 = dma.hbm_to_vmem [thread:$0]  (!%p10446_p5), %s12680_s8, 16384, %s10450_s2, [#allocation5], %s10320_s24, %s10320_s24, %s10321_s25  }
  0x30   : > { %560 = sbr.rel (%p10438_p3) target bundleno = 3598 (0xe0e), region = 92 }
  0x35   : > { %10306 = dma.done.wait (%p10434_p2), [#allocation3], 16384  }
  0x36   : > { %10308 = vsyncadd (%p10434_p2), [#allocation3], 4294950912 }
  0x37   : > { %10310 = dma.done.wait (%p10434_p2), [#allocation5], 32768  }
  0x38   : > { %10312 = vsyncadd (%p10434_p2), [#allocation5], 4294934528  ;;  %s627_s20 = smul.u32 14, %s7907_s28  ;;  %v12696_v0 = vmov 1   ;;  %v12692_v1 = vmov 0   ;;  %s12739_s24 = sld [smem:[#allocation22_spill]] }
  0x39   : > { %8960 = vset.pattern.permute.xlu1 %v12696_v0  ;;  %8959 = vset.pattern.permute.xlu0 %v12692_v1  ;;  %v8991_v2 = vld [vmem:[#allocation2 + $0xe4] ss:$16 sps:$4 sm:$0xff]   ;;  %v8995_v6 = vld [vmem:[#allocation2 + $0xe0] ss:$16 sps:$4 sm:$0xff]   ;;  %v12694_v14 = vmov 2   ;;  %s12741_s1 = sld [smem:[#allocation24_spill]] }
  0x3a   : > { %p628_p3 = scmp.lt.s32.totalorder %s627_s20, 27  ;;  %1944 = vmatprep.subr.bf16.mxu0 %v8991_v2  ;;  %v8993_v5 = vld [vmem:[#allocation2 + $0x2e4] ss:$16 sps:$4 sm:$0xff]   ;;  %v8996_v7 = vld [vmem:[#allocation2 + $0x2e0] ss:$16 sps:$4 sm:$0xff]   ;;  %s12766_s0 = sld [smem:[#allocation23_spill]] }
  0x3b   : > { %v8997_v8 = vld [vmem:[#allocation2 + $0xc4] ss:$16 sps:$4 sm:$0xff]   ;;  %2015 = vmatprep.subr.bf16.mxu1 %v8993_v5  ;;  %1945 = vmatpush1.bf16.msra.mxu0 %v8995_v6  ;;  %v9001_v10 = vld [vmem:[#allocation2 + $0xc0] ss:$16 sps:$4 sm:$0xff]   ;;  %s10327_s19 = smov 32   ;;  %s10328_s26 = smov 36  }
  0x3c   : > { %s12785_s20 = smov (!%p628_p3, %s627_s20), 27  ;;  %v8999_v9 = vld [vmem:[#allocation2 + $0x2c4] ss:$16 sps:$4 sm:$0xff]   ;;  %2016 = vmatpush1.bf16.msra.mxu1 %v8996_v7  ;;  %1946 = vmatprep.subr.bf16.mxu0 %v8997_v8  ;;  %v9002_v11 = vld [vmem:[#allocation2 + $0x2c0] ss:$16 sps:$4 sm:$0xff]  }
  0x3d   : > { %s10497_s30 = sshll.u32 %s12785_s20, 3  ;;  %2017 = vmatprep.subr.bf16.mxu1 %v8999_v9  ;;  %v9003_v12 = vld [vmem:[#allocation2 + $0xa4] ss:$16 sps:$4 sm:$0xff]   ;;  %v9007_v16 = vld [vmem:[#allocation2 + $0xa0] ss:$16 sps:$4 sm:$0xff]  }
  0x3e   : > { %s10503_s25 = scalar_lea.vmem %s12739_s24, %s10497_s30  ;;  %v9005_v13 = vld [vmem:[#allocation2 + $0x2a4] ss:$16 sps:$4 sm:$0xff]   ;;  %v9008_v17 = vld [vmem:[#allocation2 + $0x2a0] ss:$16 sps:$4 sm:$0xff]   ;;  %s11997_s21 = scalar_lea.vmem %s12690_s18, %s10497_s30 }
  0x3f   : > { %v650_v3 = vld [vmem:[%s10503_s25] sm:$0xff]  ;;  %v651_v4 = vld [vmem:[%s10503_s25 + $0x8] sm:$0xff]  ;;  %v652_v15 = vld [vmem:[%s10503_s25 + $0x10] sm:$0xff]  ;;  %1947 = vmatpush1.bf16.msra.mxu0 %v9001_v10 }
  0x40   : > { %766 = vperm.xlu1 %8960, %v650_v3   ;;  %666 = vperm.xlu0 %8959, %v650_v3   ;;  %v9009_v18 = vld [vmem:[#allocation2 + $0x84] ss:$16 sps:$4 sm:$0xff]   ;;  %v653_v20 = vld [vmem:[%s10503_s25 + $0x18] sm:$0xff]  ;;  %v9013_v21 = vld [vmem:[#allocation2 + $0x80] ss:$16 sps:$4 sm:$0xff]   ;;  %s11399_s20 = scalar_lea.vmem %s12766_s0, %s10497_s30 }
  0x41   : > { %2018 = vmatpush1.bf16.msra.mxu1 %v9002_v11  ;;  %1948 = vmatprep.subr.bf16.mxu0 %v9003_v12  ;;  %v9011_v19 = vld [vmem:[#allocation2 + $0x284] ss:$16 sps:$4 sm:$0xff]   ;;  %v9014_v22 = vld [vmem:[#allocation2 + $0x280] ss:$16 sps:$4 sm:$0xff]   ;;  %v10515_v25 = vld [vmem:[%s10503_s25 + $0x28] sm:$0xff] }
  0x42   : > { %2019 = vmatprep.subr.bf16.mxu1 %v9005_v13  ;;  %v9015_v23 = vld [vmem:[#allocation2 + $0x64] ss:$16 sps:$4 sm:$0xff]   ;;  %v9019_v26 = vld [vmem:[#allocation2 + $0x60] ss:$16 sps:$4 sm:$0xff]   ;;  %v9089_v12 = vld [vmem:[#allocation2 + $0xec] ss:$16 sps:$4 sm:$0xff]  }
  0x43   : > { %1949 = vmatpush1.bf16.msra.mxu0 %v9007_v16  ;;  %v9017_v24 = vld [vmem:[#allocation2 + $0x264] ss:$16 sps:$4 sm:$0xff]   ;;  %v9020_v27 = vld [vmem:[#allocation2 + $0x260] ss:$16 sps:$4 sm:$0xff]   ;;  %v9092_v13 = vld [vmem:[#allocation2 + $0x2ec] ss:$16 sps:$4 sm:$0xff]  }
  0x44   : > { %770 = vperm.xlu1 %8960, %v651_v4   ;;  %671 = vperm.xlu0 %8959, %v651_v4   ;;  %v9021_v28 = vld [vmem:[#allocation2 + $0x44] ss:$16 sps:$4 sm:$0xff]   ;;  %v9025_v30 = vld [vmem:[#allocation2 + $0x40] ss:$16 sps:$4 sm:$0xff]  }
  0x45   : > { %2020 = vmatpush1.bf16.msra.mxu1 %v9008_v17  ;;  %1950 = vmatprep.subr.bf16.mxu0 %v9009_v18  ;;  %v9023_v29 = vld [vmem:[#allocation2 + $0x244] ss:$16 sps:$4 sm:$0xff]   ;;  %v9026_v31 = vld [vmem:[#allocation2 + $0x240] ss:$16 sps:$4 sm:$0xff]  }
  0x46   : > { %2021 = vmatprep.subr.bf16.mxu1 %v9011_v19  ;;  %v9027_v32 = vld [vmem:[#allocation2 + $0x24] ss:$16 sps:$4 sm:$0xff]   ;;  %v9031_v36 = vld [vmem:[#allocation2 + $0x20] ss:$16 sps:$4 sm:$0xff]  }
  0x47   : > { %1951 = vmatpush1.bf16.msra.mxu0 %v9013_v21  ;;  %v654_v33 = vld [vmem:[%s10503_s25 + $0x20] sm:$0xff]  ;;  %v10522_v35 = vld [vmem:[%s10503_s25 + $0x30] sm:$0xff] }
  0x48   : > { %8962 = vset.pattern.permute.xlu1 %v12694_v14  ;;  %8961 = vset.pattern.permute.xlu0 %v12694_v14  ;;  %v9029_v34 = vld [vmem:[#allocation2 + $0x224] ss:$16 sps:$4 sm:$0xff]   ;;  %v9032_v37 = vld [vmem:[#allocation2 + $0x220] ss:$16 sps:$4 sm:$0xff]  }
  0x49   : > { %890 = vperm.xlu1 %8962, %v651_v4   ;;  %886 = vperm.xlu0 %8961, %v650_v3   ;;  %v9033_v38 = vld [vmem:[#allocation2 + $0x4] ss:$16 sps:$4 sm:$0xff]   ;;  %v9037_v40 = vld [vmem:[#allocation2] ss:$16 sps:$4 sm:$0xff]  }
  0x4a   : > { %2022 = vmatpush1.bf16.msra.mxu1 %v9014_v22  ;;  %1952 = vmatprep.subr.bf16.mxu0 %v9015_v23  ;;  %v9035_v39 = vld [vmem:[#allocation2 + $0x204] ss:$16 sps:$4 sm:$0xff]   ;;  %v9038_v41 = vld [vmem:[#allocation2 + $0x200] ss:$16 sps:$4 sm:$0xff]  }
  0x4b   : > { %2023 = vmatprep.subr.bf16.mxu1 %v9017_v24  ;;  %1953 = vmatpush1.bf16.msra.mxu0 %v9019_v26  ;;  %v9039_v42 = vld [vmem:[#allocation2 + $0x1e4] ss:$16 sps:$4 sm:$0xff]   ;;  %v9043_v44 = vld [vmem:[#allocation2 + $0x1e0] ss:$16 sps:$4 sm:$0xff]  }
  0x4c   : > { %1954 = vmatprep.subr.bf16.mxu0 %v9021_v28  ;;  %v9041_v43 = vld [vmem:[#allocation2 + $0x3e4] ss:$16 sps:$4 sm:$0xff]   ;;  %v9044_v45 = vld [vmem:[#allocation2 + $0x3e0] ss:$16 sps:$4 sm:$0xff]  }
  0x4d   : > { %8963 = vset.pattern.permute.xlu1 %v12692_v1  ;;  %894 = vperm.xlu0 %8961, %v652_v15   ;;  %v9045_v46 = vld [vmem:[#allocation2 + $0x1c4] ss:$16 sps:$4 sm:$0xff]   ;;  %v9049_v48 = vld [vmem:[#allocation2 + $0x1c0] ss:$16 sps:$4 sm:$0xff]  }
  0x4e   : > { %676 = vperm.xlu1 %8963, %v652_v15   ;;  %2024 = vmatpush1.bf16.msra.mxu1 %v9020_v27  ;;  %v9047_v47 = vld [vmem:[#allocation2 + $0x3c4] ss:$16 sps:$4 sm:$0xff]   ;;  %v9050_v49 = vld [vmem:[#allocation2 + $0x3c0] ss:$16 sps:$4 sm:$0xff]  }
  0x4f   : > { %2025 = vmatprep.subr.bf16.mxu1 %v9023_v29  ;;  %1955 = vmatpush1.bf16.msra.mxu0 %v9025_v30  ;;  %v9051_v50 = vld [vmem:[#allocation2 + $0x1a4] ss:$16 sps:$4 sm:$0xff]   ;;  %v9055_v52 = vld [vmem:[#allocation2 + $0x1a0] ss:$16 sps:$4 sm:$0xff]  }
  0x50   : > { %1956 = vmatprep.subr.bf16.mxu0 %v9027_v32  ;;  %v9053_v51 = vld [vmem:[#allocation2 + $0x3a4] ss:$16 sps:$4 sm:$0xff]   ;;  %v9056_v53 = vld [vmem:[#allocation2 + $0x3a0] ss:$16 sps:$4 sm:$0xff]  }
  0x51   : > { %8965 = vset.pattern.permute.xlu0 %v12692_v1  ;;  %v9057_v54 = vld [vmem:[#allocation2 + $0x184] ss:$16 sps:$4 sm:$0xff]   ;;  %v9061_v56 = vld [vmem:[#allocation2 + $0x180] ss:$16 sps:$4 sm:$0xff]  }
  0x52   : > { %8964 = vset.pattern.permute.xlu1 %v12696_v0  ;;  %681 = vperm.xlu0 %8965, %v653_v20   ;;  %v9059_v55 = vld [vmem:[#allocation2 + $0x384] ss:$16 sps:$4 sm:$0xff]   ;;  %v9062_v57 = vld [vmem:[#allocation2 + $0x380] ss:$16 sps:$4 sm:$0xff]  }
  0x53   : > { %774 = vperm.xlu1 %8964, %v652_v15   ;;  %2026 = vmatpush1.bf16.msra.mxu1 %v9026_v31  ;;  %v9063_v58 = vld [vmem:[#allocation2 + $0x164] ss:$16 sps:$4 sm:$0xff]   ;;  %v9067_v60 = vld [vmem:[#allocation2 + $0x160] ss:$16 sps:$4 sm:$0xff]   ;;  %v701_v15 = vlaneseq }
  0x54   : > { %2027 = vmatprep.subr.bf16.mxu1 %v9029_v34  ;;  %1957 = vmatpush1.bf16.msra.mxu0 %v9031_v36  ;;  %v9065_v59 = vld [vmem:[#allocation2 + $0x364] ss:$16 sps:$4 sm:$0xff]   ;;  %v9068_v61 = vld [vmem:[#allocation2 + $0x360] ss:$16 sps:$4 sm:$0xff]  }
  0x55   : > { %1958 = vmatprep.subr.bf16.mxu0 %v9033_v38  ;;  %v9069_v62 = vld [vmem:[#allocation2 + $0x144] ss:$16 sps:$4 sm:$0xff]   ;;  %v9073_v2 = vld [vmem:[#allocation2 + $0x140] ss:$16 sps:$4 sm:$0xff]   ;;  %v702_v16 = vshrl.u32 %v701_v15, 7 }
  0x56   : > { %691 = vperm.xlu0 %8965, %v10515_v25   ;;  %v9071_v63 = vld [vmem:[#allocation2 + $0x344] ss:$16 sps:$4 sm:$0xff]   ;;  %v9074_v3 = vld [vmem:[#allocation2 + $0x340] ss:$16 sps:$4 sm:$0xff]  }
  0x57   : > { %778 = vperm.xlu1 %8964, %v653_v20   ;;  %2028 = vmatpush1.bf16.msra.mxu1 %v9032_v37  ;;  %v9075_v4 = vld [vmem:[#allocation2 + $0x124] ss:$16 sps:$4 sm:$0xff]   ;;  %v9079_v6 = vld [vmem:[#allocation2 + $0x120] ss:$16 sps:$4 sm:$0xff]   ;;  %v10537_v17 = vsub.s32 1, %v702_v16  ;;  %v799_v18 = vsub.s32 5, %v702_v16 }
  0x58   : > { %2029 = vmatprep.subr.bf16.mxu1 %v9035_v39  ;;  %1959 = vmatpush1.bf16.msra.mxu0 %v9037_v40  ;;  %v9077_v5 = vld [vmem:[#allocation2 + $0x324] ss:$16 sps:$4 sm:$0xff]   ;;  %v9080_v7 = vld [vmem:[#allocation2 + $0x320] ss:$16 sps:$4 sm:$0xff]   ;;  %v10545_v21 = vsub.s32 0, %v702_v16  ;;  %v707_v22 = vsub.s32 4, %v702_v16 }
  0x59   : > { %1960 = vmatprep.subr.bf16.mxu0 %v9039_v42  ;;  %v9081_v8 = vld [vmem:[#allocation2 + $0x104] ss:$16 sps:$4 sm:$0xff]   ;;  %v9085_v10 = vld [vmem:[#allocation2 + $0x100] ss:$16 sps:$4 sm:$0xff]   ;;  %12740 = vst [vmem:[#allocation9_spill] sm:$0xff] %v10537_v17  ;;  %v10547_v23 = vsub.s32 2, %v702_v16 }
  0x5a   : > { %8969 = vset.pattern.permute.xlu0 %v12694_v14  ;;  %v9083_v9 = vld [vmem:[#allocation2 + $0x304] ss:$16 sps:$4 sm:$0xff]   ;;  %v9086_v11 = vld [vmem:[#allocation2 + $0x300] ss:$16 sps:$4 sm:$0xff]   ;;  %12742 = vst [vmem:[#allocation10_spill] sm:$0xff] %v10545_v21  ;;  %v919_v24 = vsub.s32 6, %v702_v16 }
  0x5b   : > { %8966 = vset.pattern.permute.xlu1 %v12694_v14  ;;  %902 = vperm.xlu0 %8969, %v654_v33   ;;  %v647_v19 = vld [vmem:[%s12741_s1] sm:$0x77]  ;;  %12743 = vst [vmem:[#allocation11_spill] sm:$0xff] %v10547_v23 }
  0x5c   : > { %898 = vperm.xlu1 %8966, %v653_v20   ;;  %2030 = vmatpush1.bf16.msra.mxu1 %v9038_v41  ;;  %v648_v20 = vld [vmem:[%s12741_s1 + $0x8] sm:$0x77]  ;;  %v800_v26 = vrot.slane %v647_v19, %v799_v18  ;;  %v704_v29 = vrot.slane %v647_v19, %v10545_v21  ;;  %v708_v30 = vrot.slane %v647_v19, %v707_v22 }
  0x5d   : > { %2031 = vmatprep.subr.bf16.mxu1 %v9041_v43  ;;  %1961 = vmatpush2.bf16.msra.mxu0 %v9043_v44  ;;  %v804_v27 = vrot.slane %v648_v20, %v10537_v17  ;;  %v808_v28 = vrot.slane %v648_v20, %v799_v18  ;;  %v712_v31 = vrot.slane %v648_v20, %v10545_v21 }
  0x5e   : > { %1962 = vmatprep.subr.bf16.mxu0 %v9045_v46  ;;  %v716_v32 = vrot.slane %v648_v20, %v707_v22  ;;  %v920_v34 = vrot.slane %v647_v19, %v919_v24  ;;  %v928_v36 = vrot.slane %v648_v20, %v919_v24  ;;  %v10559_v38 = vrot.slane %v800_v26, %v10537_v17 }
  0x5f   : > { %8972 = vset.pattern.permute.xlu0 %v12696_v0  ;;  %v10562_v39 = vrot.slane %v804_v27, %v10537_v17  ;;  %v10565_v40 = vrot.slane %v808_v28, %v10537_v17  ;;  %v10568_v43 = vrot.slane %v704_v29, %v10545_v21  ;;  %v10571_v44 = vrot.slane %v708_v30, %v10545_v21 }
  0x60   : > { %8967 = vset.pattern.permute.xlu1 %v12692_v1  ;;  %790 = vperm.xlu0 %8972, %v10522_v35   ;;  %v10577_v46 = vrot.slane %v716_v32, %v10545_v21 }
  0x61   : > { %686 = vperm.xlu1 %8967, %v654_v33   ;;  %2032 = vmatpush2.bf16.msra.mxu1 %v9044_v45  ;;  %v10574_v45 = vrot.slane %v712_v31, %v10545_v21 }
  0x62   : > { %2033 = vmatprep.subr.bf16.mxu1 %v9047_v47  ;;  %1963 = vmatpush2.bf16.msra.mxu0 %v9049_v48  ;;  %v10579_v47 = vsub.s32 3, %v702_v16 }
  0x63   : > { %1964 = vmatprep.subr.bf16.mxu0 %v9051_v50 }
  0x64   : > { %8975 = vset.pattern.permute.xlu0 %v12692_v1  ;;  %12744 = vst [vmem:[#allocation12_spill] sm:$0xff] %v10579_v47 }
  0x65   : > { %8968 = vset.pattern.permute.xlu1 %v12696_v0  ;;  %2034 = vmatpush2.bf16.msra.mxu1 %v9050_v49  ;;  %v10585_v49 = vrot.slane %v920_v34, %v10547_v23 }
  0x66   : > { %782 = vperm.xlu1 %8968, %v654_v33   ;;  %2035 = vmatprep.subr.bf16.mxu1 %v9053_v51  ;;  %v916_v33 = vrot.slane %v647_v19, %v10547_v23  ;;  %v10591_v51 = vrot.slane %v928_v36, %v10547_v23 }
  0x67   : > { %1965 = vmatpush2.bf16.msra.mxu0 %v9055_v52 }
  0x68   : > { %1966 = vmatprep.subr.bf16.mxu0 %v9057_v54  ;;  %v10582_v48 = vrot.slane %v916_v33, %v10547_v23 }
  0x69   : > { %2036 = vmatpush2.bf16.msra.mxu1 %v9056_v53 }
  0x6a   : > { %786 = vperm.xlu1 %8968, %v10515_v25   ;;  %2037 = vmatprep.subr.bf16.mxu1 %v9059_v55 }
  0x6b   : > { %1967 = vmatpush2.bf16.msra.mxu0 %v9061_v56 }
  0x6c   : > { %1968 = vmatprep.subr.bf16.mxu0 %v9063_v58 }
  0x6d   : > { %2038 = vmatpush2.bf16.msra.mxu1 %v9062_v57 }
  0x6e   : > { %8970 = vset.pattern.permute.xlu1 %v12694_v14  ;;  %2039 = vmatprep.subr.bf16.mxu1 %v9065_v59 }
  0x6f   : > { %906 = vperm.xlu1 %8970, %v10515_v25   ;;  %1969 = vmatpush2.bf16.msra.mxu0 %v9067_v60  ;;  %v796_v25 = vrot.slane %v647_v19, %v10537_v17 }
  0x70   : > { %1970 = vmatprep.subr.bf16.mxu0 %v9069_v62  ;;  %v649_v62 = vld [vmem:[%s12675_s3] sm:$0xf] }
  0x71   : > { %2040 = vmatpush2.bf16.msra.mxu1 %v9068_v61  ;;  %v10556_v37 = vrot.slane %v796_v25, %v10537_v17 }
  0x72   : > { %2041 = vmatprep.subr.bf16.mxu1 %v9071_v63 }
  0x73   : > { %8971 = vset.pattern.permute.xlu1 %v12692_v1  ;;  %1971 = vmatpush2.bf16.msra.mxu0 %v9073_v2 }
  0x74   : > { %696 = vperm.xlu1 %8971, %v10522_v35   ;;  %1972 = vmatprep.subr.bf16.mxu0 %v9075_v4 }
  0x75   : > { %2042 = vmatpush2.bf16.msra.mxu1 %v9074_v3 }
  0x76   : > { %2043 = vmatprep.subr.bf16.mxu1 %v9077_v5 }
  0x77   : > { %1973 = vmatpush2.bf16.msra.mxu0 %v9079_v6 }
  0x78   : > { %8973 = vset.pattern.permute.xlu1 %v12694_v14  ;;  %1974 = vmatprep.subr.bf16.mxu0 %v9081_v8 }
  0x79   : > { %910 = vperm.xlu1 %8973, %v10522_v35   ;;  %2044 = vmatpush2.bf16.msra.mxu1 %v9080_v7  ;;  %v924_v35 = vrot.slane %v648_v20, %v10547_v23 }
  0x7a   : > { %2045 = vmatprep.subr.bf16.mxu1 %v9083_v9  ;;  %v10613_v9 = vrot.slane %v649_v62, %v10537_v17 }
  0x7b   : > { %1975 = vmatpush2.bf16.msra.mxu0 %v9085_v10  ;;  %v10588_v50 = vrot.slane %v924_v35, %v10547_v23  ;;  %v10616_v10 = vrot.slane %v649_v62, %v10579_v47  ;;  %v9114_v47 = vld [vmem:[#allocation2 + $0x268] ss:$16 sps:$4 sm:$0xff]  }
  0x7c   : > { %2086 = vmatprep.subr.bf16.mxu0 %v9089_v12  ;;  %v10622_v12 = vrot.slane %v649_v62, %v10547_v23 }
  0x7d   : > { %8974 = vset.pattern.permute.xlu1 %v12692_v1  ;;  %2046 = vmatpush2.bf16.msra.mxu1 %v9086_v11  ;;  %v10619_v11 = vrot.slane %v649_v62, %v10545_v21 }
  0x7e   : > { %2157 = vmatprep.subr.bf16.mxu1 %v9092_v13 }
  0xbb   : > { %v767_v41 = vpop.permute.xlu1 %766  ;;  %v667_v42 = vpop.permute.xlu0 %666 }
  0xbc   : > { %v829_v52 = vmul.f32 %v10556_v37, %v767_v41  ;;  %v830_v53 = vmul.f32 %v10559_v38, %v767_v41  ;;  %v831_v54 = vmul.f32 %v10562_v39, %v767_v41  ;;  %v832_v55 = vmul.f32 %v10565_v40, %v767_v41 }
  0xbd   : > { %v737_v56 = vmul.f32 %v10568_v43, %v667_v42  ;;  %v738_v57 = vmul.f32 %v10571_v44, %v667_v42  ;;  %v739_v58 = vmul.f32 %v10574_v45, %v667_v42  ;;  %v740_v59 = vmul.f32 %v10577_v46, %v667_v42 }
  0xbf   : > { %v771_v60 = vpop.permute.xlu1 %770  ;;  %v672_v61 = vpop.permute.xlu0 %671  ;;  %v857_v13 = vadd.f32 %v829_v52, %v737_v56  ;;  %v858_v15 = vadd.f32 %v830_v53, %v738_v57  ;;  %v859_v16 = vadd.f32 %v831_v54, %v739_v58  ;;  %v860_v18 = vadd.f32 %v832_v55, %v740_v59 }
  0xc0   : > { %v833_v63 = vmul.f32 %v10556_v37, %v771_v60  ;;  %v834_v2 = vmul.f32 %v10559_v38, %v771_v60  ;;  %v835_v3 = vmul.f32 %v10562_v39, %v771_v60  ;;  %v836_v4 = vmul.f32 %v10565_v40, %v771_v60 }
  0xc1   : > { %v741_v5 = vmul.f32 %v10568_v43, %v672_v61  ;;  %v742_v6 = vmul.f32 %v10571_v44, %v672_v61  ;;  %v743_v7 = vmul.f32 %v10574_v45, %v672_v61  ;;  %v744_v8 = vmul.f32 %v10577_v46, %v672_v61 }
  0xc3   : > { %v861_v19 = vadd.f32 %v833_v63, %v741_v5  ;;  %v862_v20 = vadd.f32 %v834_v2, %v742_v6  ;;  %v863_v22 = vadd.f32 %v835_v3, %v743_v7  ;;  %v864_v24 = vadd.f32 %v836_v4, %v744_v8 }
  0xc4   : > { %v891_v25 = vpop.permute.xlu1 %890  ;;  %v887_v26 = vpop.permute.xlu0 %886 }
  0xc5   : > { %v953_v27 = vmul.f32 %v10582_v48, %v891_v25  ;;  %v954_v28 = vmul.f32 %v10585_v49, %v891_v25  ;;  %v955_v29 = vmul.f32 %v10588_v50, %v891_v25  ;;  %v956_v30 = vmul.f32 %v10591_v51, %v891_v25 }
  0xc6   : > { %v949_v31 = vmul.f32 %v10582_v48, %v887_v26  ;;  %v950_v32 = vmul.f32 %v10585_v49, %v887_v26  ;;  %v951_v33 = vmul.f32 %v10588_v50, %v887_v26  ;;  %v952_v34 = vmul.f32 %v10591_v51, %v887_v26 }
  0xc7   : > { %v981_v35 = vadd.f32 %v953_v27, %v861_v19  ;;  %v982_v36 = vadd.f32 %v954_v28, %v862_v20  ;;  %v983_v41 = vadd.f32 %v955_v29, %v863_v22  ;;  %v984_v42 = vadd.f32 %v956_v30, %v864_v24 }
  0xc8   : > { %v977_v52 = vadd.f32 %v949_v31, %v857_v13  ;;  %v978_v53 = vadd.f32 %v950_v32, %v858_v15  ;;  %v979_v54 = vadd.f32 %v951_v33, %v859_v16  ;;  %v980_v55 = vadd.f32 %v952_v34, %v860_v18  ;;  %v895_v56 = vpop.permute.xlu0 %894 }
  0xc9   : > { %v957_v57 = vmul.f32 %v10582_v48, %v895_v56  ;;  %v958_v58 = vmul.f32 %v10585_v49, %v895_v56  ;;  %v959_v59 = vmul.f32 %v10588_v50, %v895_v56  ;;  %v960_v60 = vmul.f32 %v10591_v51, %v895_v56  ;;  %v677_v61 = vpop.permute.xlu1 %676 }
  0xca   : > { %v745_v62 = vmul.f32 %v10568_v43, %v677_v61  ;;  %v746_v63 = vmul.f32 %v10571_v44, %v677_v61  ;;  %v747_v2 = vmul.f32 %v10574_v45, %v677_v61  ;;  %v748_v3 = vmul.f32 %v10577_v46, %v677_v61 }
  0xcb   : > { %v1027_v4 = vadd.f32 %v10613_v9, %v978_v53  ;;  %v1031_v5 = vadd.f32 %v10613_v9, %v982_v36  ;;  %v1029_v6 = vadd.f32 %v10616_v10, %v980_v55  ;;  %v1033_v7 = vadd.f32 %v10616_v10, %v984_v42 }
  0xcc   : > { %v1026_v8 = vadd.f32 %v10619_v11, %v977_v52  ;;  %v1030_v13 = vadd.f32 %v10619_v11, %v981_v35  ;;  %v1028_v15 = vadd.f32 %v10622_v12, %v979_v54  ;;  %v1032_v16 = vadd.f32 %v10622_v12, %v983_v41 }
  0xcd   : > { %vm1055_vm0 = vcmp.gt.f32.partialorder %v1027_v4, 0.0  ;;  %vm1059_vm1 = vcmp.gt.f32.partialorder %v1031_v5, 0.0  ;;  %v1083_v18 = vmul.f32 0.2, %v1027_v4  ;;  %v1087_v19 = vmul.f32 0.2, %v1031_v5  ;;  %v682_v41 = vpop.permute.xlu0 %681 }
  0xce   : > { %v775_v20 = vpop.permute.xlu1 %774  ;;  %vm1057_vm2 = vcmp.gt.f32.partialorder %v1029_v6, 0.0  ;;  %vm1061_vm3 = vcmp.gt.f32.partialorder %v1033_v7, 0.0  ;;  %v1085_v22 = vmul.f32 0.2, %v1029_v6  ;;  %v1089_v24 = vmul.f32 0.2, %v1033_v7 }
  0xcf   : > { %v837_v25 = vmul.f32 %v10556_v37, %v775_v20  ;;  %v838_v26 = vmul.f32 %v10559_v38, %v775_v20  ;;  %v839_v27 = vmul.f32 %v10562_v39, %v775_v20  ;;  %v840_v28 = vmul.f32 %v10565_v40, %v775_v20  ;;  %v9098_v20 = vld [vmem:[#allocation2 + $0x2cc] ss:$16 sps:$4 sm:$0xff]  }
  0xd0   : > { %v1111_v29 = vsel %vm1055_vm0, %v1027_v4, %v1083_v18  ;;  %v1115_v30 = vsel %vm1059_vm1, %v1031_v5, %v1087_v19  ;;  %v1113_v31 = vsel %vm1057_vm2, %v1029_v6, %v1085_v22  ;;  %v1117_v32 = vsel %vm1061_vm3, %v1033_v7, %v1089_v24 }
  0xd1   : > { %v865_v33 = vadd.f32 %v837_v25, %v745_v62  ;;  %v866_v34 = vadd.f32 %v838_v26, %v746_v63  ;;  %v867_v35 = vadd.f32 %v839_v27, %v747_v2  ;;  %v868_v36 = vadd.f32 %v840_v28, %v748_v3  ;;  %v9087_v62 = vld [vmem:[#allocation2 + $0xe8] ss:$16 sps:$4 sm:$0xff]   ;;  %v692_v6 = vpop.permute.xlu0 %691 }
  0xd2   : > { %v10652_v42 = vpack.c.bf16 %v1115_v30, %v1111_v29  ;;  %v10654_v52 = vpack.c.bf16 %v1117_v32, %v1113_v31  ;;  %vm1054_vm4 = vcmp.gt.f32.partialorder %v1026_v8, 0.0  ;;  %vm1058_vm5 = vcmp.gt.f32.partialorder %v1030_v13, 0.0  ;;  %v779_v53 = vpop.permute.xlu1 %778  ;;  %v9090_v3 = vld [vmem:[#allocation2 + $0x2e8] ss:$16 sps:$4 sm:$0xff]  }
  0xd3   : > { %v10656_v54 = vadd.f32 %v957_v57, %v865_v33  ;;  %v10658_v55 = vadd.f32 %v958_v58, %v866_v34  ;;  %v10660_v56 = vadd.f32 %v959_v59, %v867_v35  ;;  %v10662_v61 = vadd.f32 %v960_v60, %v868_v36  ;;  %v9095_v59 = vld [vmem:[#allocation2 + $0xcc] ss:$16 sps:$4 sm:$0xff]   ;;  %v9093_v29 = vld [vmem:[#allocation2 + $0xc8] ss:$16 sps:$4 sm:$0xff]  }
  0xd4   : > { %1976 = vmatprep.mubr.bf16.mxu0 %v10652_v42  ;;  %2047 = vmatprep.mubr.bf16.mxu1 %v10654_v52  ;;  %v1082_v63 = vmul.f32 0.2, %v1026_v8  ;;  %v1086_v2 = vmul.f32 0.2, %v1030_v13  ;;  %vm1056_vm6 = vcmp.gt.f32.partialorder %v1028_v15, 0.0  ;;  %vm1060_vm7 = vcmp.gt.f32.partialorder %v1032_v16, 0.0 }
  0xd5   : > { %v1084_v4 = vmul.f32 0.2, %v1028_v15  ;;  %v1088_v5 = vmul.f32 0.2, %v1032_v16  ;;  %v841_v57 = vmul.f32 %v10556_v37, %v779_v53  ;;  %v842_v58 = vmul.f32 %v10559_v38, %v779_v53  ;;  %v9096_v31 = vld [vmem:[#allocation2 + $0x2c8] ss:$16 sps:$4 sm:$0xff]  }
  0xd6   : > { %v1110_v60 = vsel %vm1054_vm4, %v1026_v8, %v1082_v63  ;;  %v1114_v7 = vsel %vm1058_vm5, %v1030_v13, %v1086_v2  ;;  %v843_v18 = vmul.f32 %v10562_v39, %v779_v53  ;;  %v844_v19 = vmul.f32 %v10565_v40, %v779_v53  ;;  %v9101_v34 = vld [vmem:[#allocation2 + $0xac] ss:$16 sps:$4 sm:$0xff]  }
  0xd7   : > { %v10672_v22 = vpack.c.bf16 %v1114_v7, %v1110_v60  ;;  %v1112_v24 = vsel %vm1056_vm6, %v1028_v15, %v1084_v4  ;;  %v1116_v25 = vsel %vm1060_vm7, %v1032_v16, %v1088_v5  ;;  %v749_v26 = vmul.f32 %v10568_v43, %v682_v41  ;;  %v899_v27 = vpop.permute.xlu1 %898  ;;  %v9104_v63 = vld [vmem:[#allocation2 + $0x2ac] ss:$16 sps:$4 sm:$0xff]   ;;  %v903_v5 = vpop.permute.xlu0 %902  ;;  %v9099_v7 = vld [vmem:[#allocation2 + $0xa8] ss:$16 sps:$4 sm:$0xff]  }
  0xd8   : > { %v10675_v28 = vpack.c.bf16 %v1116_v25, %v1112_v24  ;;  %v750_v30 = vmul.f32 %v10571_v44, %v682_v41  ;;  %v751_v8 = vmul.f32 %v10574_v45, %v682_v41  ;;  %v752_v13 = vmul.f32 %v10577_v46, %v682_v41 }
  0xd9   : > { %12745 = vst [vmem:[#allocation13_spill] sm:$0xff] %v10672_v22  ;;  %1977 = vmatmul.mubr.bf16.vlgmr.msra.gmra.mxu0 %v10672_v22  ;;  %v869_v32 = vadd.f32 %v841_v57, %v749_v26  ;;  %v961_v33 = vmul.f32 %v10582_v48, %v899_v27  ;;  %v962_v15 = vmul.f32 %v10585_v49, %v899_v27  ;;  %v9110_v26 = vld [vmem:[#allocation2 + $0x28c] ss:$16 sps:$4 sm:$0xff]  }
  0xda   : > { %12746 = vst [vmem:[#allocation14_spill] sm:$0xff] %v10675_v28  ;;  %v963_v16 = vmul.f32 %v10588_v50, %v899_v27  ;;  %2048 = vmatmul.mubr.bf16.vlgmr.msra.gmra.mxu1 %v10675_v28  ;;  %2087 = vmatpush1.bf16.msra.mxu0 %v9087_v62  ;;  %v870_v35 = vadd.f32 %v842_v58, %v750_v30  ;;  %v9119_v28 = vld [vmem:[#allocation2 + $0x4c] ss:$16 sps:$4 sm:$0xff]  }
  0xdb   : > { %v871_v36 = vadd.f32 %v843_v18, %v751_v8  ;;  %v872_v53 = vadd.f32 %v844_v19, %v752_v13  ;;  %2158 = vmatpush1.bf16.msra.mxu1 %v9090_v3  ;;  %2088 = vmatprep.subr.bf16.mxu0 %v9095_v59  ;;  %v964_v41 = vmul.f32 %v10591_v51, %v899_v27  ;;  %v9102_v59 = vld [vmem:[#allocation2 + $0x2a8] ss:$16 sps:$4 sm:$0xff]   ;;  %v9107_v18 = vld [vmem:[#allocation2 + $0x8c] ss:$16 sps:$4 sm:$0xff]  }
  0xdc   : > { %v989_v2 = vadd.f32 %v961_v33, %v869_v32  ;;  %v10687_v4 = vmul.f32 %v10568_v43, %v692_v6  ;;  %2159 = vmatprep.subr.bf16.mxu1 %v9098_v20  ;;  %v990_v57 = vadd.f32 %v962_v15, %v870_v35  ;;  %v687_v24 = vpop.permute.xlu1 %686  ;;  %v10692_v62 = vmul.f32 %v10571_v44, %v692_v6 }
  0xdd   : > { %v10689_v60 = vadd.f32 %v963_v16, %v871_v36  ;;  %v10695_v58 = vmul.f32 %v10574_v45, %v692_v6  ;;  %v992_v3 = vadd.f32 %v964_v41, %v872_v53  ;;  %v753_v19 = vmul.f32 %v10568_v43, %v687_v24  ;;  %v9113_v36 = vld [vmem:[#allocation2 + $0x6c] ss:$16 sps:$4 sm:$0xff]  }
  0xde   : > { %v754_v25 = vmul.f32 %v10571_v44, %v687_v24  ;;  %v755_v20 = vmul.f32 %v10574_v45, %v687_v24  ;;  %2089 = vmatpush1.bf16.msra.mxu0 %v9093_v29  ;;  %v756_v27 = vmul.f32 %v10577_v46, %v687_v24  ;;  %v10702_v30 = vmul.f32 %v10577_v46, %v692_v6  ;;  %v9105_v29 = vld [vmem:[#allocation2 + $0x88] ss:$16 sps:$4 sm:$0xff]  }
  0xdf   : > { %v965_v8 = vmul.f32 %v10582_v48, %v903_v5  ;;  %v966_v13 = vmul.f32 %v10585_v49, %v903_v5  ;;  %2160 = vmatpush1.bf16.msra.mxu1 %v9096_v31  ;;  %2090 = vmatprep.subr.bf16.mxu0 %v9101_v34  ;;  %v967_v32 = vmul.f32 %v10588_v50, %v903_v5  ;;  %v9108_v34 = vld [vmem:[#allocation2 + $0x288] ss:$16 sps:$4 sm:$0xff]  }
  0xe0   : > { %v968_v33 = vmul.f32 %v10591_v51, %v903_v5  ;;  %v1035_v15 = vadd.f32 %v10613_v9, %v10658_v55  ;;  %2161 = vmatprep.subr.bf16.mxu1 %v9104_v63  ;;  %v1039_v16 = vadd.f32 %v10613_v9, %v990_v57  ;;  %v1037_v6 = vadd.f32 %v10616_v10, %v10662_v61  ;;  %v9116_v63 = vld [vmem:[#allocation2 + $0x26c] ss:$16 sps:$4 sm:$0xff]  }
  0xe1   : > { %v1041_v35 = vadd.f32 %v10616_v10, %v992_v3  ;;  %v1034_v31 = vadd.f32 %v10619_v11, %v10656_v54  ;;  %v783_v53 = vpop.permute.xlu1 %782  ;;  %v1038_v5 = vadd.f32 %v10619_v11, %v989_v2  ;;  %v10719_v55 = vadd.f32 %v10622_v12, %v10660_v56  ;;  %v9111_v2 = vld [vmem:[#allocation2 + $0x68] ss:$16 sps:$4 sm:$0xff]  }
  0xe2   : > { %vm1063_vm8 = vcmp.gt.f32.partialorder %v1035_v15, 0.0  ;;  %v1091_v41 = vmul.f32 0.2, %v1035_v15  ;;  %2091 = vmatpush1.bf16.msra.mxu0 %v9099_v7  ;;  %v845_v61 = vmul.f32 %v10556_v37, %v783_v53  ;;  %v846_v57 = vmul.f32 %v10559_v38, %v783_v53 }
  0xe3   : > { %v847_v24 = vmul.f32 %v10562_v39, %v783_v53  ;;  %v848_v54 = vmul.f32 %v10565_v40, %v783_v53  ;;  %2162 = vmatpush1.bf16.msra.mxu1 %v9102_v59  ;;  %2092 = vmatprep.subr.bf16.mxu0 %v9107_v18  ;;  %vm1067_vm9 = vcmp.gt.f32.partialorder %v1039_v16, 0.0  ;;  %v1095_v3 = vmul.f32 0.2, %v1039_v16 }
  0xe4   : > { %v1119_v1 = vsel %vm1063_vm8, %v1035_v15, %v1091_v41  ;;  %vm1065_vm10 = vcmp.gt.f32.partialorder %v1037_v6, 0.0  ;;  %2163 = vmatprep.subr.bf16.mxu1 %v9110_v26  ;;  %v873_v56 = vadd.f32 %v845_v61, %v753_v19  ;;  %v874_v14 = vadd.f32 %v846_v57, %v754_v25  ;;  %v9122_v19 = vld [vmem:[#allocation2 + $0x24c] ss:$16 sps:$4 sm:$0xff]   ;;  %v9126_v57 = vld [vmem:[#allocation2 + $0x228] ss:$16 sps:$4 sm:$0xff]  }
  0xe5   : > { %v875_v7 = vadd.f32 %v847_v24, %v755_v20  ;;  %v876_v0 = vadd.f32 %v848_v54, %v756_v27  ;;  %v1123_v23 = vsel %vm1067_vm9, %v1039_v16, %v1095_v3  ;;  %vm1069_vm11 = vcmp.gt.f32.partialorder %v1041_v35, 0.0  ;;  %v787_v22 = vpop.permute.xlu1 %786  ;;  %v9131_v54 = vld [vmem:[#allocation2 + $0xc] ss:$16 sps:$4 sm:$0xff]  }
  0xe6   : > { %v1093_v17 = vmul.f32 0.2, %v1037_v6  ;;  %v1097_v21 = vmul.f32 0.2, %v1041_v35  ;;  %2093 = vmatpush1.bf16.msra.mxu0 %v9105_v29  ;;  %v10725_v59 = vadd.f32 %v965_v8, %v873_v56  ;;  %v10727_v18 = vadd.f32 %v966_v13, %v874_v14  ;;  %v9117_v13 = vld [vmem:[#allocation2 + $0x48] ss:$16 sps:$4 sm:$0xff]  }
  0xe7   : > { %v10729_v15 = vadd.f32 %v967_v32, %v875_v7  ;;  %v10731_v26 = vadd.f32 %v968_v33, %v876_v0  ;;  %2164 = vmatpush1.bf16.msra.mxu1 %v9108_v34  ;;  %2094 = vmatprep.subr.bf16.mxu0 %v9113_v36  ;;  %v10733_v25 = vpack.c.bf16 %v1123_v23, %v1119_v1  ;;  %vm1062_vm12 = vcmp.gt.f32.partialorder %v1034_v31, 0.0  ;;  %v9120_v23 = vld [vmem:[#allocation2 + $0x248] ss:$16 sps:$4 sm:$0xff]  }
  0xe8   : > { %v1121_v20 = vsel %vm1065_vm10, %v1037_v6, %v1093_v17  ;;  %v1125_v27 = vsel %vm1069_vm11, %v1041_v35, %v1097_v21  ;;  %2165 = vmatprep.subr.bf16.mxu1 %v9116_v63  ;;  %vm1066_vm13 = vcmp.gt.f32.partialorder %v1038_v5, 0.0  ;;  %v1090_v8 = vmul.f32 0.2, %v1034_v31  ;;  %v9125_v21 = vld [vmem:[#allocation2 + $0x2c] ss:$16 sps:$4 sm:$0xff]  }
  0xe9   : > { %v10736_v16 = vpack.c.bf16 %v1125_v27, %v1121_v20  ;;  %v1094_v14 = vmul.f32 0.2, %v1038_v5  ;;  %1986 = vmatprep.mubr.bf16.mxu0 %v10733_v25  ;;  %v1040_v0 = vadd.f32 %v10622_v12, %v10689_v60  ;;  %vm1064_vm14 = vcmp.gt.f32.partialorder %v10719_v55, 0.0  ;;  %v9128_v6 = vld [vmem:[#allocation2 + $0x22c] ss:$16 sps:$4 sm:$0xff]  }
  0xea   : > { %v1092_v1 = vmul.f32 0.2, %v10719_v55  ;;  %v849_v17 = vmul.f32 %v10556_v37, %v787_v22  ;;  %2095 = vmatpush1.bf16.msra.mxu0 %v9111_v2  ;;  %v1118_v32 = vsel %vm1062_vm12, %v1034_v31, %v1090_v8  ;;  %v850_v29 = vmul.f32 %v10559_v38, %v787_v22  ;;  %v907_v35 = vpop.permute.xlu1 %906  ;;  %v9123_v63 = vld [vmem:[#allocation2 + $0x28] ss:$16 sps:$4 sm:$0xff]   ;;  %v9134_v2 = vld [vmem:[#allocation2 + $0x20c] ss:$16 sps:$4 sm:$0xff]  }
  0xeb   : > { %2057 = vmatprep.mubr.bf16.mxu1 %v10736_v16  ;;  %v1122_v33 = vsel %vm1066_vm13, %v1038_v5, %v1094_v14  ;;  %2166 = vmatpush1.bf16.msra.mxu1 %v9114_v47  ;;  %vm1068_vm15 = vcmp.gt.f32.partialorder %v1040_v0, 0.0  ;;  %v1096_v34 = vmul.f32 0.2, %v1040_v0  ;;  %v851_v53 = vmul.f32 %v10562_v39, %v787_v22  ;;  %v791_v47 = vpop.permute.xlu0 %790  ;;  %v9129_v14 = vld [vmem:[#allocation2 + $0x8] ss:$16 sps:$4 sm:$0xff]  }
  0xec   : > { %v10747_v60 = vpack.c.bf16 %v1122_v33, %v1118_v32  ;;  %v1120_v36 = vsel %vm1064_vm14, %v10719_v55, %v1092_v1  ;;  %2096 = vmatprep.subr.bf16.mxu0 %v9119_v28  ;;  %2167 = vmatprep.subr.bf16.mxu1 %v9122_v19  ;;  %v852_v31 = vmul.f32 %v10565_v40, %v787_v22 }
  0xed   : > { %v877_v41 = vadd.f32 %v849_v17, %v10687_v4  ;;  %v878_v5 = vadd.f32 %v850_v29, %v10692_v62  ;;  %v1124_v61 = vsel %vm1068_vm15, %v1040_v0, %v1096_v34  ;;  %v969_v24 = vmul.f32 %v10582_v48, %v907_v35 }
  0xee   : > { %1987 = vmatmul.mubr.bf16.gmra.mxu0 %v10747_v60  ;;  %v970_v55 = vmul.f32 %v10585_v49, %v907_v35  ;;  %v971_v28 = vmul.f32 %v10588_v50, %v907_v35  ;;  %v10760_v3 = vpack.c.bf16 %v1124_v61, %v1120_v36  ;;  %v879_v22 = vadd.f32 %v851_v53, %v10695_v58  ;;  %v9135_v53 = vld [vmem:[#allocation2 + $0x1e8] ss:$16 sps:$4 sm:$0xff]  }
  0xef   : > { %2097 = vmatpush1.bf16.msra.mxu0 %v9117_v13  ;;  %v880_v4 = vadd.f32 %v852_v31, %v10702_v30  ;;  %v972_v62 = vmul.f32 %v10591_v51, %v907_v35  ;;  %2168 = vmatpush1.bf16.msra.mxu1 %v9120_v23  ;;  %v997_v56 = vadd.f32 %v969_v24, %v877_v41  ;;  %v697_v19 = vpop.permute.xlu1 %696  ;;  %v9132_v13 = vld [vmem:[#allocation2 + $0x208] ss:$16 sps:$4 sm:$0xff]   ;;  %v9137_v23 = vld [vmem:[#allocation2 + $0x1ec] ss:$16 sps:$4 sm:$0xff]  }
  0xf0   : > { %2098 = vmatprep.subr.bf16.mxu0 %v9125_v21  ;;  %v998_v7 = vadd.f32 %v970_v55, %v878_v5  ;;  %v853_v20 = vmul.f32 %v10556_v37, %v791_v47  ;;  %2058 = vmatmul.mubr.bf16.gmra.mxu1 %v10760_v3  ;;  %v999_v27 = vadd.f32 %v971_v28, %v879_v22  ;;  %v9140_v21 = vld [vmem:[#allocation2 + $0x3ec] ss:$16 sps:$4 sm:$0xff]  }
  0xf1   : > { %2169 = vmatprep.subr.bf16.mxu1 %v9128_v6  ;;  %v1000_v8 = vadd.f32 %v972_v62, %v880_v4  ;;  %v761_v58 = vmul.f32 %v10568_v43, %v697_v19  ;;  %v762_v30 = vmul.f32 %v10571_v44, %v697_v19  ;;  %v763_v0 = vmul.f32 %v10574_v45, %v697_v19  ;;  %v9143_v55 = vld [vmem:[#allocation2 + $0x1cc] ss:$16 sps:$4 sm:$0xff]  }
  0xf2   : > { %v764_v1 = vmul.f32 %v10577_v46, %v697_v19  ;;  %v854_v17 = vmul.f32 %v10559_v38, %v791_v47  ;;  %v855_v32 = vmul.f32 %v10562_v39, %v791_v47  ;;  %v856_v33 = vmul.f32 %v10565_v40, %v791_v47  ;;  %v9138_v47 = vld [vmem:[#allocation2 + $0x3e8] ss:$16 sps:$4 sm:$0xff]   ;;  %v9146_v28 = vld [vmem:[#allocation2 + $0x3cc] ss:$16 sps:$4 sm:$0xff]  }
  0xf3   : > { %2099 = vmatpush1.bf16.msra.mxu0 %v9123_v63  ;;  %v881_v29 = vadd.f32 %v853_v20, %v761_v58  ;;  %v1043_v6 = vadd.f32 %v10613_v9, %v10727_v18  ;;  %2170 = vmatpush1.bf16.msra.mxu1 %v9126_v57  ;;  %v1047_v34 = vadd.f32 %v10613_v9, %v998_v7  ;;  %v9141_v19 = vld [vmem:[#allocation2 + $0x1c8] ss:$16 sps:$4 sm:$0xff]  }
  0xf4   : > { %2100 = vmatprep.subr.bf16.mxu0 %v9131_v54  ;;  %v882_v35 = vadd.f32 %v854_v17, %v762_v30  ;;  %v1045_v36 = vadd.f32 %v10616_v10, %v10731_v26  ;;  %2171 = vmatprep.subr.bf16.mxu1 %v9134_v2  ;;  %v883_v31 = vadd.f32 %v855_v32, %v763_v0  ;;  %v911_v5 = vpop.permute.xlu1 %910  ;;  %v9152_v32 = vld [vmem:[#allocation2 + $0x3ac] ss:$16 sps:$4 sm:$0xff]  }
  0xf5   : > { %v884_v41 = vadd.f32 %v856_v33, %v764_v1  ;;  %vm1071_vm0 = vcmp.gt.f32.partialorder %v1043_v6, 0.0  ;;  %v1099_v63 = vmul.f32 0.2, %v1043_v6  ;;  %v973_v61 = vmul.f32 %v10582_v48, %v911_v5  ;;  %v9149_v1 = vld [vmem:[#allocation2 + $0x1ac] ss:$16 sps:$4 sm:$0xff]  }
  0xf6   : > { %v974_v18 = vmul.f32 %v10585_v49, %v911_v5  ;;  %v975_v57 = vmul.f32 %v10588_v50, %v911_v5  ;;  %v976_v24 = vmul.f32 %v10591_v51, %v911_v5  ;;  %vm1075_vm1 = vcmp.gt.f32.partialorder %v1047_v34, 0.0 }
  0xf7   : > { %2101 = vmatpush1.bf16.msra.mxu0 %v9129_v14  ;;  %v1103_v26 = vmul.f32 0.2, %v1047_v34  ;;  %v1127_v54 = vsel %vm1071_vm0, %v1043_v6, %v1099_v63  ;;  %v1049_v22 = vadd.f32 %v10616_v10, %v1000_v8  ;;  %2172 = vmatpush1.bf16.msra.mxu1 %v9132_v13  ;;  %v1001_v4 = vadd.f32 %v973_v61, %v881_v29  ;;  %v9144_v14 = vld [vmem:[#allocation2 + $0x3c8] ss:$16 sps:$4 sm:$0xff]  }
  0xf8   : > { %2102 = vmatprep.subr.bf16.mxu0 %v9137_v23  ;;  %v1002_v62 = vadd.f32 %v974_v18, %v882_v35  ;;  %v10784_v2 = vadd.f32 %v975_v57, %v883_v31  ;;  %vm1073_vm2 = vcmp.gt.f32.partialorder %v1045_v36, 0.0  ;;  %2173 = vmatprep.subr.bf16.mxu1 %v9140_v21  ;;  %v1004_v7 = vadd.f32 %v976_v24, %v884_v41  ;;  %v9158_v41 = vld [vmem:[#allocation2 + $0x38c] ss:$16 sps:$4 sm:$0xff]  }
  0xf9   : > { %v1131_v20 = vsel %vm1075_vm1, %v1047_v34, %v1103_v26  ;;  %vm1077_vm3 = vcmp.gt.f32.partialorder %v1049_v22, 0.0  ;;  %v1101_v58 = vmul.f32 0.2, %v1045_v36  ;;  %v1105_v0 = vmul.f32 0.2, %v1049_v22 }
  0xfa   : > { %v10786_v30 = vpack.c.bf16 %v1131_v20, %v1127_v54  ;;  %v1042_v8 = vadd.f32 %v10619_v11, %v10725_v59  ;;  %v1046_v13 = vadd.f32 %v10619_v11, %v997_v56  ;;  %v1044_v17 = vadd.f32 %v10622_v12, %v10729_v15  ;;  %v9147_v15 = vld [vmem:[#allocation2 + $0x1a8] ss:$16 sps:$4 sm:$0xff]   ;;  %v9164_v20 = vld [vmem:[#allocation2 + $0x36c] ss:$16 sps:$4 sm:$0xff]  }
  0xfb   : > { %2103 = vmatpush2.bf16.msra.mxu0 %v9135_v53  ;;  %v1129_v23 = vsel %vm1073_vm2, %v1045_v36, %v1101_v58  ;;  %v1048_v21 = vadd.f32 %v10622_v12, %v999_v27  ;;  %v1051_v33 = vadd.f32 %v10613_v9, %v1002_v62  ;;  %2174 = vmatpush2.bf16.msra.mxu1 %v9138_v47  ;;  %v9150_v36 = vld [vmem:[#allocation2 + $0x3a8] ss:$16 sps:$4 sm:$0xff]   ;;  %v9155_v53 = vld [vmem:[#allocation2 + $0x18c] ss:$16 sps:$4 sm:$0xff]  }
  0xfc   : > { %2104 = vmatprep.subr.bf16.mxu0 %v9143_v55  ;;  %v1133_v29 = vsel %vm1077_vm3, %v1049_v22, %v1105_v0  ;;  %vm1070_vm4 = vcmp.gt.f32.partialorder %v1042_v8, 0.0  ;;  %vm1074_vm5 = vcmp.gt.f32.partialorder %v1046_v13, 0.0  ;;  %v1098_v59 = vmul.f32 0.2, %v1042_v8  ;;  %2175 = vmatprep.subr.bf16.mxu1 %v9146_v28  ;;  %v9153_v55 = vld [vmem:[#allocation2 + $0x188] ss:$16 sps:$4 sm:$0xff]  }
  0xfd   : > { %1996 = vmatprep.mubr.bf16.mxu0 %v10786_v30  ;;  %v10797_v56 = vpack.c.bf16 %v1133_v29, %v1129_v23  ;;  %v1102_v6 = vmul.f32 0.2, %v1046_v13  ;;  %vm1072_vm6 = vcmp.gt.f32.partialorder %v1044_v17, 0.0  ;;  %vm1076_vm7 = vcmp.gt.f32.partialorder %v1048_v21, 0.0  ;;  %v9156_v54 = vld [vmem:[#allocation2 + $0x388] ss:$16 sps:$4 sm:$0xff]  }
  0xfe   : > { %v1126_v27 = vsel %vm1070_vm4, %v1042_v8, %v1098_v59  ;;  %v1100_v35 = vmul.f32 0.2, %v1044_v17  ;;  %v1104_v34 = vmul.f32 0.2, %v1048_v21  ;;  %vm1079_vm8 = vcmp.gt.f32.partialorder %v1051_v33, 0.0 }
  0xff   : > { %2105 = vmatpush2.bf16.msra.mxu0 %v9141_v19  ;;  %2067 = vmatprep.mubr.bf16.mxu1 %v10797_v56  ;;  %v1130_v31 = vsel %vm1074_vm5, %v1046_v13, %v1102_v6  ;;  %v1107_v5 = vmul.f32 0.2, %v1051_v33  ;;  %v1053_v63 = vadd.f32 %v10616_v10, %v1004_v7  ;;  %v1050_v47 = vadd.f32 %v10619_v11, %v1001_v4  ;;  %v9161_v4 = vld [vmem:[#allocation2 + $0x16c] ss:$16 sps:$4 sm:$0xff]   ;;  %v9159_v8 = vld [vmem:[#allocation2 + $0x168] ss:$16 sps:$4 sm:$0xff]  }
 0x100   : > { %2176 = vmatpush2.bf16.msra.mxu1 %v9144_v14  ;;  %v10803_v61 = vpack.c.bf16 %v1130_v31, %v1126_v27  ;;  %v1128_v18 = vsel %vm1072_vm6, %v1044_v17, %v1100_v35  ;;  %v1132_v57 = vsel %vm1076_vm7, %v1048_v21, %v1104_v34  ;;  %2106 = vmatprep.subr.bf16.mxu0 %v9149_v1  ;;  %v9162_v13 = vld [vmem:[#allocation2 + $0x368] ss:$16 sps:$4 sm:$0xff]   ;;  %v9167_v17 = vld [vmem:[#allocation2 + $0x14c] ss:$16 sps:$4 sm:$0xff]   ;;  %v12747_v31 = vld [vmem:[#allocation13_spill] sm:$0xff] }
 0x101   : > { %v10807_v24 = vpack.c.bf16 %v1132_v57, %v1128_v18  ;;  %2177 = vmatprep.subr.bf16.mxu1 %v9152_v32  ;;  %v1135_v28 = vsel %vm1079_vm8, %v1051_v33, %v1107_v5  ;;  %vm1081_vm9 = vcmp.gt.f32.partialorder %v1053_v63, 0.0  ;;  %v1109_v26 = vmul.f32 0.2, %v1053_v63  ;;  %v9170_v21 = vld [vmem:[#allocation2 + $0x34c] ss:$16 sps:$4 sm:$0xff]  }
 0x102   : > { %1997 = vmatmul.mubr.bf16.gmra.mxu0 %v10803_v61  ;;  %v10811_v22 = vpack.c.bf16 %v1135_v28, %v1135_v28  ;;  %vm1078_vm10 = vcmp.gt.f32.partialorder %v1050_v47, 0.0  ;;  %v1106_v62 = vmul.f32 0.2, %v1050_v47  ;;  %v1052_v7 = vadd.f32 %v10622_v12, %v10784_v2  ;;  %v9165_v32 = vld [vmem:[#allocation2 + $0x148] ss:$16 sps:$4 sm:$0xff]  }
 0x103   : > { %2068 = vmatmul.mubr.bf16.gmra.mxu1 %v10807_v24  ;;  %2107 = vmatpush2.bf16.msra.mxu0 %v9147_v15  ;;  %v1137_v19 = vsel %vm1081_vm9, %v1053_v63, %v1109_v26  ;;  %v9168_v33 = vld [vmem:[#allocation2 + $0x348] ss:$16 sps:$4 sm:$0xff]   ;;  %v9173_v29 = vld [vmem:[#allocation2 + $0x12c] ss:$16 sps:$4 sm:$0xff]   ;;  %v9191_v63 = vld [vmem:[#allocation4 + $0xa4] ss:$16 sps:$4 sm:$0xff]  }
 0x104   : > { %2178 = vmatpush2.bf16.msra.mxu1 %v9150_v36  ;;  %2108 = vmatprep.subr.bf16.mxu0 %v9155_v53  ;;  %v10816_v58 = vpack.c.bf16 %v1137_v19, %v1137_v19  ;;  %v1134_v14 = vsel %vm1078_vm10, %v1050_v47, %v1106_v62  ;;  %vm1080_vm11 = vcmp.gt.f32.partialorder %v1052_v7, 0.0  ;;  %v1108_v0 = vmul.f32 0.2, %v1052_v7  ;;  %v9176_v59 = vld [vmem:[#allocation2 + $0x32c] ss:$16 sps:$4 sm:$0xff]  }
 0x105   : > { %2179 = vmatprep.subr.bf16.mxu1 %v9158_v41  ;;  %2006 = vmatprep.mubr.bf16.mxu0 %v10811_v22  ;;  %v10820_v2 = vpack.c.bf16 %v1134_v14, %v1134_v14  ;;  %v9171_v6 = vld [vmem:[#allocation2 + $0x128] ss:$16 sps:$4 sm:$0xff]   ;;  %v9179_v27 = vld [vmem:[#allocation2 + $0x10c] ss:$16 sps:$4 sm:$0xff]   ;;  %v9185_v53 = vld [vmem:[#allocation4 + $0xe4] ss:$16 sps:$4 sm:$0xff]  }
 0x106   : > { %2077 = vmatprep.mubr.bf16.mxu1 %v10816_v58  ;;  %v1136_v1 = vsel %vm1080_vm11, %v1052_v7, %v1108_v0  ;;  %v9174_v15 = vld [vmem:[#allocation2 + $0x328] ss:$16 sps:$4 sm:$0xff]   ;;  %v9182_v35 = vld [vmem:[#allocation2 + $0x30c] ss:$16 sps:$4 sm:$0xff]   ;;  %v9186_v41 = vld [vmem:[#allocation4 + $0xc0] ss:$16 sps:$4 sm:$0xff]  }
 0x107   : > { %2109 = vmatpush2.bf16.msra.mxu0 %v9153_v55  ;;  %v10822_v23 = vpack.c.bf16 %v1136_v1, %v1136_v1  ;;  %v9177_v34 = vld [vmem:[#allocation2 + $0x108] ss:$16 sps:$4 sm:$0xff]   ;;  %v9189_v47 = vld [vmem:[#allocation4 + $0xa0] ss:$16 sps:$4 sm:$0xff]   ;;  %v9194_v18 = vld [vmem:[#allocation4 + $0x84] ss:$16 sps:$4 sm:$0xff]  }
 0x108   : > { %2180 = vmatpush2.bf16.msra.mxu1 %v9156_v54  ;;  %2110 = vmatprep.subr.bf16.mxu0 %v9161_v4  ;;  %v9180_v36 = vld [vmem:[#allocation2 + $0x308] ss:$16 sps:$4 sm:$0xff]   ;;  %v9192_v57 = vld [vmem:[#allocation4 + $0x80] ss:$16 sps:$4 sm:$0xff]   ;;  %v9233_v55 = vld [vmem:[#allocation4 + $0x2e4] ss:$16 sps:$4 sm:$0xff]  }
 0x109   : > { %2181 = vmatprep.subr.bf16.mxu1 %v9164_v20  ;;  %v12748_v5 = vld [vmem:[#allocation14_spill] sm:$0xff]  ;;  %v9195_v28 = vld [vmem:[#allocation4 + $0x60] ss:$16 sps:$4 sm:$0xff]   ;;  %v9200_v26 = vld [vmem:[#allocation4 + $0x44] ss:$16 sps:$4 sm:$0xff]  }
 0x10a   : > { %2007 = vmatmul.mubr.bf16.gmra.mxu0 %v10820_v2  ;;  %v9237_v54 = vld [vmem:[#allocation4 + $0x2c0] ss:$16 sps:$4 sm:$0xff]   ;;  %v9239_v4 = vld [vmem:[#allocation4 + $0x2c4] ss:$16 sps:$4 sm:$0xff]  }
 0x10b   : > { %2078 = vmatmul.mubr.bf16.gmra.mxu1 %v10822_v23  ;;  %2111 = vmatpush2.bf16.msra.mxu0 %v9159_v8  ;;  %v9243_v62 = vld [vmem:[#allocation4 + $0x2a0] ss:$16 sps:$4 sm:$0xff]   ;;  %v9245_v7 = vld [vmem:[#allocation4 + $0x2a4] ss:$16 sps:$4 sm:$0xff]  }
 0x10c   : > { %2182 = vmatpush2.bf16.msra.mxu1 %v9162_v13  ;;  %2118 = vmatprep.mubr.bf16.mxu0 %v10652_v42  ;;  %v9183_v42 = vld [vmem:[#allocation4 + $0xe0] ss:$16 sps:$4 sm:$0xff]   ;;  %v9212_v19 = vld [vmem:[#allocation4 + $0x1c4] ss:$16 sps:$4 sm:$0xff]  }
 0x10d   : > { %2189 = vmatprep.mubr.bf16.mxu1 %v10654_v52  ;;  %2112 = vmatprep.subr.bf16.mxu0 %v9167_v17  ;;  %v9188_v52 = vld [vmem:[#allocation4 + $0xc4] ss:$16 sps:$4 sm:$0xff]   ;;  %v9210_v14 = vld [vmem:[#allocation4 + $0x1c0] ss:$16 sps:$4 sm:$0xff]  }
 0x10e   : > { %2183 = vmatprep.subr.bf16.mxu1 %v9170_v21  ;;  %v9251_v20 = vld [vmem:[#allocation4 + $0x284] ss:$16 sps:$4 sm:$0xff]   ;;  %v9255_v13 = vld [vmem:[#allocation4 + $0x260] ss:$16 sps:$4 sm:$0xff]  }
 0x10f   : > { %2113 = vmatpush2.bf16.msra.mxu0 %v9165_v32  ;;  %v9257_v0 = vld [vmem:[#allocation4 + $0x264] ss:$16 sps:$4 sm:$0xff]   ;;  %v9261_v17 = vld [vmem:[#allocation4 + $0x240] ss:$16 sps:$4 sm:$0xff]  }
 0x110   : > { %2184 = vmatpush2.bf16.msra.mxu1 %v9168_v33  ;;  %2114 = vmatprep.subr.bf16.mxu0 %v9173_v29  ;;  %v9215_v8 = vld [vmem:[#allocation4 + $0x1a4] ss:$16 sps:$4 sm:$0xff]   ;;  %v9216_v21 = vld [vmem:[#allocation4 + $0x180] ss:$16 sps:$4 sm:$0xff]  }
 0x111   : > { %2185 = vmatprep.subr.bf16.mxu1 %v9176_v59  ;;  %v9263_v1 = vld [vmem:[#allocation4 + $0x244] ss:$16 sps:$4 sm:$0xff]   ;;  %v9267_v29 = vld [vmem:[#allocation4 + $0x220] ss:$16 sps:$4 sm:$0xff]  }
 0x112   : > { %v9221_v32 = vld [vmem:[#allocation4 + $0x164] ss:$16 sps:$4 sm:$0xff]   ;;  %v9219_v59 = vld [vmem:[#allocation4 + $0x160] ss:$16 sps:$4 sm:$0xff]  }
 0x113   : > { %2115 = vmatpush2.bf16.msra.mxu0 %v9171_v6  ;;  %v9269_v33 = vld [vmem:[#allocation4 + $0x224] ss:$16 sps:$4 sm:$0xff]  }
 0x114   : > { %2186 = vmatpush2.bf16.msra.mxu1 %v9174_v15  ;;  %2116 = vmatprep.subr.bf16.mxu0 %v9179_v27  ;;  %v9224_v6 = vld [vmem:[#allocation4 + $0x144] ss:$16 sps:$4 sm:$0xff]   ;;  %v9273_v15 = vld [vmem:[#allocation4 + $0x200] ss:$16 sps:$4 sm:$0xff]  }
 0x115   : > { %2187 = vmatprep.subr.bf16.mxu1 %v9182_v35  ;;  %v9275_v27 = vld [vmem:[#allocation4 + $0x204] ss:$16 sps:$4 sm:$0xff]   ;;  %v9222_v35 = vld [vmem:[#allocation4 + $0x140] ss:$16 sps:$4 sm:$0xff]  }
 0x117   : > { %2117 = vmatpush2.bf16.msra.mxu0 %v9177_v34  ;;  %v9227_v34 = vld [vmem:[#allocation4 + $0x124] ss:$16 sps:$4 sm:$0xff]  }
 0x118   : > { %2188 = vmatpush2.bf16.msra.mxu1 %v9180_v36  ;;  %3082 = vmatprep.subr.bf16.mxu0 %v9185_v53  ;;  %v9281_v36 = vld [vmem:[#allocation4 + $0x3e4] ss:$16 sps:$4 sm:$0xff]   ;;  %v9279_v53 = vld [vmem:[#allocation4 + $0x3e0] ss:$16 sps:$4 sm:$0xff]  }
 0x119   : > { %3153 = vmatprep.subr.bf16.mxu1 %v9233_v55  ;;  %v9303_v55 = vld [vmem:[#allocation4 + $0x360] ss:$16 sps:$4 sm:$0xff]  }
 0x11a   : > { %2119 = vmatmul.mubr.bf16.vlgmr.msra.gmra.mxu0 %v12747_v31  ;;  %v9285_v31 = vld [vmem:[#allocation4 + $0x3c0] ss:$16 sps:$4 sm:$0xff]  }
 0x11b   : > { %2190 = vmatmul.mubr.bf16.vlgmr.msra.gmra.mxu1 %v12748_v5  ;;  %2128 = vmatprep.mubr.bf16.mxu0 %v10733_v25  ;;  %v9197_v25 = vld [vmem:[#allocation4 + $0x64] ss:$16 sps:$4 sm:$0xff]   ;;  %v9228_v5 = vld [vmem:[#allocation4 + $0x100] ss:$16 sps:$4 sm:$0xff]  }
 0x11c   : > { %2199 = vmatprep.mubr.bf16.mxu1 %v10736_v16  ;;  %3083 = vmatpush1.bf16.msra.mxu0 %v9183_v42  ;;  %v9231_v16 = vld [vmem:[#allocation4 + $0x2e0] ss:$16 sps:$4 sm:$0xff]  }
 0x11d   : > { %3084 = vmatprep.subr.bf16.mxu0 %v9188_v52  ;;  %3154 = vmatpush1.bf16.msra.mxu1 %v9231_v16  ;;  %v9225_v42 = vld [vmem:[#allocation4 + $0x120] ss:$16 sps:$4 sm:$0xff]   ;;  %v9230_v52 = vld [vmem:[#allocation4 + $0x104] ss:$16 sps:$4 sm:$0xff]  }
 0x11e   : > { %3155 = vmatprep.subr.bf16.mxu1 %v9239_v4  ;;  %v9305_v16 = vld [vmem:[#allocation4 + $0x364] ss:$16 sps:$4 sm:$0xff]   ;;  %v10845_v4 = vld [vmem:[%s12677_s5] sm:$0xf] }
 0x120   : > { %3085 = vmatpush1.bf16.msra.mxu0 %v9186_v41  ;;  %v9287_v41 = vld [vmem:[#allocation4 + $0x3c4] ss:$16 sps:$4 sm:$0xff]  }
 0x121   : > { %3086 = vmatprep.subr.bf16.mxu0 %v9191_v63  ;;  %3156 = vmatpush1.bf16.msra.mxu1 %v9237_v54  ;;  %v9293_v63 = vld [vmem:[#allocation4 + $0x3a4] ss:$16 sps:$4 sm:$0xff]   ;;  %v9329_v54 = vld [vmem:[#allocation4 + $0x2ec] ss:$16 sps:$4 sm:$0xff]  }
 0x122   : > { %2129 = vmatmul.mubr.bf16.gmra.mxu0 %v10747_v60  ;;  %v9198_v60 = vld [vmem:[#allocation4 + $0x40] ss:$16 sps:$4 sm:$0xff]   ;;  %3157 = vmatprep.subr.bf16.mxu1 %v9245_v7 }
 0x123   : > { %2200 = vmatmul.mubr.bf16.gmra.mxu1 %v10760_v3  ;;  %2138 = vmatprep.mubr.bf16.mxu0 %v10786_v30  ;;  %v9203_v3 = vld [vmem:[#allocation4 + $0x24] ss:$16 sps:$4 sm:$0xff]   ;;  %v9201_v30 = vld [vmem:[#allocation4 + $0x20] ss:$16 sps:$4 sm:$0xff]  }
 0x124   : > { %2209 = vmatprep.mubr.bf16.mxu1 %v10797_v56  ;;  %3087 = vmatpush1.bf16.msra.mxu0 %v9189_v47  ;;  %v9206_v56 = vld [vmem:[#allocation4 + $0x4] ss:$16 sps:$4 sm:$0xff]   ;;  %v9236_v47 = vld [vmem:[#allocation4 + $0xec] ss:$16 sps:$4 sm:$0xff]  }
 0x125   : > { %3088 = vmatprep.subr.bf16.mxu0 %v9194_v18  ;;  %3158 = vmatpush1.bf16.msra.mxu1 %v9243_v62  ;;  %v9291_v18 = vld [vmem:[#allocation4 + $0x3a0] ss:$16 sps:$4 sm:$0xff]  }
 0x126   : > { %3159 = vmatprep.subr.bf16.mxu1 %v9251_v20  ;;  %v12750_v7 = vld [vmem:[#allocation9_spill] sm:$0xff] }
 0x128   : > { %3089 = vmatpush1.bf16.msra.mxu0 %v9192_v57  ;;  %v9299_v57 = vld [vmem:[#allocation4 + $0x384] ss:$16 sps:$4 sm:$0xff]  }
 0x129   : > { %3090 = vmatprep.subr.bf16.mxu0 %v9197_v25  ;;  %v9297_v25 = vld [vmem:[#allocation4 + $0x380] ss:$16 sps:$4 sm:$0xff]  }
 0x12a   : > { %2139 = vmatmul.mubr.bf16.gmra.mxu0 %v10803_v61  ;;  %v9204_v61 = vld [vmem:[#allocation4] ss:$16 sps:$4 sm:$0xff]  }
 0x12b   : > { %2210 = vmatmul.mubr.bf16.gmra.mxu1 %v10807_v24  ;;  %2148 = vmatprep.mubr.bf16.mxu0 %v10811_v22  ;;  %v9209_v24 = vld [vmem:[#allocation4 + $0x1e4] ss:$16 sps:$4 sm:$0xff]   ;;  %v9207_v22 = vld [vmem:[#allocation4 + $0x1e0] ss:$16 sps:$4 sm:$0xff]  }
 0x12c   : > { %2219 = vmatprep.mubr.bf16.mxu1 %v10816_v58  ;;  %3091 = vmatpush1.bf16.msra.mxu0 %v9195_v28  ;;  %v9249_v58 = vld [vmem:[#allocation4 + $0x280] ss:$16 sps:$4 sm:$0xff]  }
 0x12d   : > { %3092 = vmatprep.subr.bf16.mxu0 %v9200_v26  ;;  %3160 = vmatpush1.bf16.msra.mxu1 %v9249_v58  ;;  %v9309_v28 = vld [vmem:[#allocation4 + $0x340] ss:$16 sps:$4 sm:$0xff]   ;;  %v9311_v26 = vld [vmem:[#allocation4 + $0x344] ss:$16 sps:$4 sm:$0xff]  }
 0x12e   : > { %3161 = vmatprep.subr.bf16.mxu1 %v9257_v0 }
 0x130   : > { %3093 = vmatpush1.bf16.msra.mxu0 %v9198_v60  ;;  %v9317_v60 = vld [vmem:[#allocation4 + $0x324] ss:$16 sps:$4 sm:$0xff]  }
 0x131   : > { %3094 = vmatprep.subr.bf16.mxu0 %v9203_v3  ;;  %3162 = vmatpush1.bf16.msra.mxu1 %v9255_v13  ;;  %v9315_v3 = vld [vmem:[#allocation4 + $0x320] ss:$16 sps:$4 sm:$0xff]  }
 0x132   : > { %2149 = vmatmul.mubr.bf16.gmra.mxu0 %v10820_v2  ;;  %v9213_v2 = vld [vmem:[#allocation4 + $0x1a0] ss:$16 sps:$4 sm:$0xff]   ;;  %3163 = vmatprep.subr.bf16.mxu1 %v9263_v1 }
 0x133   : > { %2220 = vmatmul.mubr.bf16.gmra.mxu1 %v10822_v23  ;;  %v9218_v23 = vld [vmem:[#allocation4 + $0x184] ss:$16 sps:$4 sm:$0xff]  }
 0x134   : > { %3095 = vmatpush1.bf16.msra.mxu0 %v9201_v30  ;;  %v9323_v30 = vld [vmem:[#allocation4 + $0x304] ss:$16 sps:$4 sm:$0xff]  }
 0x135   : > { %3096 = vmatprep.subr.bf16.mxu0 %v9206_v56  ;;  %3164 = vmatpush1.bf16.msra.mxu1 %v9261_v17  ;;  %v9321_v56 = vld [vmem:[#allocation4 + $0x300] ss:$16 sps:$4 sm:$0xff]  }
 0x136   : > { %3165 = vmatprep.subr.bf16.mxu1 %v9269_v33 }
 0x138   : > { %3097 = vmatpush1.bf16.msra.mxu0 %v9204_v61  ;;  %v12749_v61 = vld [vmem:[#allocation10_spill] sm:$0xff] }
 0x139   : > { %3098 = vmatprep.subr.bf16.mxu0 %v9209_v24  ;;  %3166 = vmatpush1.bf16.msra.mxu1 %v9267_v29  ;;  %v10849_v24 = vrot.slane %v10845_v4, %v12749_v61 }
 0x13a   : > { %3167 = vmatprep.subr.bf16.mxu1 %v9275_v27 }
 0x13c   : > { %3099 = vmatpush2.bf16.msra.mxu0 %v9207_v22 }
 0x13d   : > { %3100 = vmatprep.subr.bf16.mxu0 %v9212_v19  ;;  %3168 = vmatpush1.bf16.msra.mxu1 %v9273_v15  ;;  %v10853_v19 = vrot.slane %v10845_v4, %v12750_v7 }
 0x13e   : > { %3169 = vmatprep.subr.bf16.mxu1 %v9281_v36  ;;  %v9242_v36 = vld [vmem:[#allocation4 + $0xcc] ss:$16 sps:$4 sm:$0xff]  }
 0x140   : > { %3101 = vmatpush2.bf16.msra.mxu0 %v9210_v14 }
 0x141   : > { %3102 = vmatprep.subr.bf16.mxu0 %v9215_v8  ;;  %3170 = vmatpush2.bf16.msra.mxu1 %v9279_v53 }
 0x142   : > { %3171 = vmatprep.subr.bf16.mxu1 %v9287_v41 }
 0x144   : > { %3103 = vmatpush2.bf16.msra.mxu0 %v9213_v2 }
 0x145   : > { %3104 = vmatprep.subr.bf16.mxu0 %v9218_v23  ;;  %3172 = vmatpush2.bf16.msra.mxu1 %v9285_v31 }
 0x146   : > { %3173 = vmatprep.subr.bf16.mxu1 %v9293_v63 }
 0x148   : > { %3105 = vmatpush2.bf16.msra.mxu0 %v9216_v21 }
 0x149   : > { %3106 = vmatprep.subr.bf16.mxu0 %v9221_v32  ;;  %3174 = vmatpush2.bf16.msra.mxu1 %v9291_v18 }
 0x14a   : > { %3175 = vmatprep.subr.bf16.mxu1 %v9299_v57 }
 0x14c   : > { %3107 = vmatpush2.bf16.msra.mxu0 %v9219_v59 }
 0x14d   : > { %3108 = vmatprep.subr.bf16.mxu0 %v9224_v6  ;;  %3176 = vmatpush2.bf16.msra.mxu1 %v9297_v25 }
 0x14e   : > { %3177 = vmatprep.subr.bf16.mxu1 %v9305_v16 }
 0x150   : > { %3109 = vmatpush2.bf16.msra.mxu0 %v9222_v35  ;;  %v9234_v35 = vld [vmem:[#allocation4 + $0xe8] ss:$16 sps:$4 sm:$0xff]  }
 0x151   : > { %3110 = vmatprep.subr.bf16.mxu0 %v9227_v34  ;;  %3178 = vmatpush2.bf16.msra.mxu1 %v9303_v55 }
 0x152   : > { %3179 = vmatprep.subr.bf16.mxu1 %v9311_v26  ;;  %v9252_v26 = vld [vmem:[#allocation4 + $0x88] ss:$16 sps:$4 sm:$0xff]  }
 0x154   : > { %3111 = vmatpush2.bf16.msra.mxu0 %v9225_v42  ;;  %v9240_v42 = vld [vmem:[#allocation4 + $0xc8] ss:$16 sps:$4 sm:$0xff]  }
 0x155   : > { %3112 = vmatprep.subr.bf16.mxu0 %v9230_v52  ;;  %3180 = vmatpush2.bf16.msra.mxu1 %v9309_v28  ;;  %v9248_v52 = vld [vmem:[#allocation4 + $0xac] ss:$16 sps:$4 sm:$0xff]  }
 0x156   : > { %3181 = vmatprep.subr.bf16.mxu1 %v9317_v60 }
 0x158   : > { %3113 = vmatpush2.bf16.msra.mxu0 %v9228_v5  ;;  %v9246_v5 = vld [vmem:[#allocation4 + $0xa8] ss:$16 sps:$4 sm:$0xff]  }
 0x159   : > { %3224 = vmatprep.subr.bf16.mxu0 %v9236_v47  ;;  %3182 = vmatpush2.bf16.msra.mxu1 %v9315_v3  ;;  %v9254_v47 = vld [vmem:[#allocation4 + $0x8c] ss:$16 sps:$4 sm:$0xff]  }
 0x15a   : > { %3183 = vmatprep.subr.bf16.mxu1 %v9323_v30  ;;  %v9260_v30 = vld [vmem:[#allocation4 + $0x6c] ss:$16 sps:$4 sm:$0xff]  }
 0x15d   : > { %3184 = vmatpush2.bf16.msra.mxu1 %v9321_v56 }
 0x15e   : > { %3295 = vmatprep.subr.bf16.mxu1 %v9329_v54 }
 0x199   : > { %v1978_v22 = vpop.f32.mrf.mxu0 }
 0x19a   : > { %v2049_v62 = vpop.f32.mrf.mxu1  ;;  %v1979_v58 = vadd.f32 %v1978_v22, %v10849_v24 }
 0x19b   : > { %v1980_v20 = vpop.f32.mrf.mxu0 }
 0x19c   : > { %v2051_v14 = vpop.f32.mrf.mxu1  ;;  %v1981_v8 = vadd.f32 %v1980_v20, %v10853_v19  ;;  %v2050_v23 = vadd.f32 %v2049_v62, %v1979_v58 }
 0x19d   : > { %v1982_v0 = vpop.f32.mrf.mxu0 }
 0x19e   : > { %v1983_v13 = vadd.f32 %v1982_v0, %v10849_v24  ;;  %v2053_v2 = vpop.f32.mrf.mxu1  ;;  %v2052_v33 = vadd.f32 %v2051_v14, %v1981_v8  ;;  %v9258_v14 = vld [vmem:[#allocation4 + $0x68] ss:$16 sps:$4 sm:$0xff]   ;;  %v9266_v0 = vld [vmem:[#allocation4 + $0x4c] ss:$16 sps:$4 sm:$0xff]  }
 0x19f   : > { %v1984_v1 = vpop.f32.mrf.mxu0 }
 0x1a0   : > { %v2054_v17 = vadd.f32 %v2053_v2, %v1983_v13  ;;  %v1985_v21 = vadd.f32 %v1984_v1, %v10853_v19  ;;  %v2055_v32 = vpop.f32.mrf.mxu1  ;;  %v9264_v1 = vld [vmem:[#allocation4 + $0x48] ss:$16 sps:$4 sm:$0xff]  }
 0x1a2   : > { %v2228_v29 = vpack.c.bf16 %v2054_v17, %v2050_v23  ;;  %v2056_v59 = vadd.f32 %v2055_v32, %v1985_v21  ;;  %v9272_v17 = vld [vmem:[#allocation4 + $0x2c] ss:$16 sps:$4 sm:$0xff]   ;;  %v9270_v32 = vld [vmem:[#allocation4 + $0x28] ss:$16 sps:$4 sm:$0xff]  }
 0x1a4   : > { %v2229_v6 = vpack.c.bf16 %v2056_v59, %v2052_v33  ;;  %v2260_v15 = vmul.bf16 1045249613, %v2228_v29  ;;  %vm2244_vm12 = vcmp.gt.bf16.partialorder %v2228_v29, 0 }
 0x1a6   : > { %vm2245_vm13 = vcmp.gt.bf16.partialorder %v2229_v6, 0  ;;  %v2261_v27 = vmul.bf16 1045249613, %v2229_v6  ;;  %v10862_v53 = vsel %vm2244_vm12, %v2228_v29, %v2260_v15  ;;  %v9278_v29 = vld [vmem:[#allocation4 + $0xc] ss:$16 sps:$4 sm:$0xff]  }
 0x1a8   : > { %v10859_v34 = vsel %vm2245_vm13, %v2229_v6, %v2261_v27 }
 0x1a9   : > { %3114 = vmatprep.mubr.bf16.mxu0 %v10859_v34 }
 0x1aa   : > { %3115 = vmatmul.mubr.bf16.vlgmr.msra.gmra.mxu0 %v10862_v53 }
 0x1ab   : > { %3225 = vmatpush1.bf16.msra.mxu0 %v9234_v35  ;;  %v9276_v35 = vld [vmem:[#allocation4 + $0x8] ss:$16 sps:$4 sm:$0xff]  }
 0x1ac   : > { %3226 = vmatprep.subr.bf16.mxu0 %v9242_v36 }
 0x1ae   : > { %v1988_v31 = vpop.f32.mrf.mxu0 }
 0x1af   : > { %3227 = vmatpush1.bf16.msra.mxu0 %v9240_v42  ;;  %v1989_v18 = vadd.f32 %v1988_v31, %v10849_v24  ;;  %v9284_v42 = vld [vmem:[#allocation4 + $0x1ec] ss:$16 sps:$4 sm:$0xff]  }
 0x1b0   : > { %v1990_v41 = vpop.f32.mrf.mxu0  ;;  %v2059_v63 = vpop.f32.mrf.mxu1  ;;  %3228 = vmatprep.subr.bf16.mxu0 %v9248_v52 }
 0x1b1   : > { %v1991_v55 = vadd.f32 %v1990_v41, %v10853_v19  ;;  %v2060_v56 = vadd.f32 %v2059_v63, %v1989_v18 }
 0x1b2   : > { %v1992_v57 = vpop.f32.mrf.mxu0  ;;  %v2061_v25 = vpop.f32.mrf.mxu1 }
 0x1b3   : > { %v1993_v16 = vadd.f32 %v1992_v57, %v10849_v24  ;;  %3229 = vmatpush1.bf16.msra.mxu0 %v9246_v5  ;;  %v2062_v62 = vadd.f32 %v2061_v25, %v1991_v55  ;;  %v9282_v25 = vld [vmem:[#allocation4 + $0x1e8] ss:$16 sps:$4 sm:$0xff]   ;;  %v9290_v55 = vld [vmem:[#allocation4 + $0x1cc] ss:$16 sps:$4 sm:$0xff]  }
 0x1b4   : > { %v1994_v28 = vpop.f32.mrf.mxu0  ;;  %v2063_v60 = vpop.f32.mrf.mxu1  ;;  %3230 = vmatprep.subr.bf16.mxu0 %v9254_v47 }
 0x1b5   : > { %v1995_v3 = vadd.f32 %v1994_v28, %v10853_v19  ;;  %v2064_v54 = vadd.f32 %v2063_v60, %v1993_v16 }
 0x1b6   : > { %v2065_v22 = vpop.f32.mrf.mxu1 }
 0x1b7   : > { %v2232_v20 = vpack.c.bf16 %v2064_v54, %v2060_v56  ;;  %v2066_v58 = vadd.f32 %v2065_v22, %v1995_v3  ;;  %3231 = vmatpush1.bf16.msra.mxu0 %v9252_v26 }
 0x1b8   : > { %3232 = vmatprep.subr.bf16.mxu0 %v9260_v30 }
 0x1b9   : > { %v2233_v8 = vpack.c.bf16 %v2066_v58, %v2062_v62  ;;  %v2264_v13 = vmul.bf16 1045249613, %v2232_v20  ;;  %vm2248_vm15 = vcmp.gt.bf16.partialorder %v2232_v20, 0 }
 0x1bb   : > { %3233 = vmatpush1.bf16.msra.mxu0 %v9258_v14  ;;  %vm2249_vm14 = vcmp.gt.bf16.partialorder %v2233_v8, 0  ;;  %v2265_v2 = vmul.bf16 1045249613, %v2233_v8  ;;  %v10872_v21 = vsel %vm2248_vm15, %v2232_v20, %v2264_v13  ;;  %v9288_v20 = vld [vmem:[#allocation4 + $0x1c8] ss:$16 sps:$4 sm:$0xff]  }
 0x1bc   : > { %3234 = vmatprep.subr.bf16.mxu0 %v9266_v0 }
 0x1bd   : > { %v10869_v23 = vsel %vm2249_vm14, %v2233_v8, %v2265_v2  ;;  %v9296_v8 = vld [vmem:[#allocation4 + $0x1ac] ss:$16 sps:$4 sm:$0xff]  }
 0x1be   : > { %3124 = vmatprep.mubr.bf16.mxu0 %v10869_v23 }
 0x1bf   : > { %3125 = vmatmul.mubr.bf16.gmra.mxu0 %v10872_v21 }
 0x1c0   : > { %3235 = vmatpush1.bf16.msra.mxu0 %v9264_v1 }
 0x1c1   : > { %3236 = vmatprep.subr.bf16.mxu0 %v9272_v17 }
 0x1c2   : > { %v1998_v33 = vpop.f32.mrf.mxu0 }
 0x1c3   : > { %v2069_v59 = vpop.f32.mrf.mxu1  ;;  %v1999_v15 = vadd.f32 %v1998_v33, %v10849_v24 }
 0x1c4   : > { %v2000_v6 = vpop.f32.mrf.mxu0  ;;  %3237 = vmatpush1.bf16.msra.mxu0 %v9270_v32 }
 0x1c5   : > { %v2071_v27 = vpop.f32.mrf.mxu1  ;;  %3238 = vmatprep.subr.bf16.mxu0 %v9278_v29  ;;  %v2001_v52 = vadd.f32 %v2000_v6, %v10853_v19  ;;  %v2070_v63 = vadd.f32 %v2069_v59, %v1999_v15  ;;  %v9294_v59 = vld [vmem:[#allocation4 + $0x1a8] ss:$16 sps:$4 sm:$0xff]  }
 0x1c6   : > { %v2002_v36 = vpop.f32.mrf.mxu0 }
 0x1c7   : > { %v2003_v31 = vadd.f32 %v2002_v36, %v10849_v24  ;;  %v2073_v41 = vpop.f32.mrf.mxu1  ;;  %v2072_v28 = vadd.f32 %v2071_v27, %v2001_v52  ;;  %v9302_v27 = vld [vmem:[#allocation4 + $0x18c] ss:$16 sps:$4 sm:$0xff]  }
 0x1c8   : > { %v2004_v5 = vpop.f32.mrf.mxu0  ;;  %3239 = vmatpush1.bf16.msra.mxu0 %v9276_v35 }
 0x1c9   : > { %v2074_v47 = vadd.f32 %v2073_v41, %v2003_v31  ;;  %v2005_v18 = vadd.f32 %v2004_v5, %v10853_v19  ;;  %v2075_v57 = vpop.f32.mrf.mxu1  ;;  %3240 = vmatprep.subr.bf16.mxu0 %v9284_v42  ;;  %v9300_v42 = vld [vmem:[#allocation4 + $0x188] ss:$16 sps:$4 sm:$0xff]   ;;  %v9308_v31 = vld [vmem:[#allocation4 + $0x16c] ss:$16 sps:$4 sm:$0xff]   ;;  %v12751_v41 = vld [vmem:[#allocation11_spill] sm:$0xff] }
 0x1ca   : > { %v2008_v16 = vpop.f32.mrf.mxu0  ;;  %v10892_v5 = vrot.slane %v10845_v4, %v12751_v41 }
 0x1cb   : > { %v2236_v26 = vpack.c.bf16 %v2074_v47, %v2070_v63  ;;  %v2076_v60 = vadd.f32 %v2075_v57, %v2005_v18  ;;  %v2009_v3 = vadd.f32 %v2008_v16, %v10849_v24  ;;  %v2079_v30 = vpop.f32.mrf.mxu1  ;;  %v9306_v63 = vld [vmem:[#allocation4 + $0x168] ss:$16 sps:$4 sm:$0xff]   ;;  %v9314_v57 = vld [vmem:[#allocation4 + $0x14c] ss:$16 sps:$4 sm:$0xff]  }
 0x1cc   : > { %v2010_v56 = vpop.f32.mrf.mxu0  ;;  %3241 = vmatpush2.bf16.msra.mxu0 %v9282_v25  ;;  %12752 = vst [vmem:[#allocation13_spill] sm:$0xff] %v10892_v5  ;;  %v12753_v16 = vld [vmem:[#allocation12_spill] sm:$0xff] }
 0x1cd   : > { %v2237_v54 = vpack.c.bf16 %v2076_v60, %v2072_v28  ;;  %v2011_v22 = vadd.f32 %v2010_v56, %v10853_v19  ;;  %v2081_v62 = vpop.f32.mrf.mxu1  ;;  %v2080_v58 = vadd.f32 %v2079_v30, %v2009_v3  ;;  %3242 = vmatprep.subr.bf16.mxu0 %v9290_v55  ;;  %v2268_v0 = vmul.bf16 1045249613, %v2236_v26  ;;  %v9312_v3 = vld [vmem:[#allocation4 + $0x148] ss:$16 sps:$4 sm:$0xff]   ;;  %v9320_v56 = vld [vmem:[#allocation4 + $0x12c] ss:$16 sps:$4 sm:$0xff]  }
 0x1ce   : > { %v2012_v14 = vpop.f32.mrf.mxu0  ;;  %vm2252_vm1 = vcmp.gt.bf16.partialorder %v2236_v26, 0  ;;  %v10899_v55 = vrot.slane %v10845_v4, %v12753_v16 }
 0x1cf   : > { %v2082_v13 = vadd.f32 %v2081_v62, %v2011_v22  ;;  %v2083_v2 = vpop.f32.mrf.mxu1  ;;  %vm2253_vm0 = vcmp.gt.bf16.partialorder %v2237_v54, 0  ;;  %v2269_v1 = vmul.bf16 1045249613, %v2237_v54  ;;  %v2240_v6 = vpack.c.bf16 %v2080_v58, %v2080_v58 }
 0x1d0   : > { %v2013_v17 = vpop.f32.mrf.mxu0  ;;  %3243 = vmatpush2.bf16.msra.mxu0 %v9288_v20  ;;  %v10884_v15 = vsel %vm2252_vm1, %v2236_v26, %v2268_v0  ;;  %12754 = vst [vmem:[#allocation14_spill] sm:$0xff] %v10899_v55  ;;  %v9318_v0 = vld [vmem:[#allocation4 + $0x128] ss:$16 sps:$4 sm:$0xff]  }
 0x1d1   : > { %v2241_v32 = vpack.c.bf16 %v2082_v13, %v2082_v13  ;;  %v2084_v33 = vpop.f32.mrf.mxu1  ;;  %v10881_v29 = vsel %vm2253_vm0, %v2237_v54, %v2269_v1  ;;  %3244 = vmatprep.subr.bf16.mxu0 %v9296_v8  ;;  %v2272_v52 = vmul.bf16 1045249613, %v2240_v6  ;;  %vm2256_vm3 = vcmp.gt.bf16.partialorder %v2240_v6, 0  ;;  %v9326_v13 = vld [vmem:[#allocation4 + $0x10c] ss:$16 sps:$4 sm:$0xff]  }
 0x1d2   : > { %3134 = vmatprep.mubr.bf16.mxu0 %v10881_v29 }
 0x1d3   : > { %v2273_v35 = vmul.bf16 1045249613, %v2241_v32  ;;  %3135 = vmatmul.mubr.bf16.gmra.mxu0 %v10884_v15  ;;  %vm2257_vm2 = vcmp.gt.bf16.partialorder %v2241_v32, 0  ;;  %v10894_v18 = vsel %vm2256_vm3, %v2240_v6, %v2272_v52 }
 0x1d4   : > { %3245 = vmatpush2.bf16.msra.mxu0 %v9294_v59 }
 0x1d5   : > { %v10887_v36 = vsel %vm2257_vm2, %v2241_v32, %v2273_v35  ;;  %3246 = vmatprep.subr.bf16.mxu0 %v9302_v27  ;;  %v9324_v35 = vld [vmem:[#allocation4 + $0x108] ss:$16 sps:$4 sm:$0xff]  }
 0x1d6   : > { %3144 = vmatprep.mubr.bf16.mxu0 %v10887_v36 }
 0x1d8   : > { %3247 = vmatpush2.bf16.msra.mxu0 %v9300_v42 }
 0x1d9   : > { %3248 = vmatprep.subr.bf16.mxu0 %v9308_v31 }
 0x1da   : > { %v2120_v47 = vpop.f32.mrf.mxu0 }
 0x1db   : > { %v2191_v25 = vpop.f32.mrf.mxu1  ;;  %3145 = vmatmul.mubr.bf16.gmra.mxu0 %v10894_v18  ;;  %v2121_v26 = vadd.f32 %v2120_v47, %v10892_v5 }
 0x1dc   : > { %3256 = vmatprep.mubr.bf16.mxu0 %v10859_v34  ;;  %v2122_v28 = vpop.f32.mrf.mxu0  ;;  %3249 = vmatpush2.bf16.msra.mxu0 %v9306_v63 }
 0x1dd   : > { %v2193_v60 = vpop.f32.mrf.mxu1  ;;  %3250 = vmatprep.subr.bf16.mxu0 %v9314_v57  ;;  %v2123_v54 = vadd.f32 %v2122_v28, %v10899_v55  ;;  %v2192_v58 = vadd.f32 %v2191_v25, %v2121_v26  ;;  %v9327_v28 = vld [vmem:[#allocation4 + $0x2e8] ss:$16 sps:$4 sm:$0xff]  }
 0x1de   : > { %v2124_v30 = vpop.f32.mrf.mxu0 }
 0x1df   : > { %v2125_v22 = vadd.f32 %v2124_v30, %v10892_v5  ;;  %v2195_v62 = vpop.f32.mrf.mxu1  ;;  %v2194_v2 = vadd.f32 %v2193_v60, %v2123_v54  ;;  %v9332_v54 = vld [vmem:[#allocation4 + $0x2cc] ss:$16 sps:$4 sm:$0xff]  }
 0x1e0   : > { %v2126_v20 = vpop.f32.mrf.mxu0  ;;  %3251 = vmatpush2.bf16.msra.mxu0 %v9312_v3 }
 0x1e1   : > { %v2196_v4 = vadd.f32 %v2195_v62, %v2125_v22  ;;  %v2127_v14 = vadd.f32 %v2126_v20, %v10899_v55  ;;  %v2197_v34 = vpop.f32.mrf.mxu1  ;;  %3252 = vmatprep.subr.bf16.mxu0 %v9320_v56 }
 0x1e2   : > { %v2130_v8 = vpop.f32.mrf.mxu0 }
 0x1e3   : > { %v2230_v1 = vpack.c.bf16 %v2196_v4, %v2192_v58  ;;  %v2198_v17 = vadd.f32 %v2197_v34, %v2127_v14  ;;  %v2201_v32 = vpop.f32.mrf.mxu1  ;;  %v2131_v6 = vadd.f32 %v2130_v8, %v10892_v5 }
 0x1e4   : > { %v2132_v33 = vpop.f32.mrf.mxu0  ;;  %3253 = vmatpush2.bf16.msra.mxu0 %v9318_v0  ;;  %v9330_v0 = vld [vmem:[#allocation4 + $0x2c8] ss:$16 sps:$4 sm:$0xff]  }
 0x1e5   : > { %v2231_v59 = vpack.c.bf16 %v2198_v17, %v2194_v2  ;;  %v2203_v27 = vpop.f32.mrf.mxu1  ;;  %vm2246_vm4 = vcmp.gt.bf16.partialorder %v2230_v1, 0  ;;  %v2262_v42 = vmul.bf16 1045249613, %v2230_v1  ;;  %3254 = vmatprep.subr.bf16.mxu0 %v9326_v13  ;;  %v2133_v31 = vadd.f32 %v2132_v33, %v10899_v55 }
 0x1e6   : > { %v2134_v52 = vpop.f32.mrf.mxu0  ;;  %v2202_v26 = vadd.f32 %v2201_v32, %v2131_v6 }
 0x1e7   : > { %v2135_v63 = vadd.f32 %v2134_v52, %v10892_v5  ;;  %v2205_v47 = vpop.f32.mrf.mxu1  ;;  %vm2247_vm5 = vcmp.gt.bf16.partialorder %v2231_v59, 0  ;;  %v2263_v57 = vmul.bf16 1045249613, %v2231_v59  ;;  %v10914_v62 = vsel %vm2246_vm4, %v2230_v1, %v2262_v42  ;;  %v9335_v1 = vld [vmem:[#allocation4 + $0x2ac] ss:$16 sps:$4 sm:$0xff]  }
 0x1e8   : > { %v2136_v25 = vpop.f32.mrf.mxu0  ;;  %3255 = vmatpush2.bf16.msra.mxu0 %v9324_v35  ;;  %v2204_v20 = vadd.f32 %v2203_v27, %v2133_v31  ;;  %v9333_v35 = vld [vmem:[#allocation4 + $0x2a8] ss:$16 sps:$4 sm:$0xff]  }
 0x1e9   : > { %v2206_v60 = vadd.f32 %v2205_v47, %v2135_v63  ;;  %v2137_v3 = vadd.f32 %v2136_v25, %v10899_v55  ;;  %v2207_v30 = vpop.f32.mrf.mxu1  ;;  %v10910_v56 = vsel %vm2247_vm5, %v2231_v59, %v2263_v57  ;;  %v9338_v47 = vld [vmem:[#allocation4 + $0x28c] ss:$16 sps:$4 sm:$0xff]  }
 0x1ea   : > { %v2140_v22 = vpop.f32.mrf.mxu0  ;;  %3185 = vmatprep.mubr.bf16.mxu1 %v10910_v56 }
 0x1eb   : > { %v2234_v58 = vpack.c.bf16 %v2206_v60, %v2202_v26  ;;  %v2208_v4 = vadd.f32 %v2207_v30, %v2137_v3  ;;  %v2211_v14 = vpop.f32.mrf.mxu1  ;;  %3186 = vmatmul.mubr.bf16.vlgmr.msra.gmra.mxu1 %v10914_v62  ;;  %3257 = vmatmul.mubr.bf16.vlgmr.msra.gmra.mxu0 %v10862_v53  ;;  %v2141_v13 = vadd.f32 %v2140_v22, %v10892_v5  ;;  %v9375_v22 = vld [vmem:[#allocation6 + $0xe0] ss:$16 sps:$4 sm:$0xff]  }
 0x1ec   : > { %3296 = vmatpush1.bf16.msra.mxu1 %v9327_v28  ;;  %v2142_v34 = vpop.f32.mrf.mxu0  ;;  %3266 = vmatprep.mubr.bf16.mxu0 %v10869_v23  ;;  %v9377_v28 = vld [vmem:[#allocation6 + $0xe4] ss:$16 sps:$4 sm:$0xff]  }
 0x1ed   : > { %v2235_v8 = vpack.c.bf16 %v2208_v4, %v2204_v20  ;;  %v2213_v2 = vpop.f32.mrf.mxu1  ;;  %3297 = vmatprep.subr.bf16.mxu1 %v9332_v54  ;;  %v2143_v17 = vadd.f32 %v2142_v34, %v10899_v55  ;;  %v2266_v33 = vmul.bf16 1045249613, %v2234_v58  ;;  %vm2250_vm7 = vcmp.gt.bf16.partialorder %v2234_v58, 0  ;;  %v9336_v4 = vld [vmem:[#allocation4 + $0x288] ss:$16 sps:$4 sm:$0xff]   ;;  %4220 = vmatprep.subr.bf16.mxu0 %v9377_v28 }
 0x1ee   : > { %v2144_v32 = vpop.f32.mrf.mxu0  ;;  %v2212_v42 = vadd.f32 %v2211_v14, %v2141_v13  ;;  %v9380_v14 = vld [vmem:[#allocation6 + $0xc4] ss:$16 sps:$4 sm:$0xff]   ;;  %4221 = vmatpush1.bf16.msra.mxu0 %v9375_v22  ;;  %v9384_v22 = vld [vmem:[#allocation6 + $0x80] ss:$16 sps:$4 sm:$0xff]  }
 0x1ef   : > { %v2145_v59 = vadd.f32 %v2144_v32, %v10892_v5  ;;  %v2215_v6 = vpop.f32.mrf.mxu1  ;;  %vm2251_vm6 = vcmp.gt.bf16.partialorder %v2235_v8, 0  ;;  %v2267_v53 = vmul.bf16 1045249613, %v2235_v8  ;;  %v10926_v25 = vsel %vm2250_vm7, %v2234_v58, %v2266_v33  ;;  %v9378_v33 = vld [vmem:[#allocation6 + $0xc0] ss:$16 sps:$4 sm:$0xff]   ;;  %4222 = vmatprep.subr.bf16.mxu0 %v9380_v14 }
 0x1f0   : > { %3298 = vmatpush1.bf16.msra.mxu1 %v9330_v0  ;;  %v2146_v27 = vpop.f32.mrf.mxu0  ;;  %v2214_v26 = vadd.f32 %v2213_v2, %v2143_v17  ;;  %v9389_v14 = vld [vmem:[#allocation6 + $0x64] ss:$16 sps:$4 sm:$0xff]  }
 0x1f1   : > { %v2216_v52 = vadd.f32 %v2215_v6, %v2145_v59  ;;  %v2147_v31 = vadd.f32 %v2146_v27, %v10899_v55  ;;  %v2217_v23 = vpop.f32.mrf.mxu1  ;;  %v10923_v63 = vsel %vm2251_vm6, %v2235_v8, %v2267_v53  ;;  %3299 = vmatprep.subr.bf16.mxu1 %v9335_v1  ;;  %v9341_v8 = vld [vmem:[#allocation4 + $0x26c] ss:$16 sps:$4 sm:$0xff]   ;;  %v9339_v6 = vld [vmem:[#allocation4 + $0x268] ss:$16 sps:$4 sm:$0xff]  }
 0x1f2   : > { %v2150_v57 = vpop.f32.mrf.mxu0  ;;  %3195 = vmatprep.mubr.bf16.mxu1 %v10923_v63  ;;  %4223 = vmatpush1.bf16.msra.mxu0 %v9378_v33  ;;  %v9398_v33 = vld [vmem:[#allocation6 + $0x4] ss:$16 sps:$4 sm:$0xff]  }
 0x1f3   : > { %v2238_v60 = vpack.c.bf16 %v2216_v52, %v2212_v42  ;;  %v2218_v3 = vadd.f32 %v2217_v23, %v2147_v31  ;;  %v2151_v30 = vadd.f32 %v2150_v57, %v10892_v5  ;;  %v2221_v54 = vpop.f32.mrf.mxu1  ;;  %3196 = vmatmul.mubr.bf16.gmra.mxu1 %v10926_v25  ;;  %3267 = vmatmul.mubr.bf16.gmra.mxu0 %v10872_v21  ;;  %v9342_v23 = vld [vmem:[#allocation4 + $0x248] ss:$16 sps:$4 sm:$0xff]   ;;  %v9347_v57 = vld [vmem:[#allocation4 + $0x22c] ss:$16 sps:$4 sm:$0xff]  }
 0x1f4   : > { %3300 = vmatpush1.bf16.msra.mxu1 %v9333_v35  ;;  %v2152_v20 = vpop.f32.mrf.mxu0  ;;  %3276 = vmatprep.mubr.bf16.mxu0 %v10881_v29  ;;  %v9344_v35 = vld [vmem:[#allocation4 + $0x24c] ss:$16 sps:$4 sm:$0xff]  }
 0x1f5   : > { %v2239_v34 = vpack.c.bf16 %v2218_v3, %v2214_v26  ;;  %v2153_v58 = vadd.f32 %v2152_v20, %v10899_v55  ;;  %v2223_v0 = vpop.f32.mrf.mxu1  ;;  %3301 = vmatprep.subr.bf16.mxu1 %v9338_v47  ;;  %v2222_v13 = vadd.f32 %v2221_v54, %v2151_v30  ;;  %v2270_v1 = vmul.bf16 1045249613, %v2238_v60  ;;  %v9345_v26 = vld [vmem:[#allocation4 + $0x228] ss:$16 sps:$4 sm:$0xff]   ;;  %v9383_v30 = vld [vmem:[#allocation6 + $0xa4] ss:$16 sps:$4 sm:$0xff]  }
 0x1f6   : > { %v2154_v2 = vpop.f32.mrf.mxu0  ;;  %vm2254_vm9 = vcmp.gt.bf16.partialorder %v2238_v60, 0  ;;  %v9353_v54 = vld [vmem:[#allocation4 + $0x3ec] ss:$16 sps:$4 sm:$0xff]   ;;  %4224 = vmatprep.subr.bf16.mxu0 %v9383_v30  ;;  %v9386_v20 = vld [vmem:[#allocation6 + $0x84] ss:$16 sps:$4 sm:$0xff]  }
 0x1f7   : > { %v2224_v17 = vadd.f32 %v2223_v0, %v2153_v58  ;;  %v2225_v32 = vpop.f32.mrf.mxu1  ;;  %vm2255_vm8 = vcmp.gt.bf16.partialorder %v2239_v34, 0  ;;  %v2271_v21 = vmul.bf16 1045249613, %v2239_v34  ;;  %v2242_v42 = vpack.c.bf16 %v2222_v13, %v2222_v13  ;;  %v9387_v58 = vld [vmem:[#allocation6 + $0x60] ss:$16 sps:$4 sm:$0xff]  }
 0x1f8   : > { %3302 = vmatpush1.bf16.msra.mxu1 %v9336_v4  ;;  %v2155_v59 = vpop.f32.mrf.mxu0  ;;  %v10936_v52 = vsel %vm2254_vm9, %v2238_v60, %v2270_v1  ;;  %v9350_v60 = vld [vmem:[#allocation4 + $0x20c] ss:$16 sps:$4 sm:$0xff]   ;;  %v9351_v4 = vld [vmem:[#allocation4 + $0x3e8] ss:$16 sps:$4 sm:$0xff]   ;;  %v9392_v0 = vld [vmem:[#allocation6 + $0x44] ss:$16 sps:$4 sm:$0xff]  }
 0x1f9   : > { %v2243_v53 = vpack.c.bf16 %v2224_v17, %v2224_v17  ;;  %v2226_v27 = vpop.f32.mrf.mxu1  ;;  %v10933_v29 = vsel %vm2255_vm8, %v2239_v34, %v2271_v21  ;;  %3303 = vmatprep.subr.bf16.mxu1 %v9341_v8  ;;  %v2274_v28 = vmul.bf16 1045249613, %v2242_v42  ;;  %vm2258_vm11 = vcmp.gt.bf16.partialorder %v2242_v42, 0  ;;  %v9356_v34 = vld [vmem:[#allocation4 + $0x3cc] ss:$16 sps:$4 sm:$0xff]  }
 0x1fa   : > { %3205 = vmatprep.mubr.bf16.mxu1 %v10933_v29  ;;  %v9390_v8 = vld [vmem:[#allocation6 + $0x40] ss:$16 sps:$4 sm:$0xff]   ;;  %v9357_v13 = vld [vmem:[#allocation4 + $0x3a8] ss:$16 sps:$4 sm:$0xff]   ;;  %v9395_v2 = vld [vmem:[#allocation6 + $0x24] ss:$16 sps:$4 sm:$0xff]  }
 0x1fb   : > { %v2275_v31 = vmul.bf16 1045249613, %v2243_v53  ;;  %3206 = vmatmul.mubr.bf16.gmra.mxu1 %v10936_v52  ;;  %vm2259_vm10 = vcmp.gt.bf16.partialorder %v2243_v53, 0  ;;  %3277 = vmatmul.mubr.bf16.gmra.mxu0 %v10884_v15  ;;  %v10944_v3 = vsel %vm2258_vm11, %v2242_v42, %v2274_v28  ;;  %v9381_v15 = vld [vmem:[#allocation6 + $0xa0] ss:$16 sps:$4 sm:$0xff]  }
 0x1fc   : > { %3304 = vmatpush1.bf16.msra.mxu1 %v9339_v6  ;;  %3286 = vmatprep.mubr.bf16.mxu0 %v10887_v36  ;;  %v9348_v36 = vld [vmem:[#allocation4 + $0x208] ss:$16 sps:$4 sm:$0xff]   ;;  %v9362_v1 = vld [vmem:[#allocation4 + $0x38c] ss:$16 sps:$4 sm:$0xff]   ;;  %v9393_v17 = vld [vmem:[#allocation6 + $0x20] ss:$16 sps:$4 sm:$0xff]  }
 0x1fd   : > { %v10941_v47 = vsel %vm2259_vm10, %v2243_v53, %v2275_v31  ;;  %3305 = vmatprep.subr.bf16.mxu1 %v9344_v35  ;;  %4225 = vmatpush1.bf16.msra.mxu0 %v9381_v15  ;;  %v9360_v32 = vld [vmem:[#allocation4 + $0x388] ss:$16 sps:$4 sm:$0xff]   ;;  %v9365_v21 = vld [vmem:[#allocation4 + $0x36c] ss:$16 sps:$4 sm:$0xff]   ;;  %v9396_v59 = vld [vmem:[#allocation6] ss:$16 sps:$4 sm:$0xff]  }
 0x1fe   : > { %3215 = vmatprep.mubr.bf16.mxu1 %v10941_v47  ;;  %4226 = vmatprep.subr.bf16.mxu0 %v9386_v20  ;;  %v9363_v6 = vld [vmem:[#allocation4 + $0x368] ss:$16 sps:$4 sm:$0xff]   ;;  %v9368_v53 = vld [vmem:[#allocation4 + $0x34c] ss:$16 sps:$4 sm:$0xff]   ;;  %v9401_v27 = vld [vmem:[#allocation6 + $0x1e4] ss:$16 sps:$4 sm:$0xff]  }
 0x1ff   : > { %v9399_v35 = vld [vmem:[#allocation6 + $0x1e0] ss:$16 sps:$4 sm:$0xff]   ;;  %v9366_v42 = vld [vmem:[#allocation4 + $0x348] ss:$16 sps:$4 sm:$0xff]   ;;  %v9371_v31 = vld [vmem:[#allocation4 + $0x32c] ss:$16 sps:$4 sm:$0xff]  }
 0x200   : > { %3306 = vmatpush1.bf16.msra.mxu1 %v9342_v23  ;;  %v9404_v23 = vld [vmem:[#allocation6 + $0x1c4] ss:$16 sps:$4 sm:$0xff]   ;;  %v9369_v28 = vld [vmem:[#allocation4 + $0x328] ss:$16 sps:$4 sm:$0xff]   ;;  %v9405_v15 = vld [vmem:[#allocation6 + $0x1a0] ss:$16 sps:$4 sm:$0xff]  }
 0x201   : > { %3307 = vmatprep.subr.bf16.mxu1 %v9347_v57  ;;  %4227 = vmatpush1.bf16.msra.mxu0 %v9384_v22  ;;  %v9402_v57 = vld [vmem:[#allocation6 + $0x1c0] ss:$16 sps:$4 sm:$0xff]   ;;  %v9372_v30 = vld [vmem:[#allocation4 + $0x308] ss:$16 sps:$4 sm:$0xff]   ;;  %v9413_v22 = vld [vmem:[#allocation6 + $0x164] ss:$16 sps:$4 sm:$0xff]  }
 0x202   : > { %4228 = vmatprep.subr.bf16.mxu0 %v9389_v14  ;;  %v9411_v20 = vld [vmem:[#allocation6 + $0x160] ss:$16 sps:$4 sm:$0xff]   ;;  %v9416_v14 = vld [vmem:[#allocation6 + $0x144] ss:$16 sps:$4 sm:$0xff]  }
 0x203   : > { %3216 = vmatmul.mubr.bf16.gmra.mxu1 %v10944_v3  ;;  %3287 = vmatmul.mubr.bf16.gmra.mxu0 %v10894_v18  ;;  %v9354_v18 = vld [vmem:[#allocation4 + $0x3c8] ss:$16 sps:$4 sm:$0xff]  }
 0x204   : > { %3308 = vmatpush1.bf16.msra.mxu1 %v9345_v26  ;;  %3327 = vmatprep.mubr.bf16.mxu1 %v10910_v56  ;;  %v9359_v56 = vld [vmem:[#allocation4 + $0x3ac] ss:$16 sps:$4 sm:$0xff]  }
 0x205   : > { %3309 = vmatprep.subr.bf16.mxu1 %v9350_v60  ;;  %4229 = vmatpush1.bf16.msra.mxu0 %v9387_v58  ;;  %v9374_v26 = vld [vmem:[#allocation4 + $0x30c] ss:$16 sps:$4 sm:$0xff]   ;;  %v9407_v60 = vld [vmem:[#allocation6 + $0x1a4] ss:$16 sps:$4 sm:$0xff]  }
 0x206   : > { %4230 = vmatprep.subr.bf16.mxu0 %v9392_v0  ;;  %v9419_v58 = vld [vmem:[#allocation6 + $0x124] ss:$16 sps:$4 sm:$0xff]   ;;  %v9423_v0 = vld [vmem:[#allocation6 + $0x2e0] ss:$16 sps:$4 sm:$0xff]  }
 0x208   : > { %3310 = vmatpush1.bf16.msra.mxu1 %v9348_v36  ;;  %v9410_v36 = vld [vmem:[#allocation6 + $0x184] ss:$16 sps:$4 sm:$0xff]  }
 0x209   : > { %3311 = vmatprep.subr.bf16.mxu1 %v9353_v54  ;;  %4231 = vmatpush1.bf16.msra.mxu0 %v9390_v8  ;;  %v9408_v54 = vld [vmem:[#allocation6 + $0x180] ss:$16 sps:$4 sm:$0xff]   ;;  %v9431_v8 = vld [vmem:[#allocation6 + $0x2c4] ss:$16 sps:$4 sm:$0xff]  }
 0x20a   : > { %4232 = vmatprep.subr.bf16.mxu0 %v9395_v2  ;;  %v9441_v2 = vld [vmem:[#allocation6 + $0x280] ss:$16 sps:$4 sm:$0xff]  }
 0x20c   : > { %3312 = vmatpush2.bf16.msra.mxu1 %v9351_v4  ;;  %v9414_v4 = vld [vmem:[#allocation6 + $0x140] ss:$16 sps:$4 sm:$0xff]  }
 0x20d   : > { %3313 = vmatprep.subr.bf16.mxu1 %v9356_v34  ;;  %4233 = vmatpush1.bf16.msra.mxu0 %v9393_v17  ;;  %v9417_v34 = vld [vmem:[#allocation6 + $0x120] ss:$16 sps:$4 sm:$0xff]   ;;  %v9455_v17 = vld [vmem:[#allocation6 + $0x244] ss:$16 sps:$4 sm:$0xff]  }
 0x20e   : > { %4234 = vmatprep.subr.bf16.mxu0 %v9398_v33  ;;  %v9459_v33 = vld [vmem:[#allocation6 + $0x220] ss:$16 sps:$4 sm:$0xff]  }
 0x210   : > { %3314 = vmatpush2.bf16.msra.mxu1 %v9354_v18  ;;  %v9420_v18 = vld [vmem:[#allocation6 + $0x100] ss:$16 sps:$4 sm:$0xff]  }
 0x211   : > { %3315 = vmatprep.subr.bf16.mxu1 %v9359_v56  ;;  %4235 = vmatpush1.bf16.msra.mxu0 %v9396_v59  ;;  %v9425_v56 = vld [vmem:[#allocation6 + $0x2e4] ss:$16 sps:$4 sm:$0xff]  }
 0x212   : > { %4236 = vmatprep.subr.bf16.mxu0 %v9401_v27  ;;  %v9467_v59 = vld [vmem:[#allocation6 + $0x204] ss:$16 sps:$4 sm:$0xff]  }
 0x213   : > { %v9479_v27 = vld [vmem:[#allocation6 + $0x3c4] ss:$16 sps:$4 sm:$0xff]  }
 0x214   : > { %3316 = vmatpush2.bf16.msra.mxu1 %v9357_v13  ;;  %v9437_v13 = vld [vmem:[#allocation6 + $0x2a4] ss:$16 sps:$4 sm:$0xff]  }
 0x215   : > { %3317 = vmatprep.subr.bf16.mxu1 %v9362_v1  ;;  %4237 = vmatpush2.bf16.msra.mxu0 %v9399_v35  ;;  %v9443_v1 = vld [vmem:[#allocation6 + $0x284] ss:$16 sps:$4 sm:$0xff]   ;;  %v9477_v35 = vld [vmem:[#allocation6 + $0x3c0] ss:$16 sps:$4 sm:$0xff]  }
 0x216   : > { %4238 = vmatprep.subr.bf16.mxu0 %v9404_v23  ;;  %v9491_v23 = vld [vmem:[#allocation6 + $0x384] ss:$16 sps:$4 sm:$0xff]  }
 0x218   : > { %3318 = vmatpush2.bf16.msra.mxu1 %v9360_v32  ;;  %v9453_v32 = vld [vmem:[#allocation6 + $0x240] ss:$16 sps:$4 sm:$0xff]  }
 0x219   : > { %3319 = vmatprep.subr.bf16.mxu1 %v9365_v21  ;;  %4239 = vmatpush2.bf16.msra.mxu0 %v9402_v57  ;;  %v9461_v21 = vld [vmem:[#allocation6 + $0x224] ss:$16 sps:$4 sm:$0xff]   ;;  %v9489_v57 = vld [vmem:[#allocation6 + $0x380] ss:$16 sps:$4 sm:$0xff]  }
 0x21a   : > { %4240 = vmatprep.subr.bf16.mxu0 %v9407_v60  ;;  %v9503_v60 = vld [vmem:[#allocation6 + $0x344] ss:$16 sps:$4 sm:$0xff]  }
 0x21c   : > { %3320 = vmatpush2.bf16.msra.mxu1 %v9363_v6  ;;  %v9473_v6 = vld [vmem:[#allocation6 + $0x3e4] ss:$16 sps:$4 sm:$0xff]  }
 0x21d   : > { %3321 = vmatprep.subr.bf16.mxu1 %v9368_v53  ;;  %4241 = vmatpush2.bf16.msra.mxu0 %v9405_v15  ;;  %v9471_v53 = vld [vmem:[#allocation6 + $0x3e0] ss:$16 sps:$4 sm:$0xff]  }
 0x21e   : > { %4242 = vmatprep.subr.bf16.mxu0 %v9410_v36  ;;  %v9501_v15 = vld [vmem:[#allocation6 + $0x340] ss:$16 sps:$4 sm:$0xff]   ;;  %v9509_v36 = vld [vmem:[#allocation6 + $0x324] ss:$16 sps:$4 sm:$0xff]  }
 0x220   : > { %3322 = vmatpush2.bf16.msra.mxu1 %v9366_v42  ;;  %v9485_v42 = vld [vmem:[#allocation6 + $0x3a4] ss:$16 sps:$4 sm:$0xff]  }
 0x221   : > { %3323 = vmatprep.subr.bf16.mxu1 %v9371_v31  ;;  %4243 = vmatpush2.bf16.msra.mxu0 %v9408_v54  ;;  %v9483_v31 = vld [vmem:[#allocation6 + $0x3a0] ss:$16 sps:$4 sm:$0xff]   ;;  %v9515_v54 = vld [vmem:[#allocation6 + $0x304] ss:$16 sps:$4 sm:$0xff]  }
 0x222   : > { %4244 = vmatprep.subr.bf16.mxu0 %v9413_v22 }
 0x224   : > { %3324 = vmatpush2.bf16.msra.mxu1 %v9369_v28  ;;  %v9497_v28 = vld [vmem:[#allocation6 + $0x364] ss:$16 sps:$4 sm:$0xff]  }
 0x225   : > { %3325 = vmatprep.subr.bf16.mxu1 %v9374_v26  ;;  %4245 = vmatpush2.bf16.msra.mxu0 %v9411_v20  ;;  %v9495_v26 = vld [vmem:[#allocation6 + $0x360] ss:$16 sps:$4 sm:$0xff]  }
 0x226   : > { %4246 = vmatprep.subr.bf16.mxu0 %v9416_v14  ;;  %v9513_v20 = vld [vmem:[#allocation6 + $0x300] ss:$16 sps:$4 sm:$0xff]   ;;  %v9521_v14 = vld [vmem:[#allocation6 + $0x2ec] ss:$16 sps:$4 sm:$0xff]  }
 0x228   : > { %3326 = vmatpush2.bf16.msra.mxu1 %v9372_v30  ;;  %v9507_v30 = vld [vmem:[#allocation6 + $0x320] ss:$16 sps:$4 sm:$0xff]  }
 0x229   : > { %4247 = vmatpush2.bf16.msra.mxu0 %v9414_v4  ;;  %4291 = vmatprep.subr.bf16.mxu1 %v9425_v56 }
 0x22a   : > { %4248 = vmatprep.subr.bf16.mxu0 %v9419_v58 }
 0x22b   : > { %3328 = vmatmul.mubr.bf16.vlgmr.msra.gmra.mxu1 %v10914_v62  ;;  %v9422_v62 = vld [vmem:[#allocation6 + $0x104] ss:$16 sps:$4 sm:$0xff]  }
 0x22c   : > { %3337 = vmatprep.mubr.bf16.mxu1 %v10923_v63  ;;  %v9428_v63 = vld [vmem:[#allocation6 + $0xec] ss:$16 sps:$4 sm:$0xff]   ;;  %4292 = vmatpush1.bf16.msra.mxu1 %v9423_v0 }
 0x22d   : > { %4249 = vmatpush2.bf16.msra.mxu0 %v9417_v34  ;;  %4293 = vmatprep.subr.bf16.mxu1 %v9431_v8 }
 0x22e   : > { %4250 = vmatprep.subr.bf16.mxu0 %v9422_v62 }
 0x231   : > { %4251 = vmatpush2.bf16.msra.mxu0 %v9420_v18 }
 0x232   : > { %4362 = vmatprep.subr.bf16.mxu0 %v9428_v63 }
 0x233   : > { %3338 = vmatmul.mubr.bf16.gmra.mxu1 %v10926_v25  ;;  %v9429_v25 = vld [vmem:[#allocation6 + $0x2c0] ss:$16 sps:$4 sm:$0xff]  }
 0x234   : > { %3347 = vmatprep.mubr.bf16.mxu1 %v10933_v29  ;;  %4294 = vmatpush1.bf16.msra.mxu1 %v9429_v25  ;;  %v9435_v29 = vld [vmem:[#allocation6 + $0x2a0] ss:$16 sps:$4 sm:$0xff]  }
 0x235   : > { %4295 = vmatprep.subr.bf16.mxu1 %v9437_v13 }
 0x238   : > { %4296 = vmatpush1.bf16.msra.mxu1 %v9435_v29 }
 0x239   : > { %4297 = vmatprep.subr.bf16.mxu1 %v9443_v1 }
 0x23b   : > { %3348 = vmatmul.mubr.bf16.gmra.mxu1 %v10936_v52  ;;  %v9447_v52 = vld [vmem:[#allocation6 + $0x260] ss:$16 sps:$4 sm:$0xff]  }
 0x23c   : > { %3357 = vmatprep.mubr.bf16.mxu1 %v10941_v47  ;;  %4298 = vmatpush1.bf16.msra.mxu1 %v9441_v2  ;;  %v9449_v47 = vld [vmem:[#allocation6 + $0x264] ss:$16 sps:$4 sm:$0xff]  }
 0x23d   : > { %4299 = vmatprep.subr.bf16.mxu1 %v9449_v47  ;;  %v10971_v47 = vld [vmem:[%s12679_s7] sm:$0xf] }
 0x240   : > { %4300 = vmatpush1.bf16.msra.mxu1 %v9447_v52 }
 0x241   : > { %4301 = vmatprep.subr.bf16.mxu1 %v9455_v17  ;;  %v10975_v17 = vrot.slane %v10971_v47, %v12749_v61 }
 0x243   : > { %3358 = vmatmul.mubr.bf16.gmra.mxu1 %v10944_v3  ;;  %v9465_v3 = vld [vmem:[#allocation6 + $0x200] ss:$16 sps:$4 sm:$0xff]   ;;  %12755 = vst [vmem:[#allocation10_spill] sm:$0xff] %v10975_v17 }
 0x244   : > { %4302 = vmatpush1.bf16.msra.mxu1 %v9453_v32 }
 0x245   : > { %4303 = vmatprep.subr.bf16.mxu1 %v9461_v21  ;;  %v10979_v21 = vrot.slane %v10971_v47, %v12750_v7 }
 0x247   : > { %12756 = vst [vmem:[#allocation9_spill] sm:$0xff] %v10979_v21 }
 0x248   : > { %4304 = vmatpush1.bf16.msra.mxu1 %v9459_v33 }
 0x249   : > { %4305 = vmatprep.subr.bf16.mxu1 %v9467_v59 }
 0x24c   : > { %4306 = vmatpush1.bf16.msra.mxu1 %v9465_v3 }
 0x24d   : > { %4307 = vmatprep.subr.bf16.mxu1 %v9473_v6 }
 0x250   : > { %4308 = vmatpush2.bf16.msra.mxu1 %v9471_v53 }
 0x251   : > { %4309 = vmatprep.subr.bf16.mxu1 %v9479_v27 }
 0x254   : > { %4310 = vmatpush2.bf16.msra.mxu1 %v9477_v35 }
 0x255   : > { %4311 = vmatprep.subr.bf16.mxu1 %v9485_v42 }
 0x258   : > { %4312 = vmatpush2.bf16.msra.mxu1 %v9483_v31 }
 0x259   : > { %4313 = vmatprep.subr.bf16.mxu1 %v9491_v23 }
 0x25c   : > { %4314 = vmatpush2.bf16.msra.mxu1 %v9489_v57 }
 0x25d   : > { %4315 = vmatprep.subr.bf16.mxu1 %v9497_v28 }
 0x260   : > { %4316 = vmatpush2.bf16.msra.mxu1 %v9495_v26 }
 0x261   : > { %4317 = vmatprep.subr.bf16.mxu1 %v9503_v60 }
 0x264   : > { %4318 = vmatpush2.bf16.msra.mxu1 %v9501_v15 }
 0x265   : > { %4319 = vmatprep.subr.bf16.mxu1 %v9509_v36 }
 0x268   : > { %4320 = vmatpush2.bf16.msra.mxu1 %v9507_v30 }
 0x269   : > { %4321 = vmatprep.subr.bf16.mxu1 %v9515_v54 }
 0x26a   : > { %v3116_v22 = vpop.f32.mrf.mxu0 }
 0x26b   : > { %v3117_v3 = vadd.f32 %v3116_v22, %v10975_v17 }
 0x26c   : > { %v3118_v4 = vpop.f32.mrf.mxu0  ;;  %4322 = vmatpush2.bf16.msra.mxu1 %v9513_v20 }
 0x26d   : > { %4433 = vmatprep.subr.bf16.mxu1 %v9521_v14  ;;  %v3119_v35 = vadd.f32 %v3118_v4, %v10979_v21 }
 0x26e   : > { %v3120_v34 = vpop.f32.mrf.mxu0 }
 0x26f   : > { %v3121_v6 = vadd.f32 %v3120_v34, %v10975_v17 }
 0x270   : > { %v3122_v58 = vpop.f32.mrf.mxu0 }
 0x271   : > { %v3123_v42 = vadd.f32 %v3122_v58, %v10979_v21 }
 0x27f   : > { %v3126_v18 = vpop.f32.mrf.mxu0 }
 0x280   : > { %v3127_v20 = vadd.f32 %v3126_v18, %v10975_v17 }
 0x281   : > { %v3128_v62 = vpop.f32.mrf.mxu0 }
 0x283   : > { %v3130_v0 = vpop.f32.mrf.mxu0 }
 0x284   : > { %v3131_v34 = vadd.f32 %v3130_v0, %v10975_v17 }
 0x285   : > { %v3132_v56 = vpop.f32.mrf.mxu0 }
 0x293   : > { %v10956_v63 = vpop.f32.mrf.mxu0 }
 0x295   : > { %v10958_v25 = vpop.f32.mrf.mxu0 }
 0x297   : > { %v10960_v8 = vpop.f32.mrf.mxu0 }
 0x299   : > { %v10962_v29 = vpop.f32.mrf.mxu0 }
 0x29b   : > { %v10964_v13 = vpop.f32.mrf.mxu0 }
 0x29d   : > { %v10966_v2 = vpop.f32.mrf.mxu0 }
 0x29f   : > { %v3150_v1 = vpop.f32.mrf.mxu0 }
 0x2a1   : > { %v3151_v52 = vpop.f32.mrf.mxu0 }
 0x2a2   : > { %v3129_v52 = vadd.f32 %v3128_v62, %v10979_v21 }
 0x2ab   : > { %v3187_v32 = vpop.f32.mrf.mxu1  ;;  %v10981_v33 = vpop.f32.mrf.mxu0 }
 0x2ac   : > { %v3188_v31 = vadd.f32 %v3187_v32, %v3117_v3  ;;  %v3133_v3 = vadd.f32 %v3132_v56, %v10979_v21 }
 0x2ad   : > { %v3189_v59 = vpop.f32.mrf.mxu1  ;;  %v10985_v53 = vpop.f32.mrf.mxu0 }
 0x2ae   : > { %v3190_v26 = vadd.f32 %v3189_v59, %v3119_v35  ;;  %v9426_v59 = vld [vmem:[#allocation6 + $0xe8] ss:$16 sps:$4 sm:$0xff]  }
 0x2af   : > { %v3191_v27 = vpop.f32.mrf.mxu1  ;;  %v10989_v57 = vpop.f32.mrf.mxu0 }
 0x2b0   : > { %v3192_v23 = vadd.f32 %v3191_v27, %v3121_v6 }
 0x2b1   : > { %v3193_v28 = vpop.f32.mrf.mxu1  ;;  %v10991_v30 = vpop.f32.mrf.mxu0 }
 0x2b2   : > { %v3366_v60 = vpack.c.bf16 %v3192_v23, %v3188_v31  ;;  %v3194_v15 = vadd.f32 %v3193_v28, %v3123_v42  ;;  %v9434_v42 = vld [vmem:[#allocation6 + $0xcc] ss:$16 sps:$4 sm:$0xff]  }
 0x2b3   : > { %v3197_v36 = vpop.f32.mrf.mxu1  ;;  %v10993_v22 = vpop.f32.mrf.mxu0 }
 0x2b4   : > { %v3367_v54 = vpack.c.bf16 %v3194_v15, %v3190_v26  ;;  %v3398_v14 = vmul.bf16 1045249613, %v3366_v60  ;;  %vm3382_vm12 = vcmp.gt.bf16.partialorder %v3366_v60, 0  ;;  %v3198_v6 = vadd.f32 %v3197_v36, %v3127_v20  ;;  %v9432_v15 = vld [vmem:[#allocation6 + $0xc8] ss:$16 sps:$4 sm:$0xff]  }
 0x2b5   : > { %v3199_v4 = vpop.f32.mrf.mxu1  ;;  %v10997_v58 = vpop.f32.mrf.mxu0 }
 0x2b6   : > { %vm3383_vm13 = vcmp.gt.bf16.partialorder %v3367_v54, 0  ;;  %v3399_v1 = vmul.bf16 1045249613, %v3367_v54  ;;  %v11006_v0 = vsel %vm3382_vm12, %v3366_v60, %v3398_v14  ;;  %v3200_v23 = vadd.f32 %v3199_v4, %v3129_v52 }
 0x2b7   : > { %v3201_v32 = vpop.f32.mrf.mxu1  ;;  %v11001_v35 = vpop.f32.mrf.mxu0  ;;  %v3141_v4 = vadd.f32 %v10960_v8, %v10975_v17  ;;  %v9446_v8 = vld [vmem:[#allocation6 + $0x8c] ss:$16 sps:$4 sm:$0xff]  }
 0x2b8   : > { %v3202_v27 = vadd.f32 %v3201_v32, %v3131_v34  ;;  %v11003_v18 = vsel %vm3383_vm13, %v3367_v54, %v3399_v1  ;;  %v9440_v54 = vld [vmem:[#allocation6 + $0xac] ss:$16 sps:$4 sm:$0xff]   ;;  %v3137_v34 = vadd.f32 %v10956_v63, %v10975_v17  ;;  %v3139_v32 = vadd.f32 %v10958_v25, %v10979_v21 }
 0x2b9   : > { %v3203_v31 = vpop.f32.mrf.mxu1  ;;  %4252 = vmatprep.mubr.bf16.mxu0 %v11003_v18  ;;  %v11008_v62 = vpop.f32.mrf.mxu0 }
 0x2ba   : > { %v3370_v28 = vpack.c.bf16 %v3202_v27, %v3198_v6  ;;  %v3204_v26 = vadd.f32 %v3203_v31, %v3133_v3  ;;  %4253 = vmatmul.mubr.bf16.vlgmr.msra.gmra.mxu0 %v11006_v0  ;;  %v9438_v3 = vld [vmem:[#allocation6 + $0xa8] ss:$16 sps:$4 sm:$0xff]   ;;  %v3143_v6 = vadd.f32 %v10962_v29, %v10979_v21  ;;  %v3147_v29 = vadd.f32 %v10964_v13, %v10975_v17 }
 0x2bb   : > { %4363 = vmatpush1.bf16.msra.mxu0 %v9426_v59  ;;  %v3207_v56 = vpop.f32.mrf.mxu1  ;;  %v11011_v20 = vpop.f32.mrf.mxu0 }
 0x2bc   : > { %v3371_v36 = vpack.c.bf16 %v3204_v26, %v3200_v23  ;;  %4364 = vmatprep.subr.bf16.mxu0 %v9434_v42  ;;  %v3402_v14 = vmul.bf16 1045249613, %v3370_v28  ;;  %vm3386_vm15 = vcmp.gt.bf16.partialorder %v3370_v28, 0  ;;  %v3208_v63 = vadd.f32 %v3207_v56, %v3137_v34 }
 0x2bd   : > { %v3209_v60 = vpop.f32.mrf.mxu1  ;;  %v11017_v1 = vpop.f32.mrf.mxu0 }
 0x2be   : > { %vm3387_vm14 = vcmp.gt.bf16.partialorder %v3371_v36, 0  ;;  %v3403_v52 = vmul.bf16 1045249613, %v3371_v36  ;;  %v11028_v26 = vsel %vm3386_vm15, %v3370_v28, %v3402_v14  ;;  %v3210_v25 = vadd.f32 %v3209_v60, %v3139_v32  ;;  %v9452_v28 = vld [vmem:[#allocation6 + $0x6c] ss:$16 sps:$4 sm:$0xff]  }
 0x2bf   : > { %4365 = vmatpush1.bf16.msra.mxu0 %v9432_v15  ;;  %v3211_v59 = vpop.f32.mrf.mxu1  ;;  %v11023_v42 = vpop.f32.mrf.mxu0 }
 0x2c0   : > { %v3212_v27 = vadd.f32 %v3211_v59, %v3141_v4  ;;  %v11025_v31 = vsel %vm3387_vm14, %v3371_v36, %v3403_v52  ;;  %4366 = vmatprep.subr.bf16.mxu0 %v9440_v54  ;;  %v9444_v36 = vld [vmem:[#allocation6 + $0x88] ss:$16 sps:$4 sm:$0xff]   ;;  %v3149_v54 = vadd.f32 %v10966_v2, %v10979_v21 }
 0x2c1   : > { %v3213_v23 = vpop.f32.mrf.mxu1  ;;  %4262 = vmatprep.mubr.bf16.mxu0 %v11025_v31  ;;  %v11030_v5 = vpop.f32.mrf.mxu0 }
 0x2c2   : > { %v3374_v15 = vpack.c.bf16 %v3212_v27, %v3208_v63  ;;  %v3214_v55 = vadd.f32 %v3213_v23, %v3143_v6  ;;  %4263 = vmatmul.mubr.bf16.gmra.mxu0 %v11028_v26 }
 0x2c3   : > { %4367 = vmatpush1.bf16.msra.mxu0 %v9438_v3  ;;  %v3217_v56 = vpop.f32.mrf.mxu1  ;;  %v11037_v4 = vpop.f32.mrf.mxu0  ;;  %v9450_v3 = vld [vmem:[#allocation6 + $0x68] ss:$16 sps:$4 sm:$0xff]  }
 0x2c4   : > { %v3375_v34 = vpack.c.bf16 %v3214_v55, %v3210_v25  ;;  %4368 = vmatprep.subr.bf16.mxu0 %v9446_v8  ;;  %v3218_v60 = vadd.f32 %v3217_v56, %v3147_v29  ;;  %v3406_v52 = vmul.bf16 1045249613, %v3374_v15  ;;  %vm3390_vm1 = vcmp.gt.bf16.partialorder %v3374_v15, 0  ;;  %v9458_v55 = vld [vmem:[#allocation6 + $0x4c] ss:$16 sps:$4 sm:$0xff]  }
 0x2c5   : > { %v3219_v14 = vpop.f32.mrf.mxu1  ;;  %v11039_v59 = vpop.f32.mrf.mxu0 }
 0x2c6   : > { %v3220_v32 = vadd.f32 %v3219_v14, %v3149_v54  ;;  %vm3391_vm0 = vcmp.gt.bf16.partialorder %v3375_v34, 0  ;;  %v3407_v6 = vmul.bf16 1045249613, %v3375_v34  ;;  %v3378_v8 = vpack.c.bf16 %v3218_v60, %v3218_v60 }
 0x2c7   : > { %4369 = vmatpush1.bf16.msra.mxu0 %v9444_v36  ;;  %v3221_v13 = vpop.f32.mrf.mxu1  ;;  %v3292_v27 = vpop.f32.mrf.mxu0  ;;  %v11044_v25 = vsel %vm3390_vm1, %v3374_v15, %v3406_v52  ;;  %v9456_v36 = vld [vmem:[#allocation6 + $0x48] ss:$16 sps:$4 sm:$0xff]   ;;  %v9470_v15 = vld [vmem:[#allocation6 + $0xc] ss:$16 sps:$4 sm:$0xff]  }
 0x2c8   : > { %v3379_v63 = vpack.c.bf16 %v3220_v32, %v3220_v32  ;;  %v11041_v2 = vsel %vm3391_vm0, %v3375_v34, %v3407_v6  ;;  %4370 = vmatprep.subr.bf16.mxu0 %v9452_v28  ;;  %v9464_v34 = vld [vmem:[#allocation6 + $0x2c] ss:$16 sps:$4 sm:$0xff]   ;;  %v3410_v14 = vmul.bf16 1045249613, %v3378_v8  ;;  %vm3394_vm3 = vcmp.gt.bf16.partialorder %v3378_v8, 0 }
 0x2c9   : > { %v3222_v23 = vpop.f32.mrf.mxu1  ;;  %4272 = vmatprep.mubr.bf16.mxu0 %v11041_v2  ;;  %v3293_v56 = vpop.f32.mrf.mxu0  ;;  %v9462_v28 = vld [vmem:[#allocation6 + $0x28] ss:$16 sps:$4 sm:$0xff]   ;;  %v9476_v32 = vld [vmem:[#allocation6 + $0x1ec] ss:$16 sps:$4 sm:$0xff]  }
 0x2ca   : > { %v3411_v29 = vmul.bf16 1045249613, %v3379_v63  ;;  %4273 = vmatmul.mubr.bf16.gmra.mxu0 %v11044_v25  ;;  %vm3395_vm2 = vcmp.gt.bf16.partialorder %v3379_v63, 0  ;;  %v11050_v60 = vsel %vm3394_vm3, %v3378_v8, %v3410_v14  ;;  %v9468_v52 = vld [vmem:[#allocation6 + $0x8] ss:$16 sps:$4 sm:$0xff]   ;;  %v11056_v56 = vrot.slane %v10971_v47, %v12751_v41 }
 0x2cb   : > { %4371 = vmatpush1.bf16.msra.mxu0 %v9450_v3  ;;  %v9474_v6 = vld [vmem:[#allocation6 + $0x1e8] ss:$16 sps:$4 sm:$0xff]   ;;  %v9482_v13 = vld [vmem:[#allocation6 + $0x1cc] ss:$16 sps:$4 sm:$0xff]   ;;  %v11060_v14 = vrot.slane %v10971_v47, %v12753_v16 }
 0x2cc   : > { %v11047_v54 = vsel %vm3395_vm2, %v3379_v63, %v3411_v29  ;;  %4372 = vmatprep.subr.bf16.mxu0 %v9458_v55  ;;  %v9480_v3 = vld [vmem:[#allocation6 + $0x1c8] ss:$16 sps:$4 sm:$0xff]   ;;  %v9488_v63 = vld [vmem:[#allocation6 + $0x1ac] ss:$16 sps:$4 sm:$0xff]   ;;  %12757 = vst [vmem:[#allocation11_spill] sm:$0xff] %v11056_v56 }
 0x2cd   : > { %4282 = vmatprep.mubr.bf16.mxu0 %v11047_v54  ;;  %v9486_v27 = vld [vmem:[#allocation6 + $0x1a8] ss:$16 sps:$4 sm:$0xff]   ;;  %v9494_v55 = vld [vmem:[#allocation6 + $0x18c] ss:$16 sps:$4 sm:$0xff]   ;;  %12758 = vst [vmem:[#allocation12_spill] sm:$0xff] %v11060_v14 }
 0x2ce   : > { %v9492_v8 = vld [vmem:[#allocation6 + $0x188] ss:$16 sps:$4 sm:$0xff]   ;;  %v9500_v23 = vld [vmem:[#allocation6 + $0x16c] ss:$16 sps:$4 sm:$0xff]  }
 0x2cf   : > { %4373 = vmatpush1.bf16.msra.mxu0 %v9456_v36  ;;  %v9506_v29 = vld [vmem:[#allocation6 + $0x14c] ss:$16 sps:$4 sm:$0xff]  }
 0x2d0   : > { %4374 = vmatprep.subr.bf16.mxu0 %v9464_v34  ;;  %v9504_v34 = vld [vmem:[#allocation6 + $0x148] ss:$16 sps:$4 sm:$0xff]  }
 0x2d2   : > { %4283 = vmatmul.mubr.bf16.gmra.mxu0 %v11050_v60 }
 0x2d3   : > { %4375 = vmatpush1.bf16.msra.mxu0 %v9462_v28  ;;  %4394 = vmatprep.mubr.bf16.mxu0 %v11003_v18  ;;  %v9498_v18 = vld [vmem:[#allocation6 + $0x168] ss:$16 sps:$4 sm:$0xff]   ;;  %v9512_v28 = vld [vmem:[#allocation6 + $0x12c] ss:$16 sps:$4 sm:$0xff]  }
 0x2d4   : > { %4376 = vmatprep.subr.bf16.mxu0 %v9470_v15 }
 0x2d7   : > { %4377 = vmatpush1.bf16.msra.mxu0 %v9468_v52  ;;  %v3259_v52 = vadd.f32 %v10981_v33, %v11056_v56 }
 0x2d8   : > { %4378 = vmatprep.subr.bf16.mxu0 %v9476_v32  ;;  %v3263_v32 = vadd.f32 %v10989_v57, %v11056_v56  ;;  %v9516_v57 = vld [vmem:[#allocation6 + $0x108] ss:$16 sps:$4 sm:$0xff]  }
 0x2db   : > { %4379 = vmatpush2.bf16.msra.mxu0 %v9474_v6 }
 0x2dc   : > { %4380 = vmatprep.subr.bf16.mxu0 %v9482_v13  ;;  %v9510_v13 = vld [vmem:[#allocation6 + $0x128] ss:$16 sps:$4 sm:$0xff]  }
 0x2df   : > { %4381 = vmatpush2.bf16.msra.mxu0 %v9480_v3  ;;  %v3261_v3 = vadd.f32 %v10985_v53, %v11060_v14 }
 0x2e0   : > { %4382 = vmatprep.subr.bf16.mxu0 %v9488_v63  ;;  %v3265_v63 = vadd.f32 %v10991_v30, %v11060_v14  ;;  %v3273_v30 = vadd.f32 %v11001_v35, %v11056_v56 }
 0x2e3   : > { %4383 = vmatpush2.bf16.msra.mxu0 %v9486_v27 }
 0x2e4   : > { %4384 = vmatprep.subr.bf16.mxu0 %v9494_v55  ;;  %v9518_v55 = vld [vmem:[#allocation6 + $0x10c] ss:$16 sps:$4 sm:$0xff]  }
 0x2e7   : > { %4385 = vmatpush2.bf16.msra.mxu0 %v9492_v8 }
 0x2e8   : > { %4386 = vmatprep.subr.bf16.mxu0 %v9500_v23 }
 0x2eb   : > { %v3329_v36 = vpop.f32.mrf.mxu1  ;;  %4387 = vmatpush2.bf16.msra.mxu0 %v9498_v18 }
 0x2ec   : > { %4388 = vmatprep.subr.bf16.mxu0 %v9506_v29  ;;  %v3330_v47 = vadd.f32 %v3329_v36, %v3259_v52  ;;  %v9519_v52 = vld [vmem:[#allocation6 + $0x2e8] ss:$16 sps:$4 sm:$0xff]  }
 0x2ed   : > { %v3331_v15 = vpop.f32.mrf.mxu1 }
 0x2ee   : > { %v3332_v23 = vadd.f32 %v3331_v15, %v3261_v3  ;;  %v9524_v3 = vld [vmem:[#allocation6 + $0x2cc] ss:$16 sps:$4 sm:$0xff]  }
 0x2ef   : > { %v3333_v6 = vpop.f32.mrf.mxu1  ;;  %4389 = vmatpush2.bf16.msra.mxu0 %v9504_v34  ;;  %v3269_v34 = vadd.f32 %v10993_v22, %v11056_v56 }
 0x2f0   : > { %v3334_v27 = vadd.f32 %v3333_v6, %v3263_v32  ;;  %4390 = vmatprep.subr.bf16.mxu0 %v9512_v28  ;;  %v3271_v28 = vadd.f32 %v10997_v58, %v11060_v14  ;;  %v3275_v32 = vadd.f32 %v11008_v62, %v11060_v14  ;;  %v9522_v62 = vld [vmem:[#allocation6 + $0x2c8] ss:$16 sps:$4 sm:$0xff]  }
 0x2f1   : > { %v3335_v8 = vpop.f32.mrf.mxu1 }
 0x2f2   : > { %v3368_v18 = vpack.c.bf16 %v3334_v27, %v3330_v47  ;;  %v3336_v33 = vadd.f32 %v3335_v8, %v3265_v63  ;;  %v9527_v8 = vld [vmem:[#allocation6 + $0x2ac] ss:$16 sps:$4 sm:$0xff]  }
 0x2f3   : > { %v3339_v29 = vpop.f32.mrf.mxu1  ;;  %4391 = vmatpush2.bf16.msra.mxu0 %v9510_v13 }
 0x2f4   : > { %v3369_v21 = vpack.c.bf16 %v3336_v33, %v3332_v23  ;;  %4392 = vmatprep.subr.bf16.mxu0 %v9518_v55  ;;  %v3400_v53 = vmul.bf16 1045249613, %v3368_v18  ;;  %vm3384_vm4 = vcmp.gt.bf16.partialorder %v3368_v18, 0  ;;  %v3340_v6 = vadd.f32 %v3339_v29, %v3269_v34 }
 0x2f5   : > { %v3341_v17 = vpop.f32.mrf.mxu1  ;;  %v3279_v23 = vadd.f32 %v11011_v20, %v11056_v56  ;;  %v3285_v34 = vadd.f32 %v11030_v5, %v11060_v14  ;;  %v3289_v5 = vadd.f32 %v11037_v4, %v11056_v56 }
 0x2f6   : > { %vm3385_vm5 = vcmp.gt.bf16.partialorder %v3369_v21, 0  ;;  %v3401_v36 = vmul.bf16 1045249613, %v3369_v21  ;;  %v11081_v35 = vsel %vm3384_vm4, %v3368_v18, %v3400_v53  ;;  %v3342_v47 = vadd.f32 %v3341_v17, %v3271_v28 }
 0x2f7   : > { %v3343_v15 = vpop.f32.mrf.mxu1  ;;  %4393 = vmatpush2.bf16.msra.mxu0 %v9516_v57  ;;  %v3283_v17 = vadd.f32 %v11023_v42, %v11056_v56  ;;  %v9525_v57 = vld [vmem:[#allocation6 + $0x2a8] ss:$16 sps:$4 sm:$0xff]  }
 0x2f8   : > { %v3344_v13 = vadd.f32 %v3343_v15, %v3273_v30  ;;  %v11078_v22 = vsel %vm3385_vm5, %v3369_v21, %v3401_v36  ;;  %v9530_v36 = vld [vmem:[#allocation6 + $0x28c] ss:$16 sps:$4 sm:$0xff]  }
 0x2f9   : > { %v3345_v63 = vpop.f32.mrf.mxu1  ;;  %4323 = vmatprep.mubr.bf16.mxu1 %v11078_v22 }
 0x2fa   : > { %v3372_v27 = vpack.c.bf16 %v3344_v13, %v3340_v6  ;;  %v3346_v55 = vadd.f32 %v3345_v63, %v3275_v32  ;;  %4324 = vmatmul.mubr.bf16.vlgmr.msra.gmra.mxu1 %v11081_v35  ;;  %4395 = vmatmul.mubr.bf16.vlgmr.msra.gmra.mxu0 %v11006_v0  ;;  %v3281_v0 = vadd.f32 %v11017_v1, %v11060_v14  ;;  %v9528_v6 = vld [vmem:[#allocation6 + $0x288] ss:$16 sps:$4 sm:$0xff]   ;;  %v9533_v63 = vld [vmem:[#allocation6 + $0x26c] ss:$16 sps:$4 sm:$0xff]  }
 0x2fb   : > { %4434 = vmatpush1.bf16.msra.mxu1 %v9519_v52  ;;  %v3349_v58 = vpop.f32.mrf.mxu1  ;;  %4404 = vmatprep.mubr.bf16.mxu0 %v11025_v31  ;;  %v3291_v13 = vadd.f32 %v11039_v59, %v11060_v14 }
 0x2fc   : > { %v3373_v21 = vpack.c.bf16 %v3346_v55, %v3342_v47  ;;  %4435 = vmatprep.subr.bf16.mxu1 %v9524_v3  ;;  %v3404_v33 = vmul.bf16 1045249613, %v3372_v27  ;;  %vm3388_vm7 = vcmp.gt.bf16.partialorder %v3372_v27, 0  ;;  %v3350_v53 = vadd.f32 %v3349_v58, %v3279_v23 }
 0x2fd   : > { %v3351_v18 = vpop.f32.mrf.mxu1 }
 0x2fe   : > { %vm3389_vm6 = vcmp.gt.bf16.partialorder %v3373_v21, 0  ;;  %v3405_v29 = vmul.bf16 1045249613, %v3373_v21  ;;  %v11097_v42 = vsel %vm3388_vm7, %v3372_v27, %v3404_v33  ;;  %v3352_v15 = vadd.f32 %v3351_v18, %v3281_v0  ;;  %v9539_v0 = vld [vmem:[#allocation6 + $0x22c] ss:$16 sps:$4 sm:$0xff]  }
 0x2ff   : > { %4436 = vmatpush1.bf16.msra.mxu1 %v9522_v62  ;;  %v3353_v31 = vpop.f32.mrf.mxu1  ;;  %v9531_v62 = vld [vmem:[#allocation6 + $0x268] ss:$16 sps:$4 sm:$0xff]  }
 0x300   : > { %v3354_v30 = vadd.f32 %v3353_v31, %v3283_v17  ;;  %v11094_v20 = vsel %vm3389_vm6, %v3373_v21, %v3405_v29  ;;  %4437 = vmatprep.subr.bf16.mxu1 %v9527_v8  ;;  %v9534_v17 = vld [vmem:[#allocation6 + $0x248] ss:$16 sps:$4 sm:$0xff]  }
 0x301   : > { %v3355_v28 = vpop.f32.mrf.mxu1  ;;  %4333 = vmatprep.mubr.bf16.mxu1 %v11094_v20 }
 0x302   : > { %v3376_v52 = vpack.c.bf16 %v3354_v30, %v3350_v53  ;;  %v3356_v1 = vadd.f32 %v3355_v28, %v3285_v34  ;;  %4334 = vmatmul.mubr.bf16.gmra.mxu1 %v11097_v42  ;;  %4405 = vmatmul.mubr.bf16.gmra.mxu0 %v11028_v26  ;;  %v9542_v34 = vld [vmem:[#allocation6 + $0x20c] ss:$16 sps:$4 sm:$0xff]   ;;  %v9543_v30 = vld [vmem:[#allocation6 + $0x3e8] ss:$16 sps:$4 sm:$0xff]  }
 0x303   : > { %4438 = vmatpush1.bf16.msra.mxu1 %v9525_v57  ;;  %v3359_v32 = vpop.f32.mrf.mxu1  ;;  %4414 = vmatprep.mubr.bf16.mxu0 %v11041_v2  ;;  %v9536_v2 = vld [vmem:[#allocation6 + $0x24c] ss:$16 sps:$4 sm:$0xff]   ;;  %v9537_v57 = vld [vmem:[#allocation6 + $0x228] ss:$16 sps:$4 sm:$0xff]  }
 0x304   : > { %v3377_v3 = vpack.c.bf16 %v3356_v1, %v3352_v15  ;;  %4439 = vmatprep.subr.bf16.mxu1 %v9530_v36  ;;  %v3360_v47 = vadd.f32 %v3359_v32, %v3289_v5  ;;  %v3408_v55 = vmul.bf16 1045249613, %v3376_v52  ;;  %vm3392_vm9 = vcmp.gt.bf16.partialorder %v3376_v52, 0  ;;  %v9548_v36 = vld [vmem:[#allocation6 + $0x3cc] ss:$16 sps:$4 sm:$0xff]  }
 0x305   : > { %v3361_v27 = vpop.f32.mrf.mxu1  ;;  %v9567_v28 = vld [vmem:[%s12682_s10 + $0x78] sm:$0xff]   ;;  %v9571_v5 = vld [vmem:[%s12682_s10 + $0x68] sm:$0xff]  }
 0x306   : > { %v3362_v58 = vadd.f32 %v3361_v27, %v3291_v13  ;;  %vm3393_vm8 = vcmp.gt.bf16.partialorder %v3377_v3, 0  ;;  %v3409_v26 = vmul.bf16 1045249613, %v3377_v3  ;;  %v3380_v23 = vpack.c.bf16 %v3360_v47, %v3360_v47  ;;  %v9568_v15 = vld [vmem:[%s12682_s10 + $0x38] sm:$0xff]   ;;  %8417 = vmatprep.subr.bf16.mxu0 %v9567_v28  ;;  %v9574_v47 = vld [vmem:[%s12682_s10 + $0x20] sm:$0xff]  }
 0x307   : > { %4440 = vmatpush1.bf16.msra.mxu1 %v9528_v6  ;;  %v3363_v4 = vpop.f32.mrf.mxu1  ;;  %v11109_v18 = vsel %vm3392_vm9, %v3376_v52, %v3408_v55  ;;  %8418 = vmatpush3.bf16.msra.mxu0 %v9568_v15  ;;  %v9570_v52 = vld [vmem:[%s12682_s10 + $0x30] sm:$0xff]   ;;  %v9551_v1 = vld [vmem:[#allocation6 + $0x3ac] ss:$16 sps:$4 sm:$0xff]   ;;  %v9549_v32 = vld [vmem:[#allocation6 + $0x3a8] ss:$16 sps:$4 sm:$0xff]  }
 0x308   : > { %v3381_v21 = vpack.c.bf16 %v3362_v58, %v3362_v58  ;;  %v11106_v8 = vsel %vm3393_vm8, %v3377_v3, %v3409_v26  ;;  %4441 = vmatprep.subr.bf16.mxu1 %v9533_v63  ;;  %v3412_v31 = vmul.bf16 1045249613, %v3380_v23  ;;  %vm3396_vm11 = vcmp.gt.bf16.partialorder %v3380_v23, 0  ;;  %v9572_v6 = vld [vmem:[%s12682_s10 + $0x28] sm:$0xff]   ;;  %v9573_v3 = vld [vmem:[%s12682_s10 + $0x60] sm:$0xff]   ;;  %v9575_v55 = vld [vmem:[%s12682_s10 + $0x58] sm:$0xff]  }
 0x309   : > { %v3364_v59 = vpop.f32.mrf.mxu1  ;;  %4343 = vmatprep.mubr.bf16.mxu1 %v11106_v8  ;;  %v9554_v13 = vld [vmem:[#allocation6 + $0x38c] ss:$16 sps:$4 sm:$0xff]   ;;  %v9552_v63 = vld [vmem:[#allocation6 + $0x388] ss:$16 sps:$4 sm:$0xff]   ;;  %v9593_v15 = vld [vmem:[%s12682_s10 + $0xd0] sm:$0xff]  }
 0x30a   : > { %v3413_v33 = vmul.bf16 1045249613, %v3381_v21  ;;  %4344 = vmatmul.mubr.bf16.gmra.mxu1 %v11109_v18  ;;  %4415 = vmatmul.mubr.bf16.gmra.mxu0 %v11044_v25  ;;  %vm3397_vm10 = vcmp.gt.bf16.partialorder %v3381_v21, 0  ;;  %v11117_v53 = vsel %vm3396_vm11, %v3380_v23, %v3412_v31  ;;  %v9540_v25 = vld [vmem:[#allocation6 + $0x208] ss:$16 sps:$4 sm:$0xff]  }
 0x30b   : > { %4442 = vmatpush1.bf16.msra.mxu1 %v9531_v62  ;;  %4424 = vmatprep.mubr.bf16.mxu0 %v11047_v54  ;;  %v9545_v54 = vld [vmem:[#allocation6 + $0x3ec] ss:$16 sps:$4 sm:$0xff]   ;;  %v9555_v58 = vld [vmem:[#allocation6 + $0x368] ss:$16 sps:$4 sm:$0xff]  }
 0x30c   : > { %v11114_v29 = vsel %vm3397_vm10, %v3381_v21, %v3413_v33  ;;  %4443 = vmatprep.subr.bf16.mxu1 %v9536_v2  ;;  %v9557_v27 = vld [vmem:[#allocation6 + $0x36c] ss:$16 sps:$4 sm:$0xff]   ;;  %v9558_v4 = vld [vmem:[#allocation6 + $0x348] ss:$16 sps:$4 sm:$0xff]   ;;  %v9577_v33 = vld [vmem:[%s12682_s10 + $0x50] sm:$0xff]  }
 0x30d   : > { %4353 = vmatprep.mubr.bf16.mxu1 %v11114_v29  ;;  %v9560_v26 = vld [vmem:[#allocation6 + $0x34c] ss:$16 sps:$4 sm:$0xff]   ;;  %v9561_v21 = vld [vmem:[#allocation6 + $0x328] ss:$16 sps:$4 sm:$0xff]  }
 0x30e   : > { %v9563_v62 = vld [vmem:[#allocation6 + $0x32c] ss:$16 sps:$4 sm:$0xff]   ;;  %v9564_v23 = vld [vmem:[#allocation6 + $0x308] ss:$16 sps:$4 sm:$0xff]  }
 0x30f   : > { %4444 = vmatpush1.bf16.msra.mxu1 %v9534_v17  ;;  %v9566_v2 = vld [vmem:[#allocation6 + $0x30c] ss:$16 sps:$4 sm:$0xff]  }
 0x310   : > { %4445 = vmatprep.subr.bf16.mxu1 %v9539_v0  ;;  %v9576_v59 = vld [vmem:[%s12682_s10 + $0x18] sm:$0xff]   ;;  %v9580_v17 = vld [vmem:[%s12682_s10 + $0x8] sm:$0xff]  }
 0x311   : > { %v9583_v0 = vld [vmem:[%s12682_s10 + $0xf8] sm:$0xff]  }
 0x312   : > { %4354 = vmatmul.mubr.bf16.gmra.mxu1 %v11117_v53  ;;  %4425 = vmatmul.mubr.bf16.gmra.mxu0 %v11050_v60  ;;  %v9569_v60 = vld [vmem:[%s12682_s10 + $0x70] sm:$0xff]   ;;  %v9584_v31 = vld [vmem:[%s12682_s10 + $0xb8] sm:$0xff]  }
 0x313   : > { %4446 = vmatpush1.bf16.msra.mxu1 %v9537_v57  ;;  %4465 = vmatprep.mubr.bf16.mxu1 %v11078_v22  ;;  %v9546_v22 = vld [vmem:[#allocation6 + $0x3c8] ss:$16 sps:$4 sm:$0xff]   ;;  %v9585_v57 = vld [vmem:[%s12682_s10 + $0xf0] sm:$0xff]  }
 0x314   : > { %4447 = vmatprep.subr.bf16.mxu1 %v9542_v34  ;;  %8419 = vmatprep.subr.bf16.mxu0 %v9569_v60  ;;  %v9588_v34 = vld [vmem:[%s12682_s10 + $0xa8] sm:$0xff]   ;;  %v9594_v60 = vld [vmem:[%s12682_s10 + $0x90] sm:$0xff]  }
 0x315   : > { %8420 = vmatpush3.bf16.msra.mxu0 %v9570_v52 }
 0x316   : > { %8421 = vmatprep.subr.bf16.mxu0 %v9571_v5  ;;  %v9595_v5 = vld [vmem:[%s12682_s10 + $0xc8] sm:$0xff]  }
 0x317   : > { %4448 = vmatpush1.bf16.msra.mxu1 %v9540_v25  ;;  %v9590_v25 = vld [vmem:[%s12682_s10 + $0xa0] sm:$0xff]  }
 0x318   : > { %4449 = vmatprep.subr.bf16.mxu1 %v9545_v54  ;;  %v9591_v54 = vld [vmem:[%s12682_s10 + $0xd8] sm:$0xff]  }
 0x319   : > { %8422 = vmatpush3.bf16.msra.mxu0 %v9572_v6 }
 0x31a   : > { %8423 = vmatprep.subr.bf16.mxu0 %v9573_v3 }
 0x31b   : > { %4450 = vmatpush2.bf16.msra.mxu1 %v9543_v30  ;;  %v9592_v30 = vld [vmem:[%s12682_s10 + $0x98] sm:$0xff]  }
 0x31c   : > { %4451 = vmatprep.subr.bf16.mxu1 %v9548_v36 }
 0x31d   : > { %8424 = vmatpush3.bf16.msra.mxu0 %v9574_v47 }
 0x31e   : > { %8425 = vmatprep.subr.bf16.mxu0 %v9575_v55 }
 0x31f   : > { %4452 = vmatpush2.bf16.msra.mxu1 %v9546_v22 }
 0x320   : > { %4453 = vmatprep.subr.bf16.mxu1 %v9551_v1 }
 0x321   : > { %8426 = vmatpush3.bf16.msra.mxu0 %v9576_v59 }
 0x322   : > { %8427 = vmatprep.subr.bf16.mxu0 %v9577_v33 }
 0x323   : > { %4454 = vmatpush2.bf16.msra.mxu1 %v9549_v32  ;;  %v9596_v32 = vld [vmem:[%s12682_s10 + $0x88] sm:$0xff]  }
 0x324   : > { %4455 = vmatprep.subr.bf16.mxu1 %v9554_v13  ;;  %v9597_v13 = vld [vmem:[%s12682_s10 + $0xc0] sm:$0xff]  }
 0x327   : > { %4456 = vmatpush2.bf16.msra.mxu1 %v9552_v63  ;;  %v9598_v63 = vld [vmem:[%s12682_s10 + $0x80] sm:$0xff]  }
 0x328   : > { %4457 = vmatprep.subr.bf16.mxu1 %v9557_v27 }
 0x32b   : > { %4458 = vmatpush2.bf16.msra.mxu1 %v9555_v58 }
 0x32c   : > { %4459 = vmatprep.subr.bf16.mxu1 %v9560_v26 }
 0x32f   : > { %4460 = vmatpush2.bf16.msra.mxu1 %v9558_v4 }
 0x330   : > { %4461 = vmatprep.subr.bf16.mxu1 %v9563_v62 }
 0x333   : > { %4462 = vmatpush2.bf16.msra.mxu1 %v9561_v21 }
 0x334   : > { %4463 = vmatprep.subr.bf16.mxu1 %v9566_v2 }
 0x337   : > { %4464 = vmatpush2.bf16.msra.mxu1 %v9564_v23  ;;  %v11236_v23 = vld [vmem:[%s12681_s9] sm:$0xf] }
 0x338   : > { %8457 = vmatprep.subr.bf16.mxu1 %v9583_v0  ;;  %v11240_v59 = vrot.slane %v11236_v23, %v12749_v61 }
 0x33a   : > { %4466 = vmatmul.mubr.bf16.vlgmr.msra.gmra.mxu1 %v11081_v35  ;;  %v9578_v35 = vld [vmem:[%s12682_s10 + $0x10] sm:$0xff]   ;;  %12759 = vst [vmem:[#allocation15_spill] sm:$0xff] %v11240_v59 }
 0x33b   : > { %4475 = vmatprep.mubr.bf16.mxu1 %v11094_v20  ;;  %v9579_v20 = vld [vmem:[%s12682_s10 + $0x48] sm:$0xff]   ;;  %8428 = vmatpush3.bf16.msra.mxu0 %v9578_v35 }
 0x33c   : > { %8429 = vmatprep.subr.bf16.mxu0 %v9579_v20  ;;  %8458 = vmatpush3.bf16.msra.mxu1 %v9584_v31  ;;  %v11246_v20 = vrot.slane %v11236_v23, %v12750_v7 }
 0x33d   : > { %8459 = vmatprep.subr.bf16.mxu1 %v9585_v57 }
 0x33e   : > { %12760 = vst [vmem:[#allocation16_spill] sm:$0xff] %v11246_v20 }
 0x33f   : > { %8430 = vmatpush3.bf16.msra.mxu0 %v9580_v17 }
 0x342   : > { %4476 = vmatmul.mubr.bf16.gmra.mxu1 %v11097_v42  ;;  %v9581_v42 = vld [vmem:[%s12682_s10 + $0x40] sm:$0xff]  }
 0x343   : > { %4485 = vmatprep.mubr.bf16.mxu1 %v11106_v8  ;;  %v9582_v8 = vld [vmem:[%s12682_s10] sm:$0xff]   ;;  %8431 = vmatprep.subr.bf16.mxu0 %v9581_v42 }
 0x344   : > { %8432 = vmatpush3.bf16.msra.mxu0 %v9582_v8 }
 0x34a   : > { %4486 = vmatmul.mubr.bf16.gmra.mxu1 %v11109_v18  ;;  %v9586_v18 = vld [vmem:[%s12682_s10 + $0xb0] sm:$0xff]  }
 0x34b   : > { %4495 = vmatprep.mubr.bf16.mxu1 %v11114_v29  ;;  %v9587_v29 = vld [vmem:[%s12682_s10 + $0xe8] sm:$0xff]   ;;  %8460 = vmatpush3.bf16.msra.mxu1 %v9586_v18 }
 0x34c   : > { %8461 = vmatprep.subr.bf16.mxu1 %v9587_v29 }
 0x34f   : > { %8462 = vmatpush3.bf16.msra.mxu1 %v9588_v34 }
 0x352   : > { %4496 = vmatmul.mubr.bf16.gmra.mxu1 %v11117_v53  ;;  %v9589_v53 = vld [vmem:[%s12682_s10 + $0xe0] sm:$0xff]  }
 0x353   : > { %8463 = vmatprep.subr.bf16.mxu1 %v9589_v53 }
 0x354   : > { %8464 = vmatpush3.bf16.msra.mxu1 %v9590_v25 }
 0x355   : > { %8465 = vmatprep.subr.bf16.mxu1 %v9591_v54 }
 0x358   : > { %8466 = vmatpush3.bf16.msra.mxu1 %v9592_v30 }
 0x359   : > { %8467 = vmatprep.subr.bf16.mxu1 %v9593_v15 }
 0x35c   : > { %8468 = vmatpush3.bf16.msra.mxu1 %v9594_v60 }
 0x35d   : > { %8469 = vmatprep.subr.bf16.mxu1 %v9595_v5 }
 0x360   : > { %8470 = vmatpush3.bf16.msra.mxu1 %v9596_v32 }
 0x361   : > { %8471 = vmatprep.subr.bf16.mxu1 %v9597_v13 }
 0x364   : > { %8472 = vmatpush3.bf16.msra.mxu1 %v9598_v63 }
 0x37a   : > { %v4254_v36 = vpop.f32.mrf.mxu0 }
 0x37b   : > { %v4255_v8 = vadd.f32 %v4254_v36, %v11240_v59 }
 0x37c   : > { %v4256_v28 = vpop.f32.mrf.mxu0 }
 0x37d   : > { %v4257_v61 = vadd.f32 %v4256_v28, %v11246_v20 }
 0x37e   : > { %v4258_v22 = vpop.f32.mrf.mxu0 }
 0x37f   : > { %v4259_v0 = vadd.f32 %v4258_v22, %v11240_v59 }
 0x380   : > { %v4260_v52 = vpop.f32.mrf.mxu0 }
 0x381   : > { %v4261_v18 = vadd.f32 %v4260_v52, %v11246_v20 }
 0x382   : > { %v4264_v1 = vpop.f32.mrf.mxu0 }
 0x383   : > { %v4265_v22 = vadd.f32 %v4264_v1, %v11240_v59 }
 0x384   : > { %v4266_v6 = vpop.f32.mrf.mxu0 }
 0x385   : > { %v4267_v63 = vadd.f32 %v4266_v6, %v11246_v20 }
 0x386   : > { %v4268_v3 = vpop.f32.mrf.mxu0 }
 0x387   : > { %v4269_v28 = vadd.f32 %v4268_v3, %v11240_v59 }
 0x388   : > { %v4270_v47 = vpop.f32.mrf.mxu0 }
 0x38a   : > { %v4274_v27 = vpop.f32.mrf.mxu0 }
 0x38c   : > { %v11225_v55 = vpop.f32.mrf.mxu0 }
 0x38e   : > { %v4278_v58 = vpop.f32.mrf.mxu0 }
 0x390   : > { %v11227_v26 = vpop.f32.mrf.mxu0 }
 0x392   : > { %v11229_v4 = vpop.f32.mrf.mxu0 }
 0x394   : > { %v11231_v62 = vpop.f32.mrf.mxu0 }
 0x396   : > { %v4288_v21 = vpop.f32.mrf.mxu0 }
 0x398   : > { %v4289_v2 = vpop.f32.mrf.mxu0 }
 0x3ba   : > { %v4325_v33 = vpop.f32.mrf.mxu1  ;;  %v11242_v35 = vpop.f32.mrf.mxu0 }
 0x3bb   : > { %v4326_v29 = vadd.f32 %v4325_v33, %v4255_v8  ;;  %v4271_v33 = vadd.f32 %v4270_v47, %v11246_v20 }
 0x3bc   : > { %v4327_v17 = vpop.f32.mrf.mxu1  ;;  %v11248_v42 = vpop.f32.mrf.mxu0 }
 0x3bd   : > { %v4328_v7 = vadd.f32 %v4327_v17, %v4257_v61 }
 0x3be   : > { %v4329_v31 = vpop.f32.mrf.mxu1  ;;  %v11252_v57 = vpop.f32.mrf.mxu0 }
 0x3bf   : > { %v4330_v34 = vadd.f32 %v4329_v31, %v4259_v0 }
 0x3c0   : > { %v4331_v53 = vpop.f32.mrf.mxu1  ;;  %v11256_v25 = vpop.f32.mrf.mxu0 }
 0x3c1   : > { %v4504_v54 = vpack.c.bf16 %v4330_v34, %v4326_v29  ;;  %v4332_v30 = vadd.f32 %v4331_v53, %v4261_v18 }
 0x3c2   : > { %v4335_v15 = vpop.f32.mrf.mxu1  ;;  %v11258_v60 = vpop.f32.mrf.mxu0 }
 0x3c3   : > { %v4505_v36 = vpack.c.bf16 %v4332_v30, %v4328_v7  ;;  %v4536_v5 = vmul.bf16 1045249613, %v4504_v54  ;;  %vm4520_vm12 = vcmp.gt.bf16.partialorder %v4504_v54, 0  ;;  %v4336_v17 = vadd.f32 %v4335_v15, %v4265_v22 }
 0x3c4   : > { %v4337_v32 = vpop.f32.mrf.mxu1  ;;  %v11261_v13 = vpop.f32.mrf.mxu0  ;;  %v4275_v7 = vadd.f32 %v4274_v27, %v11240_v59 }
 0x3c5   : > { %vm4521_vm13 = vcmp.gt.bf16.partialorder %v4505_v36, 0  ;;  %v4537_v52 = vmul.bf16 1045249613, %v4505_v36  ;;  %v4552_v61 = vsel %vm4520_vm12, %v4504_v54, %v4536_v5  ;;  %v4338_v18 = vadd.f32 %v4337_v32, %v4267_v63 }
 0x3c6   : > { %v4339_v21 = vpop.f32.mrf.mxu1  ;;  %v11265_v2 = vpop.f32.mrf.mxu0  ;;  %v4277_v54 = vadd.f32 %v11225_v55, %v11246_v20  ;;  %vm10326_vm12 = vmmov 0  }
 0x3c7   : > { %v4340_v8 = vadd.f32 %v4339_v21, %v4269_v28  ;;  %v4553_v0 = vsel %vm4521_vm13, %v4505_v36, %v4537_v52  ;;  %v4279_v36 = vadd.f32 %v4278_v58, %v11240_v59  ;;  %v4281_v28 = vadd.f32 %v11227_v26, %v11246_v20 }
 0x3c8   : > { %v4341_v1 = vpop.f32.mrf.mxu1  ;;  %v11268_v31 = vpop.f32.mrf.mxu0  ;;  %4863 = vmatprep.mubr.bf16.mxu0 %v4553_v0  ;;  %v4287_v26 = vadd.f32 %v11231_v62, %v11246_v20  ;;  %vm5045_vm13 = vcmask 261120  }
 0x3c9   : > { %v4508_v3 = vpack.c.bf16 %v4340_v8, %v4336_v17  ;;  %v4342_v29 = vadd.f32 %v4341_v1, %v4271_v33  ;;  %4864 = vmatmul.mubr.bf16.vlgmr.msra.gmra.mxu0 %v4552_v61  ;;  %v4285_v61 = vadd.f32 %v11229_v4, %v11240_v59  ;;  %v9829_v59 = vld [vmem:[#allocation2 + $0x48] ss:$16 sps:$4 sm:$0xff]  }
 0x3ca   : > { %v4345_v34 = vpop.f32.mrf.mxu1  ;;  %v11270_v53 = vpop.f32.mrf.mxu0 }
 0x3cb   : > { %v4509_v6 = vpack.c.bf16 %v4342_v29, %v4338_v18  ;;  %v4540_v15 = vmul.bf16 1045249613, %v4508_v3  ;;  %vm4524_vm15 = vcmp.gt.bf16.partialorder %v4508_v3, 0  ;;  %v4346_v52 = vadd.f32 %v4345_v34, %v4275_v7 }
 0x3cc   : > { %v4347_v30 = vpop.f32.mrf.mxu1  ;;  %v11273_v47 = vpop.f32.mrf.mxu0 }
 0x3cd   : > { %vm4525_vm14 = vcmp.gt.bf16.partialorder %v4509_v6, 0  ;;  %v4541_v22 = vmul.bf16 1045249613, %v4509_v6  ;;  %v4556_v58 = vsel %vm4524_vm15, %v4508_v3, %v4540_v15  ;;  %v4348_v17 = vadd.f32 %v4347_v30, %v4277_v54 }
 0x3ce   : > { %v4349_v5 = vpop.f32.mrf.mxu1  ;;  %v11278_v32 = vpop.f32.mrf.mxu0 }
 0x3cf   : > { %v4350_v27 = vadd.f32 %v4349_v5, %v4279_v36  ;;  %v4557_v63 = vsel %vm4525_vm14, %v4509_v6, %v4541_v22 }
 0x3d0   : > { %v4351_v21 = vpop.f32.mrf.mxu1  ;;  %v11282_v33 = vpop.f32.mrf.mxu0  ;;  %4871 = vmatprep.mubr.bf16.mxu0 %v4557_v63 }
 0x3d1   : > { %v4512_v8 = vpack.c.bf16 %v4350_v27, %v4346_v52  ;;  %v4352_v0 = vadd.f32 %v4351_v21, %v4281_v28  ;;  %4872 = vmatmul.mubr.bf16.gmra.mxu0 %v4556_v58  ;;  %v11294_v58 = vrot.slane %v11236_v23, %v12751_v41 }
 0x3d2   : > { %v4355_v1 = vpop.f32.mrf.mxu1  ;;  %v11284_v55 = vpop.f32.mrf.mxu0 }
 0x3d3   : > { %v4513_v18 = vpack.c.bf16 %v4352_v0, %v4348_v17  ;;  %v4356_v6 = vadd.f32 %v4355_v1, %v4285_v61  ;;  %v4544_v3 = vmul.bf16 1045249613, %v4512_v8  ;;  %vm4528_vm1 = vcmp.gt.bf16.partialorder %v4512_v8, 0  ;;  %12761 = vst [vmem:[#allocation17_spill] sm:$0xff] %v11294_v58 }
 0x3d4   : > { %v4357_v29 = vpop.f32.mrf.mxu1  ;;  %v11290_v34 = vpop.f32.mrf.mxu0  ;;  %v11298_v0 = vrot.slane %v11236_v23, %v12753_v16  ;;  %v4401_v61 = vadd.f32 %v11252_v57, %v11294_v58 }
 0x3d5   : > { %v4358_v7 = vadd.f32 %v4357_v29, %v4287_v26  ;;  %vm4529_vm0 = vcmp.gt.bf16.partialorder %v4513_v18, 0  ;;  %v4545_v36 = vmul.bf16 1045249613, %v4513_v18  ;;  %v4516_v4 = vpack.c.bf16 %v4356_v6, %v4356_v6 }
 0x3d6   : > { %v4359_v30 = vpop.f32.mrf.mxu1  ;;  %v4430_v15 = vpop.f32.mrf.mxu0  ;;  %v4560_v62 = vsel %vm4528_vm1, %v4512_v8, %v4544_v3  ;;  %12762 = vst [vmem:[#allocation18_spill] sm:$0xff] %v11298_v0  ;;  %v4397_v8 = vadd.f32 %v11242_v35, %v11294_v58  ;;  %v4403_v41 = vadd.f32 %v11256_v25, %v11298_v0  ;;  %v4407_v35 = vadd.f32 %v11258_v60, %v11294_v58 }
 0x3d7   : > { %v4517_v22 = vpack.c.bf16 %v4358_v7, %v4358_v7  ;;  %v4561_v28 = vsel %vm4529_vm0, %v4513_v18, %v4545_v36  ;;  %v4548_v63 = vmul.bf16 1045249613, %v4516_v4  ;;  %vm4532_vm3 = vcmp.gt.bf16.partialorder %v4516_v4, 0 }
 0x3d8   : > { %v4360_v54 = vpop.f32.mrf.mxu1  ;;  %v4431_v5 = vpop.f32.mrf.mxu0  ;;  %4879 = vmatprep.mubr.bf16.mxu0 %v4561_v28  ;;  %v4399_v18 = vadd.f32 %v11248_v42, %v11298_v0  ;;  %v4409_v25 = vadd.f32 %v11261_v13, %v11298_v0 }
 0x3d9   : > { %v4549_v52 = vmul.bf16 1045249613, %v4517_v22  ;;  %vm4533_vm2 = vcmp.gt.bf16.partialorder %v4517_v22, 0  ;;  %4880 = vmatmul.mubr.bf16.gmra.mxu0 %v4560_v62  ;;  %v4564_v21 = vsel %vm4532_vm3, %v4516_v4, %v4548_v63  ;;  %v4413_v5 = vadd.f32 %v11268_v31, %v11298_v0 }
 0x3da   : > { %v4421_v31 = vadd.f32 %v11278_v32, %v11294_v58  ;;  %v4427_v32 = vadd.f32 %v11284_v55, %v11294_v58 }
 0x3db   : > { %v4565_v27 = vsel %vm4533_vm2, %v4517_v22, %v4549_v52  ;;  %v4411_v22 = vadd.f32 %v11265_v2, %v11294_v58 }
 0x3dc   : > { %4887 = vmatprep.mubr.bf16.mxu0 %v4565_v27 }
 0x3e1   : > { %4888 = vmatmul.mubr.bf16.gmra.mxu0 %v4564_v21 }
 0x3fa   : > { %v4467_v17 = vpop.f32.mrf.mxu1 }
 0x3fb   : > { %v4468_v29 = vadd.f32 %v4467_v17, %v4397_v8 }
 0x3fc   : > { %v4469_v1 = vpop.f32.mrf.mxu1 }
 0x3fd   : > { %v4470_v3 = vadd.f32 %v4469_v1, %v4399_v18  ;;  %v4417_v1 = vadd.f32 %v11270_v53, %v11294_v58 }
 0x3fe   : > { %v4471_v26 = vpop.f32.mrf.mxu1 }
 0x3ff   : > { %v4472_v6 = vadd.f32 %v4471_v26, %v4401_v61  ;;  %v4419_v26 = vadd.f32 %v11273_v47, %v11298_v0  ;;  %v4429_v47 = vadd.f32 %v11290_v34, %v11298_v0 }
 0x400   : > { %v4473_v7 = vpop.f32.mrf.mxu1 }
 0x401   : > { %v4506_v16 = vpack.c.bf16 %v4472_v6, %v4468_v29  ;;  %v4474_v23 = vadd.f32 %v4473_v7, %v4403_v41  ;;  %v4423_v41 = vadd.f32 %v11282_v33, %v11298_v0 }
 0x402   : > { %v4477_v30 = vpop.f32.mrf.mxu1 }
 0x403   : > { %v4507_v15 = vpack.c.bf16 %v4474_v23, %v4470_v3  ;;  %v4538_v36 = vmul.bf16 1045249613, %v4506_v16  ;;  %vm4522_vm4 = vcmp.gt.bf16.partialorder %v4506_v16, 0  ;;  %v4478_v28 = vadd.f32 %v4477_v30, %v4407_v35 }
 0x404   : > { %v4479_v57 = vpop.f32.mrf.mxu1 }
 0x405   : > { %vm4523_vm5 = vcmp.gt.bf16.partialorder %v4507_v15, 0  ;;  %v4539_v42 = vmul.bf16 1045249613, %v4507_v15  ;;  %v4554_v60 = vsel %vm4522_vm4, %v4506_v16, %v4538_v36  ;;  %v4480_v27 = vadd.f32 %v4479_v57, %v4409_v25 }
 0x406   : > { %v4481_v54 = vpop.f32.mrf.mxu1 }
 0x407   : > { %v4482_v4 = vadd.f32 %v4481_v54, %v4411_v22  ;;  %v4555_v52 = vsel %vm4523_vm5, %v4507_v15, %v4539_v42 }
 0x408   : > { %v4483_v62 = vpop.f32.mrf.mxu1  ;;  %4927 = vmatprep.mubr.bf16.mxu1 %v4555_v52 }
 0x409   : > { %v4510_v63 = vpack.c.bf16 %v4482_v4, %v4478_v28  ;;  %v4484_v21 = vadd.f32 %v4483_v62, %v4413_v5  ;;  %4928 = vmatmul.mubr.bf16.vlgmr.msra.gmra.mxu1 %v4554_v60 }
 0x40a   : > { %v4487_v2 = vpop.f32.mrf.mxu1 }
 0x40b   : > { %v4511_v17 = vpack.c.bf16 %v4484_v21, %v4480_v27  ;;  %v4542_v8 = vmul.bf16 1045249613, %v4510_v63  ;;  %vm4526_vm7 = vcmp.gt.bf16.partialorder %v4510_v63, 0  ;;  %v4488_v29 = vadd.f32 %v4487_v2, %v4417_v1  ;;  %v9599_v27 = vld [vmem:[%s12684_s12 + $0x8] sm:$0xff]   ;;  %v9600_v21 = vld [vmem:[%s12684_s12] sm:$0xff]  }
 0x40c   : > { %v4489_v13 = vpop.f32.mrf.mxu1 }
 0x40d   : > { %vm4527_vm6 = vcmp.gt.bf16.partialorder %v4511_v17, 0  ;;  %v4543_v61 = vmul.bf16 1045249613, %v4511_v17  ;;  %v4558_v53 = vsel %vm4526_vm7, %v4510_v63, %v4542_v8  ;;  %v4490_v16 = vadd.f32 %v4489_v13, %v4419_v26 }
 0x40e   : > { %v4491_v18 = vpop.f32.mrf.mxu1  ;;  %v12716_v63 = vmov 0.0  }
 0x40f   : > { %v4492_v6 = vadd.f32 %v4491_v18, %v4421_v31  ;;  %v4559_v7 = vsel %vm4527_vm6, %v4511_v17, %v4543_v61  ;;  %8655 = vmatprep.subr.bf16.mxu0 %v12716_v63  ;;  %8687 = vmatprep.subr.bf16.mxu1 %v12716_v63 }
 0x410   : > { %v4493_v3 = vpop.f32.mrf.mxu1  ;;  %4935 = vmatprep.mubr.bf16.mxu1 %v4559_v7  ;;  %8656 = vmatpush3.bf16.msra.mxu0 %v9599_v27 }
 0x411   : > { %v4514_v23 = vpack.c.bf16 %v4492_v6, %v4488_v29  ;;  %v4494_v30 = vadd.f32 %v4493_v3, %v4423_v41  ;;  %4936 = vmatmul.mubr.bf16.gmra.mxu1 %v4558_v53  ;;  %8657 = vmatprep.subr.bf16.mxu0 %v12716_v63 }
 0x412   : > { %v4497_v15 = vpop.f32.mrf.mxu1  ;;  %8659 = vmatprep.mubr.msk.bf16.mxu0 %vm10326_vm12, %v12716_v63 }
 0x413   : > { %v4515_v35 = vpack.c.bf16 %v4494_v30, %v4490_v16  ;;  %v4498_v36 = vadd.f32 %v4497_v15, %v4427_v32  ;;  %v4546_v57 = vmul.bf16 1045249613, %v4514_v23  ;;  %vm4530_vm9 = vcmp.gt.bf16.partialorder %v4514_v23, 0  ;;  %v9601_v15 = vld [vmem:[%s12686_s14 + $0x38] sm:$0xff]  }
 0x414   : > { %v4499_v33 = vpop.f32.mrf.mxu1  ;;  %8658 = vmatpush3.bf16.msra.mxu0 %v9600_v21  ;;  %8688 = vmatpush3.bf16.msra.mxu1 %v9601_v15 }
 0x415   : > { %v4500_v22 = vadd.f32 %v4499_v33, %v4429_v47  ;;  %vm4531_vm8 = vcmp.gt.bf16.partialorder %v4515_v35, 0  ;;  %v4547_v42 = vmul.bf16 1045249613, %v4515_v35  ;;  %v4518_v28 = vpack.c.bf16 %v4498_v36, %v4498_v36  ;;  %8731 = vmatprep.subr.bf16.mxu0 %v12716_v63  ;;  %8689 = vmatprep.subr.bf16.mxu1 %v12716_v63  ;;  %v9603_v36 = vld [vmem:[%s12686_s14 + $0x28] sm:$0xff]   ;;  %v9604_v33 = vld [vmem:[%s12686_s14 + $0x20] sm:$0xff]  }
 0x416   : > { %v4501_v25 = vpop.f32.mrf.mxu1  ;;  %v4562_v52 = vsel %vm4530_vm9, %v4514_v23, %v4546_v57  ;;  %v9605_v57 = vld [vmem:[%s12686_s14 + $0x18] sm:$0xff]  }
 0x417   : > { %v4519_v54 = vpack.c.bf16 %v4500_v22, %v4500_v22  ;;  %v4563_v5 = vsel %vm4531_vm8, %v4515_v35, %v4547_v42  ;;  %v4550_v34 = vmul.bf16 1045249613, %v4518_v28  ;;  %vm4534_vm11 = vcmp.gt.bf16.partialorder %v4518_v28, 0  ;;  %v9602_v35 = vld [vmem:[%s12686_s14 + $0x30] sm:$0xff]   ;;  %v8305_v22 = vld [vmem:[%s12683_s11] ss:$0 sm:$0xff] }
 0x418   : > { %v4502_v4 = vpop.f32.mrf.mxu1  ;;  %4943 = vmatprep.mubr.bf16.mxu1 %v4563_v5  ;;  %8690 = vmatpush3.bf16.msra.mxu1 %v9602_v35 }
 0x419   : > { %v4551_v55 = vmul.bf16 1045249613, %v4519_v54  ;;  %4944 = vmatmul.mubr.bf16.gmra.mxu1 %v4562_v52  ;;  %vm4535_vm10 = vcmp.gt.bf16.partialorder %v4519_v54, 0  ;;  %v4566_v60 = vsel %vm4534_vm11, %v4518_v28, %v4550_v34  ;;  %8691 = vmatprep.subr.bf16.mxu1 %v12716_v63 }
 0x41b   : > { %v4567_v62 = vsel %vm4535_vm10, %v4519_v54, %v4551_v55 }
 0x41c   : > { %4951 = vmatprep.mubr.bf16.mxu1 %v4567_v62  ;;  %8692 = vmatpush3.bf16.msra.mxu1 %v9603_v36 }
 0x41d   : > { %8693 = vmatprep.subr.bf16.mxu1 %v12716_v63 }
 0x420   : > { %8694 = vmatpush3.bf16.msra.mxu1 %v9604_v33 }
 0x421   : > { %4952 = vmatmul.mubr.bf16.gmra.mxu1 %v4566_v60  ;;  %8695 = vmatprep.subr.bf16.mxu1 %v12716_v63 }
 0x422   : > { %8703 = vmatprep.mubr.msk.bf16.mxu1 %vm10326_vm12, %v12716_v63 }
 0x424   : > { %8696 = vmatpush3.bf16.msra.mxu1 %v9605_v57 }
 0x425   : > { %8697 = vmatprep.subr.bf16.mxu1 %v12716_v63 }
 0x489   : > { %v8433_v2 = vpop.f32.mrf.mxu0 }
 0x48b   : > { %v8434_v17 = vpop.f32.mrf.mxu0 }
 0x48c   : > { %v8435_v1 = vadd.f32 %v8434_v17, %v8433_v2 }
 0x48d   : > { %v8436_v13 = vpop.f32.mrf.mxu0 }
 0x48e   : > { %v4866_v54 = vadd.f32 %v8435_v1, %v8305_v22 }
 0x48f   : > { %v8437_v8 = vpop.f32.mrf.mxu0 }
 0x490   : > { %v8438_v5 = vadd.f32 %v8437_v8, %v8436_v13 }
 0x491   : > { %v8439_v31 = vpop.f32.mrf.mxu0 }
 0x492   : > { %v4869_v62 = vadd.f32 %v8438_v5, %v8305_v22 }
 0x493   : > { %v8440_v61 = vpop.f32.mrf.mxu0 }
 0x494   : > { %v8441_v26 = vadd.f32 %v8440_v61, %v8439_v31 }
 0x495   : > { %v8442_v18 = vpop.f32.mrf.mxu0 }
 0x496   : > { %v4874_v17 = vadd.f32 %v8441_v26, %v8305_v22 }
 0x497   : > { %v8443_v41 = vpop.f32.mrf.mxu0 }
 0x498   : > { %v8444_v31 = vadd.f32 %v8443_v41, %v8442_v18 }
 0x499   : > { %v8445_v29 = vpop.f32.mrf.mxu0 }
 0x49b   : > { %v8446_v6 = vpop.f32.mrf.mxu0 }
 0x49c   : > { %v8447_v7 = vadd.f32 %v8446_v6, %v8445_v29  ;;  %v4877_v6 = vadd.f32 %v8444_v31, %v8305_v22 }
 0x49d   : > { %v8448_v3 = vpop.f32.mrf.mxu0 }
 0x49e   : > { %v4882_v35 = vadd.f32 %v8447_v7, %v8305_v22 }
 0x49f   : > { %v8449_v53 = vpop.f32.mrf.mxu0 }
 0x4a0   : > { %v8450_v26 = vadd.f32 %v8449_v53, %v8448_v3 }
 0x4a1   : > { %v8451_v16 = vpop.f32.mrf.mxu0 }
 0x4a3   : > { %v8452_v23 = vpop.f32.mrf.mxu0 }
 0x4a4   : > { %v11342_v30 = vadd.f32 %v8452_v23, %v8451_v16 }
 0x4a5   : > { %v8454_v32 = vpop.f32.mrf.mxu0 }
 0x4a6   : > { %v4890_v3 = vadd.f32 %v11342_v30, %v8305_v22 }
 0x4a7   : > { %v8455_v47 = vpop.f32.mrf.mxu0 }
 0x4c9   : > { %v8473_v42 = vpop.f32.mrf.mxu1 }
 0x4cb   : > { %v8474_v25 = vpop.f32.mrf.mxu1 }
 0x4cc   : > { %v8475_v28 = vadd.f32 %v8474_v25, %v8473_v42  ;;  %v4885_v25 = vadd.f32 %v8450_v26, %v8305_v22 }
 0x4cd   : > { %v8476_v4 = vpop.f32.mrf.mxu1 }
 0x4ce   : > { %v11367_v52 = vadd.f32 %v8475_v28, %v4866_v54 }
 0x4cf   : > { %v8477_v55 = vpop.f32.mrf.mxu1 }
 0x4d0   : > { %v8338_v34 = vmul.f32 -1.442695, %v11367_v52  ;;  %v8478_v60 = vadd.f32 %v8477_v55, %v8476_v4 }
 0x4d1   : > { %v8479_v27 = vpop.f32.mrf.mxu1 }
 0x4d2   : > { %9617 = vpow2.f32 %v8338_v34  ;;  %v11370_v21 = vadd.f32 %v8478_v60, %v4869_v62 }
 0x4d3   : > { %v8480_v2 = vpop.f32.mrf.mxu1 }
 0x4d4   : > { %v8339_v61 = vmul.f32 -1.442695, %v11370_v21  ;;  %v8481_v1 = vadd.f32 %v8480_v2, %v8479_v27 }
 0x4d5   : > { %v8482_v13 = vpop.f32.mrf.mxu1 }
 0x4d6   : > { %9619 = vpow2.f32 %v8339_v61  ;;  %v11373_v8 = vadd.f32 %v8481_v1, %v4874_v17 }
 0x4d7   : > { %v8483_v29 = vpop.f32.mrf.mxu1 }
 0x4d8   : > { %v8340_v16 = vmul.f32 -1.442695, %v11373_v8  ;;  %v8484_v23 = vadd.f32 %v8483_v29, %v8482_v13 }
 0x4d9   : > { %v8485_v32 = vpop.f32.mrf.mxu1 }
 0x4da   : > { %9621 = vpow2.f32 %v8340_v16  ;;  %v11376_v15 = vadd.f32 %v8484_v23, %v4877_v6 }
 0x4db   : > { %v8486_v47 = vpop.f32.mrf.mxu1 }
 0x4dc   : > { %v8341_v18 = vmul.f32 -1.442695, %v11376_v15  ;;  %v8487_v41 = vadd.f32 %v8486_v47, %v8485_v32 }
 0x4dd   : > { %v8488_v36 = vpop.f32.mrf.mxu1 }
 0x4de   : > { %9623 = vpow2.f32 %v8341_v18  ;;  %v11379_v33 = vadd.f32 %v8487_v41, %v4882_v35 }
 0x4df   : > { %v9618_v57 = vpop.eup %9617  ;;  %v8489_v42 = vpop.f32.mrf.mxu1 }
 0x4e0   : > { %12763 = vst [vmem:[#allocation19_spill] sm:$0xff] %v11379_v33  ;;  %v8342_v54 = vmul.f32 -1.442695, %v11379_v33  ;;  %v8490_v5 = vadd.f32 %v8489_v42, %v8488_v36  ;;  %v4980_v28 = vadd.f32 1.0, %v9618_v57 }
 0x4e1   : > { %v8491_v4 = vpop.f32.mrf.mxu1 }
 0x4e2   : > { %v11382_v55 = vadd.f32 %v8490_v5, %v4885_v25  ;;  %9625 = vpow2.f32 %v8342_v54  ;;  %v657_v25 = vld [vmem:[%s11399_s20] sm:$0xff] }
 0x4e3   : > { %v9620_v62 = vpop.eup %9619  ;;  %v8492_v7 = vpop.f32.mrf.mxu1  ;;  %9627 = vrcp.f32 %v4980_v28  ;;  %v5001_v5 = vmul.f32 0.06, %v657_v25  ;;  %v12767_v25 = vmov 1  }
 0x4e4   : > { %12764 = vst [vmem:[#allocation20_spill] sm:$0xff] %v11382_v55  ;;  %v4981_v53 = vadd.f32 1.0, %v9620_v62  ;;  %v8343_v34 = vmul.f32 -1.442695, %v11382_v55  ;;  %v8493_v60 = vadd.f32 %v8492_v7, %v8491_v4  ;;  %v659_v4 = vld [vmem:[%s11399_s20 + $0x10] sm:$0xff]  ;;  %v658_v7 = vld [vmem:[%s11399_s20 + $0x8] sm:$0xff] }
 0x4e5   : > { %v8494_v27 = vpop.f32.mrf.mxu1 }
 0x4e6   : > { %9629 = vrcp.f32 %v4981_v53  ;;  %v11386_v2 = vadd.f32 %v8493_v60, %v4890_v3  ;;  %v5003_v53 = vmul.f32 0.06, %v659_v4  ;;  %v661_v27 = vld [vmem:[%s11399_s20 + $0x20] sm:$0xff]  ;;  %v9610_v4 = vld [vmem:[%s12688_s16 + $0x30] sm:$0xff]  }
 0x4e7   : > { %v9622_v17 = vpop.eup %9621  ;;  %9631 = vpow2.f32 %v8343_v34  ;;  %v8495_v31 = vpop.f32.mrf.mxu1  ;;  %v5002_v34 = vmul.f32 0.06, %v658_v7  ;;  %v12769_v7 = vmov 0  }
 0x4e8   : > { %12765 = vst [vmem:[#allocation21_spill] sm:$0xff] %v11386_v2  ;;  %v8344_v61 = vmul.f32 -1.442695, %v11386_v2  ;;  %v4982_v1 = vadd.f32 1.0, %v9622_v17  ;;  %v660_v31 = vld [vmem:[%s11399_s20 + $0x18] sm:$0xff] }
 0x4ea   : > { %9633 = vpow2.f32 %v8344_v61 }
 0x4eb   : > { %v9624_v13 = vpop.eup %9623  ;;  %9635 = vrcp.f32 %v4982_v1  ;;  %v5005_v1 = vmul.f32 0.06, %v661_v27  ;;  %v9613_v27 = vld [vmem:[%s12688_s16 + $0x18] sm:$0xff]  }
 0x4ec   : > { %v4983_v29 = vadd.f32 1.0, %v9624_v13  ;;  %v5004_v13 = vmul.f32 0.06, %v660_v31  ;;  %v9614_v31 = vld [vmem:[%s12688_s16 + $0x10] sm:$0xff]  }
 0x4ee   : > { %9637 = vrcp.f32 %v4983_v29 }
 0x4ef   : > { %v9626_v30 = vpop.eup %9625 }
 0x4f0   : > { %v9628_v22 = vpop.eup %9627  ;;  %v4984_v6 = vadd.f32 1.0, %v9626_v30  ;;  %v663_v30 = vld [vmem:[%s11399_s20 + $0x30] sm:$0xff] }
 0x4f1   : > { %v5008_v62 = vadd.f32 %v9628_v22, %v5001_v5  ;;  %v9609_v5 = vld [vmem:[%s12688_s16 + $0x38] sm:$0xff]  }
 0x4f2   : > { %9639 = vrcp.f32 %v4984_v6  ;;  %v662_v6 = vld [vmem:[%s11399_s20 + $0x28] sm:$0xff] }
 0x4f3   : > { %v9630_v16 = vpop.eup %9629 }
 0x4f4   : > { %v9632_v23 = vpop.eup %9631  ;;  %v5015_v32 = vpack.c.bf16 %v9630_v16, %v9628_v22  ;;  %v5009_v17 = vadd.f32 %v9630_v16, %v5002_v34  ;;  %v9612_v34 = vld [vmem:[%s12688_s16 + $0x20] sm:$0xff]  }
 0x4f5   : > { %v4985_v47 = vadd.f32 1.0, %v9632_v23 }
 0x4f6   : > { %8660 = vmatmul.mubr.msk.bf16.vlgmr.msra.gmra.mxu0 %vm5045_vm13, %v5015_v32  ;;  %v5007_v32 = vmul.f32 0.06, %v663_v30 }
 0x4f7   : > { %9641 = vrcp.f32 %v4985_v47  ;;  %8663 = vmatprep.mubr.msk.bf16.mxu0 %vm10326_vm12, %v12716_v63  ;;  %v9634_v35 = vpop.eup %9633  ;;  %v5006_v47 = vmul.f32 0.06, %v662_v6  ;;  %8732 = vmatpush3.bf16.msra.mxu0 %v9609_v5 }
 0x4f8   : > { %v4986_v26 = vadd.f32 1.0, %v9634_v35  ;;  %v9636_v18 = vpop.eup %9635  ;;  %8733 = vmatprep.subr.bf16.mxu0 %v12716_v63 }
 0x4f9   : > { %v5010_v60 = vadd.f32 %v9636_v18, %v5003_v53  ;;  %v5690_v53 = vld [vmem:[%s10503_s25 + $0x50] sm:$0xff] }
 0x4fa   : > { %9643 = vrcp.f32 %v4986_v26 }
 0x4fb   : > { %v9638_v41 = vpop.eup %9637  ;;  %v5019_v61 = vpack.c.bf16 %v5010_v60, %v5009_v17  ;;  %8734 = vmatpush3.bf16.msra.mxu0 %v9610_v4  ;;  %v5692_v60 = vld [vmem:[%s10503_s25 + $0x60] sm:$0xff]  ;;  %v5691_v17 = vld [vmem:[%s10503_s25 + $0x58] sm:$0xff] }
 0x4fc   : > { %v5016_v36 = vpack.c.bf16 %v9638_v41, %v9636_v18  ;;  %v5011_v22 = vadd.f32 %v9638_v41, %v5004_v13  ;;  %v9606_v18 = vld [vmem:[%s12686_s14 + $0x10] sm:$0xff]   ;;  %v9607_v41 = vld [vmem:[%s12686_s14 + $0x8] sm:$0xff]   ;;  %8735 = vmatprep.subr.bf16.mxu0 %v12716_v63 }
 0x4fd   : > { %8698 = vmatpush3.bf16.msra.mxu1 %v9606_v18 }
 0x4fe   : > { %8664 = vmatmul.mubr.msk.bf16.gmra.mxu0 %vm5045_vm13, %v5016_v36  ;;  %8699 = vmatprep.subr.bf16.mxu1 %v12716_v63  ;;  %v9608_v36 = vld [vmem:[%s12686_s14] sm:$0xff]  }
 0x4ff   : > { %8667 = vmatprep.mubr.msk.bf16.mxu0 %vm10326_vm12, %v12716_v63  ;;  %v9640_v57 = vpop.eup %9639 }
 0x500   : > { %v5012_v29 = vadd.f32 %v9640_v57, %v5005_v1  ;;  %v9615_v1 = vld [vmem:[%s12688_s16 + $0x8] sm:$0xff]  }
 0x501   : > { %8700 = vmatpush3.bf16.msra.mxu1 %v9607_v41 }
 0x502   : > { %v5020_v23 = vpack.c.bf16 %v5012_v29, %v5011_v22  ;;  %8701 = vmatprep.subr.bf16.mxu1 %v12716_v63  ;;  %v11487_v29 = vld [vmem:[%s12685_s13] ss:$0 sm:$0xff] }
 0x504   : > { %v9642_v42 = vpop.eup %9641 }
 0x505   : > { %v5017_v54 = vpack.c.bf16 %v9642_v42, %v9640_v57  ;;  %v5013_v35 = vadd.f32 %v9642_v42, %v5006_v47  ;;  %8702 = vmatpush3.bf16.msra.mxu1 %v9608_v36  ;;  %v9785_v57 = vld [vmem:[#allocation2 + $0xe4] ss:$16 sps:$4 sm:$0xff]   ;;  %v5687_v42 = vld [vmem:[%s10503_s25 + $0x38] sm:$0xff] }
 0x506   : > { %6060 = vmatprep.subr.bf16.mxu1 %v9785_v57  ;;  %5703 = vperm.xlu1 %8974, %v5687_v42  }
 0x507   : > { %8668 = vmatmul.mubr.msk.bf16.gmra.mxu0 %vm5045_vm13, %v5017_v54  ;;  %v9644_v28 = vpop.eup %9643  ;;  %v5688_v54 = vld [vmem:[%s10503_s25 + $0x40] sm:$0xff] }
 0x508   : > { %8671 = vmatprep.mubr.msk.bf16.mxu0 %vm10326_vm12, %v12716_v63  ;;  %v5018_v3 = vpack.c.bf16 %v5008_v62, %v9644_v28  ;;  %v5014_v16 = vadd.f32 %v9644_v28, %v5007_v32  ;;  %5708 = vperm.xlu0 %8975, %v5688_v54   ;;  %v12768_v28 = vmov 2   ;;  %v5689_v62 = vld [vmem:[%s10503_s25 + $0x48] sm:$0xff] }
 0x50a   : > { %v5021_v26 = vpack.c.bf16 %v5014_v16, %v5013_v35  ;;  %8976 = vset.pattern.permute.xlu1 %v12767_v25 }
 0x50b   : > { %5765 = vperm.xlu1 %8976, %v5687_v42  }
 0x50c   : > { %8977 = vset.pattern.permute.xlu0 %v12768_v28 }
 0x50d   : > { %5849 = vperm.xlu0 %8977, %v5687_v42   ;;  %v9786_v42 = vld [vmem:[#allocation2 + $0xe0] ss:$16 sps:$4 sm:$0xff]  }
 0x50f   : > { %8672 = vmatmul.mubr.msk.bf16.gmra.mxu0 %vm5045_vm13, %v5018_v3  ;;  %5769 = vperm.xlu1 %8976, %v5688_v54   ;;  %v9611_v3 = vld [vmem:[%s12688_s16 + $0x28] sm:$0xff]  }
 0x510   : > { %8675 = vmatprep.mubr.msk.bf16.mxu0 %vm10326_vm12, %v12716_v63  ;;  %8736 = vmatpush3.bf16.msra.mxu0 %v9611_v3 }
 0x511   : > { %5857 = vperm.xlu0 %8977, %v5689_v62   ;;  %8737 = vmatprep.subr.bf16.mxu0 %v12716_v63 }
 0x513   : > { %8978 = vset.pattern.permute.xlu1 %v12768_v28 }
 0x514   : > { %5853 = vperm.xlu1 %8978, %v5688_v54   ;;  %8738 = vmatpush3.bf16.msra.mxu0 %v9612_v34  ;;  %v9787_v54 = vld [vmem:[#allocation2 + $0xc4] ss:$16 sps:$4 sm:$0xff]  }
 0x515   : > { %8981 = vset.pattern.permute.xlu0 %v12769_v7  ;;  %8739 = vmatprep.subr.bf16.mxu0 %v12716_v63 }
 0x516   : > { %5718 = vperm.xlu0 %8981, %v5690_v53  }
 0x517   : > { %8676 = vmatmul.mubr.msk.bf16.gmra.mxu0 %vm5045_vm13, %v5019_v61  ;;  %v5693_v61 = vld [vmem:[%s10503_s25 + $0x68] sm:$0xff] }
 0x518   : > { %8679 = vmatprep.mubr.msk.bf16.mxu0 %vm10326_vm12, %v12716_v63  ;;  %8979 = vset.pattern.permute.xlu1 %v12769_v7 }
 0x519   : > { %5713 = vperm.xlu1 %8979, %v5689_v62   ;;  %8740 = vmatpush3.bf16.msra.mxu0 %v9613_v27 }
 0x51a   : > { %5728 = vperm.xlu0 %8981, %v5692_v60   ;;  %8741 = vmatprep.subr.bf16.mxu0 %v12716_v63 }
 0x51d   : > { %8980 = vset.pattern.permute.xlu1 %v12767_v25  ;;  %8742 = vmatpush3.bf16.msra.mxu0 %v9614_v31  ;;  %v9791_v31 = vld [vmem:[#allocation2 + $0x84] ss:$16 sps:$4 sm:$0xff]  }
 0x51e   : > { %5773 = vperm.xlu1 %8980, %v5689_v62   ;;  %8985 = vset.pattern.permute.xlu0 %v12768_v28  ;;  %v9788_v62 = vld [vmem:[#allocation2 + $0xc0] ss:$16 sps:$4 sm:$0xff]  }
 0x51f   : > { %8680 = vmatmul.mubr.msk.bf16.gmra.mxu0 %vm5045_vm13, %v5020_v23  ;;  %5865 = vperm.xlu0 %8985, %v5691_v17  }
 0x520   : > { %8683 = vmatprep.mubr.msk.bf16.mxu0 %vm10326_vm12, %v12716_v63  ;;  %8743 = vmatprep.subr.bf16.mxu0 %v12716_v63 }
 0x521   : > { %8744 = vmatpush3.bf16.msra.mxu0 %v9615_v1 }
 0x522   : > { %5777 = vperm.xlu1 %8980, %v5690_v53   ;;  %8745 = vmatprep.subr.bf16.mxu0 %v12716_v63 }
 0x523   : > { %8988 = vset.pattern.permute.xlu0 %v12767_v25 }
 0x524   : > { %5789 = vperm.xlu0 %8988, %v5693_v61  }
 0x526   : > { %8982 = vset.pattern.permute.xlu1 %v12768_v28 }
 0x527   : > { %8684 = vmatmul.mubr.msk.bf16.gmra.mxu0 %vm5045_vm13, %v5021_v26  ;;  %5861 = vperm.xlu1 %8982, %v5690_v53  }
 0x528   : > { %8747 = vmatprep.mubr.msk.bf16.mxu0 %vm10326_vm12, %v12716_v63  ;;  %8990 = vset.pattern.permute.xlu0 %v12768_v28 }
 0x52b   : > { %8983 = vset.pattern.permute.xlu1 %v12769_v7 }
 0x52c   : > { %5723 = vperm.xlu1 %8983, %v5691_v17  }
 0x530   : > { %8984 = vset.pattern.permute.xlu1 %v12767_v25 }
 0x531   : > { %5781 = vperm.xlu1 %8984, %v5691_v17  }
 0x535   : > { %5785 = vperm.xlu1 %8984, %v5692_v60  }
 0x539   : > { %8986 = vset.pattern.permute.xlu1 %v12768_v28 }
 0x53a   : > { %5869 = vperm.xlu1 %8986, %v5692_v60   ;;  %v9790_v60 = vld [vmem:[#allocation2 + $0xa0] ss:$16 sps:$4 sm:$0xff]  }
 0x53e   : > { %8987 = vset.pattern.permute.xlu1 %v12769_v7  ;;  %v9789_v7 = vld [vmem:[#allocation2 + $0xa4] ss:$16 sps:$4 sm:$0xff]  }
 0x53f   : > { %5733 = vperm.xlu1 %8987, %v5693_v61  }
 0x543   : > { %8989 = vset.pattern.permute.xlu1 %v12768_v28 }
 0x544   : > { %5873 = vperm.xlu1 %8989, %v5693_v61  }
 0x5b6   : > { %v5101_v13 = vpop.f32.mrf.mxu0 }
 0x5b7   : > { %v5102_v6 = vadd.f32 %v11487_v29, %v5101_v13 }
 0x5b8   : > { %v8661_v30 = vpop.f32.mrf.mxu0 }
 0x5b9   : > { %v9792_v30 = vld [vmem:[#allocation2 + $0x80] ss:$16 sps:$4 sm:$0xff]  }
 0x5ba   : > { %v5104_v22 = vpop.f32.mrf.mxu0 }
 0x5bb   : > { %v5105_v23 = vadd.f32 %v11487_v29, %v5104_v22 }
 0x5bc   : > { %v8662_v32 = vpop.f32.mrf.mxu0 }
 0x5bd   : > { %v5156_v47 = vpack.c.bf16 %v5105_v23, %v5102_v6  ;;  %v9793_v6 = vld [vmem:[#allocation2 + $0x64] ss:$16 sps:$4 sm:$0xff]  }
 0x5be   : > { %v5109_v16 = vpop.f32.mrf.mxu0 }
 0x5bf   : > { %vm5163_vm14 = vcmp.gt.bf16.partialorder %v5156_v47, 0  ;;  %v5170_v35 = vmul.bf16 1045249613, %v5156_v47  ;;  %v5110_v36 = vadd.f32 %v11487_v29, %v5109_v16 }
 0x5c0   : > { %v8665_v26 = vpop.f32.mrf.mxu0 }
 0x5c1   : > { %v5177_v18 = vsel %vm5163_vm14, %v5156_v47, %v5170_v35  ;;  %v9794_v26 = vld [vmem:[#allocation2 + $0x60] ss:$16 sps:$4 sm:$0xff]  }
 0x5c2   : > { %v5112_v41 = vpop.f32.mrf.mxu0  ;;  %8704 = vmatmul.mubr.bf16.vlgmr.msra.gmra.mxu1 %v5177_v18 }
 0x5c3   : > { %v5113_v57 = vadd.f32 %v11487_v29, %v5112_v41  ;;  %8707 = vmatprep.mubr.msk.bf16.mxu1 %vm10326_vm12, %v12716_v63  ;;  %6061 = vmatpush1.bf16.msra.mxu1 %v9786_v42  ;;  %v9795_v41 = vld [vmem:[#allocation2 + $0x44] ss:$16 sps:$4 sm:$0xff]  }
 0x5c4   : > { %v8666_v25 = vpop.f32.mrf.mxu0  ;;  %6062 = vmatprep.subr.bf16.mxu1 %v9787_v54 }
 0x5c5   : > { %v5157_v5 = vpack.c.bf16 %v5113_v57, %v5110_v36  ;;  %v9796_v25 = vld [vmem:[#allocation2 + $0x40] ss:$16 sps:$4 sm:$0xff]  }
 0x5c7   : > { %v5171_v28 = vmul.bf16 1045249613, %v5157_v5  ;;  %v5117_v4 = vpop.f32.mrf.mxu0  ;;  %vm5164_vm15 = vcmp.gt.bf16.partialorder %v5157_v5, 0  ;;  %6063 = vmatpush1.bf16.msra.mxu1 %v9788_v62 }
 0x5c8   : > { %6064 = vmatprep.subr.bf16.mxu1 %v9789_v7  ;;  %v5118_v27 = vadd.f32 %v11487_v29, %v5117_v4 }
 0x5c9   : > { %v8669_v3 = vpop.f32.mrf.mxu0  ;;  %v5178_v53 = vsel %vm5164_vm15, %v5157_v5, %v5171_v28  ;;  %v9797_v5 = vld [vmem:[#allocation2 + $0x24] ss:$16 sps:$4 sm:$0xff]  }
 0x5ca   : > { %8708 = vmatmul.mubr.bf16.gmra.mxu1 %v5178_v53  ;;  %v9798_v3 = vld [vmem:[#allocation2 + $0x20] ss:$16 sps:$4 sm:$0xff]  }
 0x5cb   : > { %v5120_v34 = vpop.f32.mrf.mxu0  ;;  %8711 = vmatprep.mubr.msk.bf16.mxu1 %vm10326_vm12, %v12716_v63  ;;  %6065 = vmatpush1.bf16.msra.mxu1 %v9790_v60  ;;  %v5704_v60 = vpop.permute.xlu1 %5703 }
 0x5cc   : > { %v5121_v17 = vadd.f32 %v11487_v29, %v5120_v34  ;;  %6066 = vmatprep.subr.bf16.mxu1 %v9791_v31  ;;  %v9799_v34 = vld [vmem:[#allocation2 + $0x4] ss:$16 sps:$4 sm:$0xff]  }
 0x5cd   : > { %v8670_v61 = vpop.f32.mrf.mxu0 }
 0x5ce   : > { %v5158_v1 = vpack.c.bf16 %v5121_v17, %v5118_v27  ;;  %v9800_v61 = vld [vmem:[#allocation2] ss:$16 sps:$4 sm:$0xff]  }
 0x5cf   : > { %v5125_v13 = vpop.f32.mrf.mxu0  ;;  %6067 = vmatpush1.bf16.msra.mxu1 %v9792_v30  ;;  %v5738_v30 = vmul.f32 %v5704_v60, %v10574_v45 }
 0x5d0   : > { %v5172_v22 = vmul.bf16 1045249613, %v5158_v1  ;;  %vm5165_vm0 = vcmp.gt.bf16.partialorder %v5158_v1, 0  ;;  %6068 = vmatprep.subr.bf16.mxu1 %v9793_v6  ;;  %v5126_v16 = vadd.f32 %v11487_v29, %v5125_v13  ;;  %v9801_v13 = vld [vmem:[#allocation2 + $0x1e4] ss:$16 sps:$4 sm:$0xff]  }
 0x5d1   : > { %v8673_v23 = vpop.f32.mrf.mxu0 }
 0x5d2   : > { %v5179_v32 = vsel %vm5165_vm0, %v5158_v1, %v5172_v22  ;;  %v5739_v22 = vmul.f32 %v5704_v60, %v10577_v46  ;;  %v5766_v23 = vpop.permute.xlu1 %5765 }
 0x5d3   : > { %v5128_v47 = vpop.f32.mrf.mxu0  ;;  %8712 = vmatmul.mubr.bf16.gmra.mxu1 %v5179_v32 }
 0x5d4   : > { %v5129_v35 = vadd.f32 %v11487_v29, %v5128_v47  ;;  %8715 = vmatprep.mubr.msk.bf16.mxu1 %vm10326_vm12, %v12716_v63  ;;  %6069 = vmatpush1.bf16.msra.mxu1 %v9794_v26  ;;  %v5794_v47 = vmul.f32 %v5766_v23, %v10562_v39 }
 0x5d5   : > { %v8674_v18 = vpop.f32.mrf.mxu0  ;;  %6070 = vmatprep.subr.bf16.mxu1 %v9795_v41 }
 0x5d6   : > { %v5159_v36 = vpack.c.bf16 %v5129_v35, %v5126_v16  ;;  %v5795_v16 = vmul.f32 %v5766_v23, %v10565_v40  ;;  %v9802_v18 = vld [vmem:[#allocation2 + $0x1e0] ss:$16 sps:$4 sm:$0xff]  }
 0x5d7   : > { %v5133_v57 = vpop.f32.mrf.mxu0 }
 0x5d8   : > { %v5173_v42 = vmul.bf16 1045249613, %v5159_v36  ;;  %vm5166_vm1 = vcmp.gt.bf16.partialorder %v5159_v36, 0  ;;  %6071 = vmatpush1.bf16.msra.mxu1 %v9796_v25  ;;  %v5134_v62 = vadd.f32 %v11487_v29, %v5133_v57  ;;  %v11515_v57 = vadd.f32 %v5794_v47, %v5738_v30  ;;  %v5709_v30 = vpop.permute.xlu0 %5708 }
 0x5d9   : > { %v8677_v54 = vpop.f32.mrf.mxu0  ;;  %6072 = vmatprep.subr.bf16.mxu1 %v9797_v5 }
 0x5da   : > { %v5180_v28 = vsel %vm5166_vm1, %v5159_v36, %v5173_v42  ;;  %v9803_v36 = vld [vmem:[#allocation2 + $0x1c4] ss:$16 sps:$4 sm:$0xff]   ;;  %v11517_v42 = vadd.f32 %v5795_v16, %v5739_v22 }
 0x5db   : > { %v5136_v4 = vpop.f32.mrf.mxu0  ;;  %8716 = vmatmul.mubr.bf16.gmra.mxu1 %v5180_v28  ;;  %v9804_v28 = vld [vmem:[#allocation2 + $0x1c0] ss:$16 sps:$4 sm:$0xff]  }
 0x5dc   : > { %v5137_v7 = vadd.f32 %v11487_v29, %v5136_v4  ;;  %8719 = vmatprep.mubr.msk.bf16.mxu1 %vm10326_vm12, %v12716_v63  ;;  %6073 = vmatpush1.bf16.msra.mxu1 %v9798_v3 }
 0x5dd   : > { %v8678_v53 = vpop.f32.mrf.mxu0  ;;  %6074 = vmatprep.subr.bf16.mxu1 %v9799_v34  ;;  %v5737_v34 = vmul.f32 %v5704_v60, %v10571_v44 }
 0x5de   : > { %v5160_v27 = vpack.c.bf16 %v5137_v7, %v5134_v62  ;;  %v9805_v62 = vld [vmem:[#allocation2 + $0x1a4] ss:$16 sps:$4 sm:$0xff]   ;;  %v5736_v53 = vmul.f32 %v5704_v60, %v10568_v43 }
 0x5df   : > { %v5141_v17 = vpop.f32.mrf.mxu0 }
 0x5e0   : > { %v5174_v31 = vmul.bf16 1045249613, %v5160_v27  ;;  %vm5167_vm2 = vcmp.gt.bf16.partialorder %v5160_v27, 0  ;;  %6075 = vmatpush1.bf16.msra.mxu1 %v9800_v61  ;;  %v5142_v35 = vadd.f32 %v11487_v29, %v5141_v17  ;;  %v9806_v61 = vld [vmem:[#allocation2 + $0x1a0] ss:$16 sps:$4 sm:$0xff]  }
 0x5e1   : > { %v8681_v1 = vpop.f32.mrf.mxu0  ;;  %6076 = vmatprep.subr.bf16.mxu1 %v9801_v13  ;;  %v5770_v13 = vpop.permute.xlu1 %5769 }
 0x5e2   : > { %v5181_v6 = vsel %vm5167_vm2, %v5160_v27, %v5174_v31  ;;  %v5792_v27 = vmul.f32 %v5766_v23, %v10556_v37  ;;  %v5793_v1 = vmul.f32 %v5766_v23, %v10559_v38  ;;  %v5796_v60 = vmul.f32 %v5770_v13, %v10556_v37 }
 0x5e3   : > { %v5144_v32 = vpop.f32.mrf.mxu0  ;;  %8720 = vmatmul.mubr.bf16.gmra.mxu1 %v5181_v6  ;;  %v9807_v6 = vld [vmem:[#allocation2 + $0x184] ss:$16 sps:$4 sm:$0xff]   ;;  %v5798_v47 = vmul.f32 %v5770_v13, %v10562_v39  ;;  %v5742_v23 = vmul.f32 %v5709_v30, %v10574_v45 }
 0x5e4   : > { %v5145_v26 = vadd.f32 %v11487_v29, %v5144_v32  ;;  %8723 = vmatprep.mubr.msk.bf16.mxu1 %vm10326_vm12, %v12716_v63  ;;  %6077 = vmatpush2.bf16.msra.mxu1 %v9802_v18  ;;  %v5797_v32 = vmul.f32 %v5770_v13, %v10559_v38  ;;  %v5743_v18 = vmul.f32 %v5709_v30, %v10577_v46 }
 0x5e5   : > { %v8682_v41 = vpop.f32.mrf.mxu0  ;;  %6078 = vmatprep.subr.bf16.mxu1 %v9803_v36  ;;  %v9808_v36 = vld [vmem:[#allocation2 + $0x180] ss:$16 sps:$4 sm:$0xff]  }
 0x5e6   : > { %v5161_v25 = vpack.c.bf16 %v5145_v26, %v5142_v35  ;;  %v5740_v35 = vmul.f32 %v5709_v30, %v10568_v43  ;;  %v5741_v26 = vmul.f32 %v5709_v30, %v10571_v44 }
 0x5e7   : > { %v5149_v54 = vpop.f32.mrf.mxu0 }
 0x5e8   : > { %v5175_v5 = vmul.bf16 1045249613, %v5161_v25  ;;  %vm5168_vm3 = vcmp.gt.bf16.partialorder %v5161_v25, 0  ;;  %6079 = vmatpush2.bf16.msra.mxu1 %v9804_v28  ;;  %v5150_v17 = vadd.f32 %v11487_v29, %v5149_v54  ;;  %v5825_v54 = vadd.f32 %v5797_v32, %v5741_v26 }
 0x5e9   : > { %v8685_v4 = vpop.f32.mrf.mxu0  ;;  %6080 = vmatprep.subr.bf16.mxu1 %v9805_v62  ;;  %v5821_v28 = vadd.f32 %v5793_v1, %v5737_v34 }
 0x5ea   : > { %v5182_v7 = vsel %vm5168_vm3, %v5161_v25, %v5175_v5  ;;  %v5824_v25 = vadd.f32 %v5796_v60, %v5740_v35  ;;  %v5820_v5 = vadd.f32 %v5792_v27, %v5736_v53  ;;  %v5826_v4 = vadd.f32 %v5798_v47, %v5742_v23  ;;  %v9810_v27 = vld [vmem:[#allocation2 + $0x160] ss:$16 sps:$4 sm:$0xff]   ;;  %v9811_v23 = vld [vmem:[#allocation2 + $0x144] ss:$16 sps:$4 sm:$0xff]  }
 0x5eb   : > { %v5152_v3 = vpop.f32.mrf.mxu0  ;;  %8724 = vmatmul.mubr.bf16.gmra.mxu1 %v5182_v7  ;;  %v9809_v7 = vld [vmem:[#allocation2 + $0x164] ss:$16 sps:$4 sm:$0xff]  }
 0x5ec   : > { %v5153_v31 = vadd.f32 %v11487_v29, %v5152_v3  ;;  %8727 = vmatprep.mubr.msk.bf16.mxu1 %vm10326_vm12, %v12716_v63  ;;  %6081 = vmatpush2.bf16.msra.mxu1 %v9806_v61  ;;  %v5799_v29 = vmul.f32 %v5770_v13, %v10565_v40  ;;  %v5854_v3 = vpop.permute.xlu1 %5853 }
 0x5ed   : > { %v8686_v22 = vpop.f32.mrf.mxu0  ;;  %6082 = vmatprep.subr.bf16.mxu1 %v9807_v6  ;;  %v5880_v61 = vmul.f32 %v5854_v3, %v10582_v48  ;;  %v5881_v13 = vmul.f32 %v5854_v3, %v10585_v49  ;;  %v5882_v30 = vmul.f32 %v5854_v3, %v10588_v50 }
 0x5ee   : > { %v5162_v16 = vpack.c.bf16 %v5153_v31, %v5150_v17  ;;  %v5827_v62 = vadd.f32 %v5799_v29, %v5743_v18  ;;  %v5850_v17 = vpop.permute.xlu0 %5849  ;;  %v5883_v22 = vmul.f32 %v5854_v3, %v10591_v51 }
 0x5ef   : > { %v5876_v6 = vmul.f32 %v5850_v17, %v10582_v48  ;;  %v5877_v53 = vmul.f32 %v5850_v17, %v10585_v49  ;;  %v5878_v34 = vmul.f32 %v5850_v17, %v10588_v50  ;;  %v5908_v1 = vadd.f32 %v5880_v61, %v5824_v25 }
 0x5f0   : > { %v5176_v41 = vmul.bf16 1045249613, %v5162_v16  ;;  %vm5169_vm4 = vcmp.gt.bf16.partialorder %v5162_v16, 0  ;;  %6083 = vmatpush2.bf16.msra.mxu1 %v9808_v36  ;;  %v5909_v60 = vadd.f32 %v5881_v13, %v5825_v54  ;;  %v5910_v32 = vadd.f32 %v5882_v30, %v5826_v4 }
 0x5f1   : > { %6084 = vmatprep.subr.bf16.mxu1 %v9809_v7  ;;  %v5879_v47 = vmul.f32 %v5850_v17, %v10591_v51  ;;  %v11543_v29 = vadd.f32 %v5883_v22, %v5827_v62  ;;  %v5905_v35 = vadd.f32 %v5877_v53, %v5821_v28  ;;  %v5906_v26 = vadd.f32 %v5878_v34, %v11515_v57  ;;  %v5714_v28 = vpop.permute.xlu1 %5713  ;;  %v9812_v7 = vld [vmem:[#allocation2 + $0x140] ss:$16 sps:$4 sm:$0xff]   ;;  %v9813_v17 = vld [vmem:[#allocation2 + $0x124] ss:$16 sps:$4 sm:$0xff]  }
 0x5f2   : > { %v5183_v31 = vsel %vm5169_vm4, %v5162_v16, %v5176_v41  ;;  %v5904_v16 = vadd.f32 %v5876_v6, %v5820_v5  ;;  %v5936_v18 = vadd.f32 %v5908_v1, %v10619_v11  ;;  %v5938_v41 = vadd.f32 %v5910_v32, %v10622_v12  ;;  %v9814_v34 = vld [vmem:[#allocation2 + $0x120] ss:$16 sps:$4 sm:$0xff]   ;;  %v9815_v1 = vld [vmem:[#allocation2 + $0x104] ss:$16 sps:$4 sm:$0xff]  }
 0x5f3   : > { %8728 = vmatmul.mubr.bf16.gmra.mxu1 %v5183_v31  ;;  %v11549_v36 = vadd.f32 %v5879_v47, %v11517_v42  ;;  %v5937_v25 = vadd.f32 %v5909_v60, %v10613_v9  ;;  %v5934_v4 = vadd.f32 %v5906_v26, %v10622_v12  ;;  %v5933_v5 = vadd.f32 %v5905_v35, %v10613_v9 }
 0x5f4   : > { %6085 = vmatpush2.bf16.msra.mxu1 %v9810_v27  ;;  %v5932_v54 = vadd.f32 %v5904_v16, %v10619_v11  ;;  %vm5964_vm5 = vcmp.gt.f32.partialorder %v5936_v18, 0.0  ;;  %vm5966_vm6 = vcmp.gt.f32.partialorder %v5938_v41, 0.0  ;;  %v5992_v57 = vmul.f32 0.2, %v5936_v18 }
 0x5f5   : > { %6086 = vmatprep.subr.bf16.mxu1 %v9811_v23  ;;  %v5994_v62 = vmul.f32 0.2, %v5938_v41  ;;  %vm5962_vm8 = vcmp.gt.f32.partialorder %v5934_v4, 0.0  ;;  %v5990_v42 = vmul.f32 0.2, %v5934_v4  ;;  %vm5961_vm9 = vcmp.gt.f32.partialorder %v5933_v5, 0.0  ;;  %v5774_v16 = vpop.permute.xlu1 %5773 }
 0x5f6   : > { %vm5960_vm7 = vcmp.gt.f32.partialorder %v5932_v54, 0.0  ;;  %v5988_v3 = vmul.f32 0.2, %v5932_v54  ;;  %vm5965_vm10 = vcmp.gt.f32.partialorder %v5937_v25, 0.0  ;;  %v5989_v13 = vmul.f32 0.2, %v5933_v5 }
 0x5f7   : > { %v6022_v31 = vsel %vm5966_vm6, %v5938_v41, %v5994_v62  ;;  %v6018_v61 = vsel %vm5962_vm8, %v5934_v4, %v5990_v42  ;;  %v5993_v30 = vmul.f32 0.2, %v5937_v25  ;;  %v6020_v22 = vsel %vm5964_vm5, %v5936_v18, %v5992_v57  ;;  %v9816_v41 = vld [vmem:[#allocation2 + $0x100] ss:$16 sps:$4 sm:$0xff]   ;;  %v9817_v57 = vld [vmem:[#allocation2 + $0xec] ss:$16 sps:$4 sm:$0xff]  }
 0x5f8   : > { %6087 = vmatpush2.bf16.msra.mxu1 %v9812_v7  ;;  %v6016_v6 = vsel %vm5960_vm7, %v5932_v54, %v5988_v3  ;;  %v11556_v53 = vpack.c.bf16 %v6022_v31, %v6018_v61  ;;  %v5746_v27 = vmul.f32 %v5714_v28, %v10574_v45  ;;  %v6017_v60 = vsel %vm5961_vm9, %v5933_v5, %v5989_v13  ;;  %v9819_v5 = vld [vmem:[#allocation2 + $0xcc] ss:$16 sps:$4 sm:$0xff]   ;;  %v9820_v7 = vld [vmem:[#allocation2 + $0xc8] ss:$16 sps:$4 sm:$0xff]   ;;  %v9616_v31 = vld [vmem:[%s12688_s16] sm:$0xff]   ;;  %v5858_v13 = vpop.permute.xlu0 %5857 }
 0x5f9   : > { %6088 = vmatprep.subr.bf16.mxu1 %v9813_v17  ;;  %v6021_v32 = vsel %vm5965_vm10, %v5937_v25, %v5993_v30  ;;  %v5747_v47 = vmul.f32 %v5714_v28, %v10577_v46  ;;  %v5802_v26 = vmul.f32 %v5774_v16, %v10562_v39  ;;  %v5803_v23 = vmul.f32 %v5774_v16, %v10565_v40  ;;  %v9818_v25 = vld [vmem:[#allocation2 + $0xe8] ss:$16 sps:$4 sm:$0xff]   ;;  %v5778_v62 = vpop.permute.xlu1 %5777  ;;  %v9821_v3 = vld [vmem:[#allocation2 + $0xac] ss:$16 sps:$4 sm:$0xff]  }
 0x5fa   : > { %v11560_v35 = vpack.c.bf16 %v6021_v32, %v6017_v60  ;;  %v11564_v18 = vpack.c.bf16 %v6020_v22, %v6016_v6  ;;  %v9822_v42 = vld [vmem:[#allocation2 + $0xa8] ss:$16 sps:$4 sm:$0xff]   ;;  %v9823_v17 = vld [vmem:[#allocation2 + $0x8c] ss:$16 sps:$4 sm:$0xff]   ;;  %v5744_v30 = vmul.f32 %v5714_v28, %v10568_v43  ;;  %v5800_v22 = vmul.f32 %v5774_v16, %v10556_v37  ;;  %8746 = vmatpush3.bf16.msra.mxu0 %v9616_v31  ;;  %v9825_v32 = vld [vmem:[#allocation2 + $0x2e4] ss:$16 sps:$4 sm:$0xff]  }
 0x5fb   : > { %v5830_v54 = vadd.f32 %v5802_v26, %v5746_v27  ;;  %v5831_v4 = vadd.f32 %v5803_v23, %v5747_v47  ;;  %v5745_v6 = vmul.f32 %v5714_v28, %v10571_v44  ;;  %v5886_v27 = vmul.f32 %v5858_v13, %v10588_v50  ;;  %v9824_v60 = vld [vmem:[#allocation2 + $0x88] ss:$16 sps:$4 sm:$0xff]   ;;  %6131 = vmatprep.subr.bf16.mxu0 %v9825_v32  ;;  %v9826_v47 = vld [vmem:[#allocation2 + $0x6c] ss:$16 sps:$4 sm:$0xff]  }
 0x5fc   : > { %6089 = vmatpush2.bf16.msra.mxu1 %v9814_v34  ;;  %6092 = vmatprep.mubr.bf16.mxu1 %v11560_v35  ;;  %v5801_v34 = vmul.f32 %v5774_v16, %v10559_v38  ;;  %v5804_v28 = vmul.f32 %v5778_v62, %v10556_v37  ;;  %v5806_v16 = vmul.f32 %v5778_v62, %v10562_v39 }
 0x5fd   : > { %6090 = vmatprep.subr.bf16.mxu1 %v9815_v1  ;;  %v5862_v61 = vpop.permute.xlu1 %5861  ;;  %v5887_v1 = vmul.f32 %v5858_v13, %v10591_v51  ;;  %v11577_v26 = vadd.f32 %v5886_v27, %v5830_v54  ;;  %v5719_v54 = vpop.permute.xlu0 %5718 }
 0x5fe   : > { %v5748_v31 = vmul.f32 %v5719_v54, %v10568_v43  ;;  %v5749_v32 = vmul.f32 %v5719_v54, %v10571_v44 }
 0x5ff   : > { %v11579_v23 = vadd.f32 %v5887_v1, %v5831_v4  ;;  %v5891_v4 = vmul.f32 %v5862_v61, %v10591_v51 }
 0x600   : > { %6091 = vmatpush2.bf16.msra.mxu1 %v9816_v41 }
 0x601   : > { %6202 = vmatprep.subr.bf16.mxu1 %v9817_v57  ;;  %v5724_v41 = vpop.permute.xlu1 %5723  ;;  %v5828_v57 = vadd.f32 %v5800_v22, %v5744_v30  ;;  %v5750_v30 = vmul.f32 %v5719_v54, %v10574_v45  ;;  %v5751_v22 = vmul.f32 %v5719_v54, %v10577_v46  ;;  %v5729_v20 = vpop.permute.xlu0 %5728 }
 0x602   : > { %v5754_v27 = vmul.f32 %v5724_v41, %v10574_v45  ;;  %v5755_v1 = vmul.f32 %v5724_v41, %v10577_v46  ;;  %v5752_v0 = vmul.f32 %v5724_v41, %v10568_v43  ;;  %v5753_v58 = vmul.f32 %v5724_v41, %v10571_v44 }
 0x603   : > { %6093 = vmatmul.mubr.bf16.vlgmr.msra.gmra.mxu1 %v11564_v18 }
 0x604   : > { %6203 = vmatpush1.bf16.msra.mxu1 %v9818_v25  ;;  %v5807_v25 = vmul.f32 %v5778_v62, %v10565_v40 }
 0x605   : > { %6204 = vmatprep.subr.bf16.mxu1 %v9819_v5  ;;  %v11584_v5 = vadd.f32 %v5801_v34, %v5745_v6  ;;  %v5889_v6 = vmul.f32 %v5862_v61, %v10585_v49  ;;  %v9828_v34 = vld [vmem:[#allocation2 + $0x4c] ss:$16 sps:$4 sm:$0xff]  }
 0x606   : > { %v5835_v63 = vadd.f32 %v5807_v25, %v5751_v22 }
 0x608   : > { %6205 = vmatpush1.bf16.msra.mxu1 %v9820_v7  ;;  %v5805_v7 = vmul.f32 %v5778_v62, %v10559_v38  ;;  %v5884_v62 = vmul.f32 %v5858_v13, %v10582_v48  ;;  %v11604_v56 = vadd.f32 %v5891_v4, %v5835_v63 }
 0x609   : > { %6206 = vmatprep.subr.bf16.mxu1 %v9821_v3  ;;  %v5888_v3 = vmul.f32 %v5862_v61, %v10582_v48 }
 0x60a   : > { %v5912_v25 = vadd.f32 %v5884_v62, %v5828_v57  ;;  %v5833_v2 = vadd.f32 %v5805_v7, %v5749_v32  ;;  %v9831_v57 = vld [vmem:[#allocation2 + $0x28] ss:$16 sps:$4 sm:$0xff]   ;;  %v5759_v7 = vmul.f32 %v5729_v20, %v10577_v46  ;;  %v9832_v32 = vld [vmem:[#allocation2 + $0xc] ss:$16 sps:$4 sm:$0xff]  }
 0x60c   : > { %6207 = vmatpush1.bf16.msra.mxu1 %v9822_v42  ;;  %v5890_v42 = vmul.f32 %v5862_v61, %v10588_v50 }
 0x60d   : > { %6208 = vmatprep.subr.bf16.mxu1 %v9823_v17  ;;  %v9827_v17 = vld [vmem:[#allocation2 + $0x68] ss:$16 sps:$4 sm:$0xff]  }
 0x610   : > { %6209 = vmatpush1.bf16.msra.mxu1 %v9824_v60  ;;  %v5782_v60 = vpop.permute.xlu1 %5781 }
 0x611   : > { %6210 = vmatprep.subr.bf16.mxu1 %v9826_v47  ;;  %v5832_v47 = vadd.f32 %v5804_v28, %v5748_v31  ;;  %v5810_v61 = vmul.f32 %v5782_v60, %v10562_v39  ;;  %v5808_v54 = vmul.f32 %v5782_v60, %v10556_v37  ;;  %v5809_v28 = vmul.f32 %v5782_v60, %v10559_v38  ;;  %v9830_v31 = vld [vmem:[#allocation2 + $0x2c] ss:$16 sps:$4 sm:$0xff]  }
 0x613   : > { %v5838_v41 = vadd.f32 %v5810_v61, %v5754_v27  ;;  %v5916_v55 = vadd.f32 %v5888_v3, %v5832_v47  ;;  %v5836_v62 = vadd.f32 %v5808_v54, %v5752_v0  ;;  %v5837_v27 = vadd.f32 %v5809_v28, %v5753_v58  ;;  %v5866_v3 = vpop.permute.xlu0 %5865 }
 0x614   : > { %6211 = vmatpush1.bf16.msra.mxu1 %v9827_v17  ;;  %v5834_v17 = vadd.f32 %v5806_v16, %v5750_v30  ;;  %v5885_v16 = vmul.f32 %v5858_v13, %v10585_v49  ;;  %v5786_v22 = vpop.permute.xlu1 %5785  ;;  %v5757_v13 = vmul.f32 %v5729_v20, %v10571_v44  ;;  %v5894_v54 = vmul.f32 %v5866_v3, %v10588_v50 }
 0x615   : > { %6212 = vmatprep.subr.bf16.mxu1 %v9828_v34  ;;  %v5811_v34 = vmul.f32 %v5782_v60, %v10565_v40  ;;  %v5814_v63 = vmul.f32 %v5786_v22, %v10562_v39  ;;  %v5815_v4 = vmul.f32 %v5786_v22, %v10565_v40  ;;  %v5756_v60 = vmul.f32 %v5729_v20, %v10568_v43 }
 0x616   : > { %v11602_v14 = vadd.f32 %v5890_v42, %v5834_v17  ;;  %v5813_v42 = vmul.f32 %v5786_v22, %v10559_v38  ;;  %v5895_v28 = vmul.f32 %v5866_v3, %v10591_v51 }
 0x617   : > { %v5839_v30 = vadd.f32 %v5811_v34, %v5755_v1  ;;  %v5758_v1 = vmul.f32 %v5729_v20, %v10574_v45  ;;  %v5892_v34 = vmul.f32 %v5866_v3, %v10582_v48  ;;  %v5843_v33 = vadd.f32 %v5815_v4, %v5759_v7  ;;  %v9833_v4 = vld [vmem:[#allocation2 + $0x8] ss:$16 sps:$4 sm:$0xff]  }
 0x618   : > { %6213 = vmatpush1.bf16.msra.mxu1 %v9829_v59  ;;  %v5812_v59 = vmul.f32 %v5786_v22, %v10556_v37  ;;  %v5841_v17 = vadd.f32 %v5813_v42, %v5757_v13  ;;  %v5870_v61 = vpop.permute.xlu1 %5869  ;;  %v5940_v42 = vadd.f32 %v5912_v25, %v10619_v11  ;;  %v9834_v13 = vld [vmem:[#allocation2 + $0x1ec] ss:$16 sps:$4 sm:$0xff]  }
 0x619   : > { %6214 = vmatprep.subr.bf16.mxu1 %v9830_v31  ;;  %v5893_v31 = vmul.f32 %v5866_v3, %v10585_v49  ;;  %v5842_v22 = vadd.f32 %v5814_v63, %v5758_v1  ;;  %v5897_v58 = vmul.f32 %v5870_v61, %v10585_v49  ;;  %v5898_v0 = vmul.f32 %v5870_v61, %v10588_v50 }
 0x61a   : > { %v5840_v47 = vadd.f32 %v5812_v59, %v5756_v60  ;;  %v5899_v20 = vmul.f32 %v5870_v61, %v10591_v51  ;;  %v5913_v59 = vadd.f32 %v5885_v16, %v11584_v5  ;;  %v5917_v60 = vadd.f32 %v5889_v6, %v5833_v2 }
 0x61b   : > { %v5944_v63 = vadd.f32 %v5916_v55, %v10619_v11  ;;  %v11628_v1 = vadd.f32 %v5898_v0, %v5842_v22  ;;  %v5925_v16 = vadd.f32 %v5897_v58, %v5841_v17  ;;  %v5920_v25 = vadd.f32 %v5892_v34, %v5836_v62  ;;  %v9835_v22 = vld [vmem:[#allocation2 + $0x1e8] ss:$16 sps:$4 sm:$0xff]  }
 0x61c   : > { %6215 = vmatpush1.bf16.msra.mxu1 %v9831_v57  ;;  %v5896_v57 = vmul.f32 %v5870_v61, %v10582_v48  ;;  %v11630_v7 = vadd.f32 %v5899_v20, %v5843_v33  ;;  %v11634_v61 = vadd.f32 %v5895_v28, %v5839_v30  ;;  %v11636_v3 = vpop.permute.xlu1 %5733  ;;  %v5921_v2 = vadd.f32 %v5893_v31, %v5837_v27  ;;  %v11644_v30 = vpop.permute.xlu0 %5789 }
 0x61d   : > { %6216 = vmatprep.subr.bf16.mxu1 %v9832_v32  ;;  %v11632_v32 = vadd.f32 %v5894_v54, %v5838_v41  ;;  %v5760_v55 = vmul.f32 %v11636_v3, %v10568_v43  ;;  %v5761_v6 = vmul.f32 %v11636_v3, %v10571_v44  ;;  %v5941_v33 = vadd.f32 %v5913_v59, %v10613_v9  ;;  %v9837_v54 = vld [vmem:[#allocation2 + $0x1c8] ss:$16 sps:$4 sm:$0xff]  }
 0x61e   : > { %v5924_v5 = vadd.f32 %v5896_v57, %v5840_v47  ;;  %v5945_v41 = vadd.f32 %v5917_v60, %v10613_v9  ;;  %vm5968_vm11 = vcmp.gt.f32.partialorder %v5940_v42, 0.0  ;;  %vm5972_vm14 = vcmp.gt.f32.partialorder %v5944_v63, 0.0  ;;  %v9836_v47 = vld [vmem:[#allocation2 + $0x1cc] ss:$16 sps:$4 sm:$0xff]  }
 0x61f   : > { %v5996_v62 = vmul.f32 0.2, %v5940_v42  ;;  %v6000_v27 = vmul.f32 0.2, %v5944_v63  ;;  %v5816_v43 = vmul.f32 %v11644_v30, %v10556_v37  ;;  %v5817_v44 = vmul.f32 %v11644_v30, %v10559_v38 }
 0x620   : > { %6217 = vmatpush1.bf16.msra.mxu1 %v9833_v4  ;;  %vm5969_vm15 = vcmp.gt.f32.partialorder %v5941_v33, 0.0  ;;  %vm5973_vm0 = vcmp.gt.f32.partialorder %v5945_v41, 0.0  ;;  %v5997_v17 = vmul.f32 0.2, %v5941_v33  ;;  %v6001_v34 = vmul.f32 0.2, %v5945_v41  ;;  %v11652_v20 = vpop.permute.xlu1 %5873 }
 0x621   : > { %6218 = vmatprep.subr.bf16.mxu1 %v9834_v13  ;;  %v5952_v31 = vadd.f32 %v5924_v5, %v10619_v11  ;;  %v5948_v57 = vadd.f32 %v5920_v25, %v10619_v11  ;;  %v6024_v58 = vsel %vm5968_vm11, %v5940_v42, %v5996_v62  ;;  %v6028_v0 = vsel %vm5972_vm14, %v5944_v63, %v6000_v27  ;;  %v9838_v4 = vld [vmem:[#allocation2 + $0x1ac] ss:$16 sps:$4 sm:$0xff]  }
 0x622   : > { %v6025_v28 = vsel %vm5969_vm15, %v5941_v33, %v5997_v17  ;;  %v6029_v59 = vsel %vm5973_vm0, %v5945_v41, %v6001_v34  ;;  %v11654_v37 = vpack.c.bf16 %v6028_v0, %v6024_v58  ;;  %v5844_v60 = vadd.f32 %v5816_v43, %v5760_v55  ;;  %v9839_v33 = vld [vmem:[#allocation2 + $0x1a8] ss:$16 sps:$4 sm:$0xff]   ;;  %v9840_v41 = vld [vmem:[#allocation2 + $0x18c] ss:$16 sps:$4 sm:$0xff]  }
 0x623   : > { %v11656_v38 = vpack.c.bf16 %v6029_v59, %v6025_v28  ;;  %v5845_v13 = vadd.f32 %v5817_v44, %v5761_v6  ;;  %v5900_v5 = vmul.f32 %v11652_v20, %v10582_v48  ;;  %v5901_v42 = vmul.f32 %v11652_v20, %v10585_v49  ;;  %v9841_v34 = vld [vmem:[#allocation2 + $0x188] ss:$16 sps:$4 sm:$0xff]   ;;  %v9844_v59 = vld [vmem:[#allocation2 + $0x14c] ss:$16 sps:$4 sm:$0xff]  }
 0x624   : > { %6219 = vmatpush2.bf16.msra.mxu1 %v9835_v22  ;;  %v5949_v63 = vadd.f32 %v5921_v2, %v10613_v9  ;;  %v5953_v25 = vadd.f32 %v5925_v16, %v10613_v9  ;;  %vm5976_vm1 = vcmp.gt.f32.partialorder %v5948_v57, 0.0  ;;  %vm5980_vm2 = vcmp.gt.f32.partialorder %v5952_v31, 0.0 }
 0x625   : > { %6220 = vmatprep.subr.bf16.mxu1 %v9836_v47  ;;  %6102 = vmatprep.mubr.bf16.mxu1 %v11656_v38  ;;  %v5928_v55 = vadd.f32 %v5900_v5, %v5844_v60  ;;  %v5929_v22 = vadd.f32 %v5901_v42, %v5845_v13  ;;  %v6004_v47 = vmul.f32 0.2, %v5948_v57  ;;  %v6008_v2 = vmul.f32 0.2, %v5952_v31  ;;  %v9846_v13 = vld [vmem:[#allocation2 + $0x12c] ss:$16 sps:$4 sm:$0xff]  }
 0x626   : > { %6103 = vmatmul.mubr.bf16.gmra.mxu1 %v11654_v37  ;;  %vm5977_vm3 = vcmp.gt.f32.partialorder %v5949_v63, 0.0  ;;  %vm5981_vm4 = vcmp.gt.f32.partialorder %v5953_v25, 0.0  ;;  %v6005_v48 = vmul.f32 0.2, %v5949_v63  ;;  %v6009_v6 = vmul.f32 0.2, %v5953_v25 }
 0x627   : > { %v5956_v49 = vadd.f32 %v5928_v55, %v10619_v11  ;;  %v5957_v27 = vadd.f32 %v5929_v22, %v10613_v9  ;;  %v6032_v44 = vsel %vm5976_vm1, %v5948_v57, %v6004_v47  ;;  %v6036_v17 = vsel %vm5980_vm2, %v5952_v31, %v6008_v2  ;;  %v9842_v11 = vld [vmem:[#allocation2 + $0x16c] ss:$16 sps:$4 sm:$0xff]   ;;  %v9843_v57 = vld [vmem:[#allocation2 + $0x168] ss:$16 sps:$4 sm:$0xff]   ;;  %v9853_v2 = vld [vmem:[#allocation4 + $0xc0] ss:$16 sps:$4 sm:$0xff]  }
 0x628   : > { %6221 = vmatpush2.bf16.msra.mxu1 %v9837_v54  ;;  %v6033_v62 = vsel %vm5977_vm3, %v5949_v63, %v6005_v48  ;;  %v6037_v16 = vsel %vm5981_vm4, %v5953_v25, %v6009_v6  ;;  %v11672_v58 = vpack.c.bf16 %v6036_v17, %v6032_v44  ;;  %v9847_v5 = vld [vmem:[#allocation2 + $0x128] ss:$16 sps:$4 sm:$0xff]   ;;  %v9848_v42 = vld [vmem:[#allocation2 + $0x10c] ss:$16 sps:$4 sm:$0xff]   ;;  %v5935_v63 = vadd.f32 %v11549_v36, %v10616_v10  ;;  %v9851_v36 = vld [vmem:[#allocation4 + $0xe0] ss:$16 sps:$4 sm:$0xff]  }
 0x629   : > { %6222 = vmatprep.subr.bf16.mxu1 %v9838_v4  ;;  %v11668_v43 = vpack.c.bf16 %v6037_v16, %v6033_v62  ;;  %v6013_v0 = vmul.f32 0.2, %v5957_v27  ;;  %vm5985_vm5 = vcmp.gt.f32.partialorder %v5957_v27, 0.0  ;;  %v6012_v54 = vmul.f32 0.2, %v5956_v49 }
 0x62a   : > { %vm5984_vm6 = vcmp.gt.f32.partialorder %v5956_v49, 0.0  ;;  %v9845_v4 = vld [vmem:[#allocation2 + $0x148] ss:$16 sps:$4 sm:$0xff]   ;;  %v5939_v25 = vadd.f32 %v11543_v29, %v10616_v10  ;;  %vm5963_vm7 = vcmp.gt.f32.partialorder %v5935_v63, 0.0  ;;  %v5991_v55 = vmul.f32 0.2, %v5935_v63 }
 0x62b   : > { %6112 = vmatprep.mubr.bf16.mxu1 %v11668_v43  ;;  %v6041_v28 = vsel %vm5985_vm5, %v5957_v27, %v6013_v0  ;;  %v6040_v31 = vsel %vm5984_vm6, %v5956_v49, %v6012_v54  ;;  %v9850_v49 = vld [vmem:[#allocation4 + $0xe4] ss:$16 sps:$4 sm:$0xff]   ;;  %v5942_v29 = vadd.f32 %v11577_v26, %v10622_v12  ;;  %v5946_v47 = vadd.f32 %v11602_v14, %v10622_v12  ;;  %v9855_v14 = vld [vmem:[#allocation4 + $0xa0] ss:$16 sps:$4 sm:$0xff]  }
 0x62c   : > { %6223 = vmatpush2.bf16.msra.mxu1 %v9839_v33  ;;  %v11676_v9 = vpack.c.bf16 %v6041_v28, %v6041_v28  ;;  %v11679_v60 = vpack.c.bf16 %v6040_v31, %v6040_v31  ;;  %vm5967_vm8 = vcmp.gt.f32.partialorder %v5939_v25, 0.0  ;;  %v5995_v22 = vmul.f32 0.2, %v5939_v25  ;;  %v9849_v33 = vld [vmem:[#allocation2 + $0x108] ss:$16 sps:$4 sm:$0xff]  }
 0x62d   : > { %6224 = vmatprep.subr.bf16.mxu1 %v9840_v41  ;;  %v6019_v48 = vsel %vm5963_vm7, %v5935_v63, %v5991_v55  ;;  %v5943_v62 = vadd.f32 %v11579_v23, %v10616_v10  ;;  %v9854_v16 = vld [vmem:[#allocation4 + $0xa4] ss:$16 sps:$4 sm:$0xff]   ;;  %v5998_v44 = vmul.f32 0.2, %v5942_v29  ;;  %vm5970_vm11 = vcmp.gt.f32.partialorder %v5942_v29, 0.0 }
 0x62e   : > { %6113 = vmatmul.mubr.bf16.gmra.mxu1 %v11672_v58  ;;  %v6023_v6 = vsel %vm5967_vm8, %v5939_v25, %v5995_v22  ;;  %vm5974_vm14 = vcmp.gt.f32.partialorder %v5946_v47, 0.0  ;;  %v6002_v17 = vmul.f32 0.2, %v5946_v47  ;;  %v9857_v54 = vld [vmem:[#allocation4 + $0x80] ss:$16 sps:$4 sm:$0xff]   ;;  %v5954_v31 = vadd.f32 %v11628_v1, %v10622_v12 }
 0x62f   : > { %6122 = vmatprep.mubr.bf16.mxu1 %v11676_v9  ;;  %v11687_v41 = vpack.c.bf16 %v6023_v6, %v6019_v48  ;;  %vm5971_vm9 = vcmp.gt.f32.partialorder %v5943_v62, 0.0  ;;  %v9858_v28 = vld [vmem:[#allocation4 + $0x64] ss:$16 sps:$4 sm:$0xff]   ;;  %v9863_v1 = vld [vmem:[#allocation4 + $0x20] ss:$16 sps:$4 sm:$0xff]  }
 0x630   : > { %6225 = vmatpush2.bf16.msra.mxu1 %v9841_v34  ;;  %v6026_v34 = vsel %vm5970_vm11, %v5942_v29, %v5998_v44  ;;  %vm5982_vm0 = vcmp.gt.f32.partialorder %v5954_v31, 0.0  ;;  %v9864_v25 = vld [vmem:[#allocation4 + $0x4] ss:$16 sps:$4 sm:$0xff]   ;;  %v9865_v6 = vld [vmem:[#allocation4] ss:$16 sps:$4 sm:$0xff]  }
 0x631   : > { %6226 = vmatprep.subr.bf16.mxu1 %v9842_v11  ;;  %v9870_v29 = vld [vmem:[#allocation4 + $0x1a4] ss:$16 sps:$4 sm:$0xff]  }
 0x632   : > { %v9878_v44 = vld [vmem:[#allocation4 + $0x124] ss:$16 sps:$4 sm:$0xff]  }
 0x634   : > { %6227 = vmatpush2.bf16.msra.mxu1 %v9843_v57  ;;  %v9860_v57 = vld [vmem:[#allocation4 + $0x44] ss:$16 sps:$4 sm:$0xff]  }
 0x635   : > { %6228 = vmatprep.subr.bf16.mxu1 %v9844_v59  ;;  %v5950_v59 = vadd.f32 %v11632_v32, %v10622_v12 }
 0x636   : > { %6123 = vmatmul.mubr.bf16.gmra.mxu1 %v11679_v60 }
 0x637   : > { %6234 = vmatprep.mubr.bf16.mxu1 %v11560_v35  ;;  %v9852_v35 = vld [vmem:[#allocation4 + $0xc4] ss:$16 sps:$4 sm:$0xff]   ;;  %vm5978_vm15 = vcmp.gt.f32.partialorder %v5950_v59, 0.0 }
 0x638   : > { %6229 = vmatpush2.bf16.msra.mxu1 %v9845_v4  ;;  %v9861_v4 = vld [vmem:[#allocation4 + $0x40] ss:$16 sps:$4 sm:$0xff]  }
 0x639   : > { %6230 = vmatprep.subr.bf16.mxu1 %v9846_v13  ;;  %v9862_v13 = vld [vmem:[#allocation4 + $0x24] ss:$16 sps:$4 sm:$0xff]  }
 0x63c   : > { %6231 = vmatpush2.bf16.msra.mxu1 %v9847_v5  ;;  %v5951_v5 = vadd.f32 %v11634_v61, %v10616_v10 }
 0x63d   : > { %6232 = vmatprep.subr.bf16.mxu1 %v9848_v42  ;;  %v6010_v42 = vmul.f32 0.2, %v5954_v31 }
 0x63e   : > { %vm5979_vm1 = vcmp.gt.f32.partialorder %v5951_v5, 0.0  ;;  %v6007_v32 = vmul.f32 0.2, %v5951_v5 }
 0x63f   : > { %v6038_v22 = vsel %vm5982_vm0, %v5954_v31, %v6010_v42 }
 0x640   : > { %6233 = vmatpush2.bf16.msra.mxu1 %v9849_v33  ;;  %v6035_v61 = vsel %vm5979_vm1, %v5951_v5, %v6007_v32  ;;  %v12770_v32 = vmov 0.0  }
 0x641   : > { %6408 = vmatprep.subr.bf16.mxu1 %v9850_v49  ;;  %v9867_v49 = vld [vmem:[#allocation4 + $0x1e0] ss:$16 sps:$4 sm:$0xff]  }
 0x643   : > { %6235 = vmatmul.mubr.bf16.vlgmr.msra.gmra.mxu1 %v11564_v18  ;;  %v5947_v18 = vadd.f32 %v11604_v56, %v10616_v10  ;;  %v9856_v56 = vld [vmem:[#allocation4 + $0x84] ss:$16 sps:$4 sm:$0xff]  }
 0x644   : > { %6244 = vmatprep.mubr.bf16.mxu1 %v11656_v38  ;;  %6409 = vmatpush1.bf16.msra.mxu1 %v9851_v36  ;;  %v5999_v38 = vmul.f32 0.2, %v5943_v62  ;;  %v9868_v36 = vld [vmem:[#allocation4 + $0x1c4] ss:$16 sps:$4 sm:$0xff]  }
 0x645   : > { %6410 = vmatprep.subr.bf16.mxu1 %v9852_v35  ;;  %v6003_v27 = vmul.f32 0.2, %v5947_v18  ;;  %vm5975_vm10 = vcmp.gt.f32.partialorder %v5947_v18, 0.0  ;;  %v9869_v35 = vld [vmem:[#allocation4 + $0x1c0] ss:$16 sps:$4 sm:$0xff]  }
 0x646   : > { %v6027_v26 = vsel %vm5971_vm9, %v5943_v62, %v5999_v38  ;;  %v9873_v62 = vld [vmem:[#allocation4 + $0x180] ss:$16 sps:$4 sm:$0xff]   ;;  %v9876_v38 = vld [vmem:[#allocation4 + $0x144] ss:$16 sps:$4 sm:$0xff]  }
 0x647   : > { %v6031_v23 = vsel %vm5975_vm10, %v5947_v18, %v6003_v27  ;;  %v9874_v18 = vld [vmem:[#allocation4 + $0x164] ss:$16 sps:$4 sm:$0xff]   ;;  %v9877_v27 = vld [vmem:[#allocation4 + $0x140] ss:$16 sps:$4 sm:$0xff]  }
 0x648   : > { %6411 = vmatpush1.bf16.msra.mxu1 %v9853_v2  ;;  %v11701_v0 = vpack.c.bf16 %v6031_v23, %v6027_v26  ;;  %v9872_v2 = vld [vmem:[#allocation4 + $0x184] ss:$16 sps:$4 sm:$0xff]   ;;  %v9881_v23 = vld [vmem:[#allocation4 + $0x100] ss:$16 sps:$4 sm:$0xff]  }
 0x649   : > { %6412 = vmatprep.subr.bf16.mxu1 %v9854_v16  ;;  %v9875_v16 = vld [vmem:[#allocation4 + $0x160] ss:$16 sps:$4 sm:$0xff]   ;;  %v9880_v26 = vld [vmem:[#allocation4 + $0x104] ss:$16 sps:$4 sm:$0xff]  }
 0x64b   : > { %6245 = vmatmul.mubr.bf16.gmra.mxu1 %v11654_v37  ;;  %v6030_v37 = vsel %vm5974_vm14, %v5946_v47, %v6002_v17  ;;  %v9871_v47 = vld [vmem:[#allocation4 + $0x1a0] ss:$16 sps:$4 sm:$0xff]  }
 0x64c   : > { %6254 = vmatprep.mubr.bf16.mxu1 %v11668_v43  ;;  %6413 = vmatpush1.bf16.msra.mxu1 %v9855_v14  ;;  %v11703_v11 = vpack.c.bf16 %v6030_v37, %v6026_v34  ;;  %v9859_v43 = vld [vmem:[#allocation4 + $0x60] ss:$16 sps:$4 sm:$0xff]   ;;  %v9882_v34 = vld [vmem:[#allocation4 + $0xec] ss:$16 sps:$4 sm:$0xff]  }
 0x64d   : > { %6414 = vmatprep.subr.bf16.mxu1 %v9856_v56  ;;  %v9879_v14 = vld [vmem:[#allocation4 + $0x120] ss:$16 sps:$4 sm:$0xff]  }
 0x64e   : > { %v11723_v56 = vld [vmem:[%s12687_s15] ss:$0 sm:$0xff] }
 0x650   : > { %6415 = vmatpush1.bf16.msra.mxu1 %v9857_v54 }
 0x651   : > { %6416 = vmatprep.subr.bf16.mxu1 %v9858_v28 }
 0x653   : > { %6255 = vmatmul.mubr.bf16.gmra.mxu1 %v11672_v58  ;;  %v5955_v58 = vadd.f32 %v11630_v7, %v10616_v10 }
 0x654   : > { %6264 = vmatprep.mubr.bf16.mxu1 %v11676_v9  ;;  %6417 = vmatpush1.bf16.msra.mxu1 %v9859_v43  ;;  %v6006_v9 = vmul.f32 0.2, %v5950_v59 }
 0x655   : > { %6418 = vmatprep.subr.bf16.mxu1 %v9860_v57  ;;  %vm5983_vm2 = vcmp.gt.f32.partialorder %v5955_v58, 0.0  ;;  %v6011_v63 = vmul.f32 0.2, %v5955_v58 }
 0x656   : > { %v6034_v55 = vsel %vm5978_vm15, %v5950_v59, %v6006_v9 }
 0x657   : > { %v6039_v33 = vsel %vm5983_vm2, %v5955_v58, %v6011_v63  ;;  %v11716_v48 = vpack.c.bf16 %v6038_v22, %v6034_v55 }
 0x658   : > { %6419 = vmatpush1.bf16.msra.mxu1 %v9861_v4  ;;  %v11718_v7 = vpack.c.bf16 %v6039_v33, %v6035_v61  ;;  %v9885_v33 = vld [vmem:[#allocation2 + $0x2c0] ss:$16 sps:$4 sm:$0xff]  }
 0x659   : > { %6420 = vmatprep.subr.bf16.mxu1 %v9862_v13 }
 0x65b   : > { %6265 = vmatmul.mubr.bf16.gmra.mxu1 %v11679_v60  ;;  %v9866_v60 = vld [vmem:[#allocation4 + $0x1e4] ss:$16 sps:$4 sm:$0xff]  }
 0x65c   : > { %6421 = vmatpush1.bf16.msra.mxu1 %v9863_v1  ;;  %v9883_v1 = vld [vmem:[#allocation2 + $0x2e0] ss:$16 sps:$4 sm:$0xff]  }
 0x65d   : > { %6422 = vmatprep.subr.bf16.mxu1 %v9864_v25  ;;  %v9884_v25 = vld [vmem:[#allocation2 + $0x2c4] ss:$16 sps:$4 sm:$0xff]  }
 0x660   : > { %6423 = vmatpush1.bf16.msra.mxu1 %v9865_v6  ;;  %v9886_v6 = vld [vmem:[#allocation2 + $0x2a4] ss:$16 sps:$4 sm:$0xff]  }
 0x661   : > { %6424 = vmatprep.subr.bf16.mxu1 %v9866_v60 }
 0x664   : > { %6425 = vmatpush2.bf16.msra.mxu1 %v9867_v49 }
 0x665   : > { %6426 = vmatprep.subr.bf16.mxu1 %v9868_v36 }
 0x668   : > { %6427 = vmatpush2.bf16.msra.mxu1 %v9869_v35  ;;  %v9887_v35 = vld [vmem:[#allocation2 + $0x2a0] ss:$16 sps:$4 sm:$0xff]  }
 0x669   : > { %6428 = vmatprep.subr.bf16.mxu1 %v9870_v29 }
 0x66c   : > { %6429 = vmatpush2.bf16.msra.mxu1 %v9871_v47 }
 0x66d   : > { %6430 = vmatprep.subr.bf16.mxu1 %v9872_v2  ;;  %v9888_v2 = vld [vmem:[#allocation2 + $0x284] ss:$16 sps:$4 sm:$0xff]  }
 0x670   : > { %6431 = vmatpush2.bf16.msra.mxu1 %v9873_v62 }
 0x671   : > { %6432 = vmatprep.subr.bf16.mxu1 %v9874_v18 }
 0x674   : > { %6433 = vmatpush2.bf16.msra.mxu1 %v9875_v16 }
 0x675   : > { %6434 = vmatprep.subr.bf16.mxu1 %v9876_v38  ;;  %v9889_v38 = vld [vmem:[#allocation2 + $0x280] ss:$16 sps:$4 sm:$0xff]  }
 0x678   : > { %6435 = vmatpush2.bf16.msra.mxu1 %v9877_v27 }
 0x679   : > { %6436 = vmatprep.subr.bf16.mxu1 %v9878_v44  ;;  %v9890_v44 = vld [vmem:[#allocation2 + $0x264] ss:$16 sps:$4 sm:$0xff]  }
 0x67c   : > { %6437 = vmatpush2.bf16.msra.mxu1 %v9879_v14 }
 0x67d   : > { %6438 = vmatprep.subr.bf16.mxu1 %v9880_v26 }
 0x680   : > { %6439 = vmatpush2.bf16.msra.mxu1 %v9881_v23 }
 0x681   : > { %6550 = vmatprep.subr.bf16.mxu1 %v9882_v34 }
 0x682   : > { %v5289_v17 = vpop.f32.mrf.mxu1 }
 0x683   : > { %v5290_v28 = vadd.f32 %v11723_v56, %v5289_v17 }
 0x684   : > { %v8705_v37 = vpop.f32.mrf.mxu1 }
 0x685   : > { %v9891_v37 = vld [vmem:[#allocation2 + $0x260] ss:$16 sps:$4 sm:$0xff]  }
 0x686   : > { %v5292_v54 = vpop.f32.mrf.mxu1 }
 0x687   : > { %v5293_v43 = vadd.f32 %v11723_v56, %v5292_v54 }
 0x688   : > { %v8706_v57 = vpop.f32.mrf.mxu1 }
 0x689   : > { %v5344_v31 = vpack.c.bf16 %v5293_v43, %v5290_v28  ;;  %v9892_v28 = vld [vmem:[#allocation2 + $0x244] ss:$16 sps:$4 sm:$0xff]  }
 0x68a   : > { %v5297_v59 = vpop.f32.mrf.mxu1 }
 0x68b   : > { %vm5351_vm3 = vcmp.gt.bf16.partialorder %v5344_v31, 0  ;;  %v5358_v4 = vmul.bf16 1045249613, %v5344_v31  ;;  %v5298_v9 = vadd.f32 %v11723_v56, %v5297_v59  ;;  %v9893_v59 = vld [vmem:[#allocation2 + $0x240] ss:$16 sps:$4 sm:$0xff]  }
 0x68c   : > { %v8709_v13 = vpop.f32.mrf.mxu1 }
 0x68d   : > { %v5365_v5 = vsel %vm5351_vm3, %v5344_v31, %v5358_v4  ;;  %v9894_v13 = vld [vmem:[#allocation2 + $0x224] ss:$16 sps:$4 sm:$0xff]  }
 0x68e   : > { %v5300_v58 = vpop.f32.mrf.mxu1  ;;  %8748 = vmatmul.mubr.bf16.vlgmr.msra.gmra.mxu0 %v5365_v5 }
 0x68f   : > { %v5301_v42 = vadd.f32 %v11723_v56, %v5300_v58  ;;  %6132 = vmatpush1.bf16.msra.mxu0 %v9883_v1  ;;  %8751 = vmatprep.mubr.msk.bf16.mxu0 %vm10326_vm12, %v12770_v32  ;;  %v9895_v1 = vld [vmem:[#allocation2 + $0x220] ss:$16 sps:$4 sm:$0xff]  }
 0x690   : > { %v8710_v63 = vpop.f32.mrf.mxu1  ;;  %6133 = vmatprep.subr.bf16.mxu0 %v9884_v25  ;;  %v9896_v25 = vld [vmem:[#allocation2 + $0x204] ss:$16 sps:$4 sm:$0xff]  }
 0x691   : > { %v5345_v55 = vpack.c.bf16 %v5301_v42, %v5298_v9 }
 0x693   : > { %v5359_v22 = vmul.bf16 1045249613, %v5345_v55  ;;  %v5305_v61 = vpop.f32.mrf.mxu1  ;;  %6134 = vmatpush1.bf16.msra.mxu0 %v9885_v33  ;;  %vm5352_vm4 = vcmp.gt.bf16.partialorder %v5345_v55, 0  ;;  %v9897_v33 = vld [vmem:[#allocation2 + $0x200] ss:$16 sps:$4 sm:$0xff]  }
 0x694   : > { %6135 = vmatprep.subr.bf16.mxu0 %v9886_v6  ;;  %v5306_v29 = vadd.f32 %v11723_v56, %v5305_v61 }
 0x695   : > { %v8713_v60 = vpop.f32.mrf.mxu1  ;;  %v5366_v49 = vsel %vm5352_vm4, %v5345_v55, %v5359_v22 }
 0x696   : > { %8752 = vmatmul.mubr.bf16.gmra.mxu0 %v5366_v49  ;;  %v9898_v60 = vld [vmem:[#allocation2 + $0x3e4] ss:$16 sps:$4 sm:$0xff]  }
 0x697   : > { %v5308_v36 = vpop.f32.mrf.mxu1  ;;  %6136 = vmatpush1.bf16.msra.mxu0 %v9887_v35  ;;  %8755 = vmatprep.mubr.msk.bf16.mxu0 %vm10326_vm12, %v12770_v32 }
 0x698   : > { %v5309_v47 = vadd.f32 %v11723_v56, %v5308_v36  ;;  %6137 = vmatprep.subr.bf16.mxu0 %v9888_v2 }
 0x699   : > { %v8714_v62 = vpop.f32.mrf.mxu1 }
 0x69a   : > { %v5346_v18 = vpack.c.bf16 %v5309_v47, %v5306_v29  ;;  %v9899_v47 = vld [vmem:[#allocation2 + $0x3e0] ss:$16 sps:$4 sm:$0xff]   ;;  %v9900_v62 = vld [vmem:[#allocation2 + $0x3c4] ss:$16 sps:$4 sm:$0xff]  }
 0x69b   : > { %v5313_v16 = vpop.f32.mrf.mxu1  ;;  %6138 = vmatpush1.bf16.msra.mxu0 %v9889_v38 }
 0x69c   : > { %v5360_v27 = vmul.bf16 1045249613, %v5346_v18  ;;  %6139 = vmatprep.subr.bf16.mxu0 %v9890_v44  ;;  %vm5353_vm5 = vcmp.gt.bf16.partialorder %v5346_v18, 0  ;;  %v5314_v17 = vadd.f32 %v11723_v56, %v5313_v16 }
 0x69d   : > { %v8717_v14 = vpop.f32.mrf.mxu1 }
 0x69e   : > { %v5367_v26 = vsel %vm5353_vm5, %v5346_v18, %v5360_v27  ;;  %v9901_v27 = vld [vmem:[#allocation2 + $0x3c0] ss:$16 sps:$4 sm:$0xff]   ;;  %v9902_v14 = vld [vmem:[#allocation2 + $0x3a4] ss:$16 sps:$4 sm:$0xff]  }
 0x69f   : > { %v5316_v23 = vpop.f32.mrf.mxu1  ;;  %8756 = vmatmul.mubr.bf16.gmra.mxu0 %v5367_v26 }
 0x6a0   : > { %v5317_v34 = vadd.f32 %v11723_v56, %v5316_v23  ;;  %6140 = vmatpush1.bf16.msra.mxu0 %v9891_v37  ;;  %8759 = vmatprep.mubr.msk.bf16.mxu0 %vm10326_vm12, %v12770_v32  ;;  %v9903_v37 = vld [vmem:[#allocation2 + $0x3a0] ss:$16 sps:$4 sm:$0xff]  }
 0x6a1   : > { %v8718_v54 = vpop.f32.mrf.mxu1  ;;  %6141 = vmatprep.subr.bf16.mxu0 %v9892_v28  ;;  %v9904_v28 = vld [vmem:[#allocation2 + $0x384] ss:$16 sps:$4 sm:$0xff]  }
 0x6a2   : > { %v5347_v43 = vpack.c.bf16 %v5317_v34, %v5314_v17 }
 0x6a3   : > { %v5321_v57 = vpop.f32.mrf.mxu1 }
 0x6a4   : > { %v5361_v31 = vmul.bf16 1045249613, %v5347_v43  ;;  %6142 = vmatpush1.bf16.msra.mxu0 %v9893_v59  ;;  %vm5354_vm6 = vcmp.gt.bf16.partialorder %v5347_v43, 0  ;;  %v5322_v9 = vadd.f32 %v11723_v56, %v5321_v57  ;;  %v9906_v59 = vld [vmem:[#allocation2 + $0x364] ss:$16 sps:$4 sm:$0xff]  }
 0x6a5   : > { %v8721_v4 = vpop.f32.mrf.mxu1  ;;  %6143 = vmatprep.subr.bf16.mxu0 %v9894_v13  ;;  %v9907_v13 = vld [vmem:[#allocation2 + $0x360] ss:$16 sps:$4 sm:$0xff]  }
 0x6a6   : > { %v5368_v5 = vsel %vm5354_vm6, %v5347_v43, %v5361_v31  ;;  %v9905_v31 = vld [vmem:[#allocation2 + $0x380] ss:$16 sps:$4 sm:$0xff]  }
 0x6a7   : > { %v5324_v58 = vpop.f32.mrf.mxu1  ;;  %8760 = vmatmul.mubr.bf16.gmra.mxu0 %v5368_v5  ;;  %v9909_v5 = vld [vmem:[#allocation2 + $0x340] ss:$16 sps:$4 sm:$0xff]  }
 0x6a8   : > { %v5325_v42 = vadd.f32 %v11723_v56, %v5324_v58  ;;  %6144 = vmatpush1.bf16.msra.mxu0 %v9895_v1  ;;  %8763 = vmatprep.mubr.msk.bf16.mxu0 %vm10326_vm12, %v12770_v32  ;;  %v5763_v58 = vmul.f32 %v11636_v3, %v10577_v46  ;;  %v9911_v1 = vld [vmem:[#allocation2 + $0x320] ss:$16 sps:$4 sm:$0xff]  }
 0x6a9   : > { %v8722_v63 = vpop.f32.mrf.mxu1  ;;  %6145 = vmatprep.subr.bf16.mxu0 %v9896_v25  ;;  %v5903_v25 = vmul.f32 %v11652_v20, %v10591_v51  ;;  %v9913_v46 = vld [vmem:[#allocation2 + $0x300] ss:$16 sps:$4 sm:$0xff]   ;;  %v9915_v51 = vld [vmem:[#allocation2 + $0x2e8] ss:$16 sps:$4 sm:$0xff]  }
 0x6aa   : > { %v5348_v55 = vpack.c.bf16 %v5325_v42, %v5322_v9  ;;  %v5819_v9 = vmul.f32 %v11644_v30, %v10565_v40  ;;  %v9910_v42 = vld [vmem:[#allocation2 + $0x324] ss:$16 sps:$4 sm:$0xff]   ;;  %v9914_v40 = vld [vmem:[#allocation2 + $0x2ec] ss:$16 sps:$4 sm:$0xff]  }
 0x6ab   : > { %v5329_v22 = vpop.f32.mrf.mxu1 }
 0x6ac   : > { %v5362_v61 = vmul.bf16 1045249613, %v5348_v55  ;;  %6146 = vmatpush1.bf16.msra.mxu0 %v9897_v33  ;;  %vm5355_vm7 = vcmp.gt.bf16.partialorder %v5348_v55, 0  ;;  %v5330_v35 = vadd.f32 %v11723_v56, %v5329_v22  ;;  %v5847_v63 = vadd.f32 %v5819_v9, %v5763_v58  ;;  %v9935_v9 = vld [vmem:[#allocation2 + $0x3a8] ss:$16 sps:$4 sm:$0xff]  }
 0x6ad   : > { %v8725_v6 = vpop.f32.mrf.mxu1  ;;  %6147 = vmatprep.subr.bf16.mxu0 %v9898_v60  ;;  %v5762_v22 = vmul.f32 %v11636_v3, %v10574_v45  ;;  %v5902_v60 = vmul.f32 %v11652_v20, %v10588_v50  ;;  %v9917_v3 = vld [vmem:[#allocation2 + $0x2c8] ss:$16 sps:$4 sm:$0xff]   ;;  %v9920_v20 = vld [vmem:[#allocation2 + $0x28c] ss:$16 sps:$4 sm:$0xff]  }
 0x6ae   : > { %v5369_v49 = vsel %vm5355_vm7, %v5348_v55, %v5362_v61  ;;  %v9912_v55 = vld [vmem:[#allocation2 + $0x304] ss:$16 sps:$4 sm:$0xff]   ;;  %v5818_v61 = vmul.f32 %v11644_v30, %v10562_v39  ;;  %v5931_v33 = vadd.f32 %v5903_v25, %v5847_v63  ;;  %v9918_v30 = vld [vmem:[#allocation2 + $0x2ac] ss:$16 sps:$4 sm:$0xff]   ;;  %v9919_v50 = vld [vmem:[#allocation2 + $0x2a8] ss:$16 sps:$4 sm:$0xff]  }
 0x6af   : > { %v5332_v36 = vpop.f32.mrf.mxu1  ;;  %8764 = vmatmul.mubr.bf16.gmra.mxu0 %v5369_v49  ;;  %v9916_v49 = vld [vmem:[#allocation2 + $0x2cc] ss:$16 sps:$4 sm:$0xff]   ;;  %v9937_v25 = vld [vmem:[#allocation2 + $0x388] ss:$16 sps:$4 sm:$0xff]  }
 0x6b0   : > { %v5333_v29 = vadd.f32 %v11723_v56, %v5332_v36  ;;  %6148 = vmatpush2.bf16.msra.mxu0 %v9899_v47  ;;  %8767 = vmatprep.mubr.msk.bf16.mxu0 %vm10326_vm12, %v12770_v32  ;;  %v5846_v6 = vadd.f32 %v5818_v61, %v5762_v22  ;;  %v5959_v45 = vadd.f32 %v5931_v33, %v10616_v10  ;;  %v9921_v47 = vld [vmem:[#allocation2 + $0x288] ss:$16 sps:$4 sm:$0xff]   ;;  %v9938_v22 = vld [vmem:[#allocation2 + $0x36c] ss:$16 sps:$4 sm:$0xff]  }
 0x6b1   : > { %v8726_v2 = vpop.f32.mrf.mxu1  ;;  %6149 = vmatprep.subr.bf16.mxu0 %v9900_v62  ;;  %v9922_v62 = vld [vmem:[#allocation2 + $0x26c] ss:$16 sps:$4 sm:$0xff]  }
 0x6b2   : > { %v5349_v18 = vpack.c.bf16 %v5333_v29, %v5330_v35  ;;  %v5930_v39 = vadd.f32 %v5902_v60, %v5846_v6  ;;  %v6015_v36 = vmul.f32 0.2, %v5959_v45  ;;  %vm5987_vm10 = vcmp.gt.f32.partialorder %v5959_v45, 0.0  ;;  %v9941_v60 = vld [vmem:[#allocation2 + $0x348] ss:$16 sps:$4 sm:$0xff]  }
 0x6b3   : > { %v5337_v16 = vpop.f32.mrf.mxu1 }
 0x6b4   : > { %v5363_v38 = vmul.bf16 1045249613, %v5349_v18  ;;  %6150 = vmatpush2.bf16.msra.mxu0 %v9901_v27  ;;  %vm5356_vm8 = vcmp.gt.bf16.partialorder %v5349_v18, 0  ;;  %v5338_v17 = vadd.f32 %v11723_v56, %v5337_v16  ;;  %v5958_v35 = vadd.f32 %v5930_v39, %v10622_v12  ;;  %v9923_v12 = vld [vmem:[#allocation2 + $0x268] ss:$16 sps:$4 sm:$0xff]  }
 0x6b5   : > { %v8729_v44 = vpop.f32.mrf.mxu1  ;;  %6151 = vmatprep.subr.bf16.mxu0 %v9902_v14  ;;  %v6043_v29 = vsel %vm5987_vm10, %v5959_v45, %v6015_v36  ;;  %v9925_v14 = vld [vmem:[#allocation2 + $0x248] ss:$16 sps:$4 sm:$0xff]   ;;  %v9944_v45 = vld [vmem:[#allocation2 + $0x30c] ss:$16 sps:$4 sm:$0xff]   ;;  %v9947_v36 = vld [vmem:[#allocation4 + $0x2e0] ss:$16 sps:$4 sm:$0xff]  }
 0x6b6   : > { %v5370_v26 = vsel %vm5356_vm8, %v5349_v18, %v5363_v38  ;;  %v11770_v10 = vpack.c.bf16 %v6043_v29, %v6043_v29  ;;  %v6014_v2 = vmul.f32 0.2, %v5958_v35  ;;  %vm5986_vm11 = vcmp.gt.f32.partialorder %v5958_v35, 0.0  ;;  %v9924_v38 = vld [vmem:[#allocation2 + $0x24c] ss:$16 sps:$4 sm:$0xff]  }
 0x6b7   : > { %v5340_v23 = vpop.f32.mrf.mxu1  ;;  %8768 = vmatmul.mubr.bf16.gmra.mxu0 %v5370_v26  ;;  %v9945_v39 = vld [vmem:[#allocation2 + $0x308] ss:$16 sps:$4 sm:$0xff]  }
 0x6b8   : > { %v5341_v34 = vadd.f32 %v11723_v56, %v5340_v23  ;;  %6152 = vmatpush2.bf16.msra.mxu0 %v9903_v37  ;;  %8771 = vmatprep.mubr.msk.bf16.mxu0 %vm10326_vm12, %v12770_v32  ;;  %v9908_v56 = vld [vmem:[#allocation2 + $0x344] ss:$16 sps:$4 sm:$0xff]   ;;  %v6042_v16 = vsel %vm5986_vm11, %v5958_v35, %v6014_v2  ;;  %v9926_v23 = vld [vmem:[#allocation2 + $0x22c] ss:$16 sps:$4 sm:$0xff]   ;;  %v9951_v2 = vld [vmem:[#allocation4 + $0x2a0] ss:$16 sps:$4 sm:$0xff]  }
 0x6b9   : > { %v8730_v54 = vpop.f32.mrf.mxu1  ;;  %6153 = vmatprep.subr.bf16.mxu0 %v9904_v28  ;;  %v11778_v44 = vpack.c.bf16 %v6042_v16, %v6042_v16  ;;  %v9928_v37 = vld [vmem:[#allocation2 + $0x20c] ss:$16 sps:$4 sm:$0xff]   ;;  %v9954_v16 = vld [vmem:[#allocation4 + $0x264] ss:$16 sps:$4 sm:$0xff]  }
 0x6ba   : > { %v5350_v43 = vpack.c.bf16 %v5341_v34, %v5338_v17  ;;  %v9927_v17 = vld [vmem:[#allocation2 + $0x228] ss:$16 sps:$4 sm:$0xff]  }
 0x6bb   : > { %v9929_v54 = vld [vmem:[#allocation2 + $0x208] ss:$16 sps:$4 sm:$0xff]  }
 0x6bc   : > { %v5364_v57 = vmul.bf16 1045249613, %v5350_v43  ;;  %6154 = vmatpush2.bf16.msra.mxu0 %v9905_v31  ;;  %vm5357_vm9 = vcmp.gt.bf16.partialorder %v5350_v43, 0  ;;  %v9931_v31 = vld [vmem:[#allocation2 + $0x3e8] ss:$16 sps:$4 sm:$0xff]  }
 0x6bd   : > { %6155 = vmatprep.subr.bf16.mxu0 %v9906_v59 }
 0x6be   : > { %v5371_v4 = vsel %vm5357_vm9, %v5350_v43, %v5364_v57  ;;  %v9930_v43 = vld [vmem:[#allocation2 + $0x3ec] ss:$16 sps:$4 sm:$0xff]  }
 0x6bf   : > { %8772 = vmatmul.mubr.bf16.gmra.mxu0 %v5371_v4  ;;  %v9932_v4 = vld [vmem:[#allocation2 + $0x3cc] ss:$16 sps:$4 sm:$0xff]  }
 0x6c0   : > { %6156 = vmatpush2.bf16.msra.mxu0 %v9907_v13  ;;  %6163 = vmatprep.mubr.bf16.mxu0 %v11687_v41 }
 0x6c1   : > { %6157 = vmatprep.subr.bf16.mxu0 %v9908_v56 }
 0x6c3   : > { %v11773_v18 = vpop.f32.mrf.mxu1 }
 0x6c4   : > { %6158 = vmatpush2.bf16.msra.mxu0 %v9909_v5  ;;  %v9934_v5 = vld [vmem:[#allocation2 + $0x3ac] ss:$16 sps:$4 sm:$0xff]  }
 0x6c5   : > { %6159 = vmatprep.subr.bf16.mxu0 %v9910_v42  ;;  %v11776_v27 = vpop.f32.mrf.mxu1 }
 0x6c7   : > { %v11780_v26 = vpop.f32.mrf.mxu1 }
 0x6c8   : > { %6160 = vmatpush2.bf16.msra.mxu0 %v9911_v1  ;;  %v9936_v1 = vld [vmem:[#allocation2 + $0x38c] ss:$16 sps:$4 sm:$0xff]  }
 0x6c9   : > { %6161 = vmatprep.subr.bf16.mxu0 %v9912_v55  ;;  %v11784_v34 = vpop.f32.mrf.mxu1 }
 0x6cc   : > { %6162 = vmatpush2.bf16.msra.mxu0 %v9913_v46  ;;  %v9939_v46 = vld [vmem:[#allocation2 + $0x368] ss:$16 sps:$4 sm:$0xff]  }
 0x6cd   : > { %6273 = vmatprep.subr.bf16.mxu0 %v9914_v40  ;;  %v9940_v40 = vld [vmem:[#allocation2 + $0x34c] ss:$16 sps:$4 sm:$0xff]  }
 0x6cf   : > { %6164 = vmatmul.mubr.bf16.vlgmr.msra.gmra.mxu0 %v11556_v53 }
 0x6d0   : > { %6173 = vmatprep.mubr.bf16.mxu0 %v11701_v0  ;;  %6274 = vmatpush1.bf16.msra.mxu0 %v9915_v51  ;;  %v9942_v51 = vld [vmem:[#allocation2 + $0x32c] ss:$16 sps:$4 sm:$0xff]  }
 0x6d1   : > { %6275 = vmatprep.subr.bf16.mxu0 %v9916_v49  ;;  %v9943_v49 = vld [vmem:[#allocation2 + $0x328] ss:$16 sps:$4 sm:$0xff]  }
 0x6d4   : > { %6276 = vmatpush1.bf16.msra.mxu0 %v9917_v3 }
 0x6d5   : > { %6277 = vmatprep.subr.bf16.mxu0 %v9918_v30  ;;  %v9946_v30 = vld [vmem:[#allocation4 + $0x2e4] ss:$16 sps:$4 sm:$0xff]  }
 0x6d7   : > { %6174 = vmatmul.mubr.bf16.gmra.mxu0 %v11703_v11 }
 0x6d8   : > { %6278 = vmatpush1.bf16.msra.mxu0 %v9919_v50  ;;  %6183 = vmatprep.mubr.bf16.mxu0 %v11718_v7  ;;  %v9948_v50 = vld [vmem:[#allocation4 + $0x2c4] ss:$16 sps:$4 sm:$0xff]  }
 0x6d9   : > { %6279 = vmatprep.subr.bf16.mxu0 %v9920_v20  ;;  %v9949_v20 = vld [vmem:[#allocation4 + $0x2c0] ss:$16 sps:$4 sm:$0xff]  }
 0x6dc   : > { %6280 = vmatpush1.bf16.msra.mxu0 %v9921_v47  ;;  %v9950_v47 = vld [vmem:[#allocation4 + $0x2a4] ss:$16 sps:$4 sm:$0xff]  }
 0x6dd   : > { %6281 = vmatprep.subr.bf16.mxu0 %v9922_v62 }
 0x6df   : > { %6184 = vmatmul.mubr.bf16.gmra.mxu0 %v11716_v48 }
 0x6e0   : > { %6282 = vmatpush1.bf16.msra.mxu0 %v9923_v12  ;;  %6193 = vmatprep.mubr.bf16.mxu0 %v11770_v10  ;;  %v9953_v12 = vld [vmem:[#allocation4 + $0x280] ss:$16 sps:$4 sm:$0xff]  }
 0x6e1   : > { %6283 = vmatprep.subr.bf16.mxu0 %v9924_v38 }
 0x6e4   : > { %6284 = vmatpush1.bf16.msra.mxu0 %v9925_v14 }
 0x6e5   : > { %6285 = vmatprep.subr.bf16.mxu0 %v9926_v23  ;;  %v9957_v23 = vld [vmem:[#allocation4 + $0x240] ss:$16 sps:$4 sm:$0xff]  }
 0x6e6   : > { %v11786_v28 = vpop.f32.mrf.mxu1 }
 0x6e7   : > { %6194 = vmatmul.mubr.bf16.gmra.mxu0 %v11778_v44 }
 0x6e8   : > { %6286 = vmatpush1.bf16.msra.mxu0 %v9927_v17  ;;  %6305 = vmatprep.mubr.bf16.mxu0 %v11687_v41  ;;  %v11788_v57 = vpop.f32.mrf.mxu1  ;;  %v9933_v41 = vld [vmem:[#allocation2 + $0x3c8] ss:$16 sps:$4 sm:$0xff]   ;;  %v9958_v17 = vld [vmem:[#allocation4 + $0x224] ss:$16 sps:$4 sm:$0xff]  }
 0x6e9   : > { %6287 = vmatprep.subr.bf16.mxu0 %v9928_v37 }
 0x6ea   : > { %v11790_v59 = vpop.f32.mrf.mxu1 }
 0x6ec   : > { %6288 = vmatpush1.bf16.msra.mxu0 %v9929_v54  ;;  %v11792_v13 = vpop.f32.mrf.mxu1  ;;  %v9959_v54 = vld [vmem:[#allocation4 + $0x220] ss:$16 sps:$4 sm:$0xff]  }
 0x6ed   : > { %6289 = vmatprep.subr.bf16.mxu0 %v9930_v43  ;;  %v9960_v43 = vld [vmem:[#allocation4 + $0x204] ss:$16 sps:$4 sm:$0xff]  }
 0x6ee   : > { %v11794_v56 = vpop.f32.mrf.mxu1 }
 0x6f0   : > { %6290 = vmatpush2.bf16.msra.mxu0 %v9931_v31  ;;  %v11796_v58 = vpop.f32.mrf.mxu1 }
 0x6f1   : > { %6291 = vmatprep.subr.bf16.mxu0 %v9932_v4  ;;  %v9962_v4 = vld [vmem:[#allocation4 + $0x3e4] ss:$16 sps:$4 sm:$0xff]  }
 0x6f2   : > { %v11798_v42 = vpop.f32.mrf.mxu1 }
 0x6f4   : > { %6292 = vmatpush2.bf16.msra.mxu0 %v9933_v41  ;;  %v11800_v63 = vpop.f32.mrf.mxu1  ;;  %v9963_v41 = vld [vmem:[#allocation4 + $0x3e0] ss:$16 sps:$4 sm:$0xff]  }
 0x6f5   : > { %6293 = vmatprep.subr.bf16.mxu0 %v9934_v5 }
 0x6f6   : > { %v11802_v55 = vpop.f32.mrf.mxu1 }
 0x6f8   : > { %6294 = vmatpush2.bf16.msra.mxu0 %v9935_v9  ;;  %v11804_v61 = vpop.f32.mrf.mxu1  ;;  %v9964_v9 = vld [vmem:[#allocation4 + $0x3c4] ss:$16 sps:$4 sm:$0xff]  }
 0x6f9   : > { %6295 = vmatprep.subr.bf16.mxu0 %v9936_v1 }
 0x6fa   : > { %v6128_v33 = vpop.f32.mrf.mxu1 }
 0x6fb   : > { %v9968_v33 = vld [vmem:[#allocation4 + $0x384] ss:$16 sps:$4 sm:$0xff]  }
 0x6fc   : > { %6296 = vmatpush2.bf16.msra.mxu0 %v9937_v25  ;;  %v6129_v6 = vpop.f32.mrf.mxu1  ;;  %v9966_v25 = vld [vmem:[#allocation4 + $0x3a4] ss:$16 sps:$4 sm:$0xff]  }
 0x6fd   : > { %6297 = vmatprep.subr.bf16.mxu0 %v9938_v22  ;;  %v9969_v6 = vld [vmem:[#allocation4 + $0x380] ss:$16 sps:$4 sm:$0xff]  }
 0x700   : > { %6298 = vmatpush2.bf16.msra.mxu0 %v9939_v46  ;;  %v9967_v46 = vld [vmem:[#allocation4 + $0x3a0] ss:$16 sps:$4 sm:$0xff]  }
 0x701   : > { %6299 = vmatprep.subr.bf16.mxu0 %v9940_v40 }
 0x703   : > { %v11806_v3 = vpop.f32.mrf.mxu1 }
 0x704   : > { %6300 = vmatpush2.bf16.msra.mxu0 %v9941_v60 }
 0x705   : > { %6301 = vmatprep.subr.bf16.mxu0 %v9942_v51  ;;  %v11810_v35 = vpop.f32.mrf.mxu1  ;;  %v9970_v51 = vld [vmem:[#allocation4 + $0x364] ss:$16 sps:$4 sm:$0xff]  }
 0x707   : > { %v11812_v29 = vpop.f32.mrf.mxu1 }
 0x708   : > { %6302 = vmatpush2.bf16.msra.mxu0 %v9943_v49 }
 0x709   : > { %6303 = vmatprep.subr.bf16.mxu0 %v9944_v45  ;;  %v9971_v45 = vld [vmem:[#allocation4 + $0x360] ss:$16 sps:$4 sm:$0xff]  }
 0x70c   : > { %6304 = vmatpush2.bf16.msra.mxu0 %v9945_v39  ;;  %v9972_v39 = vld [vmem:[#allocation4 + $0x344] ss:$16 sps:$4 sm:$0xff]  }
 0x70d   : > { %6479 = vmatprep.subr.bf16.mxu0 %v9946_v30  ;;  %v9973_v30 = vld [vmem:[#allocation4 + $0x340] ss:$16 sps:$4 sm:$0xff]  }
 0x70f   : > { %6306 = vmatmul.mubr.bf16.vlgmr.msra.gmra.mxu0 %v11556_v53  ;;  %v11816_v53 = vpop.f32.mrf.mxu1 }
 0x710   : > { %6315 = vmatprep.mubr.bf16.mxu0 %v11701_v0  ;;  %6480 = vmatpush1.bf16.msra.mxu0 %v9947_v36  ;;  %v9952_v0 = vld [vmem:[#allocation4 + $0x284] ss:$16 sps:$4 sm:$0xff]  }
 0x711   : > { %6481 = vmatprep.subr.bf16.mxu0 %v9948_v50  ;;  %v11818_v62 = vpop.f32.mrf.mxu1  ;;  %v9974_v36 = vld [vmem:[#allocation4 + $0x324] ss:$16 sps:$4 sm:$0xff]   ;;  %v9975_v50 = vld [vmem:[#allocation4 + $0x320] ss:$16 sps:$4 sm:$0xff]  }
 0x713   : > { %v11821_v38 = vpop.f32.mrf.mxu1 }
 0x714   : > { %6482 = vmatpush1.bf16.msra.mxu0 %v9949_v20  ;;  %v9976_v20 = vld [vmem:[#allocation4 + $0x304] ss:$16 sps:$4 sm:$0xff]  }
 0x715   : > { %6483 = vmatprep.subr.bf16.mxu0 %v9950_v47  ;;  %v11824_v14 = vpop.f32.mrf.mxu1  ;;  %v11844_v47 = vld [vmem:[%s12689_s17] ss:$0 sm:$0xff] }
 0x717   : > { %6316 = vmatmul.mubr.bf16.gmra.mxu0 %v11703_v11  ;;  %v9955_v11 = vld [vmem:[#allocation4 + $0x260] ss:$16 sps:$4 sm:$0xff]   ;;  %v11827_v37 = vpop.f32.mrf.mxu1 }
 0x718   : > { %6325 = vmatprep.mubr.bf16.mxu0 %v11718_v7  ;;  %6484 = vmatpush1.bf16.msra.mxu0 %v9951_v2  ;;  %v9956_v7 = vld [vmem:[#allocation4 + $0x244] ss:$16 sps:$4 sm:$0xff]   ;;  %v9977_v2 = vld [vmem:[#allocation4 + $0x300] ss:$16 sps:$4 sm:$0xff]  }
 0x719   : > { %6485 = vmatprep.subr.bf16.mxu0 %v9952_v0  ;;  %v9978_v0 = vld [vmem:[#allocation4 + $0x2ec] ss:$16 sps:$4 sm:$0xff]  }
 0x71c   : > { %6486 = vmatpush1.bf16.msra.mxu0 %v9953_v12 }
 0x71d   : > { %6487 = vmatprep.subr.bf16.mxu0 %v9954_v16 }
 0x71f   : > { %6326 = vmatmul.mubr.bf16.gmra.mxu0 %v11716_v48  ;;  %v11829_v48 = vpop.f32.mrf.mxu1 }
 0x720   : > { %6335 = vmatprep.mubr.bf16.mxu0 %v11770_v10  ;;  %6488 = vmatpush1.bf16.msra.mxu0 %v9955_v11  ;;  %v9961_v10 = vld [vmem:[#allocation4 + $0x200] ss:$16 sps:$4 sm:$0xff]  }
 0x721   : > { %6489 = vmatprep.subr.bf16.mxu0 %v9956_v7  ;;  %v11831_v31 = vpop.f32.mrf.mxu1 }
 0x723   : > { %v11833_v5 = vpop.f32.mrf.mxu1 }
 0x724   : > { %6490 = vmatpush1.bf16.msra.mxu0 %v9957_v23 }
 0x725   : > { %6491 = vmatprep.subr.bf16.mxu0 %v9958_v17  ;;  %v11835_v1 = vpop.f32.mrf.mxu1 }
 0x727   : > { %6336 = vmatmul.mubr.bf16.gmra.mxu0 %v11778_v44  ;;  %v9965_v44 = vld [vmem:[#allocation4 + $0x3c0] ss:$16 sps:$4 sm:$0xff]   ;;  %v11837_v22 = vpop.f32.mrf.mxu1 }
 0x728   : > { %6492 = vmatpush1.bf16.msra.mxu0 %v9959_v54 }
 0x729   : > { %6493 = vmatprep.subr.bf16.mxu0 %v9960_v43  ;;  %v11839_v40 = vpop.f32.mrf.mxu1 }
 0x72b   : > { %v6270_v60 = vpop.f32.mrf.mxu1 }
 0x72c   : > { %6494 = vmatpush1.bf16.msra.mxu0 %v9961_v10 }
 0x72d   : > { %6495 = vmatprep.subr.bf16.mxu0 %v9962_v4  ;;  %v6271_v49 = vpop.f32.mrf.mxu1 }
 0x730   : > { %6496 = vmatpush2.bf16.msra.mxu0 %v9963_v41 }
 0x731   : > { %6497 = vmatprep.subr.bf16.mxu0 %v9964_v9 }
 0x734   : > { %6498 = vmatpush2.bf16.msra.mxu0 %v9965_v44 }
 0x735   : > { %6499 = vmatprep.subr.bf16.mxu0 %v9966_v25 }
 0x738   : > { %6500 = vmatpush2.bf16.msra.mxu0 %v9967_v46 }
 0x739   : > { %6501 = vmatprep.subr.bf16.mxu0 %v9968_v33 }
 0x73c   : > { %6502 = vmatpush2.bf16.msra.mxu0 %v9969_v6 }
 0x73d   : > { %6503 = vmatprep.subr.bf16.mxu0 %v9970_v51 }
 0x740   : > { %6504 = vmatpush2.bf16.msra.mxu0 %v9971_v45 }
 0x741   : > { %6505 = vmatprep.subr.bf16.mxu0 %v9972_v39 }
 0x744   : > { %6506 = vmatpush2.bf16.msra.mxu0 %v9973_v30 }
 0x745   : > { %6507 = vmatprep.subr.bf16.mxu0 %v9974_v36 }
 0x748   : > { %6508 = vmatpush2.bf16.msra.mxu0 %v9975_v50 }
 0x749   : > { %6509 = vmatprep.subr.bf16.mxu0 %v9976_v20 }
 0x74c   : > { %6510 = vmatpush2.bf16.msra.mxu0 %v9977_v2 }
 0x74d   : > { %6621 = vmatprep.subr.bf16.mxu0 %v9978_v0 }
 0x74e   : > { %v5477_v12 = vpop.f32.mrf.mxu0 }
 0x74f   : > { %v5478_v16 = vadd.f32 %v11844_v47, %v5477_v12 }
 0x750   : > { %v8749_v11 = vpop.f32.mrf.mxu0 }
 0x751   : > { %v8373_v7 = vmul.f32 -1.442695, %v5478_v16 }
 0x752   : > { %v5480_v23 = vpop.f32.mrf.mxu0 }
 0x753   : > { %9645 = vpow2.f32 %v8373_v7  ;;  %v5481_v17 = vadd.f32 %v11844_v47, %v5480_v23 }
 0x754   : > { %v8750_v54 = vpop.f32.mrf.mxu0 }
 0x755   : > { %v8374_v43 = vmul.f32 -1.442695, %v5481_v17 }
 0x756   : > { %v5485_v10 = vpop.f32.mrf.mxu0 }
 0x757   : > { %9647 = vpow2.f32 %v8374_v43  ;;  %v5486_v4 = vadd.f32 %v11844_v47, %v5485_v10 }
 0x758   : > { %v8753_v41 = vpop.f32.mrf.mxu0 }
 0x759   : > { %v8375_v9 = vmul.f32 -1.442695, %v5486_v4 }
 0x75a   : > { %v5488_v44 = vpop.f32.mrf.mxu0 }
 0x75b   : > { %9649 = vpow2.f32 %v8375_v9  ;;  %v5489_v25 = vadd.f32 %v11844_v47, %v5488_v44 }
 0x75c   : > { %v8754_v46 = vpop.f32.mrf.mxu0 }
 0x75d   : > { %v8376_v33 = vmul.f32 -1.442695, %v5489_v25 }
 0x75f   : > { %9651 = vpow2.f32 %v8376_v33  ;;  %v5493_v6 = vpop.f32.mrf.mxu0 }
 0x760   : > { %v9646_v60 = vpop.eup %9645  ;;  %v5494_v51 = vadd.f32 %v11844_v47, %v5493_v6 }
 0x761   : > { %v5574_v49 = vadd.f32 1.0, %v9646_v60  ;;  %v8757_v45 = vpop.f32.mrf.mxu0 }
 0x762   : > { %v8377_v39 = vmul.f32 -1.442695, %v5494_v51 }
 0x763   : > { %9653 = vrcp.f32 %v5574_v49  ;;  %v5496_v30 = vpop.f32.mrf.mxu0 }
 0x764   : > { %v9648_v36 = vpop.eup %9647  ;;  %9655 = vpow2.f32 %v8377_v39  ;;  %v5497_v50 = vadd.f32 %v11844_v47, %v5496_v30 }
 0x765   : > { %v5575_v20 = vadd.f32 1.0, %v9648_v36  ;;  %v8758_v2 = vpop.f32.mrf.mxu0 }
 0x766   : > { %v8378_v0 = vmul.f32 -1.442695, %v5497_v50 }
 0x767   : > { %9657 = vrcp.f32 %v5575_v20  ;;  %v5501_v12 = vpop.f32.mrf.mxu0 }
 0x768   : > { %v9650_v16 = vpop.eup %9649  ;;  %9659 = vpow2.f32 %v8378_v0  ;;  %v5502_v11 = vadd.f32 %v11844_v47, %v5501_v12 }
 0x769   : > { %v5576_v7 = vadd.f32 1.0, %v9650_v16  ;;  %v8761_v23 = vpop.f32.mrf.mxu0 }
 0x76a   : > { %v8379_v17 = vmul.f32 -1.442695, %v5502_v11 }
 0x76b   : > { %9661 = vrcp.f32 %v5576_v7  ;;  %v5504_v54 = vpop.f32.mrf.mxu0 }
 0x76c   : > { %v9652_v43 = vpop.eup %9651  ;;  %9663 = vpow2.f32 %v8379_v17  ;;  %v5505_v10 = vadd.f32 %v11844_v47, %v5504_v54 }
 0x76d   : > { %v5577_v4 = vadd.f32 1.0, %v9652_v43  ;;  %v8762_v41 = vpop.f32.mrf.mxu0 }
 0x76e   : > { %v8380_v9 = vmul.f32 -1.442695, %v5505_v10 }
 0x76f   : > { %9665 = vrcp.f32 %v5577_v4  ;;  %v5509_v44 = vpop.f32.mrf.mxu0 }
 0x770   : > { %v9654_v25 = vpop.eup %9653  ;;  %9667 = vpow2.f32 %v8380_v9  ;;  %v5510_v46 = vadd.f32 %v11844_v47, %v5509_v44 }
 0x771   : > { %v9656_v33 = vpop.eup %9655  ;;  %v8765_v6 = vpop.f32.mrf.mxu0  ;;  %5623 = vrot.lane.b32.xlu1 %v9654_v25, %s10327_s19 }
 0x772   : > { %v5578_v60 = vadd.f32 1.0, %v9656_v33  ;;  %v8381_v51 = vmul.f32 -1.442695, %v5510_v46 }
 0x773   : > { %v5512_v49 = vpop.f32.mrf.mxu0 }
 0x774   : > { %v9658_v45 = vpop.eup %9657  ;;  %9669 = vrcp.f32 %v5578_v60  ;;  %v5513_v39 = vadd.f32 %v11844_v47, %v5512_v49 }
 0x775   : > { %v9660_v30 = vpop.eup %9659  ;;  %9671 = vpow2.f32 %v8381_v51  ;;  %v8766_v36 = vpop.f32.mrf.mxu0  ;;  %5625 = vrot.lane.b32.xlu0 %v9658_v45, %s10327_s19 }
 0x776   : > { %v5579_v50 = vadd.f32 1.0, %v9660_v30  ;;  %v8382_v20 = vmul.f32 -1.442695, %v5513_v39 }
 0x777   : > { %v5517_v2 = vpop.f32.mrf.mxu0 }
 0x778   : > { %v9662_v0 = vpop.eup %9661  ;;  %9673 = vrcp.f32 %v5579_v50  ;;  %v5518_v12 = vadd.f32 %v11844_v47, %v5517_v2 }
 0x779   : > { %v9664_v16 = vpop.eup %9663  ;;  %9675 = vpow2.f32 %v8382_v20  ;;  %v8769_v11 = vpop.f32.mrf.mxu0  ;;  %5627 = vrot.lane.b32.xlu1 %v9662_v0, %s10327_s19 }
 0x77a   : > { %v5580_v7 = vadd.f32 1.0, %v9664_v16  ;;  %v8383_v23 = vmul.f32 -1.442695, %v5518_v12 }
 0x77b   : > { %v5520_v17 = vpop.f32.mrf.mxu0 }
 0x77c   : > { %v9666_v54 = vpop.eup %9665  ;;  %9677 = vrcp.f32 %v5580_v7  ;;  %v5521_v43 = vadd.f32 %v11844_v47, %v5520_v17 }
 0x77d   : > { %v9668_v10 = vpop.eup %9667  ;;  %9679 = vpow2.f32 %v8383_v23  ;;  %v8770_v4 = vpop.f32.mrf.mxu0  ;;  %5629 = vrot.lane.b32.xlu0 %v9666_v54, %s10327_s19 }
 0x77e   : > { %v5581_v41 = vadd.f32 1.0, %v9668_v10  ;;  %v8384_v9 = vmul.f32 -1.442695, %v5521_v43  ;;  %v6095_v43 = vadd.f32 %v11773_v18, %v10849_v24  ;;  %v6099_v10 = vadd.f32 %v11780_v26, %v10849_v24 }
 0x77f   : > { %v5525_v44 = vpop.f32.mrf.mxu0 }
 0x780   : > { %9681 = vrcp.f32 %v5581_v41  ;;  %v5526_v25 = vadd.f32 %v11844_v47, %v5525_v44  ;;  %v6097_v41 = vadd.f32 %v11776_v27, %v10853_v19  ;;  %v6101_v44 = vadd.f32 %v11784_v34, %v10853_v19 }
 0x781   : > { %v9670_v46 = vpop.eup %9669  ;;  %9683 = vpow2.f32 %v8384_v9  ;;  %v8773_v33 = vpop.f32.mrf.mxu0 }
 0x782   : > { %v9672_v6 = vpop.eup %9671  ;;  %v8385_v60 = vmul.f32 -1.442695, %v5526_v25  ;;  %5631 = vrot.lane.b32.xlu1 %v9670_v46, %s10327_s19 }
 0x783   : > { %v5582_v51 = vadd.f32 1.0, %v9672_v6  ;;  %v5528_v49 = vpop.f32.mrf.mxu0 }
 0x784   : > { %9685 = vpow2.f32 %v8385_v60  ;;  %v5529_v45 = vadd.f32 %v11844_v47, %v5528_v49 }
 0x785   : > { %v9674_v39 = vpop.eup %9673  ;;  %9687 = vrcp.f32 %v5582_v51  ;;  %v8774_v30 = vpop.f32.mrf.mxu0 }
 0x786   : > { %v9676_v36 = vpop.eup %9675  ;;  %v8386_v50 = vmul.f32 -1.442695, %v5529_v45  ;;  %5633 = vrot.lane.b32.xlu0 %v9674_v39, %s10327_s19  ;;  %v6105_v39 = vadd.f32 %v11786_v28, %v10849_v24 }
 0x787   : > { %v5583_v20 = vadd.f32 1.0, %v9676_v36 }
 0x788   : > { %9689 = vpow2.f32 %v8386_v50  ;;  %v6109_v50 = vadd.f32 %v11790_v59, %v10849_v24 }
 0x789   : > { %v9678_v2 = vpop.eup %9677  ;;  %9691 = vrcp.f32 %v5583_v20 }
 0x78a   : > { %v9680_v0 = vpop.eup %9679  ;;  %5635 = vrot.lane.b32.xlu1 %v9678_v2, %s10327_s19  ;;  %v6107_v2 = vadd.f32 %v11788_v57, %v10853_v19 }
 0x78b   : > { %v5584_v12 = vadd.f32 1.0, %v9680_v0 }
 0x78d   : > { %v9682_v16 = vpop.eup %9681  ;;  %9693 = vrcp.f32 %v5584_v12  ;;  %v6111_v12 = vadd.f32 %v11792_v13, %v10853_v19 }
 0x78e   : > { %v9684_v11 = vpop.eup %9683  ;;  %5651 = vrot.lane.b32.xlu1 %v9682_v16, %s10328_s26 }
 0x78f   : > { %v5585_v47 = vadd.f32 1.0, %v9684_v11  ;;  %v6165_v7 = vpop.f32.mrf.mxu0 }
 0x790   : > { %v6166_v25 = vadd.f32 %v6165_v7, %v6095_v43  ;;  %v9979_v43 = vld [vmem:[#allocation4 + $0xe8] ss:$16 sps:$4 sm:$0xff]  }
 0x791   : > { %v9686_v23 = vpop.eup %9685  ;;  %9695 = vrcp.f32 %v5585_v47  ;;  %v6167_v17 = vpop.f32.mrf.mxu0 }
 0x792   : > { %v9688_v54 = vpop.eup %9687  ;;  %v5586_v4 = vadd.f32 1.0, %v9686_v23  ;;  %v6168_v51 = vadd.f32 %v6167_v17, %v6097_v41  ;;  %v6115_v23 = vadd.f32 %v11794_v56, %v10849_v24 }
 0x793   : > { %5653 = vrot.lane.b32.xlu0 %v9688_v54, %s10328_s26  ;;  %v6169_v9 = vpop.f32.mrf.mxu0 }
 0x794   : > { %9697 = vrcp.f32 %v5586_v4  ;;  %v6170_v46 = vadd.f32 %v6169_v9, %v6099_v10  ;;  %v6117_v10 = vadd.f32 %v11796_v58, %v10853_v19  ;;  %v6119_v4 = vadd.f32 %v11798_v42, %v10849_v24  ;;  %v9980_v9 = vld [vmem:[#allocation4 + $0xcc] ss:$16 sps:$4 sm:$0xff]  }
 0x795   : > { %v9690_v33 = vpop.eup %9689  ;;  %v6171_v6 = vpop.f32.mrf.mxu0  ;;  %v6125_v42 = vadd.f32 %v11802_v55, %v10849_v24  ;;  %v9983_v24 = vld [vmem:[#allocation4 + $0xa8] ss:$16 sps:$4 sm:$0xff]  }
 0x796   : > { %v9692_v60 = vpop.eup %9691  ;;  %v5587_v18 = vadd.f32 1.0, %v9690_v33  ;;  %v6344_v49 = vpack.c.bf16 %v6170_v46, %v6166_v25  ;;  %v6172_v26 = vadd.f32 %v6171_v6, %v6101_v44  ;;  %v6121_v44 = vadd.f32 %v11800_v63, %v10853_v19 }
 0x797   : > { %5655 = vrot.lane.b32.xlu1 %v9692_v60, %s10328_s26  ;;  %v6175_v45 = vpop.f32.mrf.mxu0  ;;  %v9981_v60 = vld [vmem:[#allocation4 + $0xc8] ss:$16 sps:$4 sm:$0xff]  }
 0x798   : > { %9699 = vrcp.f32 %v5587_v18  ;;  %v6345_v27 = vpack.c.bf16 %v6172_v26, %v6168_v51  ;;  %v6376_v30 = vmul.bf16 1045249613, %v6344_v49  ;;  %vm6360_vm14 = vcmp.gt.bf16.partialorder %v6344_v49, 0  ;;  %v9982_v26 = vld [vmem:[#allocation4 + $0xac] ss:$16 sps:$4 sm:$0xff]  }
 0x799   : > { %v6177_v34 = vpop.f32.mrf.mxu0  ;;  %v6176_v16 = vadd.f32 %v6175_v45, %v6105_v39  ;;  %v6127_v39 = vadd.f32 %v11804_v61, %v10853_v19  ;;  %v9985_v19 = vld [vmem:[#allocation4 + $0x88] ss:$16 sps:$4 sm:$0xff]  }
 0x79a   : > { %v9694_v36 = vpop.eup %9693  ;;  %vm6361_vm15 = vcmp.gt.bf16.partialorder %v6345_v27, 0  ;;  %v6377_v20 = vmul.bf16 1045249613, %v6345_v27  ;;  %v11889_v47 = vsel %vm6360_vm14, %v6344_v49, %v6376_v30  ;;  %v6178_v57 = vadd.f32 %v6177_v34, %v6107_v2 }
 0x79b   : > { %5657 = vrot.lane.b32.xlu0 %v9694_v36, %s10328_s26  ;;  %v6179_v0 = vpop.f32.mrf.mxu0 }
 0x79c   : > { %v6180_v28 = vadd.f32 %v6179_v0, %v6109_v50  ;;  %v11887_v11 = vsel %vm6361_vm15, %v6345_v27, %v6377_v20  ;;  %v9984_v20 = vld [vmem:[#allocation4 + $0x8c] ss:$16 sps:$4 sm:$0xff]  }
 0x79d   : > { %v6181_v7 = vpop.f32.mrf.mxu0  ;;  %6440 = vmatprep.mubr.bf16.mxu1 %v11887_v11 }
 0x79e   : > { %v9696_v59 = vpop.eup %9695  ;;  %v6348_v17 = vpack.c.bf16 %v6180_v28, %v6176_v16  ;;  %v6182_v54 = vadd.f32 %v6181_v7, %v6111_v12  ;;  %6441 = vmatmul.mubr.bf16.vlgmr.msra.gmra.mxu1 %v11889_v47 }
 0x79f   : > { %6551 = vmatpush1.bf16.msra.mxu1 %v9979_v43  ;;  %5659 = vrot.lane.b32.xlu1 %v9696_v59, %s10328_s26  ;;  %v6185_v13 = vpop.f32.mrf.mxu0 }
 0x7a0   : > { %v6349_v41 = vpack.c.bf16 %v6182_v54, %v6178_v57  ;;  %6552 = vmatprep.subr.bf16.mxu1 %v9980_v9  ;;  %v6380_v25 = vmul.bf16 1045249613, %v6348_v17  ;;  %v6186_v33 = vadd.f32 %v6185_v13, %v6115_v23  ;;  %vm6364_vm1 = vcmp.gt.bf16.partialorder %v6348_v17, 0  ;;  %v9986_v57 = vld [vmem:[#allocation4 + $0x6c] ss:$16 sps:$4 sm:$0xff]  }
 0x7a1   : > { %v9698_v56 = vpop.eup %9697  ;;  %v6187_v46 = vpop.f32.mrf.mxu0  ;;  %v9987_v13 = vld [vmem:[#allocation4 + $0x68] ss:$16 sps:$4 sm:$0xff]  }
 0x7a2   : > { %5661 = vrot.lane.b32.xlu0 %v9698_v56, %s10328_s26  ;;  %vm6365_vm0 = vcmp.gt.bf16.partialorder %v6349_v41, 0  ;;  %v6381_v6 = vmul.bf16 1045249613, %v6349_v41  ;;  %v6188_v18 = vadd.f32 %v6187_v46, %v6117_v10  ;;  %v11908_v27 = vsel %vm6364_vm1, %v6348_v17, %v6380_v25  ;;  %v9988_v10 = vld [vmem:[#allocation4 + $0x4c] ss:$16 sps:$4 sm:$0xff]  }
 0x7a3   : > { %6553 = vmatpush1.bf16.msra.mxu1 %v9981_v60  ;;  %v6189_v58 = vpop.f32.mrf.mxu0  ;;  %v9990_v56 = vld [vmem:[#allocation4 + $0x2c] ss:$16 sps:$4 sm:$0xff]   ;;  %v9993_v46 = vld [vmem:[#allocation4 + $0x8] ss:$16 sps:$4 sm:$0xff]   ;;  %vm7793_vm1 = vcmask 326656  }
 0x7a4   : > { %v6190_v51 = vadd.f32 %v6189_v58, %v6119_v4  ;;  %v11905_v49 = vsel %vm6365_vm0, %v6349_v41, %v6381_v6  ;;  %6554 = vmatprep.subr.bf16.mxu1 %v9982_v26  ;;  %v9989_v41 = vld [vmem:[#allocation4 + $0x48] ss:$16 sps:$4 sm:$0xff]   ;;  %v9992_v25 = vld [vmem:[#allocation4 + $0xc] ss:$16 sps:$4 sm:$0xff]   ;;  %vm5679_vm0 = vcmask 293888  }
 0x7a5   : > { %v9700_v63 = vpop.eup %9699  ;;  %v6191_v45 = vpop.f32.mrf.mxu0  ;;  %6450 = vmatprep.mubr.bf16.mxu1 %v11905_v49  ;;  %v9995_v6 = vld [vmem:[#allocation4 + $0x1e8] ss:$16 sps:$4 sm:$0xff]   ;;  %v9996_v60 = vld [vmem:[#allocation4 + $0x1cc] ss:$16 sps:$4 sm:$0xff]  }
 0x7a6   : > { %v6352_v30 = vpack.c.bf16 %v6190_v51, %v6186_v33  ;;  %v6192_v34 = vadd.f32 %v6191_v45, %v6121_v44  ;;  %6451 = vmatmul.mubr.bf16.gmra.mxu1 %v11908_v27  ;;  %5663 = vrot.lane.b32.xlu1 %v9700_v63, %s10328_s26  ;;  %v9991_v44 = vld [vmem:[#allocation4 + $0x28] ss:$16 sps:$4 sm:$0xff]   ;;  %v9994_v33 = vld [vmem:[#allocation4 + $0x1ec] ss:$16 sps:$4 sm:$0xff]  }
 0x7a7   : > { %6555 = vmatpush1.bf16.msra.mxu1 %v9983_v24  ;;  %v6195_v55 = vpop.f32.mrf.mxu0  ;;  %v9997_v58 = vld [vmem:[#allocation4 + $0x1c8] ss:$16 sps:$4 sm:$0xff]   ;;  %v10000_v51 = vld [vmem:[#allocation4 + $0x18c] ss:$16 sps:$4 sm:$0xff]  }
 0x7a8   : > { %v6384_v36 = vmul.bf16 1045249613, %v6352_v30  ;;  %v6353_v50 = vpack.c.bf16 %v6192_v34, %v6188_v18  ;;  %6556 = vmatprep.subr.bf16.mxu1 %v9984_v20  ;;  %v6196_v2 = vadd.f32 %v6195_v55, %v6125_v42  ;;  %vm6368_vm2 = vcmp.gt.bf16.partialorder %v6352_v30, 0  ;;  %v9998_v42 = vld [vmem:[#allocation4 + $0x1ac] ss:$16 sps:$4 sm:$0xff]   ;;  %v12771_v34 = vld [vmem:[#allocation13_spill] sm:$0xff] }
 0x7a9   : > { %v6197_v0 = vpop.f32.mrf.mxu0  ;;  %v9999_v18 = vld [vmem:[#allocation4 + $0x1a8] ss:$16 sps:$4 sm:$0xff]   ;;  %v6237_v24 = vadd.f32 %v11806_v3, %v12771_v34  ;;  %v6241_v55 = vadd.f32 %v11812_v29, %v12771_v34 }
 0x7aa   : > { %v6198_v12 = vadd.f32 %v6197_v0, %v6127_v39  ;;  %vm6369_vm3 = vcmp.gt.bf16.partialorder %v6353_v50, 0  ;;  %v6385_v16 = vmul.bf16 1045249613, %v6353_v50  ;;  %v6356_v61 = vpack.c.bf16 %v6196_v2, %v6196_v2  ;;  %v10001_v26 = vld [vmem:[#allocation4 + $0x188] ss:$16 sps:$4 sm:$0xff]  }
 0x7ab   : > { %6557 = vmatpush1.bf16.msra.mxu1 %v9985_v19  ;;  %v11914_v28 = vsel %vm6368_vm2, %v6352_v30, %v6384_v36  ;;  %v6199_v7 = vpop.f32.mrf.mxu0  ;;  %v10003_v63 = vld [vmem:[#allocation4 + $0x168] ss:$16 sps:$4 sm:$0xff]   ;;  %v10004_v39 = vld [vmem:[#allocation4 + $0x14c] ss:$16 sps:$4 sm:$0xff]  }
 0x7ac   : > { %v6357_v59 = vpack.c.bf16 %v6198_v12, %v6198_v12  ;;  %v11916_v23 = vsel %vm6369_vm3, %v6353_v50, %v6385_v16  ;;  %6558 = vmatprep.subr.bf16.mxu1 %v9986_v57  ;;  %v6388_v43 = vmul.bf16 1045249613, %v6356_v61  ;;  %vm6372_vm5 = vcmp.gt.bf16.partialorder %v6356_v61, 0  ;;  %v10005_v36 = vld [vmem:[#allocation4 + $0x148] ss:$16 sps:$4 sm:$0xff]  }
 0x7ad   : > { %6460 = vmatprep.mubr.bf16.mxu1 %v11916_v23  ;;  %v6200_v17 = vpop.f32.mrf.mxu0  ;;  %v12772_v20 = vld [vmem:[#allocation14_spill] sm:$0xff] }
 0x7ae   : > { %v6389_v54 = vmul.bf16 1045249613, %v6357_v59  ;;  %6461 = vmatmul.mubr.bf16.gmra.mxu1 %v11914_v28  ;;  %vm6373_vm4 = vcmp.gt.bf16.partialorder %v6357_v59, 0  ;;  %v11923_v9 = vsel %vm6372_vm5, %v6356_v61, %v6388_v43  ;;  %v6239_v2 = vadd.f32 %v11810_v35, %v12772_v20  ;;  %v10006_v19 = vld [vmem:[#allocation4 + $0x12c] ss:$16 sps:$4 sm:$0xff]  }
 0x7af   : > { %6559 = vmatpush1.bf16.msra.mxu1 %v9987_v13  ;;  %v6243_v0 = vadd.f32 %v11816_v53, %v12772_v20  ;;  %v10007_v57 = vld [vmem:[#allocation4 + $0x128] ss:$16 sps:$4 sm:$0xff]   ;;  %v6247_v35 = vadd.f32 %v11818_v62, %v12771_v34  ;;  %v6251_v53 = vadd.f32 %v11824_v14, %v12771_v34 }
 0x7b0   : > { %6560 = vmatprep.subr.bf16.mxu1 %v9988_v10  ;;  %v11920_v4 = vsel %vm6373_vm4, %v6357_v59, %v6389_v54  ;;  %v10008_v54 = vld [vmem:[#allocation4 + $0x10c] ss:$16 sps:$4 sm:$0xff]  }
 0x7b1   : > { %6470 = vmatprep.mubr.bf16.mxu1 %v11920_v4 }
 0x7b3   : > { %6561 = vmatpush1.bf16.msra.mxu1 %v9989_v41  ;;  %v6249_v41 = vadd.f32 %v11821_v38, %v12772_v20 }
 0x7b4   : > { %6562 = vmatprep.subr.bf16.mxu1 %v9990_v56  ;;  %v10009_v56 = vld [vmem:[#allocation4 + $0x108] ss:$16 sps:$4 sm:$0xff]  }
 0x7b6   : > { %6471 = vmatmul.mubr.bf16.gmra.mxu1 %v11923_v9 }
 0x7b7   : > { %6563 = vmatpush1.bf16.msra.mxu1 %v9991_v44  ;;  %6582 = vmatprep.mubr.bf16.mxu1 %v11887_v11  ;;  %v10002_v11 = vld [vmem:[#allocation4 + $0x16c] ss:$16 sps:$4 sm:$0xff]  }
 0x7b8   : > { %6564 = vmatprep.subr.bf16.mxu1 %v9992_v25  ;;  %v6253_v25 = vadd.f32 %v11827_v37, %v12772_v20  ;;  %v10011_v37 = vld [vmem:[#allocation4 + $0x2e8] ss:$16 sps:$4 sm:$0xff]  }
 0x7bb   : > { %6565 = vmatpush1.bf16.msra.mxu1 %v9993_v46 }
 0x7bc   : > { %6566 = vmatprep.subr.bf16.mxu1 %v9994_v33 }
 0x7bf   : > { %6567 = vmatpush2.bf16.msra.mxu1 %v9995_v6  ;;  %v10010_v6 = vld [vmem:[#allocation6 + $0xe4] ss:$16 sps:$4 sm:$0xff]  }
 0x7c0   : > { %6568 = vmatprep.subr.bf16.mxu1 %v9996_v60 }
 0x7c3   : > { %6569 = vmatpush2.bf16.msra.mxu1 %v9997_v58 }
 0x7c4   : > { %6570 = vmatprep.subr.bf16.mxu1 %v9998_v42 }
 0x7c7   : > { %6571 = vmatpush2.bf16.msra.mxu1 %v9999_v18 }
 0x7c8   : > { %6572 = vmatprep.subr.bf16.mxu1 %v10000_v51 }
 0x7cb   : > { %6573 = vmatpush2.bf16.msra.mxu1 %v10001_v26  ;;  %v10012_v26 = vld [vmem:[#allocation4 + $0x2cc] ss:$16 sps:$4 sm:$0xff]  }
 0x7cc   : > { %6574 = vmatprep.subr.bf16.mxu1 %v10002_v11  ;;  %v10013_v11 = vld [vmem:[#allocation6 + $0xe0] ss:$16 sps:$4 sm:$0xff]  }
 0x7cf   : > { %6575 = vmatpush2.bf16.msra.mxu1 %v10003_v63  ;;  %v6307_v45 = vpop.f32.mrf.mxu0  ;;  %v6257_v63 = vadd.f32 %v11829_v48, %v12771_v34 }
 0x7d0   : > { %6576 = vmatprep.subr.bf16.mxu1 %v10004_v39  ;;  %v6308_v12 = vadd.f32 %v6307_v45, %v6237_v24  ;;  %v6259_v24 = vadd.f32 %v11831_v31, %v12772_v20  ;;  %v10018_v31 = vld [vmem:[#allocation6 + $0xa4] ss:$16 sps:$4 sm:$0xff]  }
 0x7d1   : > { %v6309_v30 = vpop.f32.mrf.mxu0 }
 0x7d2   : > { %v6310_v7 = vadd.f32 %v6309_v30, %v6239_v2  ;;  %v10014_v30 = vld [vmem:[#allocation6 + $0xc4] ss:$16 sps:$4 sm:$0xff]  }
 0x7d3   : > { %6577 = vmatpush2.bf16.msra.mxu1 %v10005_v36  ;;  %v6311_v50 = vpop.f32.mrf.mxu0  ;;  %v10015_v36 = vld [vmem:[#allocation4 + $0x2c8] ss:$16 sps:$4 sm:$0xff]  }
 0x7d4   : > { %v6312_v16 = vadd.f32 %v6311_v50, %v6241_v55  ;;  %6578 = vmatprep.subr.bf16.mxu1 %v10006_v19  ;;  %v6263_v55 = vadd.f32 %v11835_v1, %v12772_v20 }
 0x7d5   : > { %v6313_v61 = vpop.f32.mrf.mxu0 }
 0x7d6   : > { %v6346_v59 = vpack.c.bf16 %v6312_v16, %v6308_v12  ;;  %v6314_v3 = vadd.f32 %v6313_v61, %v6243_v0  ;;  %v10016_v12 = vld [vmem:[#allocation4 + $0x2ac] ss:$16 sps:$4 sm:$0xff]   ;;  %v10017_v16 = vld [vmem:[#allocation6 + $0xc0] ss:$16 sps:$4 sm:$0xff]  }
 0x7d7   : > { %6579 = vmatpush2.bf16.msra.mxu1 %v10007_v57  ;;  %v6317_v29 = vpop.f32.mrf.mxu0  ;;  %v6267_v57 = vadd.f32 %v11837_v22, %v12771_v34 }
 0x7d8   : > { %v6347_v17 = vpack.c.bf16 %v6314_v3, %v6310_v7  ;;  %6580 = vmatprep.subr.bf16.mxu1 %v10008_v54  ;;  %v6378_v43 = vmul.bf16 1045249613, %v6346_v59  ;;  %vm6362_vm6 = vcmp.gt.bf16.partialorder %v6346_v59, 0  ;;  %v6318_v46 = vadd.f32 %v6317_v29, %v6247_v35  ;;  %v10020_v54 = vld [vmem:[#allocation4 + $0x28c] ss:$16 sps:$4 sm:$0xff]  }
 0x7d9   : > { %v6319_v13 = vpop.f32.mrf.mxu0  ;;  %v6269_v29 = vadd.f32 %v11839_v40, %v12772_v20  ;;  %v10021_v35 = vld [vmem:[#allocation6 + $0xa0] ss:$16 sps:$4 sm:$0xff]  }
 0x7da   : > { %vm6363_vm7 = vcmp.gt.bf16.partialorder %v6347_v17, 0  ;;  %v6379_v10 = vmul.bf16 1045249613, %v6347_v17  ;;  %v11945_v60 = vsel %vm6362_vm6, %v6346_v59, %v6378_v43  ;;  %v6320_v58 = vadd.f32 %v6319_v13, %v6249_v41  ;;  %v10019_v59 = vld [vmem:[#allocation4 + $0x2a8] ss:$16 sps:$4 sm:$0xff]  }
 0x7db   : > { %6581 = vmatpush2.bf16.msra.mxu1 %v10009_v56  ;;  %v6321_v44 = vpop.f32.mrf.mxu0  ;;  %v10022_v13 = vld [vmem:[#allocation6 + $0x84] ss:$16 sps:$4 sm:$0xff]   ;;  %v10023_v41 = vld [vmem:[#allocation4 + $0x288] ss:$16 sps:$4 sm:$0xff]   ;;  %v10025_v40 = vld [vmem:[#allocation6 + $0x80] ss:$16 sps:$4 sm:$0xff]  }
 0x7dc   : > { %v6322_v33 = vadd.f32 %v6321_v44, %v6251_v53  ;;  %v11943_v62 = vsel %vm6363_vm7, %v6347_v17, %v6379_v10  ;;  %6756 = vmatprep.subr.bf16.mxu1 %v10010_v6 }
 0x7dd   : > { %v6323_v14 = vpop.f32.mrf.mxu0  ;;  %6511 = vmatprep.mubr.bf16.mxu0 %v11943_v62 }
 0x7de   : > { %v6350_v42 = vpack.c.bf16 %v6322_v33, %v6318_v46  ;;  %v6324_v38 = vadd.f32 %v6323_v14, %v6253_v25  ;;  %6583 = vmatmul.mubr.bf16.vlgmr.msra.gmra.mxu1 %v11889_v47  ;;  %6512 = vmatmul.mubr.bf16.vlgmr.msra.gmra.mxu0 %v11945_v60  ;;  %v6261_v47 = vadd.f32 %v11833_v5, %v12771_v34  ;;  %v10024_v34 = vld [vmem:[#allocation4 + $0x26c] ss:$16 sps:$4 sm:$0xff]   ;;  %v10026_v25 = vld [vmem:[#allocation6 + $0x64] ss:$16 sps:$4 sm:$0xff]  }
 0x7df   : > { %6592 = vmatprep.mubr.bf16.mxu1 %v11905_v49  ;;  %6622 = vmatpush1.bf16.msra.mxu0 %v10011_v37  ;;  %v6327_v18 = vpop.f32.mrf.mxu0  ;;  %v10029_v37 = vld [vmem:[#allocation4 + $0x24c] ss:$16 sps:$4 sm:$0xff]  }
 0x7e0   : > { %v6351_v51 = vpack.c.bf16 %v6324_v38, %v6320_v58  ;;  %6623 = vmatprep.subr.bf16.mxu0 %v10012_v26  ;;  %6757 = vmatpush1.bf16.msra.mxu1 %v10013_v11  ;;  %v6382_v45 = vmul.bf16 1045249613, %v6350_v42  ;;  %vm6366_vm9 = vcmp.gt.bf16.partialorder %v6350_v42, 0  ;;  %v6328_v48 = vadd.f32 %v6327_v18, %v6257_v63  ;;  %v10027_v58 = vld [vmem:[#allocation4 + $0x268] ss:$16 sps:$4 sm:$0xff]  }
 0x7e1   : > { %v6329_v39 = vpop.f32.mrf.mxu0  ;;  %6758 = vmatprep.subr.bf16.mxu1 %v10014_v30  ;;  %v10028_v38 = vld [vmem:[#allocation6 + $0x60] ss:$16 sps:$4 sm:$0xff]   ;;  %v10031_v26 = vld [vmem:[#allocation4 + $0x248] ss:$16 sps:$4 sm:$0xff]   ;;  %v10033_v11 = vld [vmem:[#allocation4 + $0x22c] ss:$16 sps:$4 sm:$0xff]  }
 0x7e2   : > { %vm6367_vm8 = vcmp.gt.bf16.partialorder %v6351_v51, 0  ;;  %v6383_v49 = vmul.bf16 1045249613, %v6351_v51  ;;  %v11962_v19 = vsel %vm6366_vm9, %v6350_v42, %v6382_v45  ;;  %v6330_v61 = vadd.f32 %v6329_v39, %v6259_v24  ;;  %v10034_v63 = vld [vmem:[#allocation6 + $0x24] ss:$16 sps:$4 sm:$0xff]  }
 0x7e3   : > { %6624 = vmatpush1.bf16.msra.mxu0 %v10015_v36  ;;  %v6331_v50 = vpop.f32.mrf.mxu0  ;;  %v5624_v14 = vpop.permute.xlu1 %5623  ;;  %v10035_v30 = vld [vmem:[#allocation4 + $0x228] ss:$16 sps:$4 sm:$0xff]   ;;  %v10037_v24 = vld [vmem:[#allocation6 + $0x20] ss:$16 sps:$4 sm:$0xff]  }
 0x7e4   : > { %v6332_v2 = vadd.f32 %v6331_v50, %v6261_v47  ;;  %v11959_v0 = vsel %vm6367_vm8, %v6351_v51, %v6383_v49  ;;  %6625 = vmatprep.subr.bf16.mxu0 %v10016_v12  ;;  %6759 = vmatpush1.bf16.msra.mxu1 %v10017_v16  ;;  %v10036_v49 = vld [vmem:[#allocation4 + $0x20c] ss:$16 sps:$4 sm:$0xff]   ;;  %v10039_v36 = vld [vmem:[#allocation4 + $0x208] ss:$16 sps:$4 sm:$0xff]   ;;  %v10042_v12 = vld [vmem:[#allocation6 + $0x1e4] ss:$16 sps:$4 sm:$0xff]  }
 0x7e5   : > { %v6333_v5 = vpop.f32.mrf.mxu0  ;;  %6521 = vmatprep.mubr.bf16.mxu0 %v11959_v0  ;;  %6760 = vmatprep.subr.bf16.mxu1 %v10018_v31  ;;  %v10043_v16 = vld [vmem:[#allocation4 + $0x3e8] ss:$16 sps:$4 sm:$0xff]  }
 0x7e6   : > { %v6354_v1 = vpack.c.bf16 %v6332_v2, %v6328_v48  ;;  %v6334_v7 = vadd.f32 %v6333_v5, %v6263_v55  ;;  %6593 = vmatmul.mubr.bf16.gmra.mxu1 %v11908_v27  ;;  %6522 = vmatmul.mubr.bf16.gmra.mxu0 %v11962_v19  ;;  %v10038_v55 = vld [vmem:[#allocation6 + $0x4] ss:$16 sps:$4 sm:$0xff]   ;;  %v10040_v48 = vld [vmem:[#allocation4 + $0x3ec] ss:$16 sps:$4 sm:$0xff]   ;;  %v10041_v2 = vld [vmem:[#allocation6] ss:$16 sps:$4 sm:$0xff]  }
 0x7e7   : > { %6602 = vmatprep.mubr.bf16.mxu1 %v11916_v23  ;;  %6626 = vmatpush1.bf16.msra.mxu0 %v10019_v59  ;;  %v6337_v3 = vpop.f32.mrf.mxu0  ;;  %v5626_v47 = vpop.permute.xlu0 %5625  ;;  %v10046_v59 = vld [vmem:[#allocation6 + $0x1c4] ss:$16 sps:$4 sm:$0xff]  }
 0x7e8   : > { %v6355_v17 = vpack.c.bf16 %v6334_v7, %v6330_v61  ;;  %6627 = vmatprep.subr.bf16.mxu0 %v10020_v54  ;;  %6761 = vmatpush1.bf16.msra.mxu1 %v10021_v35  ;;  %v6386_v43 = vmul.bf16 1045249613, %v6354_v1  ;;  %v6338_v53 = vadd.f32 %v6337_v3, %v6267_v57  ;;  %vm6370_vm11 = vcmp.gt.bf16.partialorder %v6354_v1, 0  ;;  %v10045_v7 = vld [vmem:[#allocation6 + $0x1e0] ss:$16 sps:$4 sm:$0xff]  }
 0x7e9   : > { %v6339_v27 = vpop.f32.mrf.mxu0  ;;  %6762 = vmatprep.subr.bf16.mxu1 %v10022_v13  ;;  %v10047_v3 = vld [vmem:[#allocation4 + $0x3c8] ss:$16 sps:$4 sm:$0xff]   ;;  %v10050_v35 = vld [vmem:[#allocation6 + $0x1a4] ss:$16 sps:$4 sm:$0xff]  }
 0x7ea   : > { %v6340_v23 = vadd.f32 %v6339_v27, %v6269_v29  ;;  %vm6371_vm10 = vcmp.gt.bf16.partialorder %v6355_v17, 0  ;;  %v6387_v10 = vmul.bf16 1045249613, %v6355_v17  ;;  %v6358_v46 = vpack.c.bf16 %v6338_v53, %v6338_v53  ;;  %v10048_v29 = vld [vmem:[#allocation4 + $0x3ac] ss:$16 sps:$4 sm:$0xff]  }
 0x7eb   : > { %6628 = vmatpush1.bf16.msra.mxu0 %v10023_v41  ;;  %v6341_v56 = vpop.f32.mrf.mxu0  ;;  %v11975_v6 = vsel %vm6370_vm11, %v6354_v1, %v6386_v43  ;;  %v11982_v51 = vpop.permute.xlu1 %5627  ;;  %v10044_v1 = vld [vmem:[#allocation4 + $0x3cc] ss:$16 sps:$4 sm:$0xff]   ;;  %v10051_v43 = vld [vmem:[#allocation4 + $0x3a8] ss:$16 sps:$4 sm:$0xff]   ;;  %v10053_v53 = vld [vmem:[#allocation6 + $0x1a0] ss:$16 sps:$4 sm:$0xff]  }
 0x7ec   : > { %v6359_v22 = vpack.c.bf16 %v6340_v23, %v6340_v23  ;;  %6629 = vmatprep.subr.bf16.mxu0 %v10024_v34  ;;  %6763 = vmatpush1.bf16.msra.mxu1 %v10025_v40  ;;  %v11971_v44 = vsel %vm6371_vm10, %v6355_v17, %v6387_v10  ;;  %v6390_v18 = vmul.bf16 1045249613, %v6358_v46  ;;  %vm6374_vm15 = vcmp.gt.bf16.partialorder %v6358_v46, 0  ;;  %v10049_v17 = vld [vmem:[#allocation6 + $0x1c0] ss:$16 sps:$4 sm:$0xff]  }
 0x7ed   : > { %v6342_v20 = vpop.f32.mrf.mxu0  ;;  %6764 = vmatprep.subr.bf16.mxu1 %v10026_v25  ;;  %6531 = vmatprep.mubr.bf16.mxu0 %v11971_v44  ;;  %v5674_v27 = vsel %vm5045_vm13, %v11373_v8, %v11982_v51  ;;  %v10054_v10 = vld [vmem:[#allocation6 + $0x184] ss:$16 sps:$4 sm:$0xff]   ;;  %v10055_v41 = vld [vmem:[#allocation4 + $0x388] ss:$16 sps:$4 sm:$0xff]   ;;  %v10056_v34 = vld [vmem:[#allocation4 + $0x36c] ss:$16 sps:$4 sm:$0xff]  }
 0x7ee   : > { %v6391_v33 = vmul.bf16 1045249613, %v6359_v22  ;;  %6603 = vmatmul.mubr.bf16.gmra.mxu1 %v11914_v28  ;;  %vm6375_vm14 = vcmp.gt.bf16.partialorder %v6359_v22, 0  ;;  %6532 = vmatmul.mubr.bf16.gmra.mxu0 %v11975_v6  ;;  %v10030_v28 = vld [vmem:[#allocation6 + $0x44] ss:$16 sps:$4 sm:$0xff]   ;;  %v11985_v45 = vsel %vm6374_vm15, %v6358_v46, %v6390_v18  ;;  %v12774_v18 = vld [vmem:[#allocation20_spill] sm:$0xff] }
 0x7ef   : > { %6612 = vmatprep.mubr.bf16.mxu1 %v11920_v4  ;;  %6630 = vmatpush1.bf16.msra.mxu0 %v10027_v58  ;;  %v10032_v4 = vld [vmem:[#allocation6 + $0x40] ss:$16 sps:$4 sm:$0xff]   ;;  %v5630_v50 = vpop.permute.xlu0 %5629  ;;  %v10058_v20 = vld [vmem:[#allocation6 + $0x164] ss:$16 sps:$4 sm:$0xff]   ;;  %v10059_v25 = vld [vmem:[#allocation4 + $0x368] ss:$16 sps:$4 sm:$0xff]  }
 0x7f0   : > { %v11979_v42 = vsel %vm6375_vm14, %v6359_v22, %v6391_v33  ;;  %6765 = vmatpush1.bf16.msra.mxu1 %v10028_v38  ;;  %6631 = vmatprep.subr.bf16.mxu0 %v10029_v37  ;;  %v5675_v56 = vsel %vm5045_vm13, %v11376_v15, %v5630_v50  ;;  %v10057_v8 = vld [vmem:[#allocation6 + $0x180] ss:$16 sps:$4 sm:$0xff]   ;;  %v10060_v15 = vld [vmem:[#allocation4 + $0x34c] ss:$16 sps:$4 sm:$0xff]   ;;  %v10062_v37 = vld [vmem:[#allocation6 + $0x144] ss:$16 sps:$4 sm:$0xff]  }
 0x7f1   : > { %6541 = vmatprep.mubr.bf16.mxu0 %v11979_v42  ;;  %6766 = vmatprep.subr.bf16.mxu1 %v10030_v28  ;;  %v12773_v46 = vld [vmem:[#allocation19_spill] sm:$0xff]  ;;  %v10063_v51 = vld [vmem:[#allocation4 + $0x348] ss:$16 sps:$4 sm:$0xff]  }
 0x7f2   : > { %v10061_v58 = vld [vmem:[#allocation6 + $0x160] ss:$16 sps:$4 sm:$0xff]  }
 0x7f3   : > { %6632 = vmatpush1.bf16.msra.mxu0 %v10031_v26  ;;  %v10069_v50 = vld [vmem:[#allocation6 + $0x120] ss:$16 sps:$4 sm:$0xff]  }
 0x7f4   : > { %6767 = vmatpush1.bf16.msra.mxu1 %v10032_v4  ;;  %6633 = vmatprep.subr.bf16.mxu0 %v10033_v11  ;;  %v11988_v39 = vpop.permute.xlu1 %5631  ;;  %v10064_v11 = vld [vmem:[#allocation4 + $0x32c] ss:$16 sps:$4 sm:$0xff]  }
 0x7f5   : > { %6768 = vmatprep.subr.bf16.mxu1 %v10034_v63  ;;  %v5676_v33 = vsel %vm5045_vm13, %v12773_v46, %v11988_v39  ;;  %v10065_v63 = vld [vmem:[#allocation6 + $0x140] ss:$16 sps:$4 sm:$0xff]   ;;  %v10066_v39 = vld [vmem:[#allocation6 + $0x124] ss:$16 sps:$4 sm:$0xff]  }
 0x7f6   : > { %6613 = vmatmul.mubr.bf16.gmra.mxu1 %v11923_v9  ;;  %6542 = vmatmul.mubr.bf16.gmra.mxu0 %v11985_v45 }
 0x7f7   : > { %6634 = vmatpush1.bf16.msra.mxu0 %v10035_v30  ;;  %6653 = vmatprep.mubr.bf16.mxu0 %v11943_v62  ;;  %v5672_v62 = vsel %vm5045_vm13, %v11367_v52, %v5624_v14  ;;  %v5673_v52 = vsel %vm5045_vm13, %v11370_v21, %v5626_v47  ;;  %v10052_v21 = vld [vmem:[#allocation4 + $0x38c] ss:$16 sps:$4 sm:$0xff]   ;;  %v12775_v30 = vld [vmem:[#allocation21_spill] sm:$0xff] }
 0x7f8   : > { %6635 = vmatprep.subr.bf16.mxu0 %v10036_v49  ;;  %6769 = vmatpush1.bf16.msra.mxu1 %v10037_v24  ;;  %v5634_v31 = vpop.permute.xlu0 %5633  ;;  %v10067_v49 = vld [vmem:[#allocation4 + $0x328] ss:$16 sps:$4 sm:$0xff]  }
 0x7f9   : > { %6770 = vmatprep.subr.bf16.mxu1 %v10038_v55  ;;  %v5677_v28 = vsel %vm5045_vm13, %v12774_v18, %v5634_v31  ;;  %v10077_v31 = vld [vmem:[#allocation6 + $0x2c0] ss:$16 sps:$4 sm:$0xff]  }
 0x7fb   : > { %6636 = vmatpush1.bf16.msra.mxu0 %v10039_v36  ;;  %v10068_v36 = vld [vmem:[#allocation4 + $0x30c] ss:$16 sps:$4 sm:$0xff]  }
 0x7fc   : > { %v11991_v9 = vpop.permute.xlu1 %5635  ;;  %6637 = vmatprep.subr.bf16.mxu0 %v10040_v48  ;;  %6771 = vmatpush1.bf16.msra.mxu1 %v10041_v2  ;;  %v10070_v48 = vld [vmem:[#allocation6 + $0x104] ss:$16 sps:$4 sm:$0xff]   ;;  %v10071_v2 = vld [vmem:[#allocation4 + $0x308] ss:$16 sps:$4 sm:$0xff]  }
 0x7fd   : > { %6772 = vmatprep.subr.bf16.mxu1 %v10042_v12  ;;  %v5678_v47 = vsel %vm5045_vm13, %v12775_v30, %v11991_v9  ;;  %v10072_v12 = vld [vmem:[#allocation6 + $0x100] ss:$16 sps:$4 sm:$0xff]   ;;  %v10074_v9 = vld [vmem:[#allocation6 + $0xec] ss:$16 sps:$4 sm:$0xff]  }
 0x7ff   : > { %6638 = vmatpush2.bf16.msra.mxu0 %v10043_v16  ;;  %v10075_v16 = vld [vmem:[#allocation6 + $0x2e0] ss:$16 sps:$4 sm:$0xff]  }
 0x800   : > { %v5652_v5 = vpop.permute.xlu1 %5651  ;;  %6639 = vmatprep.subr.bf16.mxu0 %v10044_v1  ;;  %6773 = vmatpush2.bf16.msra.mxu1 %v10045_v7  ;;  %v10079_v1 = vld [vmem:[#allocation6 + $0x2a0] ss:$16 sps:$4 sm:$0xff]   ;;  %v10080_v7 = vld [vmem:[#allocation6 + $0x284] ss:$16 sps:$4 sm:$0xff]  }
 0x801   : > { %v5680_v61 = vsel %vm5679_vm0, %v5672_v62, %v5652_v5  ;;  %6774 = vmatprep.subr.bf16.mxu1 %v10046_v59  ;;  %v10073_v62 = vld [vmem:[#allocation6 + $0x2e4] ss:$16 sps:$4 sm:$0xff]   ;;  %v10081_v59 = vld [vmem:[#allocation6 + $0x280] ss:$16 sps:$4 sm:$0xff]  }
 0x802   : > { %7794 = vst.msk [vmem:[%s11997_s21] sm:$0xff] %vm7793_vm1, %v5680_v61  ;;  %v10076_v5 = vld [vmem:[#allocation6 + $0x2c4] ss:$16 sps:$4 sm:$0xff]  }
 0x803   : > { %6640 = vmatpush2.bf16.msra.mxu0 %v10047_v3  ;;  %v10078_v61 = vld [vmem:[#allocation6 + $0x2a4] ss:$16 sps:$4 sm:$0xff]  }
 0x804   : > { %6641 = vmatprep.subr.bf16.mxu0 %v10048_v29  ;;  %6775 = vmatpush2.bf16.msra.mxu1 %v10049_v17  ;;  %v10084_v3 = vld [vmem:[#allocation6 + $0x244] ss:$16 sps:$4 sm:$0xff]   ;;  %v10089_v29 = vld [vmem:[#allocation6 + $0x200] ss:$16 sps:$4 sm:$0xff]  }
 0x805   : > { %v5654_v57 = vpop.permute.xlu0 %5653  ;;  %6776 = vmatprep.subr.bf16.mxu1 %v10050_v35  ;;  %v10090_v17 = vld [vmem:[#allocation6 + $0x3e4] ss:$16 sps:$4 sm:$0xff]  }
 0x806   : > { %v5681_v54 = vsel %vm5679_vm0, %v5673_v52, %v5654_v57  ;;  %v10085_v52 = vld [vmem:[#allocation6 + $0x240] ss:$16 sps:$4 sm:$0xff]   ;;  %v10088_v57 = vld [vmem:[#allocation6 + $0x204] ss:$16 sps:$4 sm:$0xff]  }
 0x807   : > { %7795 = vst.msk [vmem:[%s11997_s21 + $0x8] sm:$0xff] %vm7793_vm1, %v5681_v54  ;;  %6642 = vmatpush2.bf16.msra.mxu0 %v10051_v43  ;;  %v10093_v54 = vld [vmem:[#allocation6 + $0x3c0] ss:$16 sps:$4 sm:$0xff]   ;;  %v10094_v35 = vld [vmem:[#allocation6 + $0x3a4] ss:$16 sps:$4 sm:$0xff]  }
 0x808   : > { %6643 = vmatprep.subr.bf16.mxu0 %v10052_v21  ;;  %6777 = vmatpush2.bf16.msra.mxu1 %v10053_v53  ;;  %v10095_v43 = vld [vmem:[#allocation6 + $0x3a0] ss:$16 sps:$4 sm:$0xff]   ;;  %v10100_v53 = vld [vmem:[#allocation6 + $0x344] ss:$16 sps:$4 sm:$0xff]  }
 0x809   : > { %v5656_v13 = vpop.permute.xlu1 %5655  ;;  %6778 = vmatprep.subr.bf16.mxu1 %v10054_v10  ;;  %v10099_v21 = vld [vmem:[#allocation6 + $0x360] ss:$16 sps:$4 sm:$0xff]   ;;  %v10102_v10 = vld [vmem:[#allocation6 + $0x324] ss:$16 sps:$4 sm:$0xff]  }
 0x80a   : > { %v5682_v23 = vsel %vm5679_vm0, %v5674_v27, %v5656_v13  ;;  %v10096_v27 = vld [vmem:[#allocation6 + $0x384] ss:$16 sps:$4 sm:$0xff]  }
 0x80b   : > { %7796 = vst.msk [vmem:[%s11997_s21 + $0x10] sm:$0xff] %vm7793_vm1, %v5682_v23  ;;  %6644 = vmatpush2.bf16.msra.mxu0 %v10055_v41  ;;  %v10098_v13 = vld [vmem:[#allocation6 + $0x364] ss:$16 sps:$4 sm:$0xff]   ;;  %v10101_v23 = vld [vmem:[#allocation6 + $0x340] ss:$16 sps:$4 sm:$0xff]  }
 0x80c   : > { %6645 = vmatprep.subr.bf16.mxu0 %v10056_v34  ;;  %6779 = vmatpush2.bf16.msra.mxu1 %v10057_v8  ;;  %v10103_v41 = vld [vmem:[#allocation6 + $0x320] ss:$16 sps:$4 sm:$0xff]   ;;  %v10106_v34 = vld [vmem:[#allocation6 + $0x2ec] ss:$16 sps:$4 sm:$0xff]  }
 0x80d   : > { %v5658_v22 = vpop.permute.xlu0 %5657  ;;  %6780 = vmatprep.subr.bf16.mxu1 %v10058_v20 }
 0x80e   : > { %v5683_v40 = vsel %vm5679_vm0, %v5675_v56, %v5658_v22  ;;  %v10104_v56 = vld [vmem:[#allocation6 + $0x304] ss:$16 sps:$4 sm:$0xff]   ;;  %v10105_v22 = vld [vmem:[#allocation6 + $0x300] ss:$16 sps:$4 sm:$0xff]  }
 0x80f   : > { %7797 = vst.msk [vmem:[%s11997_s21 + $0x18] sm:$0xff] %vm7793_vm1, %v5683_v40  ;;  %6646 = vmatpush2.bf16.msra.mxu0 %v10059_v25 }
 0x810   : > { %6647 = vmatprep.subr.bf16.mxu0 %v10060_v15  ;;  %6781 = vmatpush2.bf16.msra.mxu1 %v10061_v58 }
 0x811   : > { %v5660_v14 = vpop.permute.xlu1 %5659  ;;  %6782 = vmatprep.subr.bf16.mxu1 %v10062_v37 }
 0x812   : > { %v5684_v38 = vsel %vm5679_vm0, %v5676_v33, %v5660_v14 }
 0x813   : > { %7798 = vst.msk [vmem:[%s11997_s21 + $0x20] sm:$0xff] %vm7793_vm1, %v5684_v38  ;;  %6648 = vmatpush2.bf16.msra.mxu0 %v10063_v51 }
 0x814   : > { %v5662_v26 = vpop.permute.xlu0 %5661  ;;  %6649 = vmatprep.subr.bf16.mxu0 %v10064_v11  ;;  %6783 = vmatpush2.bf16.msra.mxu1 %v10065_v63 }
 0x815   : > { %v5685_v4 = vsel %vm5679_vm0, %v5677_v28, %v5662_v26  ;;  %6784 = vmatprep.subr.bf16.mxu1 %v10066_v39 }
 0x816   : > { %7799 = vst.msk [vmem:[%s11997_s21 + $0x28] sm:$0xff] %vm7793_vm1, %v5685_v4 }
 0x817   : > { %6650 = vmatpush2.bf16.msra.mxu0 %v10067_v49 }
 0x818   : > { %v5664_v24 = vpop.permute.xlu1 %5663  ;;  %6651 = vmatprep.subr.bf16.mxu0 %v10068_v36  ;;  %6785 = vmatpush2.bf16.msra.mxu1 %v10069_v50  ;;  %v12777_v50 = vld [vmem:[#allocation9_spill] sm:$0xff] }
 0x819   : > { %v5686_v55 = vsel %vm5679_vm0, %v5678_v47, %v5664_v24  ;;  %6786 = vmatprep.subr.bf16.mxu1 %v10070_v48  ;;  %v12776_v47 = vld [vmem:[#allocation10_spill] sm:$0xff] }
 0x81a   : > { %7800 = vst.msk [vmem:[%s11997_s21 + $0x30] sm:$0xff] %vm7793_vm1, %v5686_v55 }
 0x81b   : > { %6652 = vmatpush2.bf16.msra.mxu0 %v10071_v2 }
 0x81c   : > { %6787 = vmatpush2.bf16.msra.mxu1 %v10072_v12  ;;  %6827 = vmatprep.subr.bf16.mxu0 %v10073_v62 }
 0x81d   : > { %6898 = vmatprep.subr.bf16.mxu1 %v10074_v9 }
 0x81e   : > { %6654 = vmatmul.mubr.bf16.vlgmr.msra.gmra.mxu0 %v11945_v60  ;;  %v10082_v60 = vld [vmem:[#allocation6 + $0x264] ss:$16 sps:$4 sm:$0xff]  }
 0x81f   : > { %6663 = vmatprep.mubr.bf16.mxu0 %v11959_v0  ;;  %6828 = vmatpush1.bf16.msra.mxu0 %v10075_v16  ;;  %v10083_v0 = vld [vmem:[#allocation6 + $0x260] ss:$16 sps:$4 sm:$0xff]  }
 0x820   : > { %6829 = vmatprep.subr.bf16.mxu0 %v10076_v5 }
 0x823   : > { %6830 = vmatpush1.bf16.msra.mxu0 %v10077_v31 }
 0x824   : > { %6831 = vmatprep.subr.bf16.mxu0 %v10078_v61 }
 0x826   : > { %6664 = vmatmul.mubr.bf16.gmra.mxu0 %v11962_v19  ;;  %v10086_v19 = vld [vmem:[#allocation6 + $0x224] ss:$16 sps:$4 sm:$0xff]  }
 0x827   : > { %6673 = vmatprep.mubr.bf16.mxu0 %v11971_v44  ;;  %6832 = vmatpush1.bf16.msra.mxu0 %v10079_v1  ;;  %v10087_v44 = vld [vmem:[#allocation6 + $0x220] ss:$16 sps:$4 sm:$0xff]  }
 0x828   : > { %6833 = vmatprep.subr.bf16.mxu0 %v10080_v7 }
 0x82b   : > { %6834 = vmatpush1.bf16.msra.mxu0 %v10081_v59 }
 0x82c   : > { %6835 = vmatprep.subr.bf16.mxu0 %v10082_v60 }
 0x82e   : > { %6674 = vmatmul.mubr.bf16.gmra.mxu0 %v11975_v6  ;;  %v10091_v6 = vld [vmem:[#allocation6 + $0x3e0] ss:$16 sps:$4 sm:$0xff]  }
 0x82f   : > { %6683 = vmatprep.mubr.bf16.mxu0 %v11979_v42  ;;  %6836 = vmatpush1.bf16.msra.mxu0 %v10083_v0  ;;  %v10092_v42 = vld [vmem:[#allocation6 + $0x3c4] ss:$16 sps:$4 sm:$0xff]  }
 0x830   : > { %6837 = vmatprep.subr.bf16.mxu0 %v10084_v3 }
 0x833   : > { %6838 = vmatpush1.bf16.msra.mxu0 %v10085_v52 }
 0x834   : > { %6839 = vmatprep.subr.bf16.mxu0 %v10086_v19 }
 0x836   : > { %6684 = vmatmul.mubr.bf16.gmra.mxu0 %v11985_v45  ;;  %v10097_v45 = vld [vmem:[#allocation6 + $0x380] ss:$16 sps:$4 sm:$0xff]  }
 0x837   : > { %6840 = vmatpush1.bf16.msra.mxu0 %v10087_v44 }
 0x838   : > { %6841 = vmatprep.subr.bf16.mxu0 %v10088_v57 }
 0x83b   : > { %6842 = vmatpush1.bf16.msra.mxu0 %v10089_v29 }
 0x83c   : > { %6843 = vmatprep.subr.bf16.mxu0 %v10090_v17 }
 0x83f   : > { %6844 = vmatpush2.bf16.msra.mxu0 %v10091_v6 }
 0x840   : > { %6845 = vmatprep.subr.bf16.mxu0 %v10092_v42 }
 0x843   : > { %6846 = vmatpush2.bf16.msra.mxu0 %v10093_v54 }
 0x844   : > { %6847 = vmatprep.subr.bf16.mxu0 %v10094_v35 }
 0x847   : > { %6848 = vmatpush2.bf16.msra.mxu0 %v10095_v43 }
 0x848   : > { %6849 = vmatprep.subr.bf16.mxu0 %v10096_v27 }
 0x84b   : > { %6850 = vmatpush2.bf16.msra.mxu0 %v10097_v45 }
 0x84c   : > { %6851 = vmatprep.subr.bf16.mxu0 %v10098_v13 }
 0x84f   : > { %6852 = vmatpush2.bf16.msra.mxu0 %v10099_v21 }
 0x850   : > { %6853 = vmatprep.subr.bf16.mxu0 %v10100_v53 }
 0x853   : > { %6854 = vmatpush2.bf16.msra.mxu0 %v10101_v23 }
 0x854   : > { %6855 = vmatprep.subr.bf16.mxu0 %v10102_v10 }
 0x857   : > { %6856 = vmatpush2.bf16.msra.mxu0 %v10103_v41  ;;  %v10107_v41 = vld [vmem:[#allocation6 + $0xe8] ss:$16 sps:$4 sm:$0xff]  }
 0x858   : > { %6857 = vmatprep.subr.bf16.mxu0 %v10104_v56 }
 0x85b   : > { %6858 = vmatpush2.bf16.msra.mxu0 %v10105_v22 }
 0x85c   : > { %6969 = vmatprep.subr.bf16.mxu0 %v10106_v34  ;;  %v10108_v34 = vld [vmem:[#allocation6 + $0xcc] ss:$16 sps:$4 sm:$0xff]  }
 0x85e   : > { %v6442_v8 = vpop.f32.mrf.mxu1 }
 0x85f   : > { %v6443_v49 = vadd.f32 %v6442_v8, %v12776_v47 }
 0x860   : > { %v6444_v40 = vpop.f32.mrf.mxu1 }
 0x861   : > { %v6445_v48 = vadd.f32 %v6444_v40, %v12777_v50 }
 0x862   : > { %v6446_v20 = vpop.f32.mrf.mxu1 }
 0x863   : > { %v6447_v24 = vadd.f32 %v6446_v20, %v12776_v47 }
 0x864   : > { %v6448_v25 = vpop.f32.mrf.mxu1 }
 0x865   : > { %v6449_v2 = vadd.f32 %v6448_v25, %v12777_v50 }
 0x866   : > { %v6452_v46 = vpop.f32.mrf.mxu1 }
 0x867   : > { %v6453_v3 = vadd.f32 %v6452_v46, %v12776_v47 }
 0x868   : > { %v6454_v33 = vpop.f32.mrf.mxu1 }
 0x869   : > { %v6455_v17 = vadd.f32 %v6454_v33, %v12777_v50 }
 0x86a   : > { %v6456_v14 = vpop.f32.mrf.mxu1 }
 0x86b   : > { %v6457_v52 = vadd.f32 %v6456_v14, %v12776_v47 }
 0x86c   : > { %v6458_v15 = vpop.f32.mrf.mxu1 }
 0x86d   : > { %v6459_v6 = vadd.f32 %v6458_v15, %v12777_v50  ;;  %v10109_v15 = vld [vmem:[#allocation6 + $0xc8] ss:$16 sps:$4 sm:$0xff]  }
 0x86e   : > { %v12044_v58 = vpop.f32.mrf.mxu1 }
 0x86f   : > { %v6463_v25 = vadd.f32 %v12044_v58, %v12776_v47  ;;  %v10110_v58 = vld [vmem:[#allocation6 + $0xac] ss:$16 sps:$4 sm:$0xff]  }
 0x870   : > { %v12046_v38 = vpop.f32.mrf.mxu1 }
 0x871   : > { %v6465_v14 = vadd.f32 %v12046_v38, %v12777_v50 }
 0x872   : > { %v6466_v37 = vpop.f32.mrf.mxu1 }
 0x873   : > { %v6467_v46 = vadd.f32 %v6466_v37, %v12776_v47 }
 0x874   : > { %v12048_v18 = vpop.f32.mrf.mxu1 }
 0x876   : > { %v12050_v28 = vpop.f32.mrf.mxu1 }
 0x878   : > { %v12052_v51 = vpop.f32.mrf.mxu1 }
 0x87a   : > { %v6476_v26 = vpop.f32.mrf.mxu1 }
 0x87c   : > { %v6477_v4 = vpop.f32.mrf.mxu1 }
 0x89e   : > { %v12054_v11 = vpop.f32.mrf.mxu1  ;;  %v6513_v63 = vpop.f32.mrf.mxu0 }
 0x89f   : > { %v6514_v12 = vadd.f32 %v6513_v63, %v6443_v49  ;;  %v6469_v63 = vadd.f32 %v12048_v18, %v12777_v50  ;;  %v6473_v18 = vadd.f32 %v12050_v28, %v12776_v47  ;;  %v10113_v28 = vld [vmem:[#allocation6 + $0x88] ss:$16 sps:$4 sm:$0xff]  }
 0x8a0   : > { %v12056_v39 = vpop.f32.mrf.mxu1  ;;  %v6515_v30 = vpop.f32.mrf.mxu0 }
 0x8a1   : > { %v6516_v5 = vadd.f32 %v6515_v30, %v6445_v48 }
 0x8a2   : > { %v12060_v55 = vpop.f32.mrf.mxu1  ;;  %v6517_v36 = vpop.f32.mrf.mxu0 }
 0x8a3   : > { %v6518_v62 = vadd.f32 %v6517_v36, %v6447_v24 }
 0x8a4   : > { %v12064_v9 = vpop.f32.mrf.mxu1  ;;  %v6519_v16 = vpop.f32.mrf.mxu0 }
 0x8a5   : > { %v6692_v31 = vpack.c.bf16 %v6518_v62, %v6514_v12  ;;  %v6520_v61 = vadd.f32 %v6519_v16, %v6449_v2  ;;  %v10111_v62 = vld [vmem:[#allocation6 + $0xa8] ss:$16 sps:$4 sm:$0xff]  }
 0x8a6   : > { %v12066_v1 = vpop.f32.mrf.mxu1  ;;  %v6523_v7 = vpop.f32.mrf.mxu0 }
 0x8a7   : > { %v6693_v59 = vpack.c.bf16 %v6520_v61, %v6516_v5  ;;  %v6724_v19 = vmul.bf16 1045249613, %v6692_v31  ;;  %vm6708_vm3 = vcmp.gt.bf16.partialorder %v6692_v31, 0  ;;  %v6524_v42 = vadd.f32 %v6523_v7, %v6453_v3  ;;  %v10112_v7 = vld [vmem:[#allocation6 + $0x8c] ss:$16 sps:$4 sm:$0xff]  }
 0x8a8   : > { %v12068_v60 = vpop.f32.mrf.mxu1  ;;  %v6525_v0 = vpop.f32.mrf.mxu0  ;;  %v6475_v5 = vadd.f32 %v12052_v51, %v12777_v50  ;;  %v10114_v51 = vld [vmem:[#allocation6 + $0x6c] ss:$16 sps:$4 sm:$0xff]  }
 0x8a9   : > { %vm6709_vm2 = vcmp.gt.bf16.partialorder %v6693_v59, 0  ;;  %v6725_v29 = vmul.bf16 1045249613, %v6693_v59  ;;  %v12080_v45 = vsel %vm6708_vm3, %v6692_v31, %v6724_v19  ;;  %v6526_v13 = vadd.f32 %v6525_v0, %v6455_v17 }
 0x8aa   : > { %v12072_v44 = vpop.f32.mrf.mxu1  ;;  %v6527_v57 = vpop.f32.mrf.mxu0 }
 0x8ab   : > { %v6528_v54 = vadd.f32 %v6527_v57, %v6457_v52  ;;  %v12078_v27 = vsel %vm6709_vm2, %v6693_v59, %v6725_v29 }
 0x8ac   : > { %v12076_v35 = vpop.f32.mrf.mxu1  ;;  %v6529_v43 = vpop.f32.mrf.mxu0  ;;  %6788 = vmatprep.mubr.bf16.mxu1 %v12078_v27 }
 0x8ad   : > { %v6696_v21 = vpack.c.bf16 %v6528_v54, %v6524_v42  ;;  %v6530_v53 = vadd.f32 %v6529_v43, %v6459_v6  ;;  %6789 = vmatmul.mubr.bf16.vlgmr.msra.gmra.mxu1 %v12080_v45 }
 0x8ae   : > { %v12083_v23 = vpop.f32.mrf.mxu1  ;;  %6899 = vmatpush1.bf16.msra.mxu1 %v10107_v41  ;;  %v6533_v56 = vpop.f32.mrf.mxu0  ;;  %v10117_v41 = vld [vmem:[#allocation6 + $0x48] ss:$16 sps:$4 sm:$0xff]  }
 0x8af   : > { %v6697_v10 = vpack.c.bf16 %v6530_v53, %v6526_v13  ;;  %6900 = vmatprep.subr.bf16.mxu1 %v10108_v34  ;;  %v6728_v8 = vmul.bf16 1045249613, %v6696_v21  ;;  %vm6712_vm5 = vcmp.gt.bf16.partialorder %v6696_v21, 0  ;;  %v6534_v30 = vadd.f32 %v6533_v56, %v6463_v25  ;;  %v10115_v13 = vld [vmem:[#allocation6 + $0x68] ss:$16 sps:$4 sm:$0xff]  }
 0x8b0   : > { %v12086_v22 = vpop.f32.mrf.mxu1  ;;  %v6535_v40 = vpop.f32.mrf.mxu0  ;;  %v10116_v53 = vld [vmem:[#allocation6 + $0x4c] ss:$16 sps:$4 sm:$0xff]  }
 0x8b1   : > { %vm6713_vm4 = vcmp.gt.bf16.partialorder %v6697_v10, 0  ;;  %v6729_v20 = vmul.bf16 1045249613, %v6697_v10  ;;  %v12102_v36 = vsel %vm6712_vm5, %v6696_v21, %v6728_v8  ;;  %v6536_v38 = vadd.f32 %v6535_v40, %v6465_v14  ;;  %v10118_v56 = vld [vmem:[#allocation6 + $0x2c] ss:$16 sps:$4 sm:$0xff]  }
 0x8b2   : > { %v12091_v33 = vpop.f32.mrf.mxu1  ;;  %6901 = vmatpush1.bf16.msra.mxu1 %v10109_v15  ;;  %v6537_v26 = vpop.f32.mrf.mxu0  ;;  %v10119_v8 = vld [vmem:[#allocation6 + $0x28] ss:$16 sps:$4 sm:$0xff]   ;;  %v10120_v40 = vld [vmem:[#allocation6 + $0xc] ss:$16 sps:$4 sm:$0xff]  }
 0x8b3   : > { %v12095_v4 = vsel %vm6713_vm4, %v6697_v10, %v6729_v20  ;;  %v6538_v49 = vadd.f32 %v6537_v26, %v6467_v46  ;;  %6902 = vmatprep.subr.bf16.mxu1 %v10110_v58  ;;  %v10121_v20 = vld [vmem:[#allocation6 + $0x8] ss:$16 sps:$4 sm:$0xff]   ;;  %v10122_v25 = vld [vmem:[#allocation6 + $0x1ec] ss:$16 sps:$4 sm:$0xff]  }
 0x8b4   : > { %v12099_v24 = vpop.f32.mrf.mxu1  ;;  %6798 = vmatprep.mubr.bf16.mxu1 %v12095_v4  ;;  %v6539_v37 = vpop.f32.mrf.mxu0  ;;  %v10123_v46 = vld [vmem:[#allocation6 + $0x1e8] ss:$16 sps:$4 sm:$0xff]   ;;  %v10124_v14 = vld [vmem:[#allocation6 + $0x1cc] ss:$16 sps:$4 sm:$0xff]  }
 0x8b5   : > { %v6700_v48 = vpack.c.bf16 %v6538_v49, %v6534_v30  ;;  %v6540_v2 = vadd.f32 %v6539_v37, %v6469_v63  ;;  %6799 = vmatmul.mubr.bf16.gmra.mxu1 %v12102_v36  ;;  %v10125_v15 = vld [vmem:[#allocation6 + $0x1c8] ss:$16 sps:$4 sm:$0xff]   ;;  %v10126_v26 = vld [vmem:[#allocation6 + $0x1ac] ss:$16 sps:$4 sm:$0xff]  }
 0x8b6   : > { %v12104_v12 = vpop.f32.mrf.mxu1  ;;  %6903 = vmatpush1.bf16.msra.mxu1 %v10111_v62  ;;  %v6543_v16 = vpop.f32.mrf.mxu0  ;;  %v10127_v63 = vld [vmem:[#allocation6 + $0x1a8] ss:$16 sps:$4 sm:$0xff]   ;;  %v10128_v30 = vld [vmem:[#allocation6 + $0x18c] ss:$16 sps:$4 sm:$0xff]  }
 0x8b7   : > { %v6701_v31 = vpack.c.bf16 %v6540_v2, %v6536_v38  ;;  %6904 = vmatprep.subr.bf16.mxu1 %v10112_v7  ;;  %v6732_v59 = vmul.bf16 1045249613, %v6700_v48  ;;  %v6544_v0 = vadd.f32 %v6543_v16, %v6473_v18  ;;  %vm6716_vm7 = vcmp.gt.bf16.partialorder %v6700_v48, 0  ;;  %v10129_v49 = vld [vmem:[#allocation6 + $0x188] ss:$16 sps:$4 sm:$0xff]   ;;  %v12778_v2 = vld [vmem:[#allocation11_spill] sm:$0xff] }
 0x8b8   : > { %v12111_v61 = vpop.f32.mrf.mxu1  ;;  %v6545_v3 = vpop.f32.mrf.mxu0  ;;  %v10131_v37 = vld [vmem:[#allocation6 + $0x168] ss:$16 sps:$4 sm:$0xff]   ;;  %v10132_v38 = vld [vmem:[#allocation6 + $0x14c] ss:$16 sps:$4 sm:$0xff]   ;;  %v6585_v18 = vadd.f32 %v12054_v11, %v12778_v2  ;;  %v6589_v62 = vadd.f32 %v12060_v55, %v12778_v2 }
 0x8b9   : > { %v6546_v52 = vadd.f32 %v6545_v3, %v6475_v5  ;;  %vm6717_vm6 = vcmp.gt.bf16.partialorder %v6701_v31, 0  ;;  %v6733_v57 = vmul.bf16 1045249613, %v6701_v31  ;;  %v6704_v50 = vpack.c.bf16 %v6544_v0, %v6544_v0  ;;  %v10133_v5 = vld [vmem:[#allocation6 + $0x148] ss:$16 sps:$4 sm:$0xff]  }
 0x8ba   : > { %v6618_v19 = vpop.f32.mrf.mxu1  ;;  %6905 = vmatpush1.bf16.msra.mxu1 %v10113_v28  ;;  %v6547_v47 = vpop.f32.mrf.mxu0  ;;  %v12116_v54 = vsel %vm6716_vm7, %v6700_v48, %v6732_v59 }
 0x8bb   : > { %v6705_v29 = vpack.c.bf16 %v6546_v52, %v6546_v52  ;;  %v12113_v6 = vsel %vm6717_vm6, %v6701_v31, %v6733_v57  ;;  %6906 = vmatprep.subr.bf16.mxu1 %v10114_v51  ;;  %v6736_v10 = vmul.bf16 1045249613, %v6704_v50  ;;  %vm6720_vm9 = vcmp.gt.bf16.partialorder %v6704_v50, 0  ;;  %v12779_v31 = vld [vmem:[#allocation12_spill] sm:$0xff] }
 0x8bc   : > { %v6619_v17 = vpop.f32.mrf.mxu1  ;;  %v6548_v42 = vpop.f32.mrf.mxu0  ;;  %6808 = vmatprep.mubr.bf16.mxu1 %v12113_v6  ;;  %v6587_v7 = vadd.f32 %v12056_v39, %v12779_v31  ;;  %v6591_v59 = vadd.f32 %v12064_v9, %v12779_v31  ;;  %v10134_v52 = vld [vmem:[#allocation6 + $0x12c] ss:$16 sps:$4 sm:$0xff]   ;;  %v6595_v39 = vadd.f32 %v12066_v1, %v12778_v2  ;;  %v6599_v9 = vadd.f32 %v12072_v44, %v12778_v2 }
 0x8bd   : > { %v6737_v43 = vmul.bf16 1045249613, %v6705_v29  ;;  %6809 = vmatmul.mubr.bf16.gmra.mxu1 %v12116_v54  ;;  %vm6721_vm8 = vcmp.gt.bf16.partialorder %v6705_v29, 0  ;;  %v12122_v34 = vsel %vm6720_vm9, %v6704_v50, %v6736_v10  ;;  %v10136_v17 = vld [vmem:[#allocation6 + $0x10c] ss:$16 sps:$4 sm:$0xff]   ;;  %v6601_v10 = vadd.f32 %v12076_v35, %v12779_v31 }
 0x8be   : > { %6907 = vmatpush1.bf16.msra.mxu1 %v10115_v13  ;;  %v10138_v44 = vld [vmem:[%s12682_s10 + $0x78] sm:$0xff]  }
 0x8bf   : > { %v12119_v21 = vsel %vm6721_vm8, %v6705_v29, %v6737_v43  ;;  %6908 = vmatprep.subr.bf16.mxu1 %v10116_v53  ;;  %v10135_v29 = vld [vmem:[#allocation6 + $0x128] ss:$16 sps:$4 sm:$0xff]   ;;  %v6597_v43 = vadd.f32 %v12068_v60, %v12779_v31 }
 0x8c0   : > { %6818 = vmatprep.mubr.bf16.mxu1 %v12119_v21  ;;  %v10137_v53 = vld [vmem:[#allocation6 + $0x108] ss:$16 sps:$4 sm:$0xff]  }
 0x8c1   : > { %v10139_v35 = vld [vmem:[#allocation6 + $0x2e8] ss:$16 sps:$4 sm:$0xff]  }
 0x8c2   : > { %6909 = vmatpush1.bf16.msra.mxu1 %v10117_v41 }
 0x8c3   : > { %6910 = vmatprep.subr.bf16.mxu1 %v10118_v56 }
 0x8c5   : > { %6819 = vmatmul.mubr.bf16.gmra.mxu1 %v12122_v34 }
 0x8c6   : > { %6911 = vmatpush1.bf16.msra.mxu1 %v10119_v8  ;;  %6930 = vmatprep.mubr.bf16.mxu1 %v12078_v27  ;;  %v10130_v27 = vld [vmem:[#allocation6 + $0x16c] ss:$16 sps:$4 sm:$0xff]  }
 0x8c7   : > { %6912 = vmatprep.subr.bf16.mxu1 %v10120_v40 }
 0x8ca   : > { %6913 = vmatpush1.bf16.msra.mxu1 %v10121_v20 }
 0x8cb   : > { %6914 = vmatprep.subr.bf16.mxu1 %v10122_v25 }
 0x8ce   : > { %6915 = vmatpush2.bf16.msra.mxu1 %v10123_v46 }
 0x8cf   : > { %6916 = vmatprep.subr.bf16.mxu1 %v10124_v14 }
 0x8d2   : > { %6917 = vmatpush2.bf16.msra.mxu1 %v10125_v15  ;;  %v10140_v15 = vld [vmem:[#allocation6 + $0x2cc] ss:$16 sps:$4 sm:$0xff]  }
 0x8d3   : > { %6918 = vmatprep.subr.bf16.mxu1 %v10126_v26  ;;  %v10141_v26 = vld [vmem:[%s12682_s10 + $0x38] sm:$0xff]  }
 0x8d6   : > { %6919 = vmatpush2.bf16.msra.mxu1 %v10127_v63  ;;  %v6605_v63 = vadd.f32 %v12083_v23, %v12778_v2  ;;  %v10143_v23 = vld [vmem:[#allocation6 + $0x2c8] ss:$16 sps:$4 sm:$0xff]  }
 0x8d7   : > { %6920 = vmatprep.subr.bf16.mxu1 %v10128_v30 }
 0x8da   : > { %6921 = vmatpush2.bf16.msra.mxu1 %v10129_v49 }
 0x8db   : > { %6922 = vmatprep.subr.bf16.mxu1 %v10130_v27 }
 0x8de   : > { %v6655_v58 = vpop.f32.mrf.mxu0  ;;  %6923 = vmatpush2.bf16.msra.mxu1 %v10131_v37  ;;  %v6611_v37 = vadd.f32 %v12099_v24, %v12779_v31  ;;  %v10146_v24 = vld [vmem:[%s12682_s10 + $0x68] sm:$0xff]  }
 0x8df   : > { %6924 = vmatprep.subr.bf16.mxu1 %v10132_v38  ;;  %v6656_v0 = vadd.f32 %v6655_v58, %v6585_v18  ;;  %v6607_v58 = vadd.f32 %v12086_v22, %v12779_v31 }
 0x8e0   : > { %v6657_v48 = vpop.f32.mrf.mxu0 }
 0x8e1   : > { %v6658_v57 = vadd.f32 %v6657_v48, %v6587_v7 }
 0x8e2   : > { %v6659_v16 = vpop.f32.mrf.mxu0  ;;  %6925 = vmatpush2.bf16.msra.mxu1 %v10133_v5 }
 0x8e3   : > { %v6660_v3 = vadd.f32 %v6659_v16, %v6589_v62  ;;  %6926 = vmatprep.subr.bf16.mxu1 %v10134_v52  ;;  %v10144_v16 = vld [vmem:[#allocation6 + $0x2ac] ss:$16 sps:$4 sm:$0xff]   ;;  %v10147_v52 = vld [vmem:[#allocation6 + $0x2a8] ss:$16 sps:$4 sm:$0xff]  }
 0x8e4   : > { %v6661_v19 = vpop.f32.mrf.mxu0 }
 0x8e5   : > { %v6694_v28 = vpack.c.bf16 %v6660_v3, %v6656_v0  ;;  %v6662_v11 = vadd.f32 %v6661_v19, %v6591_v59  ;;  %v6615_v3 = vadd.f32 %v12104_v12, %v12778_v2  ;;  %v10150_v12 = vld [vmem:[%s12682_s10 + $0x60] sm:$0xff]  }
 0x8e6   : > { %v6665_v47 = vpop.f32.mrf.mxu0  ;;  %6927 = vmatpush2.bf16.msra.mxu1 %v10135_v29 }
 0x8e7   : > { %v6695_v55 = vpack.c.bf16 %v6662_v11, %v6658_v57  ;;  %6928 = vmatprep.subr.bf16.mxu1 %v10136_v17  ;;  %v6726_v51 = vmul.bf16 1045249613, %v6694_v28  ;;  %vm6710_vm10 = vcmp.gt.bf16.partialorder %v6694_v28, 0  ;;  %v6666_v41 = vadd.f32 %v6665_v47, %v6595_v39  ;;  %v10148_v11 = vld [vmem:[#allocation6 + $0x28c] ss:$16 sps:$4 sm:$0xff]  }
 0x8e8   : > { %v6667_v50 = vpop.f32.mrf.mxu0  ;;  %v6617_v57 = vadd.f32 %v12111_v61, %v12779_v31  ;;  %v10149_v47 = vld [vmem:[%s12682_s10 + $0x28] sm:$0xff]  }
 0x8e9   : > { %vm6711_vm11 = vcmp.gt.bf16.partialorder %v6695_v55, 0  ;;  %v6727_v42 = vmul.bf16 1045249613, %v6695_v55  ;;  %v12147_v8 = vsel %vm6710_vm10, %v6694_v28, %v6726_v51  ;;  %v6668_v60 = vadd.f32 %v6667_v50, %v6597_v43  ;;  %v10151_v61 = vld [vmem:[#allocation6 + $0x288] ss:$16 sps:$4 sm:$0xff]   ;;  %v10153_v50 = vld [vmem:[%s12682_s10 + $0x20] sm:$0xff]  }
 0x8ea   : > { %v6669_v13 = vpop.f32.mrf.mxu0  ;;  %6929 = vmatpush2.bf16.msra.mxu1 %v10137_v53  ;;  %v10152_v51 = vld [vmem:[#allocation6 + $0x26c] ss:$16 sps:$4 sm:$0xff]  }
 0x8eb   : > { %v6670_v56 = vadd.f32 %v6669_v13, %v6599_v9  ;;  %v12142_v1 = vsel %vm6711_vm11, %v6695_v55, %v6727_v42  ;;  %8536 = vmatprep.subr.bf16.mxu1 %v10138_v44  ;;  %v10154_v13 = vld [vmem:[%s12682_s10 + $0x58] sm:$0xff]  }
 0x8ec   : > { %v6671_v40 = vpop.f32.mrf.mxu0  ;;  %6859 = vmatprep.mubr.bf16.mxu0 %v12142_v1  ;;  %v10157_v44 = vld [vmem:[%s12682_s10 + $0x18] sm:$0xff]  }
 0x8ed   : > { %v6698_v20 = vpack.c.bf16 %v6670_v56, %v6666_v41  ;;  %v6672_v25 = vadd.f32 %v6671_v40, %v6601_v10  ;;  %6860 = vmatmul.mubr.bf16.vlgmr.msra.gmra.mxu0 %v12147_v8  ;;  %6931 = vmatmul.mubr.bf16.vlgmr.msra.gmra.mxu1 %v12080_v45  ;;  %v10142_v45 = vld [vmem:[%s12682_s10 + $0x70] sm:$0xff]   ;;  %v10155_v10 = vld [vmem:[#allocation6 + $0x268] ss:$16 sps:$4 sm:$0xff]   ;;  %v10156_v56 = vld [vmem:[#allocation6 + $0x24c] ss:$16 sps:$4 sm:$0xff]  }
 0x8ee   : > { %6970 = vmatpush1.bf16.msra.mxu0 %v10139_v35  ;;  %v6675_v46 = vpop.f32.mrf.mxu0  ;;  %6940 = vmatprep.mubr.bf16.mxu1 %v12095_v4  ;;  %v6609_v4 = vadd.f32 %v12091_v33, %v12778_v2  ;;  %v10145_v33 = vld [vmem:[%s12682_s10 + $0x30] sm:$0xff]   ;;  %v10162_v35 = vld [vmem:[%s12682_s10 + $0x48] sm:$0xff]  }
 0x8ef   : > { %v6699_v14 = vpack.c.bf16 %v6672_v25, %v6668_v60  ;;  %6971 = vmatprep.subr.bf16.mxu0 %v10140_v15  ;;  %8537 = vmatpush3.bf16.msra.mxu1 %v10141_v26  ;;  %v6730_v30 = vmul.bf16 1045249613, %v6698_v20  ;;  %vm6714_vm15 = vcmp.gt.bf16.partialorder %v6698_v20, 0  ;;  %v6676_v48 = vadd.f32 %v6675_v46, %v6605_v63  ;;  %v10159_v60 = vld [vmem:[#allocation6 + $0x248] ss:$16 sps:$4 sm:$0xff]   ;;  %v10166_v26 = vld [vmem:[%s12682_s10 + $0x40] sm:$0xff]  }
 0x8f0   : > { %v6677_v49 = vpop.f32.mrf.mxu0  ;;  %8538 = vmatprep.subr.bf16.mxu1 %v10142_v45  ;;  %v10163_v46 = vld [vmem:[#allocation6 + $0x228] ss:$16 sps:$4 sm:$0xff]   ;;  %v10172_v45 = vld [vmem:[#allocation6 + $0x3cc] ss:$16 sps:$4 sm:$0xff]  }
 0x8f1   : > { %vm6715_vm14 = vcmp.gt.bf16.partialorder %v6699_v14, 0  ;;  %v6731_v27 = vmul.bf16 1045249613, %v6699_v14  ;;  %v12173_v22 = vsel %vm6714_vm15, %v6698_v20, %v6730_v30  ;;  %v6678_v7 = vadd.f32 %v6677_v49, %v6607_v58  ;;  %v10161_v20 = vld [vmem:[%s12682_s10 + $0x10] sm:$0xff]   ;;  %v10165_v15 = vld [vmem:[%s12682_s10 + $0x8] sm:$0xff]  }
 0x8f2   : > { %6972 = vmatpush1.bf16.msra.mxu0 %v10143_v23  ;;  %v6679_v38 = vpop.f32.mrf.mxu0  ;;  %v10167_v63 = vld [vmem:[#allocation6 + $0x208] ss:$16 sps:$4 sm:$0xff]   ;;  %v10168_v30 = vld [vmem:[#allocation6 + $0x3ec] ss:$16 sps:$4 sm:$0xff]  }
 0x8f3   : > { %v6680_v18 = vadd.f32 %v6679_v38, %v6609_v4  ;;  %v12167_v62 = vsel %vm6715_vm14, %v6699_v14, %v6731_v27  ;;  %6973 = vmatprep.subr.bf16.mxu0 %v10144_v16  ;;  %8539 = vmatpush3.bf16.msra.mxu1 %v10145_v33  ;;  %v10164_v14 = vld [vmem:[#allocation6 + $0x20c] ss:$16 sps:$4 sm:$0xff]   ;;  %v10171_v49 = vld [vmem:[#allocation6 + $0x3e8] ss:$16 sps:$4 sm:$0xff]  }
 0x8f4   : > { %v6681_v5 = vpop.f32.mrf.mxu0  ;;  %6869 = vmatprep.mubr.bf16.mxu0 %v12167_v62  ;;  %8540 = vmatprep.subr.bf16.mxu1 %v10146_v24  ;;  %v10173_v4 = vld [vmem:[#allocation6 + $0x3c8] ss:$16 sps:$4 sm:$0xff]   ;;  %v10174_v27 = vld [vmem:[#allocation6 + $0x3ac] ss:$16 sps:$4 sm:$0xff]  }
 0x8f5   : > { %v6702_v59 = vpack.c.bf16 %v6680_v18, %v6676_v48  ;;  %v6682_v0 = vadd.f32 %v6681_v5, %v6611_v37  ;;  %6870 = vmatmul.mubr.bf16.gmra.mxu0 %v12173_v22  ;;  %6941 = vmatmul.mubr.bf16.gmra.mxu1 %v12102_v36  ;;  %v10175_v58 = vld [vmem:[#allocation6 + $0x3a8] ss:$16 sps:$4 sm:$0xff]   ;;  %v10176_v37 = vld [vmem:[#allocation6 + $0x38c] ss:$16 sps:$4 sm:$0xff]  }
 0x8f6   : > { %6974 = vmatpush1.bf16.msra.mxu0 %v10147_v52  ;;  %v6685_v19 = vpop.f32.mrf.mxu0  ;;  %6950 = vmatprep.mubr.bf16.mxu1 %v12113_v6  ;;  %v10177_v23 = vld [vmem:[#allocation6 + $0x388] ss:$16 sps:$4 sm:$0xff]   ;;  %v10178_v38 = vld [vmem:[#allocation6 + $0x36c] ss:$16 sps:$4 sm:$0xff]  }
 0x8f7   : > { %v6703_v28 = vpack.c.bf16 %v6682_v0, %v6678_v7  ;;  %6975 = vmatprep.subr.bf16.mxu0 %v10148_v11  ;;  %8541 = vmatpush3.bf16.msra.mxu1 %v10149_v47  ;;  %v6734_v36 = vmul.bf16 1045249613, %v6702_v59  ;;  %v6686_v29 = vadd.f32 %v6685_v19, %v6615_v3  ;;  %vm6718_vm3 = vcmp.gt.bf16.partialorder %v6702_v59, 0  ;;  %v10179_v48 = vld [vmem:[#allocation6 + $0x368] ss:$16 sps:$4 sm:$0xff]   ;;  %v10187_v0 = vld [vmem:[%s12684_s12] sm:$0xff]  }
 0x8f8   : > { %v6687_v55 = vpop.f32.mrf.mxu0  ;;  %8542 = vmatprep.subr.bf16.mxu1 %v10150_v12  ;;  %v10180_v18 = vld [vmem:[#allocation6 + $0x34c] ss:$16 sps:$4 sm:$0xff]   ;;  %v10181_v16 = vld [vmem:[#allocation6 + $0x348] ss:$16 sps:$4 sm:$0xff]  }
 0x8f9   : > { %v6688_v6 = vadd.f32 %v6687_v55, %v6617_v57  ;;  %vm6719_vm2 = vcmp.gt.bf16.partialorder %v6703_v28, 0  ;;  %v6735_v2 = vmul.bf16 1045249613, %v6703_v28  ;;  %v6706_v9 = vpack.c.bf16 %v6686_v29, %v6686_v29  ;;  %v10182_v33 = vld [vmem:[#allocation6 + $0x32c] ss:$16 sps:$4 sm:$0xff]  }
 0x8fa   : > { %6976 = vmatpush1.bf16.msra.mxu0 %v10151_v61  ;;  %v6689_v31 = vpop.f32.mrf.mxu0  ;;  %v12197_v43 = vsel %vm6718_vm3, %v6702_v59, %v6734_v36  ;;  %v10183_v5 = vld [vmem:[#allocation6 + $0x328] ss:$16 sps:$4 sm:$0xff]   ;;  %v10184_v24 = vld [vmem:[#allocation6 + $0x30c] ss:$16 sps:$4 sm:$0xff]  }
 0x8fb   : > { %v6707_v17 = vpack.c.bf16 %v6688_v6, %v6688_v6  ;;  %v12191_v39 = vsel %vm6719_vm2, %v6703_v28, %v6735_v2  ;;  %6977 = vmatprep.subr.bf16.mxu0 %v10152_v51  ;;  %8543 = vmatpush3.bf16.msra.mxu1 %v10153_v50  ;;  %v6738_v40 = vmul.bf16 1045249613, %v6706_v9  ;;  %vm6722_vm5 = vcmp.gt.bf16.partialorder %v6706_v9, 0  ;;  %v10185_v7 = vld [vmem:[#allocation6 + $0x308] ss:$16 sps:$4 sm:$0xff]   ;;  %v12780_v51 = vld [vmem:[#allocation15_spill] sm:$0xff] }
 0x8fc   : > { %v6690_v42 = vpop.f32.mrf.mxu0  ;;  %6879 = vmatprep.mubr.bf16.mxu0 %v12191_v39  ;;  %8544 = vmatprep.subr.bf16.mxu1 %v10154_v13  ;;  %v10186_v59 = vld [vmem:[%s12684_s12 + $0x8] sm:$0xff]   ;;  %v12781_v13 = vld [vmem:[#allocation16_spill] sm:$0xff] }
 0x8fd   : > { %v6739_v53 = vmul.bf16 1045249613, %v6707_v17  ;;  %6880 = vmatmul.mubr.bf16.gmra.mxu0 %v12197_v43  ;;  %6951 = vmatmul.mubr.bf16.gmra.mxu1 %v12116_v54  ;;  %vm6723_vm4 = vcmp.gt.bf16.partialorder %v6707_v17, 0  ;;  %v10158_v54 = vld [vmem:[%s12682_s10 + $0x50] sm:$0xff]   ;;  %v12217_v25 = vsel %vm6722_vm5, %v6706_v9, %v6738_v40 }
 0x8fe   : > { %6978 = vmatpush1.bf16.msra.mxu0 %v10155_v10  ;;  %6960 = vmatprep.mubr.bf16.mxu1 %v12119_v21  ;;  %v10160_v21 = vld [vmem:[#allocation6 + $0x22c] ss:$16 sps:$4 sm:$0xff]  }
 0x8ff   : > { %v12205_v41 = vsel %vm6723_vm4, %v6707_v17, %v6739_v53  ;;  %6979 = vmatprep.subr.bf16.mxu0 %v10156_v56  ;;  %8545 = vmatpush3.bf16.msra.mxu1 %v10157_v44 }
 0x900   : > { %6889 = vmatprep.mubr.bf16.mxu0 %v12205_v41  ;;  %8546 = vmatprep.subr.bf16.mxu1 %v10158_v54 }
 0x902   : > { %6980 = vmatpush1.bf16.msra.mxu0 %v10159_v60 }
 0x903   : > { %6981 = vmatprep.subr.bf16.mxu0 %v10160_v21  ;;  %8547 = vmatpush3.bf16.msra.mxu1 %v10161_v20 }
 0x904   : > { %8548 = vmatprep.subr.bf16.mxu1 %v10162_v35 }
 0x905   : > { %6890 = vmatmul.mubr.bf16.gmra.mxu0 %v12217_v25  ;;  %6961 = vmatmul.mubr.bf16.gmra.mxu1 %v12122_v34  ;;  %v10169_v34 = vld [vmem:[%s12682_s10] sm:$0xff]  }
 0x906   : > { %6982 = vmatpush1.bf16.msra.mxu0 %v10163_v46  ;;  %7001 = vmatprep.mubr.bf16.mxu0 %v12142_v1  ;;  %v10170_v1 = vld [vmem:[%s12682_s10 + $0xf8] sm:$0xff]  }
 0x907   : > { %6983 = vmatprep.subr.bf16.mxu0 %v10164_v14  ;;  %8549 = vmatpush3.bf16.msra.mxu1 %v10165_v15 }
 0x908   : > { %8550 = vmatprep.subr.bf16.mxu1 %v10166_v26 }
 0x90a   : > { %6984 = vmatpush1.bf16.msra.mxu0 %v10167_v63 }
 0x90b   : > { %6985 = vmatprep.subr.bf16.mxu0 %v10168_v30  ;;  %8551 = vmatpush3.bf16.msra.mxu1 %v10169_v34 }
 0x90c   : > { %8576 = vmatprep.subr.bf16.mxu1 %v10170_v1 }
 0x90e   : > { %6986 = vmatpush2.bf16.msra.mxu0 %v10171_v49 }
 0x90f   : > { %6987 = vmatprep.subr.bf16.mxu0 %v10172_v45 }
 0x912   : > { %6988 = vmatpush2.bf16.msra.mxu0 %v10173_v4 }
 0x913   : > { %6989 = vmatprep.subr.bf16.mxu0 %v10174_v27 }
 0x916   : > { %6990 = vmatpush2.bf16.msra.mxu0 %v10175_v58 }
 0x917   : > { %6991 = vmatprep.subr.bf16.mxu0 %v10176_v37 }
 0x91a   : > { %6992 = vmatpush2.bf16.msra.mxu0 %v10177_v23 }
 0x91b   : > { %6993 = vmatprep.subr.bf16.mxu0 %v10178_v38 }
 0x91e   : > { %6994 = vmatpush2.bf16.msra.mxu0 %v10179_v48 }
 0x91f   : > { %6995 = vmatprep.subr.bf16.mxu0 %v10180_v18 }
 0x922   : > { %6996 = vmatpush2.bf16.msra.mxu0 %v10181_v16 }
 0x923   : > { %6997 = vmatprep.subr.bf16.mxu0 %v10182_v33 }
 0x926   : > { %6998 = vmatpush2.bf16.msra.mxu0 %v10183_v5 }
 0x927   : > { %6999 = vmatprep.subr.bf16.mxu0 %v10184_v24 }
 0x92a   : > { %7000 = vmatpush2.bf16.msra.mxu0 %v10185_v7  ;;  %v10188_v7 = vld [vmem:[%s12682_s10 + $0xb8] sm:$0xff]  }
 0x92b   : > { %8775 = vmatprep.subr.bf16.mxu0 %v12770_v32 }
 0x92d   : > { %7002 = vmatmul.mubr.bf16.vlgmr.msra.gmra.mxu0 %v12147_v8 }
 0x92e   : > { %7011 = vmatprep.mubr.bf16.mxu0 %v12167_v62  ;;  %8776 = vmatpush3.bf16.msra.mxu0 %v10186_v59 }
 0x92f   : > { %8777 = vmatprep.subr.bf16.mxu0 %v12770_v32 }
 0x932   : > { %8778 = vmatpush3.bf16.msra.mxu0 %v10187_v0 }
 0x933   : > { %8851 = vmatprep.subr.bf16.mxu0 %v12770_v32 }
 0x935   : > { %7012 = vmatmul.mubr.bf16.gmra.mxu0 %v12173_v22 }
 0x936   : > { %7021 = vmatprep.mubr.bf16.mxu0 %v12191_v39 }
 0x93d   : > { %7022 = vmatmul.mubr.bf16.gmra.mxu0 %v12197_v43 }
 0x93e   : > { %7031 = vmatprep.mubr.bf16.mxu0 %v12205_v41 }
 0x945   : > { %7032 = vmatmul.mubr.bf16.gmra.mxu0 %v12217_v25 }
 0x946   : > { %8779 = vmatprep.mubr.msk.bf16.mxu0 %vm10326_vm12, %v12770_v32 }
 0x96d   : > { %v6790_v8 = vpop.f32.mrf.mxu1 }
 0x96e   : > { %v6791_v50 = vadd.f32 %v6790_v8, %v12780_v51 }
 0x96f   : > { %v6792_v62 = vpop.f32.mrf.mxu1 }
 0x970   : > { %v6793_v53 = vadd.f32 %v6792_v62, %v12781_v13  ;;  %v10189_v62 = vld [vmem:[%s12682_s10 + $0xf0] sm:$0xff]  }
 0x971   : > { %v6794_v3 = vpop.f32.mrf.mxu1 }
 0x972   : > { %v6795_v9 = vadd.f32 %v6794_v3, %v12780_v51 }
 0x973   : > { %v6796_v52 = vpop.f32.mrf.mxu1 }
 0x974   : > { %v6797_v10 = vadd.f32 %v6796_v52, %v12781_v13 }
 0x975   : > { %v6800_v19 = vpop.f32.mrf.mxu1 }
 0x976   : > { %v6801_v15 = vadd.f32 %v6800_v19, %v12780_v51 }
 0x977   : > { %v6802_v57 = vpop.f32.mrf.mxu1 }
 0x978   : > { %v6803_v49 = vadd.f32 %v6802_v57, %v12781_v13 }
 0x979   : > { %v6804_v28 = vpop.f32.mrf.mxu1 }
 0x97a   : > { %v6805_v26 = vadd.f32 %v6804_v28, %v12780_v51 }
 0x97b   : > { %v6806_v11 = vpop.f32.mrf.mxu1 }
 0x97c   : > { %v6807_v45 = vadd.f32 %v6806_v11, %v12781_v13 }
 0x97d   : > { %v6810_v22 = vpop.f32.mrf.mxu1 }
 0x97e   : > { %v6811_v59 = vadd.f32 %v6810_v22, %v12780_v51 }
 0x97f   : > { %v12255_v47 = vpop.f32.mrf.mxu1 }
 0x980   : > { %v6813_v57 = vadd.f32 %v12255_v47, %v12781_v13  ;;  %v10191_v47 = vld [vmem:[%s12682_s10 + $0xe8] sm:$0xff]  }
 0x981   : > { %v6814_v36 = vpop.f32.mrf.mxu1 }
 0x982   : > { %v6815_v3 = vadd.f32 %v6814_v36, %v12780_v51  ;;  %v10190_v36 = vld [vmem:[%s12682_s10 + $0xb0] sm:$0xff]  }
 0x983   : > { %v12257_v29 = vpop.f32.mrf.mxu1 }
 0x984   : > { %v6817_v22 = vadd.f32 %v12257_v29, %v12781_v13 }
 0x985   : > { %v12259_v55 = vpop.f32.mrf.mxu1 }
 0x987   : > { %v12261_v12 = vpop.f32.mrf.mxu1 }
 0x989   : > { %v6824_v6 = vpop.f32.mrf.mxu1 }
 0x98b   : > { %v6825_v2 = vpop.f32.mrf.mxu1 }
 0x9ad   : > { %v6861_v61 = vpop.f32.mrf.mxu0  ;;  %v12263_v31 = vpop.f32.mrf.mxu1 }
 0x9ae   : > { %v6862_v41 = vadd.f32 %v6861_v61, %v6791_v50 }
 0x9af   : > { %v6863_v17 = vpop.f32.mrf.mxu0  ;;  %v12265_v39 = vpop.f32.mrf.mxu1 }
 0x9b0   : > { %v6864_v54 = vadd.f32 %v6863_v17, %v6793_v53 }
 0x9b1   : > { %v6865_v42 = vpop.f32.mrf.mxu0  ;;  %v12269_v43 = vpop.f32.mrf.mxu1 }
 0x9b2   : > { %v6866_v56 = vadd.f32 %v6865_v42, %v6795_v9 }
 0x9b3   : > { %v6867_v44 = vpop.f32.mrf.mxu0  ;;  %v12273_v40 = vpop.f32.mrf.mxu1 }
 0x9b4   : > { %v7040_v60 = vpack.c.bf16 %v6866_v56, %v6862_v41  ;;  %v6868_v21 = vadd.f32 %v6867_v44, %v6797_v10  ;;  %v6821_v56 = vadd.f32 %v12259_v55, %v12780_v51  ;;  %v6823_v44 = vadd.f32 %v12261_v12, %v12781_v13 }
 0x9b5   : > { %v6871_v20 = vpop.f32.mrf.mxu0  ;;  %v12275_v25 = vpop.f32.mrf.mxu1 }
 0x9b6   : > { %v7041_v35 = vpack.c.bf16 %v6868_v21, %v6864_v54  ;;  %v7072_v63 = vmul.bf16 1045249613, %v7040_v60  ;;  %vm7056_vm7 = vcmp.gt.bf16.partialorder %v7040_v60, 0  ;;  %v6872_v4 = vadd.f32 %v6871_v20, %v6801_v15 }
 0x9b7   : > { %v6873_v46 = vpop.f32.mrf.mxu0  ;;  %v12277_v14 = vpop.f32.mrf.mxu1 }
 0x9b8   : > { %vm7057_vm6 = vcmp.gt.bf16.partialorder %v7041_v35, 0  ;;  %v7073_v1 = vmul.bf16 1045249613, %v7041_v35  ;;  %v7088_v38 = vsel %vm7056_vm7, %v7040_v60, %v7072_v63  ;;  %v6874_v48 = vadd.f32 %v6873_v46, %v6803_v49  ;;  %v10192_v60 = vld [vmem:[%s12682_s10 + $0xa8] sm:$0xff]   ;;  %v10194_v63 = vld [vmem:[%s12682_s10 + $0xa0] sm:$0xff]  }
 0x9b9   : > { %v6875_v30 = vpop.f32.mrf.mxu0  ;;  %v12281_v34 = vpop.f32.mrf.mxu1 }
 0x9ba   : > { %v6876_v27 = vadd.f32 %v6875_v30, %v6805_v26  ;;  %v7089_v23 = vsel %vm7057_vm6, %v7041_v35, %v7073_v1  ;;  %v10193_v35 = vld [vmem:[%s12682_s10 + $0xe0] sm:$0xff]  }
 0x9bb   : > { %v6877_v58 = vpop.f32.mrf.mxu0  ;;  %v12285_v37 = vpop.f32.mrf.mxu1  ;;  %7136 = vmatprep.mubr.bf16.mxu1 %v7089_v23 }
 0x9bc   : > { %v7044_v18 = vpack.c.bf16 %v6876_v27, %v6872_v4  ;;  %v6878_v16 = vadd.f32 %v6877_v58, %v6807_v45  ;;  %7137 = vmatmul.mubr.bf16.vlgmr.msra.gmra.mxu1 %v7088_v38  ;;  %v10195_v45 = vld [vmem:[%s12682_s10 + $0xd8] sm:$0xff]  }
 0x9bd   : > { %v6881_v33 = vpop.f32.mrf.mxu0  ;;  %v12287_v5 = vpop.f32.mrf.mxu1  ;;  %8577 = vmatpush3.bf16.msra.mxu1 %v10188_v7  ;;  %v10196_v38 = vld [vmem:[%s12682_s10 + $0x98] sm:$0xff]   ;;  %v10200_v7 = vld [vmem:[%s12682_s10 + $0x88] sm:$0xff]  }
 0x9be   : > { %v7045_v24 = vpack.c.bf16 %v6878_v16, %v6874_v48  ;;  %8578 = vmatprep.subr.bf16.mxu1 %v10189_v62  ;;  %v7076_v52 = vmul.bf16 1045249613, %v7044_v18  ;;  %vm7060_vm9 = vcmp.gt.bf16.partialorder %v7044_v18, 0  ;;  %v6882_v6 = vadd.f32 %v6881_v33, %v6811_v59  ;;  %v10197_v48 = vld [vmem:[%s12682_s10 + $0xd0] sm:$0xff]   ;;  %v10199_v33 = vld [vmem:[%s12682_s10 + $0xc8] sm:$0xff]   ;;  %v10201_v59 = vld [vmem:[%s12682_s10 + $0xc0] sm:$0xff]  }
 0x9bf   : > { %v6883_v0 = vpop.f32.mrf.mxu0  ;;  %v12293_v8 = vpop.f32.mrf.mxu1  ;;  %v10198_v16 = vld [vmem:[%s12682_s10 + $0x90] sm:$0xff]  }
 0x9c0   : > { %vm7061_vm8 = vcmp.gt.bf16.partialorder %v7045_v24, 0  ;;  %v7077_v19 = vmul.bf16 1045249613, %v7045_v24  ;;  %v6884_v9 = vadd.f32 %v6883_v0, %v6813_v57  ;;  %v7092_v53 = vsel %vm7060_vm9, %v7044_v18, %v7076_v52  ;;  %v10202_v0 = vld [vmem:[%s12682_s10 + $0x80] sm:$0xff]  }
 0x9c1   : > { %v6885_v28 = vpop.f32.mrf.mxu0  ;;  %v12301_v11 = vpop.f32.mrf.mxu1  ;;  %8579 = vmatpush3.bf16.msra.mxu1 %v10190_v36  ;;  %v12782_v52 = vld [vmem:[#allocation17_spill] sm:$0xff] }
 0x9c2   : > { %v6886_v2 = vadd.f32 %v6885_v28, %v6815_v3  ;;  %v7093_v61 = vsel %vm7061_vm8, %v7045_v24, %v7077_v19  ;;  %8580 = vmatprep.subr.bf16.mxu1 %v10191_v47  ;;  %v6933_v19 = vadd.f32 %v12263_v31, %v12782_v52  ;;  %v6937_v57 = vadd.f32 %v12269_v43, %v12782_v52 }
 0x9c3   : > { %v6887_v17 = vpop.f32.mrf.mxu0  ;;  %v12308_v50 = vpop.f32.mrf.mxu1  ;;  %7144 = vmatprep.mubr.bf16.mxu1 %v7093_v61  ;;  %v6943_v31 = vadd.f32 %v12275_v25, %v12782_v52 }
 0x9c4   : > { %v7048_v42 = vpack.c.bf16 %v6886_v2, %v6882_v6  ;;  %v6888_v29 = vadd.f32 %v6887_v17, %v6817_v22  ;;  %7145 = vmatmul.mubr.bf16.gmra.mxu1 %v7092_v53  ;;  %v12783_v22 = vld [vmem:[#allocation18_spill] sm:$0xff] }
 0x9c5   : > { %v6891_v10 = vpop.f32.mrf.mxu0  ;;  %v12313_v41 = vpop.f32.mrf.mxu1  ;;  %8581 = vmatpush3.bf16.msra.mxu1 %v10192_v60  ;;  %v6935_v6 = vadd.f32 %v12265_v39, %v12783_v22  ;;  %v6939_v2 = vadd.f32 %v12273_v40, %v12783_v22  ;;  %v6945_v40 = vadd.f32 %v12277_v14, %v12783_v22 }
 0x9c6   : > { %v7049_v54 = vpack.c.bf16 %v6888_v29, %v6884_v9  ;;  %8582 = vmatprep.subr.bf16.mxu1 %v10193_v35  ;;  %v7080_v46 = vmul.bf16 1045249613, %v7048_v42  ;;  %v6892_v15 = vadd.f32 %v6891_v10, %v6821_v56  ;;  %vm7064_vm11 = vcmp.gt.bf16.partialorder %v7048_v42, 0 }
 0x9c7   : > { %v6893_v21 = vpop.f32.mrf.mxu0  ;;  %v12322_v20 = vpop.f32.mrf.mxu1  ;;  %v6947_v56 = vadd.f32 %v12281_v34, %v12782_v52 }
 0x9c8   : > { %v6894_v55 = vadd.f32 %v6893_v21, %v6823_v44  ;;  %vm7065_vm10 = vcmp.gt.bf16.partialorder %v7049_v54, 0  ;;  %v7081_v13 = vmul.bf16 1045249613, %v7049_v54  ;;  %v7052_v4 = vpack.c.bf16 %v6892_v15, %v6892_v15 }
 0x9c9   : > { %v6895_v51 = vpop.f32.mrf.mxu0  ;;  %v6966_v12 = vpop.f32.mrf.mxu1  ;;  %8583 = vmatpush3.bf16.msra.mxu1 %v10194_v63  ;;  %v7096_v58 = vsel %vm7064_vm11, %v7048_v42, %v7080_v46  ;;  %v6957_v63 = vadd.f32 %v12301_v11, %v12782_v52 }
 0x9ca   : > { %v7053_v26 = vpack.c.bf16 %v6894_v55, %v6894_v55  ;;  %v7097_v49 = vsel %vm7065_vm10, %v7049_v54, %v7081_v13  ;;  %8584 = vmatprep.subr.bf16.mxu1 %v10195_v45  ;;  %v7084_v18 = vmul.bf16 1045249613, %v7052_v4  ;;  %vm7068_vm15 = vcmp.gt.bf16.partialorder %v7052_v4, 0  ;;  %v10203_v12 = vld [vmem:[%s12686_s14 + $0x38] sm:$0xff]   ;;  %v10204_v45 = vld [vmem:[%s12686_s14 + $0x30] sm:$0xff]  }
 0x9cb   : > { %v6896_v30 = vpop.f32.mrf.mxu0  ;;  %v6967_v1 = vpop.f32.mrf.mxu1  ;;  %7152 = vmatprep.mubr.bf16.mxu1 %v7097_v49  ;;  %v6949_v54 = vadd.f32 %v12285_v37, %v12783_v22  ;;  %v6953_v37 = vadd.f32 %v12287_v5, %v12782_v52  ;;  %v6959_v5 = vadd.f32 %v12308_v50, %v12783_v22  ;;  %v10205_v50 = vld [vmem:[%s12686_s14 + $0x28] sm:$0xff]  }
 0x9cc   : > { %v7085_v27 = vmul.bf16 1045249613, %v7053_v26  ;;  %vm7069_vm14 = vcmp.gt.bf16.partialorder %v7053_v26, 0  ;;  %7153 = vmatmul.mubr.bf16.gmra.mxu1 %v7096_v58  ;;  %v7100_v24 = vsel %vm7068_vm15, %v7052_v4, %v7084_v18  ;;  %v6955_v1 = vadd.f32 %v12293_v8, %v12783_v22 }
 0x9cd   : > { %8585 = vmatpush3.bf16.msra.mxu1 %v10196_v38  ;;  %v6963_v18 = vadd.f32 %v12313_v41, %v12782_v52  ;;  %v10206_v52 = vld [vmem:[%s12686_s14 + $0x20] sm:$0xff]  }
 0x9ce   : > { %v7101_v23 = vsel %vm7069_vm14, %v7053_v26, %v7085_v27  ;;  %8586 = vmatprep.subr.bf16.mxu1 %v10197_v48 }
 0x9cf   : > { %7160 = vmatprep.mubr.bf16.mxu1 %v7101_v23 }
 0x9d1   : > { %8587 = vmatpush3.bf16.msra.mxu1 %v10198_v16 }
 0x9d2   : > { %8588 = vmatprep.subr.bf16.mxu1 %v10199_v33  ;;  %v6965_v33 = vadd.f32 %v12322_v20, %v12783_v22 }
 0x9d4   : > { %7161 = vmatmul.mubr.bf16.gmra.mxu1 %v7100_v24 }
 0x9d5   : > { %8589 = vmatpush3.bf16.msra.mxu1 %v10200_v7 }
 0x9d6   : > { %8590 = vmatprep.subr.bf16.mxu1 %v10201_v59 }
 0x9d9   : > { %8591 = vmatpush3.bf16.msra.mxu1 %v10202_v0 }
 0x9da   : > { %8807 = vmatprep.subr.bf16.mxu1 %v12770_v32 }
 0x9ed   : > { %v7003_v62 = vpop.f32.mrf.mxu0 }
 0x9ee   : > { %v7004_v61 = vadd.f32 %v7003_v62, %v6933_v19 }
 0x9ef   : > { %v7005_v3 = vpop.f32.mrf.mxu0 }
 0x9f0   : > { %v7006_v47 = vadd.f32 %v7005_v3, %v6935_v6 }
 0x9f1   : > { %v7007_v28 = vpop.f32.mrf.mxu0 }
 0x9f2   : > { %v7008_v36 = vadd.f32 %v7007_v28, %v6937_v57 }
 0x9f3   : > { %v7009_v17 = vpop.f32.mrf.mxu0 }
 0x9f4   : > { %v7042_v9 = vpack.c.bf16 %v7008_v36, %v7004_v61  ;;  %v7010_v42 = vadd.f32 %v7009_v17, %v6939_v2  ;;  %v10207_v2 = vld [vmem:[%s12686_s14 + $0x18] sm:$0xff]   ;;  %v10208_v17 = vld [vmem:[%s12686_s14 + $0x10] sm:$0xff]  }
 0x9f5   : > { %v7013_v29 = vpop.f32.mrf.mxu0 }
 0x9f6   : > { %v7043_v53 = vpack.c.bf16 %v7010_v42, %v7006_v47  ;;  %v7074_v10 = vmul.bf16 1045249613, %v7042_v9  ;;  %vm7058_vm2 = vcmp.gt.bf16.partialorder %v7042_v9, 0  ;;  %v7014_v60 = vadd.f32 %v7013_v29, %v6943_v31  ;;  %v10210_v42 = vld [vmem:[%s12686_s14] sm:$0xff]  }
 0x9f7   : > { %v7015_v43 = vpop.f32.mrf.mxu0 }
 0x9f8   : > { %vm7059_vm3 = vcmp.gt.bf16.partialorder %v7043_v53, 0  ;;  %v7075_v39 = vmul.bf16 1045249613, %v7043_v53  ;;  %v7090_v46 = vsel %vm7058_vm2, %v7042_v9, %v7074_v10  ;;  %v7016_v15 = vadd.f32 %v7015_v43, %v6945_v40  ;;  %v10209_v9 = vld [vmem:[%s12686_s14 + $0x8] sm:$0xff]  }
 0x9f9   : > { %v7017_v44 = vpop.f32.mrf.mxu0 }
 0x9fa   : > { %v7018_v21 = vadd.f32 %v7017_v44, %v6947_v56  ;;  %v7091_v35 = vsel %vm7059_vm3, %v7043_v53, %v7075_v39 }
 0x9fb   : > { %v7019_v25 = vpop.f32.mrf.mxu0  ;;  %7200 = vmatprep.mubr.bf16.mxu1 %v7091_v35 }
 0x9fc   : > { %v7046_v55 = vpack.c.bf16 %v7018_v21, %v7014_v60  ;;  %v7020_v51 = vadd.f32 %v7019_v25, %v6949_v54  ;;  %7201 = vmatmul.mubr.bf16.vlgmr.msra.gmra.mxu1 %v7090_v46 }
 0x9fd   : > { %v7023_v34 = vpop.f32.mrf.mxu0  ;;  %8808 = vmatpush3.bf16.msra.mxu1 %v10203_v12 }
 0x9fe   : > { %v7047_v14 = vpack.c.bf16 %v7020_v51, %v7016_v15  ;;  %8809 = vmatprep.subr.bf16.mxu1 %v12770_v32  ;;  %v7078_v13 = vmul.bf16 1045249613, %v7046_v55  ;;  %vm7062_vm5 = vcmp.gt.bf16.partialorder %v7046_v55, 0  ;;  %v7024_v4 = vadd.f32 %v7023_v34, %v6953_v37 }
 0x9ff   : > { %v7025_v26 = vpop.f32.mrf.mxu0 }
 0xa00   : > { %vm7063_vm4 = vcmp.gt.bf16.partialorder %v7047_v14, 0  ;;  %v7079_v30 = vmul.bf16 1045249613, %v7047_v14  ;;  %v7094_v23 = vsel %vm7062_vm5, %v7046_v55, %v7078_v13  ;;  %v7026_v38 = vadd.f32 %v7025_v26, %v6955_v1  ;;  %v10211_v13 = vld [vmem:[%s12683_s11] ss:$0 sm:$0xff] }
 0xa01   : > { %v7027_v49 = vpop.f32.mrf.mxu0  ;;  %8810 = vmatpush3.bf16.msra.mxu1 %v10204_v45 }
 0xa02   : > { %v7028_v27 = vadd.f32 %v7027_v49, %v6957_v63  ;;  %v7095_v58 = vsel %vm7063_vm4, %v7047_v14, %v7079_v30  ;;  %8811 = vmatprep.subr.bf16.mxu1 %v12770_v32 }
 0xa03   : > { %v7029_v11 = vpop.f32.mrf.mxu0  ;;  %7208 = vmatprep.mubr.bf16.mxu1 %v7095_v58 }
 0xa04   : > { %v7050_v48 = vpack.c.bf16 %v7028_v27, %v7024_v4  ;;  %v7030_v8 = vadd.f32 %v7029_v11, %v6959_v5  ;;  %7209 = vmatmul.mubr.bf16.gmra.mxu1 %v7094_v23 }
 0xa05   : > { %v7033_v16 = vpop.f32.mrf.mxu0  ;;  %8812 = vmatpush3.bf16.msra.mxu1 %v10205_v50 }
 0xa06   : > { %v7051_v24 = vpack.c.bf16 %v7030_v8, %v7026_v38  ;;  %8813 = vmatprep.subr.bf16.mxu1 %v12770_v32  ;;  %v7082_v7 = vmul.bf16 1045249613, %v7050_v48  ;;  %v7034_v59 = vadd.f32 %v7033_v16, %v6963_v18  ;;  %vm7066_vm7 = vcmp.gt.bf16.partialorder %v7050_v48, 0 }
 0xa07   : > { %v7035_v0 = vpop.f32.mrf.mxu0 }
 0xa08   : > { %v7036_v62 = vadd.f32 %v7035_v0, %v6965_v33  ;;  %vm7067_vm6 = vcmp.gt.bf16.partialorder %v7051_v24, 0  ;;  %v7083_v3 = vmul.bf16 1045249613, %v7051_v24  ;;  %v7054_v20 = vpack.c.bf16 %v7034_v59, %v7034_v59 }
 0xa09   : > { %v7037_v41 = vpop.f32.mrf.mxu0  ;;  %8814 = vmatpush3.bf16.msra.mxu1 %v10206_v52  ;;  %v7098_v22 = vsel %vm7066_vm7, %v7050_v48, %v7082_v7 }
 0xa0a   : > { %v7055_v19 = vpack.c.bf16 %v7036_v62, %v7036_v62  ;;  %v7099_v57 = vsel %vm7067_vm6, %v7051_v24, %v7083_v3  ;;  %8815 = vmatprep.subr.bf16.mxu1 %v12770_v32  ;;  %v7086_v36 = vmul.bf16 1045249613, %v7054_v20  ;;  %vm7070_vm9 = vcmp.gt.bf16.partialorder %v7054_v20, 0 }
 0xa0b   : > { %v7038_v28 = vpop.f32.mrf.mxu0  ;;  %7216 = vmatprep.mubr.bf16.mxu1 %v7099_v57 }
 0xa0c   : > { %v7087_v6 = vmul.bf16 1045249613, %v7055_v19  ;;  %7217 = vmatmul.mubr.bf16.gmra.mxu1 %v7098_v22  ;;  %vm7071_vm8 = vcmp.gt.bf16.partialorder %v7055_v19, 0  ;;  %v7102_v47 = vsel %vm7070_vm9, %v7054_v20, %v7086_v36 }
 0xa0d   : > { %8816 = vmatpush3.bf16.msra.mxu1 %v10207_v2 }
 0xa0e   : > { %v7103_v61 = vsel %vm7071_vm8, %v7055_v19, %v7087_v6  ;;  %8817 = vmatprep.subr.bf16.mxu1 %v12770_v32 }
 0xa0f   : > { %7224 = vmatprep.mubr.bf16.mxu1 %v7103_v61 }
 0xa11   : > { %8818 = vmatpush3.bf16.msra.mxu1 %v10208_v17 }
 0xa12   : > { %8819 = vmatprep.subr.bf16.mxu1 %v12770_v32 }
 0xa14   : > { %7225 = vmatmul.mubr.bf16.gmra.mxu1 %v7102_v47 }
 0xa15   : > { %8820 = vmatpush3.bf16.msra.mxu1 %v10209_v9  ;;  %8823 = vmatprep.mubr.msk.bf16.mxu1 %vm10326_vm12, %v12770_v32 }
 0xa16   : > { %8821 = vmatprep.subr.bf16.mxu1 %v12770_v32 }
 0xa19   : > { %8822 = vmatpush3.bf16.msra.mxu1 %v10210_v42 }
 0xa1a   : > { %8895 = vmatprep.subr.bf16.mxu1 %v12770_v32 }
 0xa7c   : > { %v8552_v29 = vpop.f32.mrf.mxu1 }
 0xa7e   : > { %v8553_v53 = vpop.f32.mrf.mxu1 }
 0xa7f   : > { %v8554_v31 = vadd.f32 %v8553_v53, %v8552_v29 }
 0xa80   : > { %v8555_v10 = vpop.f32.mrf.mxu1 }
 0xa81   : > { %v7139_v26 = vadd.f32 %v10211_v13, %v8554_v31 }
 0xa82   : > { %v8556_v43 = vpop.f32.mrf.mxu1 }
 0xa83   : > { %v8557_v63 = vadd.f32 %v8556_v43, %v8555_v10 }
 0xa84   : > { %v8558_v56 = vpop.f32.mrf.mxu1 }
 0xa85   : > { %v7142_v5 = vadd.f32 %v10211_v13, %v8557_v63 }
 0xa86   : > { %v8559_v39 = vpop.f32.mrf.mxu1 }
 0xa87   : > { %v8560_v40 = vadd.f32 %v8559_v39, %v8558_v56 }
 0xa88   : > { %v8561_v44 = vpop.f32.mrf.mxu1 }
 0xa89   : > { %v7147_v38 = vadd.f32 %v10211_v13, %v8560_v40 }
 0xa8a   : > { %v8562_v54 = vpop.f32.mrf.mxu1 }
 0xa8b   : > { %v8563_v48 = vadd.f32 %v8562_v54, %v8561_v44 }
 0xa8c   : > { %v8564_v60 = vpop.f32.mrf.mxu1 }
 0xa8d   : > { %v7150_v24 = vadd.f32 %v10211_v13, %v8563_v48  ;;  %v12482_v48 = vld [vmem:[%s12688_s16 + $0x18] sm:$0xff]  }
 0xa8e   : > { %v8565_v21 = vpop.f32.mrf.mxu1 }
 0xa8f   : > { %v8566_v35 = vadd.f32 %v8565_v21, %v8564_v60 }
 0xa90   : > { %v8567_v46 = vpop.f32.mrf.mxu1 }
 0xa91   : > { %v7155_v41 = vadd.f32 %v10211_v13, %v8566_v35 }
 0xa92   : > { %v8568_v25 = vpop.f32.mrf.mxu1 }
 0xa93   : > { %v8569_v52 = vadd.f32 %v8568_v25, %v8567_v46 }
 0xa94   : > { %v8570_v15 = vpop.f32.mrf.mxu1 }
 0xa95   : > { %v7158_v2 = vadd.f32 %v10211_v13, %v8569_v52  ;;  %v5698_v52 = vld [vmem:[%s11399_s20 + $0x58] sm:$0xff] }
 0xa96   : > { %v8571_v55 = vpop.f32.mrf.mxu1 }
 0xa97   : > { %v8572_v51 = vadd.f32 %v8571_v55, %v8570_v15 }
 0xa98   : > { %v8573_v34 = vpop.f32.mrf.mxu1 }
 0xa99   : > { %v7163_v53 = vadd.f32 %v10211_v13, %v8572_v51 }
 0xa9a   : > { %v8574_v12 = vpop.f32.mrf.mxu1 }
 0xabc   : > { %v8592_v14 = vpop.f32.mrf.mxu1 }
 0xabe   : > { %v8593_v37 = vpop.f32.mrf.mxu1 }
 0xabf   : > { %v8594_v30 = vadd.f32 %v8593_v37, %v8592_v14  ;;  %v12447_v14 = vld [vmem:[%s12688_s16 + $0x38] sm:$0xff]  }
 0xac0   : > { %v8595_v1 = vpop.f32.mrf.mxu1 }
 0xac1   : > { %v12420_v49 = vadd.f32 %v8594_v30, %v7139_v26  ;;  %v12454_v30 = vld [vmem:[%s12688_s16 + $0x30] sm:$0xff]  }
 0xac2   : > { %v8596_v45 = vpop.f32.mrf.mxu1 }
 0xac3   : > { %v8387_v4 = vmul.f32 -1.442695, %v12420_v49  ;;  %v8597_v27 = vadd.f32 %v8596_v45, %v8595_v1  ;;  %v12464_v45 = vld [vmem:[%s12688_s16 + $0x28] sm:$0xff]  }
 0xac4   : > { %v8598_v58 = vpop.f32.mrf.mxu1 }
 0xac5   : > { %9701 = vpow2.f32 %v8387_v4  ;;  %v12423_v11 = vadd.f32 %v8597_v27, %v7142_v5  ;;  %v12471_v4 = vld [vmem:[%s12688_s16 + $0x20] sm:$0xff]  }
 0xac6   : > { %v8599_v23 = vpop.f32.mrf.mxu1 }
 0xac7   : > { %v8388_v8 = vmul.f32 -1.442695, %v12423_v11  ;;  %v8600_v18 = vadd.f32 %v8599_v23, %v8598_v58  ;;  %v5694_v58 = vld [vmem:[%s11399_s20 + $0x38] sm:$0xff] }
 0xac8   : > { %v8601_v16 = vpop.f32.mrf.mxu1 }
 0xac9   : > { %9703 = vpow2.f32 %v8388_v8  ;;  %v12426_v50 = vadd.f32 %v8600_v18, %v7147_v38  ;;  %v7274_v38 = vmul.f32 0.06, %v5694_v58  ;;  %v5696_v18 = vld [vmem:[%s11399_s20 + $0x48] sm:$0xff] }
 0xaca   : > { %v8602_v33 = vpop.f32.mrf.mxu1 }
 0xacb   : > { %v8389_v7 = vmul.f32 -1.442695, %v12426_v50  ;;  %v8603_v59 = vadd.f32 %v8602_v33, %v8601_v16  ;;  %v5695_v33 = vld [vmem:[%s11399_s20 + $0x40] sm:$0xff] }
 0xacc   : > { %v8604_v0 = vpop.f32.mrf.mxu1 }
 0xacd   : > { %9705 = vpow2.f32 %v8389_v7  ;;  %v12429_v62 = vadd.f32 %v8603_v59, %v7150_v24  ;;  %v12491_v24 = vld [vmem:[%s12688_s16 + $0x10] sm:$0xff]   ;;  %v7276_v59 = vmul.f32 0.06, %v5696_v18 }
 0xace   : > { %v8605_v3 = vpop.f32.mrf.mxu1 }
 0xacf   : > { %v8390_v19 = vmul.f32 -1.442695, %v12429_v62  ;;  %v8606_v57 = vadd.f32 %v8605_v3, %v8604_v0  ;;  %v7275_v0 = vmul.f32 0.06, %v5695_v33  ;;  %v12501_v3 = vld [vmem:[%s12688_s16 + $0x8] sm:$0xff]  }
 0xad0   : > { %v8607_v20 = vpop.f32.mrf.mxu1 }
 0xad1   : > { %9707 = vpow2.f32 %v8390_v19  ;;  %v12432_v28 = vadd.f32 %v8606_v57, %v7155_v41  ;;  %v5697_v57 = vld [vmem:[%s11399_s20 + $0x50] sm:$0xff] }
 0xad2   : > { %v9702_v22 = vpop.eup %9701  ;;  %v8608_v6 = vpop.f32.mrf.mxu1 }
 0xad3   : > { %v8391_v61 = vmul.f32 -1.442695, %v12432_v28  ;;  %v8609_v36 = vadd.f32 %v8608_v6, %v8607_v20  ;;  %v7253_v17 = vadd.f32 1.0, %v9702_v22  ;;  %v12510_v20 = vld [vmem:[%s12688_s16] sm:$0xff]   ;;  %v7278_v6 = vmul.f32 0.06, %v5698_v52 }
 0xad4   : > { %v8610_v47 = vpop.f32.mrf.mxu1 }
 0xad5   : > { %v12435_v9 = vadd.f32 %v8609_v36, %v7158_v2  ;;  %9709 = vpow2.f32 %v8391_v61  ;;  %v7277_v2 = vmul.f32 0.06, %v5697_v57  ;;  %v5700_v36 = vld [vmem:[%s11399_s20 + $0x68] sm:$0xff] }
 0xad6   : > { %v9704_v42 = vpop.eup %9703  ;;  %v8611_v29 = vpop.f32.mrf.mxu1  ;;  %9711 = vrcp.f32 %v7253_v17 }
 0xad7   : > { %v7254_v31 = vadd.f32 1.0, %v9704_v42  ;;  %v8392_v10 = vmul.f32 -1.442695, %v12435_v9  ;;  %v8612_v43 = vadd.f32 %v8611_v29, %v8610_v47  ;;  %v5699_v47 = vld [vmem:[%s11399_s20 + $0x60] sm:$0xff]  ;;  %v7280_v29 = vmul.f32 0.06, %v5700_v36 }
 0xad8   : > { %v8613_v56 = vpop.f32.mrf.mxu1 }
 0xad9   : > { %9713 = vrcp.f32 %v7254_v31  ;;  %v12438_v39 = vadd.f32 %v8612_v43, %v7163_v53  ;;  %v7279_v53 = vmul.f32 0.06, %v5699_v47 }
 0xada   : > { %v9706_v40 = vpop.eup %9705  ;;  %9715 = vpow2.f32 %v8392_v10  ;;  %v8614_v44 = vpop.f32.mrf.mxu1 }
 0xadb   : > { %v8393_v54 = vmul.f32 -1.442695, %v12438_v39  ;;  %v7255_v60 = vadd.f32 1.0, %v9706_v40 }
 0xadd   : > { %9717 = vpow2.f32 %v8393_v54  ;;  %v12527_v54 = vld [vmem:[%s12685_s13] ss:$0 sm:$0xff] }
 0xade   : > { %v9708_v21 = vpop.eup %9707  ;;  %9719 = vrcp.f32 %v7255_v60 }
 0xadf   : > { %v7256_v35 = vadd.f32 1.0, %v9708_v21 }
 0xae1   : > { %9721 = vrcp.f32 %v7256_v35 }
 0xae2   : > { %v9710_v46 = vpop.eup %9709 }
 0xae3   : > { %v9712_v25 = vpop.eup %9711  ;;  %v7257_v15 = vadd.f32 1.0, %v9710_v46 }
 0xae4   : > { %v7281_v16 = vadd.f32 %v9712_v25, %v7274_v38 }
 0xae5   : > { %9723 = vrcp.f32 %v7257_v15 }
 0xae6   : > { %v9714_v55 = vpop.eup %9713 }
 0xae7   : > { %v9716_v51 = vpop.eup %9715  ;;  %v7288_v34 = vpack.c.bf16 %v9714_v55, %v9712_v25  ;;  %v7282_v19 = vadd.f32 %v9714_v55, %v7275_v0 }
 0xae8   : > { %v7258_v12 = vadd.f32 1.0, %v9716_v51 }
 0xae9   : > { %8780 = vmatmul.mubr.msk.bf16.vlgmr.msra.gmra.mxu0 %vm5045_vm13, %v7288_v34 }
 0xaea   : > { %9725 = vrcp.f32 %v7258_v12  ;;  %8783 = vmatprep.mubr.msk.bf16.mxu0 %vm10326_vm12, %v12770_v32  ;;  %8852 = vmatpush3.bf16.msra.mxu0 %v12447_v14  ;;  %v9718_v37 = vpop.eup %9717 }
 0xaeb   : > { %8853 = vmatprep.subr.bf16.mxu0 %v12770_v32  ;;  %v7259_v13 = vadd.f32 1.0, %v9718_v37  ;;  %v9720_v26 = vpop.eup %9719 }
 0xaec   : > { %v7283_v41 = vadd.f32 %v9720_v26, %v7276_v59 }
 0xaed   : > { %9727 = vrcp.f32 %v7259_v13 }
 0xaee   : > { %v9722_v63 = vpop.eup %9721  ;;  %8854 = vmatpush3.bf16.msra.mxu0 %v12454_v30  ;;  %v7292_v22 = vpack.c.bf16 %v7283_v41, %v7282_v19 }
 0xaef   : > { %v7289_v1 = vpack.c.bf16 %v9722_v63, %v9720_v26  ;;  %8855 = vmatprep.subr.bf16.mxu0 %v12770_v32  ;;  %v7284_v17 = vadd.f32 %v9722_v63, %v7277_v2 }
 0xaf1   : > { %8784 = vmatmul.mubr.msk.bf16.gmra.mxu0 %vm5045_vm13, %v7289_v1 }
 0xaf2   : > { %8787 = vmatprep.mubr.msk.bf16.mxu0 %vm10326_vm12, %v12770_v32  ;;  %8856 = vmatpush3.bf16.msra.mxu0 %v12464_v45  ;;  %v9724_v5 = vpop.eup %9723 }
 0xaf3   : > { %8857 = vmatprep.subr.bf16.mxu0 %v12770_v32  ;;  %v7285_v61 = vadd.f32 %v9724_v5, %v7278_v6 }
 0xaf5   : > { %v7293_v42 = vpack.c.bf16 %v7285_v61, %v7284_v17 }
 0xaf6   : > { %8858 = vmatpush3.bf16.msra.mxu0 %v12471_v4 }
 0xaf7   : > { %v9726_v27 = vpop.eup %9725  ;;  %8859 = vmatprep.subr.bf16.mxu0 %v12770_v32 }
 0xaf8   : > { %v7290_v23 = vpack.c.bf16 %v9726_v27, %v9724_v5  ;;  %v7286_v10 = vadd.f32 %v9726_v27, %v7279_v53 }
 0xafa   : > { %8788 = vmatmul.mubr.msk.bf16.gmra.mxu0 %vm5045_vm13, %v7290_v23  ;;  %v9728_v8 = vpop.eup %9727 }
 0xafb   : > { %8791 = vmatprep.mubr.msk.bf16.mxu0 %vm10326_vm12, %v12770_v32  ;;  %8860 = vmatpush3.bf16.msra.mxu0 %v12482_v48  ;;  %v7291_v7 = vpack.c.bf16 %v7281_v16, %v9728_v8  ;;  %v7287_v31 = vadd.f32 %v9728_v8, %v7280_v29 }
 0xafc   : > { %8861 = vmatprep.subr.bf16.mxu0 %v12770_v32 }
 0xafd   : > { %v7294_v43 = vpack.c.bf16 %v7287_v31, %v7286_v10 }
 0xaff   : > { %8862 = vmatpush3.bf16.msra.mxu0 %v12491_v24 }
 0xb00   : > { %8863 = vmatprep.subr.bf16.mxu0 %v12770_v32 }
 0xb02   : > { %8792 = vmatmul.mubr.msk.bf16.gmra.mxu0 %vm5045_vm13, %v7291_v7 }
 0xb03   : > { %8795 = vmatprep.mubr.msk.bf16.mxu0 %vm10326_vm12, %v12770_v32  ;;  %8864 = vmatpush3.bf16.msra.mxu0 %v12501_v3 }
 0xb04   : > { %8865 = vmatprep.subr.bf16.mxu0 %v12770_v32 }
 0xb07   : > { %8866 = vmatpush3.bf16.msra.mxu0 %v12510_v20 }
 0xb0a   : > { %8796 = vmatmul.mubr.msk.bf16.gmra.mxu0 %vm5045_vm13, %v7292_v22 }
 0xb0b   : > { %8799 = vmatprep.mubr.msk.bf16.mxu0 %vm10326_vm12, %v12770_v32 }
 0xb12   : > { %8800 = vmatmul.mubr.msk.bf16.gmra.mxu0 %vm5045_vm13, %v7293_v42 }
 0xb13   : > { %8803 = vmatprep.mubr.msk.bf16.mxu0 %vm10326_vm12, %v12770_v32 }
 0xb1a   : > { %8804 = vmatmul.mubr.msk.bf16.gmra.mxu0 %vm5045_vm13, %v7294_v43 }
 0xb1b   : > { %8867 = vmatprep.mubr.msk.bf16.mxu0 %vm10326_vm12, %v12770_v32 }
 0xba9   : > { %v7350_v56 = vpop.f32.mrf.mxu0 }
 0xbaa   : > { %v7351_v60 = vadd.f32 %v12527_v54, %v7350_v56 }
 0xbab   : > { %v8781_v40 = vpop.f32.mrf.mxu0 }
 0xbad   : > { %v7353_v44 = vpop.f32.mrf.mxu0 }
 0xbae   : > { %v7354_v21 = vadd.f32 %v12527_v54, %v7353_v44 }
 0xbaf   : > { %v8782_v35 = vpop.f32.mrf.mxu0 }
 0xbb0   : > { %v7405_v46 = vpack.c.bf16 %v7354_v21, %v7351_v60 }
 0xbb1   : > { %v7358_v25 = vpop.f32.mrf.mxu0 }
 0xbb2   : > { %vm7412_vm10 = vcmp.gt.bf16.partialorder %v7405_v46, 0  ;;  %v7419_v15 = vmul.bf16 1045249613, %v7405_v46  ;;  %v7359_v12 = vadd.f32 %v12527_v54, %v7358_v25 }
 0xbb3   : > { %v8785_v55 = vpop.f32.mrf.mxu0 }
 0xbb4   : > { %v7426_v51 = vsel %vm7412_vm10, %v7405_v46, %v7419_v15 }
 0xbb5   : > { %v7361_v34 = vpop.f32.mrf.mxu0  ;;  %8824 = vmatmul.mubr.bf16.vlgmr.msra.gmra.mxu1 %v7426_v51 }
 0xbb6   : > { %v7362_v37 = vadd.f32 %v12527_v54, %v7361_v34  ;;  %8827 = vmatprep.mubr.msk.bf16.mxu1 %vm10326_vm12, %v12770_v32  ;;  %8903 = vmatpush3.bf16.msra.mxu1 %v12447_v14  ;;  %v12575_v34 = vld [vmem:[%s12687_s15] ss:$0 sm:$0xff] }
 0xbb7   : > { %v8786_v13 = vpop.f32.mrf.mxu0  ;;  %8896 = vmatprep.subr.bf16.mxu1 %v12770_v32 }
 0xbb8   : > { %v7406_v26 = vpack.c.bf16 %v7362_v37, %v7359_v12 }
 0xbba   : > { %v7420_v63 = vmul.bf16 1045249613, %v7406_v26  ;;  %v7366_v1 = vpop.f32.mrf.mxu0  ;;  %vm7413_vm11 = vcmp.gt.bf16.partialorder %v7406_v26, 0  ;;  %8904 = vmatpush3.bf16.msra.mxu1 %v12454_v30 }
 0xbbb   : > { %8897 = vmatprep.subr.bf16.mxu1 %v12770_v32  ;;  %v7367_v14 = vadd.f32 %v12527_v54, %v7366_v1 }
 0xbbc   : > { %v8789_v5 = vpop.f32.mrf.mxu0  ;;  %v7427_v27 = vsel %vm7413_vm11, %v7406_v26, %v7420_v63 }
 0xbbd   : > { %8828 = vmatmul.mubr.bf16.gmra.mxu1 %v7427_v27 }
 0xbbe   : > { %v7369_v58 = vpop.f32.mrf.mxu0  ;;  %8831 = vmatprep.mubr.msk.bf16.mxu1 %vm10326_vm12, %v12770_v32  ;;  %8905 = vmatpush3.bf16.msra.mxu1 %v12464_v45 }
 0xbbf   : > { %v7370_v23 = vadd.f32 %v12527_v54, %v7369_v58  ;;  %8898 = vmatprep.subr.bf16.mxu1 %v12770_v32 }
 0xbc0   : > { %v8790_v38 = vpop.f32.mrf.mxu0 }
 0xbc1   : > { %v7407_v8 = vpack.c.bf16 %v7370_v23, %v7367_v14 }
 0xbc2   : > { %v7374_v30 = vpop.f32.mrf.mxu0  ;;  %8906 = vmatpush3.bf16.msra.mxu1 %v12471_v4 }
 0xbc3   : > { %v7421_v18 = vmul.bf16 1045249613, %v7407_v8  ;;  %vm7414_vm14 = vcmp.gt.bf16.partialorder %v7407_v8, 0  ;;  %8899 = vmatprep.subr.bf16.mxu1 %v12770_v32  ;;  %v7375_v45 = vadd.f32 %v12527_v54, %v7374_v30 }
 0xbc4   : > { %v8793_v16 = vpop.f32.mrf.mxu0 }
 0xbc5   : > { %v7428_v33 = vsel %vm7414_vm14, %v7407_v8, %v7421_v18 }
 0xbc6   : > { %v7377_v7 = vpop.f32.mrf.mxu0  ;;  %8832 = vmatmul.mubr.bf16.gmra.mxu1 %v7428_v33 }
 0xbc7   : > { %v7378_v59 = vadd.f32 %v12527_v54, %v7377_v7  ;;  %8835 = vmatprep.mubr.msk.bf16.mxu1 %vm10326_vm12, %v12770_v32  ;;  %8907 = vmatpush3.bf16.msra.mxu1 %v12482_v48 }
 0xbc8   : > { %v8794_v0 = vpop.f32.mrf.mxu0  ;;  %8900 = vmatprep.subr.bf16.mxu1 %v12770_v32 }
 0xbc9   : > { %v7408_v4 = vpack.c.bf16 %v7378_v59, %v7375_v45 }
 0xbca   : > { %v7382_v41 = vpop.f32.mrf.mxu0 }
 0xbcb   : > { %v7422_v52 = vmul.bf16 1045249613, %v7408_v4  ;;  %vm7415_vm15 = vcmp.gt.bf16.partialorder %v7408_v4, 0  ;;  %8908 = vmatpush3.bf16.msra.mxu1 %v12491_v24  ;;  %v7383_v6 = vadd.f32 %v12527_v54, %v7382_v41 }
 0xbcc   : > { %v8797_v19 = vpop.f32.mrf.mxu0  ;;  %8901 = vmatprep.subr.bf16.mxu1 %v12770_v32 }
 0xbcd   : > { %v7429_v57 = vsel %vm7415_vm15, %v7408_v4, %v7422_v52 }
 0xbce   : > { %v7385_v22 = vpop.f32.mrf.mxu0  ;;  %8836 = vmatmul.mubr.bf16.gmra.mxu1 %v7429_v57 }
 0xbcf   : > { %v7386_v2 = vadd.f32 %v12527_v54, %v7385_v22  ;;  %8839 = vmatprep.mubr.msk.bf16.mxu1 %vm10326_vm12, %v12770_v32  ;;  %8909 = vmatpush3.bf16.msra.mxu1 %v12501_v3 }
 0xbd0   : > { %v8798_v48 = vpop.f32.mrf.mxu0  ;;  %8902 = vmatprep.subr.bf16.mxu1 %v12770_v32 }
 0xbd1   : > { %v7409_v61 = vpack.c.bf16 %v7386_v2, %v7383_v6 }
 0xbd2   : > { %v7390_v24 = vpop.f32.mrf.mxu0 }
 0xbd3   : > { %v7423_v36 = vmul.bf16 1045249613, %v7409_v61  ;;  %vm7416_vm2 = vcmp.gt.bf16.partialorder %v7409_v61, 0  ;;  %8910 = vmatpush3.bf16.msra.mxu1 %v12510_v20  ;;  %v7391_v29 = vadd.f32 %v12527_v54, %v7390_v24 }
 0xbd4   : > { %v8801_v17 = vpop.f32.mrf.mxu0 }
 0xbd5   : > { %v7430_v47 = vsel %vm7416_vm2, %v7409_v61, %v7423_v36 }
 0xbd6   : > { %v7393_v42 = vpop.f32.mrf.mxu0  ;;  %8840 = vmatmul.mubr.bf16.gmra.mxu1 %v7430_v47 }
 0xbd7   : > { %v7394_v53 = vadd.f32 %v12527_v54, %v7393_v42  ;;  %8843 = vmatprep.mubr.msk.bf16.mxu1 %vm10326_vm12, %v12770_v32 }
 0xbd8   : > { %v8802_v3 = vpop.f32.mrf.mxu0 }
 0xbd9   : > { %v7410_v31 = vpack.c.bf16 %v7394_v53, %v7391_v29 }
 0xbda   : > { %v7398_v10 = vpop.f32.mrf.mxu0 }
 0xbdb   : > { %v7424_v43 = vmul.bf16 1045249613, %v7410_v31  ;;  %vm7417_vm3 = vcmp.gt.bf16.partialorder %v7410_v31, 0  ;;  %v7399_v20 = vadd.f32 %v12527_v54, %v7398_v10 }
 0xbdc   : > { %v8805_v56 = vpop.f32.mrf.mxu0 }
 0xbdd   : > { %v7431_v40 = vsel %vm7417_vm3, %v7410_v31, %v7424_v43 }
 0xbde   : > { %v7401_v44 = vpop.f32.mrf.mxu0  ;;  %8844 = vmatmul.mubr.bf16.gmra.mxu1 %v7431_v40 }
 0xbdf   : > { %v7402_v60 = vadd.f32 %v12527_v54, %v7401_v44  ;;  %8847 = vmatprep.mubr.msk.bf16.mxu1 %vm10326_vm12, %v12770_v32 }
 0xbe0   : > { %v8806_v21 = vpop.f32.mrf.mxu0 }
 0xbe1   : > { %v7411_v35 = vpack.c.bf16 %v7402_v60, %v7399_v20 }
 0xbe3   : > { %v7425_v46 = vmul.bf16 1045249613, %v7411_v35  ;;  %vm7418_vm4 = vcmp.gt.bf16.partialorder %v7411_v35, 0 }
 0xbe5   : > { %v7432_v25 = vsel %vm7418_vm4, %v7411_v35, %v7425_v46 }
 0xbe6   : > { %8848 = vmatmul.mubr.bf16.gmra.mxu1 %v7432_v25 }
 0xbe7   : > { %8883 = vmatprep.mubr.msk.bf16.mxu1 %vm10326_vm12, %v12770_v32 }
 0xc75   : > { %v7467_v15 = vpop.f32.mrf.mxu1 }
 0xc76   : > { %v7468_v54 = vadd.f32 %v12575_v34, %v7467_v15 }
 0xc77   : > { %v8825_v55 = vpop.f32.mrf.mxu1 }
 0xc79   : > { %v7470_v51 = vpop.f32.mrf.mxu1 }
 0xc7a   : > { %v7471_v12 = vadd.f32 %v12575_v34, %v7470_v51 }
 0xc7b   : > { %v8826_v37 = vpop.f32.mrf.mxu1 }
 0xc7c   : > { %v7522_v13 = vpack.c.bf16 %v7471_v12, %v7468_v54 }
 0xc7d   : > { %v7475_v26 = vpop.f32.mrf.mxu1 }
 0xc7e   : > { %vm7529_vm5 = vcmp.gt.bf16.partialorder %v7522_v13, 0  ;;  %v7536_v63 = vmul.bf16 1045249613, %v7522_v13  ;;  %v7476_v58 = vadd.f32 %v12575_v34, %v7475_v26 }
 0xc7f   : > { %v8829_v1 = vpop.f32.mrf.mxu1 }
 0xc80   : > { %v7543_v5 = vsel %vm7529_vm5, %v7522_v13, %v7536_v63  ;;  %v12604_v1 = vld [vmem:[%s12689_s17] ss:$0 sm:$0xff] }
 0xc81   : > { %v7478_v27 = vpop.f32.mrf.mxu1  ;;  %8868 = vmatmul.mubr.bf16.vlgmr.msra.gmra.mxu0 %v7543_v5 }
 0xc82   : > { %v7479_v14 = vadd.f32 %v12575_v34, %v7478_v27  ;;  %8871 = vmatprep.mubr.msk.bf16.mxu0 %vm10326_vm12, %v12770_v32 }
 0xc83   : > { %v8830_v23 = vpop.f32.mrf.mxu1 }
 0xc84   : > { %v7523_v38 = vpack.c.bf16 %v7479_v14, %v7476_v58 }
 0xc86   : > { %v7537_v8 = vmul.bf16 1045249613, %v7523_v38  ;;  %v7483_v30 = vpop.f32.mrf.mxu1  ;;  %vm7530_vm6 = vcmp.gt.bf16.partialorder %v7523_v38, 0 }
 0xc87   : > { %v7484_v7 = vadd.f32 %v12575_v34, %v7483_v30 }
 0xc88   : > { %v8833_v18 = vpop.f32.mrf.mxu1  ;;  %v7544_v16 = vsel %vm7530_vm6, %v7523_v38, %v7537_v8 }
 0xc89   : > { %8872 = vmatmul.mubr.bf16.gmra.mxu0 %v7544_v16 }
 0xc8a   : > { %v7486_v33 = vpop.f32.mrf.mxu1  ;;  %8875 = vmatprep.mubr.msk.bf16.mxu0 %vm10326_vm12, %v12770_v32 }
 0xc8b   : > { %v7487_v45 = vadd.f32 %v12575_v34, %v7486_v33 }
 0xc8c   : > { %v8834_v59 = vpop.f32.mrf.mxu1 }
 0xc8d   : > { %v7524_v0 = vpack.c.bf16 %v7487_v45, %v7484_v7 }
 0xc8e   : > { %v7491_v4 = vpop.f32.mrf.mxu1 }
 0xc8f   : > { %v7538_v41 = vmul.bf16 1045249613, %v7524_v0  ;;  %vm7531_vm7 = vcmp.gt.bf16.partialorder %v7524_v0, 0  ;;  %v7492_v22 = vadd.f32 %v12575_v34, %v7491_v4 }
 0xc90   : > { %v8837_v52 = vpop.f32.mrf.mxu1 }
 0xc91   : > { %v7545_v19 = vsel %vm7531_vm7, %v7524_v0, %v7538_v41 }
 0xc92   : > { %v7494_v57 = vpop.f32.mrf.mxu1  ;;  %8876 = vmatmul.mubr.bf16.gmra.mxu0 %v7545_v19 }
 0xc93   : > { %v7495_v6 = vadd.f32 %v12575_v34, %v7494_v57  ;;  %8879 = vmatprep.mubr.msk.bf16.mxu0 %vm10326_vm12, %v12770_v32 }
 0xc94   : > { %v8838_v2 = vpop.f32.mrf.mxu1 }
 0xc95   : > { %v7525_v48 = vpack.c.bf16 %v7495_v6, %v7492_v22 }
 0xc96   : > { %v7499_v61 = vpop.f32.mrf.mxu1 }
 0xc97   : > { %v7539_v24 = vmul.bf16 1045249613, %v7525_v48  ;;  %vm7532_vm8 = vcmp.gt.bf16.partialorder %v7525_v48, 0  ;;  %v7500_v42 = vadd.f32 %v12575_v34, %v7499_v61 }
 0xc98   : > { %v8841_v36 = vpop.f32.mrf.mxu1 }
 0xc99   : > { %v7546_v17 = vsel %vm7532_vm8, %v7525_v48, %v7539_v24 }
 0xc9a   : > { %v7502_v47 = vpop.f32.mrf.mxu1  ;;  %8880 = vmatmul.mubr.bf16.gmra.mxu0 %v7546_v17 }
 0xc9b   : > { %v7503_v29 = vadd.f32 %v12575_v34, %v7502_v47 }
 0xc9c   : > { %v8842_v53 = vpop.f32.mrf.mxu1 }
 0xc9d   : > { %v7526_v3 = vpack.c.bf16 %v7503_v29, %v7500_v42 }
 0xc9e   : > { %v7507_v31 = vpop.f32.mrf.mxu1 }
 0xc9f   : > { %vm7533_vm9 = vcmp.gt.bf16.partialorder %v7526_v3, 0  ;;  %v7540_v10 = vmul.bf16 1045249613, %v7526_v3  ;;  %v7508_v44 = vadd.f32 %v12575_v34, %v7507_v31 }
 0xca0   : > { %v8845_v43 = vpop.f32.mrf.mxu1 }
 0xca1   : > { %v7547_v56 = vsel %vm7533_vm9, %v7526_v3, %v7540_v10 }
 0xca2   : > { %v7510_v40 = vpop.f32.mrf.mxu1  ;;  %8884 = vmatmul.mubr.bf16.vlgmr.msra.gmra.mxu1 %v7547_v56 }
 0xca3   : > { %v7511_v20 = vadd.f32 %v12575_v34, %v7510_v40  ;;  %8887 = vmatprep.mubr.msk.bf16.mxu1 %vm10326_vm12, %v12770_v32 }
 0xca4   : > { %v8846_v60 = vpop.f32.mrf.mxu1 }
 0xca5   : > { %v7527_v21 = vpack.c.bf16 %v7511_v20, %v7508_v44 }
 0xca6   : > { %v7515_v35 = vpop.f32.mrf.mxu1 }
 0xca7   : > { %v7541_v46 = vmul.bf16 1045249613, %v7527_v21  ;;  %vm7534_vm10 = vcmp.gt.bf16.partialorder %v7527_v21, 0  ;;  %v7516_v51 = vadd.f32 %v12575_v34, %v7515_v35 }
 0xca8   : > { %v8849_v25 = vpop.f32.mrf.mxu1 }
 0xca9   : > { %v7548_v15 = vsel %vm7534_vm10, %v7527_v21, %v7541_v46 }
 0xcaa   : > { %v7518_v55 = vpop.f32.mrf.mxu1  ;;  %8888 = vmatmul.mubr.bf16.gmra.mxu1 %v7548_v15 }
 0xcab   : > { %v7519_v54 = vadd.f32 %v12575_v34, %v7518_v55  ;;  %8891 = vmatprep.mubr.msk.bf16.mxu1 %vm10326_vm12, %v12770_v32 }
 0xcac   : > { %v8850_v12 = vpop.f32.mrf.mxu1 }
 0xcad   : > { %v7528_v37 = vpack.c.bf16 %v7519_v54, %v7516_v51 }
 0xcaf   : > { %v7542_v13 = vmul.bf16 1045249613, %v7528_v37  ;;  %vm7535_vm11 = vcmp.gt.bf16.partialorder %v7528_v37, 0 }
 0xcb1   : > { %v7549_v26 = vsel %vm7535_vm11, %v7528_v37, %v7542_v13 }
 0xcb2   : > { %8892 = vmatmul.mubr.bf16.gmra.mxu1 %v7549_v26 }
 0xd41   : > { %v7584_v63 = vpop.f32.mrf.mxu0 }
 0xd42   : > { %v7585_v5 = vadd.f32 %v12604_v1, %v7584_v63 }
 0xd43   : > { %v8869_v27 = vpop.f32.mrf.mxu0 }
 0xd44   : > { %v8401_v58 = vmul.f32 -1.442695, %v7585_v5 }
 0xd45   : > { %v7587_v34 = vpop.f32.mrf.mxu0 }
 0xd46   : > { %9729 = vpow2.f32 %v8401_v58  ;;  %v7588_v32 = vadd.f32 %v12604_v1, %v7587_v34 }
 0xd47   : > { %v8870_v14 = vpop.f32.mrf.mxu0 }
 0xd48   : > { %v8402_v23 = vmul.f32 -1.442695, %v7588_v32 }
 0xd49   : > { %v7592_v38 = vpop.f32.mrf.mxu0 }
 0xd4a   : > { %9731 = vpow2.f32 %v8402_v23  ;;  %v7593_v8 = vadd.f32 %v12604_v1, %v7592_v38 }
 0xd4b   : > { %v8873_v30 = vpop.f32.mrf.mxu0 }
 0xd4c   : > { %v8403_v18 = vmul.f32 -1.442695, %v7593_v8 }
 0xd4d   : > { %v7595_v16 = vpop.f32.mrf.mxu0 }
 0xd4e   : > { %9733 = vpow2.f32 %v8403_v18  ;;  %v7596_v33 = vadd.f32 %v12604_v1, %v7595_v16 }
 0xd4f   : > { %v8874_v7 = vpop.f32.mrf.mxu0 }
 0xd50   : > { %v8404_v45 = vmul.f32 -1.442695, %v7596_v33 }
 0xd52   : > { %9735 = vpow2.f32 %v8404_v45  ;;  %v7600_v59 = vpop.f32.mrf.mxu0 }
 0xd53   : > { %v9730_v0 = vpop.eup %9729  ;;  %v7601_v4 = vadd.f32 %v12604_v1, %v7600_v59 }
 0xd54   : > { %v7681_v41 = vadd.f32 1.0, %v9730_v0  ;;  %v8877_v52 = vpop.f32.mrf.mxu0 }
 0xd55   : > { %v8405_v19 = vmul.f32 -1.442695, %v7601_v4 }
 0xd56   : > { %9737 = vrcp.f32 %v7681_v41  ;;  %v7603_v57 = vpop.f32.mrf.mxu0 }
 0xd57   : > { %v9732_v22 = vpop.eup %9731  ;;  %9739 = vpow2.f32 %v8405_v19  ;;  %v7604_v6 = vadd.f32 %v12604_v1, %v7603_v57 }
 0xd58   : > { %v7682_v2 = vadd.f32 1.0, %v9732_v22  ;;  %v8878_v48 = vpop.f32.mrf.mxu0 }
 0xd59   : > { %v8406_v61 = vmul.f32 -1.442695, %v7604_v6 }
 0xd5a   : > { %9741 = vrcp.f32 %v7682_v2  ;;  %v7608_v24 = vpop.f32.mrf.mxu0 }
 0xd5b   : > { %v9734_v36 = vpop.eup %9733  ;;  %9743 = vpow2.f32 %v8406_v61  ;;  %v7609_v17 = vadd.f32 %v12604_v1, %v7608_v24 }
 0xd5c   : > { %v7683_v47 = vadd.f32 1.0, %v9734_v36  ;;  %v8881_v42 = vpop.f32.mrf.mxu0 }
 0xd5d   : > { %v8407_v29 = vmul.f32 -1.442695, %v7609_v17 }
 0xd5e   : > { %9745 = vrcp.f32 %v7683_v47  ;;  %v7611_v53 = vpop.f32.mrf.mxu0 }
 0xd5f   : > { %v9736_v3 = vpop.eup %9735  ;;  %9747 = vpow2.f32 %v8407_v29  ;;  %v7612_v31 = vadd.f32 %v12604_v1, %v7611_v53 }
 0xd60   : > { %v7684_v10 = vadd.f32 1.0, %v9736_v3  ;;  %v8882_v43 = vpop.f32.mrf.mxu0 }
 0xd61   : > { %v8408_v56 = vmul.f32 -1.442695, %v7612_v31 }
 0xd62   : > { %9749 = vrcp.f32 %v7684_v10  ;;  %v7616_v40 = vpop.f32.mrf.mxu1 }
 0xd63   : > { %v9738_v44 = vpop.eup %9737  ;;  %9751 = vpow2.f32 %v8408_v56  ;;  %v7617_v20 = vadd.f32 %v12604_v1, %v7616_v40 }
 0xd64   : > { %v9740_v60 = vpop.eup %9739  ;;  %v8885_v21 = vpop.f32.mrf.mxu1  ;;  %7730 = vrot.lane.b32.xlu0 %v9738_v44, %s10327_s19 }
 0xd65   : > { %v7685_v35 = vadd.f32 1.0, %v9740_v60  ;;  %v8409_v46 = vmul.f32 -1.442695, %v7617_v20 }
 0xd66   : > { %v7619_v25 = vpop.f32.mrf.mxu1 }
 0xd67   : > { %v9742_v15 = vpop.eup %9741  ;;  %9753 = vrcp.f32 %v7685_v35  ;;  %v7620_v55 = vadd.f32 %v12604_v1, %v7619_v25 }
 0xd68   : > { %v9744_v51 = vpop.eup %9743  ;;  %9755 = vpow2.f32 %v8409_v46  ;;  %v8886_v54 = vpop.f32.mrf.mxu1  ;;  %7732 = vrot.lane.b32.xlu1 %v9742_v15, %s10327_s19 }
 0xd69   : > { %v7686_v12 = vadd.f32 1.0, %v9744_v51  ;;  %v8410_v37 = vmul.f32 -1.442695, %v7620_v55 }
 0xd6a   : > { %v7624_v13 = vpop.f32.mrf.mxu1 }
 0xd6b   : > { %v9746_v26 = vpop.eup %9745  ;;  %9757 = vrcp.f32 %v7686_v12  ;;  %v7625_v63 = vadd.f32 %v12604_v1, %v7624_v13 }
 0xd6c   : > { %v9748_v5 = vpop.eup %9747  ;;  %9759 = vpow2.f32 %v8410_v37  ;;  %v8889_v27 = vpop.f32.mrf.mxu1  ;;  %7734 = vrot.lane.b32.xlu0 %v9746_v26, %s10327_s19 }
 0xd6d   : > { %v7687_v58 = vadd.f32 1.0, %v9748_v5  ;;  %v8411_v34 = vmul.f32 -1.442695, %v7625_v63 }
 0xd6e   : > { %v7627_v32 = vpop.f32.mrf.mxu1 }
 0xd6f   : > { %v9750_v14 = vpop.eup %9749  ;;  %9761 = vrcp.f32 %v7687_v58  ;;  %v7628_v23 = vadd.f32 %v12604_v1, %v7627_v32 }
 0xd70   : > { %v9752_v38 = vpop.eup %9751  ;;  %9763 = vpow2.f32 %v8411_v34  ;;  %v8890_v8 = vpop.f32.mrf.mxu1  ;;  %7736 = vrot.lane.b32.xlu1 %v9750_v14, %s10327_s19 }
 0xd71   : > { %v7688_v30 = vadd.f32 1.0, %v9752_v38  ;;  %v8412_v18 = vmul.f32 -1.442695, %v7628_v23 }
 0xd72   : > { %v7632_v16 = vpop.f32.mrf.mxu1 }
 0xd73   : > { %9765 = vrcp.f32 %v7688_v30  ;;  %v7633_v33 = vadd.f32 %v12604_v1, %v7632_v16 }
 0xd74   : > { %v9754_v7 = vpop.eup %9753  ;;  %9767 = vpow2.f32 %v8412_v18  ;;  %v8893_v45 = vpop.f32.mrf.mxu1 }
 0xd75   : > { %v9756_v59 = vpop.eup %9755  ;;  %v8413_v0 = vmul.f32 -1.442695, %v7633_v33  ;;  %7738 = vrot.lane.b32.xlu0 %v9754_v7, %s10327_s19 }
 0xd76   : > { %v7689_v4 = vadd.f32 1.0, %v9756_v59  ;;  %v7635_v41 = vpop.f32.mrf.mxu1 }
 0xd77   : > { %9769 = vpow2.f32 %v8413_v0  ;;  %v7636_v52 = vadd.f32 %v12604_v1, %v7635_v41 }
 0xd78   : > { %v9758_v19 = vpop.eup %9757  ;;  %9771 = vrcp.f32 %v7689_v4  ;;  %v8894_v57 = vpop.f32.mrf.mxu1 }
 0xd79   : > { %v9760_v22 = vpop.eup %9759  ;;  %v8414_v6 = vmul.f32 -1.442695, %v7636_v52  ;;  %7740 = vrot.lane.b32.xlu1 %v9758_v19, %s10327_s19 }
 0xd7a   : > { %v7690_v2 = vadd.f32 1.0, %v9760_v22 }
 0xd7b   : > { %9773 = vpow2.f32 %v8414_v6 }
 0xd7c   : > { %v9762_v48 = vpop.eup %9761  ;;  %9775 = vrcp.f32 %v7690_v2 }
 0xd7d   : > { %v9764_v61 = vpop.eup %9763  ;;  %7742 = vrot.lane.b32.xlu0 %v9762_v48, %s10327_s19 }
 0xd7e   : > { %v7691_v24 = vadd.f32 1.0, %v9764_v61 }
 0xd80   : > { %v9766_v36 = vpop.eup %9765  ;;  %9777 = vrcp.f32 %v7691_v24 }
 0xd81   : > { %v9768_v17 = vpop.eup %9767  ;;  %7758 = vrot.lane.b32.xlu0 %v9766_v36, %s10328_s26 }
 0xd82   : > { %v7692_v1 = vadd.f32 1.0, %v9768_v17 }
 0xd84   : > { %v9770_v47 = vpop.eup %9769  ;;  %9779 = vrcp.f32 %v7692_v1 }
 0xd85   : > { %v9772_v42 = vpop.eup %9771  ;;  %v7693_v29 = vadd.f32 1.0, %v9770_v47 }
 0xd86   : > { %7760 = vrot.lane.b32.xlu1 %v9772_v42, %s10328_s26 }
 0xd87   : > { %9781 = vrcp.f32 %v7693_v29 }
 0xd88   : > { %v9774_v53 = vpop.eup %9773 }
 0xd89   : > { %v9776_v3 = vpop.eup %9775  ;;  %v7694_v31 = vadd.f32 1.0, %v9774_v53 }
 0xd8a   : > { %7762 = vrot.lane.b32.xlu0 %v9776_v3, %s10328_s26 }
 0xd8b   : > { %9783 = vrcp.f32 %v7694_v31 }
 0xd8d   : > { %v9778_v10 = vpop.eup %9777 }
 0xd8e   : > { %7764 = vrot.lane.b32.xlu1 %v9778_v10, %s10328_s26 }
 0xd91   : > { %v9780_v43 = vpop.eup %9779 }
 0xd92   : > { %7766 = vrot.lane.b32.xlu0 %v9780_v43, %s10328_s26 }
 0xd94   : > { %v9782_v56 = vpop.eup %9781 }
 0xd95   : > { %7768 = vrot.lane.b32.xlu1 %v9782_v56, %s10328_s26 }
 0xd98   : > { %v9784_v40 = vpop.eup %9783 }
 0xd99   : > { %7770 = vrot.lane.b32.xlu0 %v9784_v40, %s10328_s26 }
 0xdd6   : > { %v7731_v44 = vpop.permute.xlu0 %7730 }
 0xdd7   : > { %v7779_v25 = vsel %vm5045_vm13, %v12420_v49, %v7731_v44 }
 0xdda   : > { %v7733_v21 = vpop.permute.xlu1 %7732 }
 0xddb   : > { %v7780_v54 = vsel %vm5045_vm13, %v12423_v11, %v7733_v21 }
 0xdde   : > { %v7735_v20 = vpop.permute.xlu0 %7734 }
 0xddf   : > { %v7781_v49 = vsel %vm5045_vm13, %v12426_v50, %v7735_v20 }
 0xde2   : > { %v7737_v46 = vpop.permute.xlu1 %7736 }
 0xde3   : > { %v7782_v63 = vsel %vm5045_vm13, %v12429_v62, %v7737_v46 }
 0xde7   : > { %v7739_v60 = vpop.permute.xlu0 %7738 }
 0xde8   : > { %v7783_v27 = vsel %vm5045_vm13, %v12432_v28, %v7739_v60 }
 0xdeb   : > { %v7741_v55 = vpop.permute.xlu1 %7740 }
 0xdec   : > { %v7784_v34 = vsel %vm5045_vm13, %v12435_v9, %v7741_v55 }
 0xdef   : > { %v7743_v35 = vpop.permute.xlu0 %7742 }
 0xdf0   : > { %v7785_v62 = vsel %vm5045_vm13, %v12438_v39, %v7743_v35 }
 0xdf3   : > { %v7759_v15 = vpop.permute.xlu0 %7758 }
 0xdf4   : > { %v7786_v51 = vsel %vm5679_vm0, %v7779_v25, %v7759_v15 }
 0xdf5   : > { %7801 = vst.msk [vmem:[%s11997_s21 + $0x38] sm:$0xff] %vm7793_vm1, %v7786_v51 }
 0xdf8   : > { %v7761_v12 = vpop.permute.xlu1 %7760 }
 0xdf9   : > { %v7787_v37 = vsel %vm5679_vm0, %v7780_v54, %v7761_v12 }
 0xdfa   : > { %7802 = vst.msk [vmem:[%s11997_s21 + $0x40] sm:$0xff] %vm7793_vm1, %v7787_v37 }
 0xdfc   : > { %v7763_v13 = vpop.permute.xlu0 %7762 }
 0xdfd   : > { %v7788_v26 = vsel %vm5679_vm0, %v7781_v49, %v7763_v13 }
 0xdfe   : > { %7803 = vst.msk [vmem:[%s11997_s21 + $0x48] sm:$0xff] %vm7793_vm1, %v7788_v26 }
 0xe00   : > { %v7765_v5 = vpop.permute.xlu1 %7764 }
 0xe01   : > { %v7789_v11 = vsel %vm5679_vm0, %v7782_v63, %v7765_v5 }
 0xe02   : > { %7804 = vst.msk [vmem:[%s11997_s21 + $0x50] sm:$0xff] %vm7793_vm1, %v7789_v11 }
 0xe04   : > { %v7767_v58 = vpop.permute.xlu0 %7766 }
 0xe05   : > { %v7790_v50 = vsel %vm5679_vm0, %v7783_v27, %v7767_v58 }
 0xe06   : > { %7805 = vst.msk [vmem:[%s11997_s21 + $0x58] sm:$0xff] %vm7793_vm1, %v7790_v50 }
 0xe07   : > { %v7769_v32 = vpop.permute.xlu1 %7768 }
 0xe08   : > { %v7791_v14 = vsel %vm5679_vm0, %v7784_v34, %v7769_v32 }
 0xe09   : > { %7806 = vst.msk [vmem:[%s11997_s21 + $0x60] sm:$0xff] %vm7793_vm1, %v7791_v14 }
 0xe0b   : > { %v7771_v23 = vpop.permute.xlu0 %7770 }
 0xe0c   : > { %v7792_v38 = vsel %vm5679_vm0, %v7785_v62, %v7771_v23 }
 0xe0d   : > { %7807 = vst.msk [vmem:[%s11997_s21 + $0x68] sm:$0xff] %vm7793_vm1, %v7792_v38 }
 0xe0e PF: > { %s30_s27 = sadd.s32 1, %s10315_s27  }
 0xe0f   : > { %p27_p2 = scmp.ge.s32.totalorder %s30_s27, 4  }
 0xe11   :  { %29 = sbr.rel (!%p27_p2) target bundleno = 6 (0x6), region = 138 }
 0xe16   :  { %7830 = vsyncpa [#allocation3], 1 }
 0xe17   :  { %7832 = vsyncpa [#allocation3 + $0x1], 1 }
 0xe18   :  { %7833 = vsyncpa [#allocation5], 1 }

</bundles_post_ra>
